<compile_context>
chip_gen: v7x
topology: tpu7x:2x2x1
jax: 0.10.0
libtpu: 0.0.40
codegen_flags: <defaults>
</compile_context>

<pallas_src>
import jax
import jax.numpy as jnp
from jax import lax
from jax.experimental import pallas as pl
from jax.experimental.pallas import tpu as pltpu


def _round_up(n, m):
    return ((n + m - 1) // m) * m


_VMEM = pl.BlockSpec(memory_space=pltpu.MemorySpace.VMEM)
_UNROLL_T = 32  # fully unroll the recurrence for T <= this


# ----------------------------------------------------------------------------
# Pallas kernels
# ----------------------------------------------------------------------------
def lstm_stack_kernel(x_ref, wih_ref, whh_ref, b_ref, out_ref,
                      seq_scr, xg_scr, h_scr, c_scr):
    """Fused multi-layer LSTM over the full sequence.

    x_ref   : (T*Bp, P)      flattened time-major input (row = t*Bp + b), zero-padded
    wih_ref : (L, P, 4P)     input-to-hidden weights, gate g in cols [g*P, g*P+H)
    whh_ref : (L, P, 4P)     hidden-to-hidden weights (same gate packing)
    b_ref   : (L, 1, 4P)     combined bias b_ih + b_hh (same gate packing)
    out_ref : (T*Bp, P)      last layer hidden states
    seq_scr : (T*Bp, P)      VMEM inter-layer hidden slab (never touches HBM)
    xg_scr  : (T*Bp, 4P)     hoisted input projection for the current layer
    h_scr   : (Bp, P) f32    running hidden state
    c_scr   : (Bp, P) f32    running cell state
    Gate order matches PyTorch: [i, f, g, o]; padded lanes stay exactly zero.
    """
    TB = x_ref.shape[0]
    Bp, P = h_scr.shape
    T = TB // Bp
    L = wih_ref.shape[0]

    for l in range(L):
        in_view = x_ref if l == 0 else seq_scr
        out_view = out_ref if l == L - 1 else seq_scr

        # Hoisted input projection + bias: one large MXU matmul per layer;
        # bias is broadcast once here, not per timestep.
        xg_scr[...] = (
            jnp.dot(in_view[...], wih_ref[l], preferred_element_type=jnp.float32)
            + b_ref[l]
        )

        h_scr[...] = jnp.zeros_like(h_scr)
        c_scr[...] = jnp.zeros_like(c_scr)

        def step(row0, l=l, out_view=out_view):
            rows = pl.ds(row0, Bp)
            gates = xg_scr[rows, :] + jnp.dot(
                h_scr[...], whh_ref[l], preferred_element_type=jnp.float32)
            # gate slices are multiples of P=128 -> lane-tile aligned, no relayout
            i = jax.nn.sigmoid(gates[:, 0 * P:1 * P])
            f = jax.nn.sigmoid(gates[:, 1 * P:2 * P])
            g = jnp.tanh(gates[:, 2 * P:3 * P])
            o = jax.nn.sigmoid(gates[:, 3 * P:4 * P])
            c_new = f * c_scr[...] + i * g
            h_new = o * jnp.tanh(c_new)
            c_scr[...] = c_new
            h_scr[...] = h_new
            out_view[rows, :] = h_new          # lane-dense (Bp,128) unmasked store

        if T <= _UNROLL_T:
            for t in range(T):                  # static unroll: full LLO visibility
                step(t * Bp)
        else:
            def body(t, carry):
                step(pl.multiple_of(t * Bp, 8))
                return carry
            lax.fori_loop(0, T, body, 0, unroll=4)


def linear_kernel(x_ref, w_ref, b_ref, out_ref):
    """out = x @ W^T + b on one (tn, tv) tile; W passed pre-transposed/padded as (P, V)."""
    out_ref[...] = (
        jnp.dot(x_ref[...], w_ref[...], preferred_element_type=jnp.float32)
        + b_ref[...]
    )


# ----------------------------------------------------------------------------
# Wrappers around pallas_call
# ----------------------------------------------------------------------------
def lstm_stack(x_flat, wih, whh, bias, Bp):
    TB, P = x_flat.shape
    G = wih.shape[2]
    return pl.pallas_call(
        lstm_stack_kernel,
        out_shape=jax.ShapeDtypeStruct((TB, P), jnp.float32),
        in_specs=[_VMEM, _VMEM, _VMEM, _VMEM],
        out_specs=_VMEM,
        scratch_shapes=[
            pltpu.VMEM((TB, P), jnp.float32),   # inter-layer hidden slab
            pltpu.VMEM((TB, G), jnp.float32),   # hoisted input projection
            pltpu.VMEM((Bp, P), jnp.float32),   # h
            pltpu.VMEM((Bp, P), jnp.float32),   # c
        ],
    )(x_flat, wih, whh, bias)


def linear(x2d, w_t, b_row, tn=256, tv=512):
    """Gridded (N, P) @ (P, V) + b with lane-dense, 128-multiple output tiles."""
    N, P = x2d.shape
    V = w_t.shape[1]
    tn = min(tn, _round_up(N, 8))
    tv = min(tv, _round_up(V, 128))
    Np = _round_up(N, tn)
    Vp = _round_up(V, tv)
    if Np != N:
        x2d = jnp.pad(x2d, ((0, Np - N), (0, 0)))
    if Vp != V:
        w_t = jnp.pad(w_t, ((0, 0), (0, Vp - V)))
        b_row = jnp.pad(b_row, ((0, 0), (0, Vp - V)))
    out = pl.pallas_call(
        linear_kernel,
        out_shape=jax.ShapeDtypeStruct((Np, Vp), jnp.float32),
        grid=(Np // tn, Vp // tv),
        in_specs=[
            pl.BlockSpec((tn, P), lambda i, j: (i, 0)),
            pl.BlockSpec((P, tv), lambda i, j: (0, j)),
            pl.BlockSpec((1, tv), lambda i, j: (0, j)),
        ],
        out_specs=pl.BlockSpec((tn, tv), lambda i, j: (i, j)),
        compiler_params=pltpu.CompilerParams(
            dimension_semantics=("parallel", "parallel")),
    )(x2d, w_t, b_row)
    return out[:N, :V]


# ----------------------------------------------------------------------------
# Parameter init (deterministic, mimics module __init__ / init_weights), with
# weights repacked into the padded, gate-tile-aligned kernel layout.
# ----------------------------------------------------------------------------
def init_params(key, embed_size, hidden_size, vocab_size, num_layers):
    keys = jax.random.split(key, 2 + 4 * num_layers)
    kidx = 0
    H = hidden_size
    P = max(_round_up(embed_size, 128), _round_up(hidden_size, 128))
    G = 4 * P

    # nn.Embedding default: N(0, 1)
    embed_w = jax.random.normal(keys[kidx], (vocab_size, embed_size), jnp.float32)
    kidx += 1

    k = 1.0 / jnp.sqrt(jnp.float32(hidden_size))
    wih_list, whh_list, b_list = [], [], []
    for l in range(num_layers):
        din = embed_size if l == 0 else hidden_size
        w_ih = jax.random.uniform(keys[kidx], (4 * H, din), jnp.float32, -k, k); kidx += 1
        w_hh = jax.random.uniform(keys[kidx], (4 * H, H), jnp.float32, -k, k); kidx += 1
        b_ih = jax.random.uniform(keys[kidx], (4 * H,), jnp.float32, -k, k); kidx += 1
        b_hh = jax.random.uniform(keys[kidx], (4 * H,), jnp.float32, -k, k); kidx += 1
        # init_weights(): forget-gate slice [H:2H] of BOTH biases -> 1.0 (combined = 2.0)
        b_ih = b_ih.at[H:2 * H].set(1.0)
        b_hh = b_hh.at[H:2 * H].set(1.0)
        b_sum = b_ih + b_hh

        # Repack to padded layout: gate g occupies columns [g*P, g*P + H); zero padding
        # elsewhere keeps padded hidden lanes identically zero through the recurrence.
        wih_p = jnp.zeros((P, G), jnp.float32)
        whh_p = jnp.zeros((P, G), jnp.float32)
        b_p = jnp.zeros((G,), jnp.float32)
        for gidx in range(4):
            wih_p = wih_p.at[:din, gidx * P:gidx * P + H].set(
                w_ih[gidx * H:(gidx + 1) * H, :].T)
            whh_p = whh_p.at[:H, gidx * P:gidx * P + H].set(
                w_hh[gidx * H:(gidx + 1) * H, :].T)
            b_p = b_p.at[gidx * P:gidx * P + H].set(b_sum[gidx * H:(gidx + 1) * H])
        wih_list.append(wih_p)
        whh_list.append(whh_p)
        b_list.append(b_p.reshape(1, G))

    # linear: xavier_normal_ weight, bias filled with 0.01; rows padded H -> P with zeros
    xavier_std = jnp.sqrt(2.0 / (vocab_size + hidden_size))
    lin_w = xavier_std * jax.random.normal(keys[kidx],
                                           (vocab_size, hidden_size), jnp.float32)
    lin_w_t = jnp.zeros((P, vocab_size), jnp.float32).at[:hidden_size, :].set(lin_w.T)
    lin_b = jnp.full((1, vocab_size), 0.01, jnp.float32)

    return {
        "embed": embed_w,                      # (vocab, E)
        "wih": jnp.stack(wih_list),            # (L, P, 4P)
        "whh": jnp.stack(whh_list),            # (L, P, 4P)
        "bias": jnp.stack(b_list),             # (L, 1, 4P)
        "lin_w_t": lin_w_t,                    # (P, V)
        "lin_b": lin_b,                        # (1, V)
    }


# ----------------------------------------------------------------------------
# Forward pass (DecoderRNN.forward)
# ----------------------------------------------------------------------------
@jax.jit
def decoder_forward(params, features, captions):
    # captions = captions[:, :-1]
    captions = captions[:, :-1]
    # embeddings = self.embed(captions)        (gather glue in plain JAX)
    embeddings = jnp.take(params["embed"], captions, axis=0)            # (B, Lc-1, E)
    # inputs = cat((features.unsqueeze(1), embeddings), 1)
    inputs = jnp.concatenate([features[:, None, :], embeddings], 1)     # (B, T, E)
    B, T, E = inputs.shape
    P = params["wih"].shape[1]
    Bp = _round_up(B, 8)

    # Time-major, pad batch -> Bp (sublane multiple of 8) and features -> P (lane multiple
    # of 128), flatten to a lane-dense (T*Bp, P) slab (row = t*Bp + b).
    x = jnp.transpose(inputs, (1, 0, 2)).astype(jnp.float32)            # (T, B, E)
    x = jnp.pad(x, ((0, 0), (0, Bp - B), (0, P - E)))
    x_flat = x.reshape(T * Bp, P)

    # Fused 3-layer LSTM (single Pallas call; inter-layer activations stay in VMEM).
    hid = lstm_stack(x_flat, params["wih"], params["whh"], params["bias"], Bp)

    # dropout: eval-mode identity (see TODO(synk) at top)

    # outputs = self.linear(hiddens)
    logits = linear(hid, params["lin_w_t"], params["lin_b"])            # (T*Bp, V)
    V = logits.shape[1]
    out = logits.reshape(T, Bp, V)[:, :B, :]
    return jnp.transpose(out, (1, 0, 2))                                # (B, T, V)


# ----------------------------------------------------------------------------
if __name__ == "__main__":
    embed_size = 16
    hidden_size = 32
    vocab_size = 40
    num_layers = 3
    batch = 2
    cap_len = 8          # -> sequence length T = cap_len (features + cap_len-1 tokens)

    key = jax.random.PRNGKey(0)
    k_param, k_feat, k_cap = jax.random.split(key, 3)

    params = init_params(k_param, embed_size, hidden_size, vocab_size, num_layers)
    features = jax.random.normal(k_feat, (batch, embed_size), jnp.float32)
    captions = jax.random.randint(k_cap, (batch, cap_len), 0, vocab_size, jnp.int32)

    outputs = decoder_forward(params, features, captions)
    jax.block_until_ready(outputs)

    assert outputs.shape == (batch, cap_len, vocab_size)
    assert bool(jnp.all(jnp.isfinite(outputs)))
    print("KERNEL_OK")
</pallas_src>

<mosaic_0001>
module attributes {stable_mosaic.version = 11 : i64} {
  func.func @lstm_stack_kernel(%arg0: memref<64x128xf32, #tpu.memory_space<vmem>>, %arg1: memref<3x128x512xf32, #tpu.memory_space<vmem>>, %arg2: memref<3x128x512xf32, #tpu.memory_space<vmem>>, %arg3: memref<3x1x512xf32, #tpu.memory_space<vmem>>, %arg4: memref<64x128xf32, #tpu.memory_space<vmem>>, %arg5: memref<64x128xf32, #tpu.memory_space<vmem>>, %arg6: memref<64x512xf32, #tpu.memory_space<vmem>>, %arg7: memref<8x128xf32, #tpu.memory_space<vmem>>, %arg8: memref<8x128xf32, #tpu.memory_space<vmem>>) attributes {dimension_semantics = [], scalar_prefetch = 0 : i64, scratch_operands = 4 : i64, tpu.core_type = #tpu.core_type<tc>} {
    %c0 = arith.constant 0 : index
    %c0_0 = arith.constant 0 : index
    %0 = vector.load %arg0[%c0, %c0_0] : memref<64x128xf32, #tpu.memory_space<vmem>>, vector<64x128xf32>
    %c0_1 = arith.constant 0 : index
    %c0_2 = arith.constant 0 : index
    %c0_3 = arith.constant 0 : index
    %1 = vector.load %arg1[%c0_1, %c0_2, %c0_3] : memref<3x128x512xf32, #tpu.memory_space<vmem>>, vector<1x128x512xf32>
    %2 = vector.shape_cast %1 : vector<1x128x512xf32> to vector<128x512xf32>
    %cst = arith.constant dense<0.000000e+00> : vector<64x512xf32>
    %3 = tpu.matmul %0, %2, %cst {dimension_numbers = #tpu.dot_dimension_numbers<[1], [0], [0], [1], [0, 0, 1, 1], [], []>} : vector<64x128xf32>, vector<128x512xf32>, vector<64x512xf32> -> vector<64x512xf32>
    %c0_4 = arith.constant 0 : index
    %c0_5 = arith.constant 0 : index
    %c0_6 = arith.constant 0 : index
    %4 = vector.load %arg3[%c0_4, %c0_5, %c0_6] : memref<3x1x512xf32, #tpu.memory_space<vmem>>, vector<1x1x512xf32>
    %5 = vector.shape_cast %4 : vector<1x1x512xf32> to vector<1x512xf32>
    %6 = vector.broadcast %5 : vector<1x512xf32> to vector<64x512xf32>
    %7 = arith.addf %3, %6 : vector<64x512xf32>
    %c0_7 = arith.constant 0 : index
    %c0_8 = arith.constant 0 : index
    %8 = vector.load %arg6[%c0_7, %c0_8] : memref<64x512xf32, #tpu.memory_space<vmem>>, vector<64x512xf32>
    tpu.vector_store %arg6[%c0_7, %c0_8], %7 {strides = array<i32>} : memref<64x512xf32, #tpu.memory_space<vmem>>, vector<64x512xf32>,
    %cst_9 = arith.constant 0.000000e+00 : f32
    %9 = vector.broadcast %cst_9 : f32 to vector<8x128xf32>
    %c0_10 = arith.constant 0 : index
    %c0_11 = arith.constant 0 : index
    %10 = vector.load %arg7[%c0_10, %c0_11] : memref<8x128xf32, #tpu.memory_space<vmem>>, vector<8x128xf32>
    tpu.vector_store %arg7[%c0_10, %c0_11], %9 {strides = array<i32>} : memref<8x128xf32, #tpu.memory_space<vmem>>, vector<8x128xf32>,
    %cst_12 = arith.constant 0.000000e+00 : f32
    %11 = vector.broadcast %cst_12 : f32 to vector<8x128xf32>
    %c0_13 = arith.constant 0 : index
    %c0_14 = arith.constant 0 : index
    %12 = vector.load %arg8[%c0_13, %c0_14] : memref<8x128xf32, #tpu.memory_space<vmem>>, vector<8x128xf32>
    tpu.vector_store %arg8[%c0_13, %c0_14], %11 {strides = array<i32>} : memref<8x128xf32, #tpu.memory_space<vmem>>, vector<8x128xf32>,
    %c0_15 = arith.constant 0 : index
    %c0_16 = arith.constant 0 : index
    %13 = vector.load %arg6[%c0_15, %c0_16] : memref<64x512xf32, #tpu.memory_space<vmem>>, vector<8x512xf32>
    %c0_17 = arith.constant 0 : index
    %c0_18 = arith.constant 0 : index
    %14 = vector.load %arg7[%c0_17, %c0_18] : memref<8x128xf32, #tpu.memory_space<vmem>>, vector<8x128xf32>
    %c0_19 = arith.constant 0 : index
    %c0_20 = arith.constant 0 : index
    %c0_21 = arith.constant 0 : index
    %15 = vector.load %arg2[%c0_19, %c0_20, %c0_21] : memref<3x128x512xf32, #tpu.memory_space<vmem>>, vector<1x128x512xf32>
    %16 = vector.shape_cast %15 : vector<1x128x512xf32> to vector<128x512xf32>
    %cst_22 = arith.constant dense<0.000000e+00> : vector<8x512xf32>
    %17 = tpu.matmul %14, %16, %cst_22 {dimension_numbers = #tpu.dot_dimension_numbers<[1], [0], [0], [1], [0, 0, 1, 1], [], []>} : vector<8x128xf32>, vector<128x512xf32>, vector<8x512xf32> -> vector<8x512xf32>
    %18 = arith.addf %13, %17 : vector<8x512xf32>
    %19 = vector.extract_strided_slice %18 {offsets = [0, 0], sizes = [8, 128], strides = [1, 1]} : vector<8x512xf32> to vector<8x128xf32>
    %20 = arith.negf %19 : vector<8x128xf32>
    %21 = math.exp %20 : vector<8x128xf32>
    %cst_23 = arith.constant 1.000000e+00 : f32
    %22 = vector.broadcast %cst_23 : f32 to vector<8x128xf32>
    %23 = arith.addf %22, %21 : vector<8x128xf32>
    %24 = arith.divf %22, %23 : vector<8x128xf32>
    %25 = vector.extract_strided_slice %18 {offsets = [0, 128], sizes = [8, 128], strides = [1, 1]} : vector<8x512xf32> to vector<8x128xf32>
    %26 = arith.negf %25 : vector<8x128xf32>
    %27 = math.exp %26 : vector<8x128xf32>
    %cst_24 = arith.constant 1.000000e+00 : f32
    %28 = vector.broadcast %cst_24 : f32 to vector<8x128xf32>
    %29 = arith.addf %28, %27 : vector<8x128xf32>
    %30 = arith.divf %28, %29 : vector<8x128xf32>
    %31 = vector.extract_strided_slice %18 {offsets = [0, 256], sizes = [8, 128], strides = [1, 1]} : vector<8x512xf32> to vector<8x128xf32>
    %32 = math.tanh %31 : vector<8x128xf32>
    %33 = vector.extract_strided_slice %18 {offsets = [0, 384], sizes = [8, 128], strides = [1, 1]} : vector<8x512xf32> to vector<8x128xf32>
    %34 = arith.negf %33 : vector<8x128xf32>
    %35 = math.exp %34 : vector<8x128xf32>
    %cst_25 = arith.constant 1.000000e+00 : f32
    %36 = vector.broadcast %cst_25 : f32 to vector<8x128xf32>
    %37 = arith.addf %36, %35 : vector<8x128xf32>
    %38 = arith.divf %36, %37 : vector<8x128xf32>
    %c0_26 = arith.constant 0 : index
    %c0_27 = arith.constant 0 : index
    %39 = vector.load %arg8[%c0_26, %c0_27] : memref<8x128xf32, #tpu.memory_space<vmem>>, vector<8x128xf32>
    %40 = arith.mulf %30, %39 : vector<8x128xf32>
    %41 = arith.mulf %24, %32 : vector<8x128xf32>
    %42 = arith.addf %40, %41 : vector<8x128xf32>
    %43 = math.tanh %42 : vector<8x128xf32>
    %44 = arith.mulf %38, %43 : vector<8x128xf32>
    %c0_28 = arith.constant 0 : index
    %c0_29 = arith.constant 0 : index
    %45 = vector.load %arg8[%c0_28, %c0_29] : memref<8x128xf32, #tpu.memory_space<vmem>>, vector<8x128xf32>
    tpu.vector_store %arg8[%c0_28, %c0_29], %42 {strides = array<i32>} : memref<8x128xf32, #tpu.memory_space<vmem>>, vector<8x128xf32>,
    %c0_30 = arith.constant 0 : index
    %c0_31 = arith.constant 0 : index
    %46 = vector.load %arg7[%c0_30, %c0_31] : memref<8x128xf32, #tpu.memory_space<vmem>>, vector<8x128xf32>
    tpu.vector_store %arg7[%c0_30, %c0_31], %44 {strides = array<i32>} : memref<8x128xf32, #tpu.memory_space<vmem>>, vector<8x128xf32>,
    %c0_32 = arith.constant 0 : index
    %c0_33 = arith.constant 0 : index
    %47 = vector.load %arg5[%c0_32, %c0_33] : memref<64x128xf32, #tpu.memory_space<vmem>>, vector<8x128xf32>
    tpu.vector_store %arg5[%c0_32, %c0_33], %44 {strides = array<i32>} : memref<64x128xf32, #tpu.memory_space<vmem>>, vector<8x128xf32>,
    %c8 = arith.constant 8 : index
    %c0_34 = arith.constant 0 : index
    %48 = vector.load %arg6[%c8, %c0_34] : memref<64x512xf32, #tpu.memory_space<vmem>>, vector<8x512xf32>
    %c0_35 = arith.constant 0 : index
    %c0_36 = arith.constant 0 : index
    %49 = vector.load %arg7[%c0_35, %c0_36] : memref<8x128xf32, #tpu.memory_space<vmem>>, vector<8x128xf32>
    %c0_37 = arith.constant 0 : index
    %c0_38 = arith.constant 0 : index
    %c0_39 = arith.constant 0 : index
    %50 = vector.load %arg2[%c0_37, %c0_38, %c0_39] : memref<3x128x512xf32, #tpu.memory_space<vmem>>, vector<1x128x512xf32>
    %51 = vector.shape_cast %50 : vector<1x128x512xf32> to vector<128x512xf32>
    %cst_40 = arith.constant dense<0.000000e+00> : vector<8x512xf32>
    %52 = tpu.matmul %49, %51, %cst_40 {dimension_numbers = #tpu.dot_dimension_numbers<[1], [0], [0], [1], [0, 0, 1, 1], [], []>} : vector<8x128xf32>, vector<128x512xf32>, vector<8x512xf32> -> vector<8x512xf32>
    %53 = arith.addf %48, %52 : vector<8x512xf32>
    %54 = vector.extract_strided_slice %53 {offsets = [0, 0], sizes = [8, 128], strides = [1, 1]} : vector<8x512xf32> to vector<8x128xf32>
    %55 = arith.negf %54 : vector<8x128xf32>
    %56 = math.exp %55 : vector<8x128xf32>
    %cst_41 = arith.constant 1.000000e+00 : f32
    %57 = vector.broadcast %cst_41 : f32 to vector<8x128xf32>
    %58 = arith.addf %57, %56 : vector<8x128xf32>
    %59 = arith.divf %57, %58 : vector<8x128xf32>
    %60 = vector.extract_strided_slice %53 {offsets = [0, 128], sizes = [8, 128], strides = [1, 1]} : vector<8x512xf32> to vector<8x128xf32>
    %61 = arith.negf %60 : vector<8x128xf32>
    %62 = math.exp %61 : vector<8x128xf32>
    %cst_42 = arith.constant 1.000000e+00 : f32
    %63 = vector.broadcast %cst_42 : f32 to vector<8x128xf32>
    %64 = arith.addf %63, %62 : vector<8x128xf32>
    %65 = arith.divf %63, %64 : vector<8x128xf32>
    %66 = vector.extract_strided_slice %53 {offsets = [0, 256], sizes = [8, 128], strides = [1, 1]} : vector<8x512xf32> to vector<8x128xf32>
    %67 = math.tanh %66 : vector<8x128xf32>
    %68 = vector.extract_strided_slice %53 {offsets = [0, 384], sizes = [8, 128], strides = [1, 1]} : vector<8x512xf32> to vector<8x128xf32>
    %69 = arith.negf %68 : vector<8x128xf32>
    %70 = math.exp %69 : vector<8x128xf32>
    %cst_43 = arith.constant 1.000000e+00 : f32
    %71 = vector.broadcast %cst_43 : f32 to vector<8x128xf32>
    %72 = arith.addf %71, %70 : vector<8x128xf32>
    %73 = arith.divf %71, %72 : vector<8x128xf32>
    %c0_44 = arith.constant 0 : index
    %c0_45 = arith.constant 0 : index
    %74 = vector.load %arg8[%c0_44, %c0_45] : memref<8x128xf32, #tpu.memory_space<vmem>>, vector<8x128xf32>
    %75 = arith.mulf %65, %74 : vector<8x128xf32>
    %76 = arith.mulf %59, %67 : vector<8x128xf32>
    %77 = arith.addf %75, %76 : vector<8x128xf32>
    %78 = math.tanh %77 : vector<8x128xf32>
    %79 = arith.mulf %73, %78 : vector<8x128xf32>
    %c0_46 = arith.constant 0 : index
    %c0_47 = arith.constant 0 : index
    %80 = vector.load %arg8[%c0_46, %c0_47] : memref<8x128xf32, #tpu.memory_space<vmem>>, vector<8x128xf32>
    tpu.vector_store %arg8[%c0_46, %c0_47], %77 {strides = array<i32>} : memref<8x128xf32, #tpu.memory_space<vmem>>, vector<8x128xf32>,
    %c0_48 = arith.constant 0 : index
    %c0_49 = arith.constant 0 : index
    %81 = vector.load %arg7[%c0_48, %c0_49] : memref<8x128xf32, #tpu.memory_space<vmem>>, vector<8x128xf32>
    tpu.vector_store %arg7[%c0_48, %c0_49], %79 {strides = array<i32>} : memref<8x128xf32, #tpu.memory_space<vmem>>, vector<8x128xf32>,
    %c8_50 = arith.constant 8 : index
    %c0_51 = arith.constant 0 : index
    %82 = vector.load %arg5[%c8_50, %c0_51] : memref<64x128xf32, #tpu.memory_space<vmem>>, vector<8x128xf32>
    tpu.vector_store %arg5[%c8_50, %c0_51], %79 {strides = array<i32>} : memref<64x128xf32, #tpu.memory_space<vmem>>, vector<8x128xf32>,
    %c16 = arith.constant 16 : index
    %c0_52 = arith.constant 0 : index
    %83 = vector.load %arg6[%c16, %c0_52] : memref<64x512xf32, #tpu.memory_space<vmem>>, vector<8x512xf32>
    %c0_53 = arith.constant 0 : index
    %c0_54 = arith.constant 0 : index
    %84 = vector.load %arg7[%c0_53, %c0_54] : memref<8x128xf32, #tpu.memory_space<vmem>>, vector<8x128xf32>
    %c0_55 = arith.constant 0 : index
    %c0_56 = arith.constant 0 : index
    %c0_57 = arith.constant 0 : index
    %85 = vector.load %arg2[%c0_55, %c0_56, %c0_57] : memref<3x128x512xf32, #tpu.memory_space<vmem>>, vector<1x128x512xf32>
    %86 = vector.shape_cast %85 : vector<1x128x512xf32> to vector<128x512xf32>
    %cst_58 = arith.constant dense<0.000000e+00> : vector<8x512xf32>
    %87 = tpu.matmul %84, %86, %cst_58 {dimension_numbers = #tpu.dot_dimension_numbers<[1], [0], [0], [1], [0, 0, 1, 1], [], []>} : vector<8x128xf32>, vector<128x512xf32>, vector<8x512xf32> -> vector<8x512xf32>
    %88 = arith.addf %83, %87 : vector<8x512xf32>
    %89 = vector.extract_strided_slice %88 {offsets = [0, 0], sizes = [8, 128], strides = [1, 1]} : vector<8x512xf32> to vector<8x128xf32>
    %90 = arith.negf %89 : vector<8x128xf32>
    %91 = math.exp %90 : vector<8x128xf32>
    %cst_59 = arith.constant 1.000000e+00 : f32
    %92 = vector.broadcast %cst_59 : f32 to vector<8x128xf32>
    %93 = arith.addf %92, %91 : vector<8x128xf32>
    %94 = arith.divf %92, %93 : vector<8x128xf32>
    %95 = vector.extract_strided_slice %88 {offsets = [0, 128], sizes = [8, 128], strides = [1, 1]} : vector<8x512xf32> to vector<8x128xf32>
    %96 = arith.negf %95 : vector<8x128xf32>
    %97 = math.exp %96 : vector<8x128xf32>
    %cst_60 = arith.constant 1.000000e+00 : f32
    %98 = vector.broadcast %cst_60 : f32 to vector<8x128xf32>
    %99 = arith.addf %98, %97 : vector<8x128xf32>
    %100 = arith.divf %98, %99 : vector<8x128xf32>
    %101 = vector.extract_strided_slice %88 {offsets = [0, 256], sizes = [8, 128], strides = [1, 1]} : vector<8x512xf32> to vector<8x128xf32>
    %102 = math.tanh %101 : vector<8x128xf32>
    %103 = vector.extract_strided_slice %88 {offsets = [0, 384], sizes = [8, 128], strides = [1, 1]} : vector<8x512xf32> to vector<8x128xf32>
    %104 = arith.negf %103 : vector<8x128xf32>
    %105 = math.exp %104 : vector<8x128xf32>
    %cst_61 = arith.constant 1.000000e+00 : f32
    %106 = vector.broadcast %cst_61 : f32 to vector<8x128xf32>
    %107 = arith.addf %106, %105 : vector<8x128xf32>
    %108 = arith.divf %106, %107 : vector<8x128xf32>
    %c0_62 = arith.constant 0 : index
    %c0_63 = arith.constant 0 : index
    %109 = vector.load %arg8[%c0_62, %c0_63] : memref<8x128xf32, #tpu.memory_space<vmem>>, vector<8x128xf32>
    %110 = arith.mulf %100, %109 : vector<8x128xf32>
    %111 = arith.mulf %94, %102 : vector<8x128xf32>
    %112 = arith.addf %110, %111 : vector<8x128xf32>
    %113 = math.tanh %112 : vector<8x128xf32>
    %114 = arith.mulf %108, %113 : vector<8x128xf32>
    %c0_64 = arith.constant 0 : index
    %c0_65 = arith.constant 0 : index
    %115 = vector.load %arg8[%c0_64, %c0_65] : memref<8x128xf32, #tpu.memory_space<vmem>>, vector<8x128xf32>
    tpu.vector_store %arg8[%c0_64, %c0_65], %112 {strides = array<i32>} : memref<8x128xf32, #tpu.memory_space<vmem>>, vector<8x128xf32>,
    %c0_66 = arith.constant 0 : index
    %c0_67 = arith.constant 0 : index
    %116 = vector.load %arg7[%c0_66, %c0_67] : memref<8x128xf32, #tpu.memory_space<vmem>>, vector<8x128xf32>
    tpu.vector_store %arg7[%c0_66, %c0_67], %114 {strides = array<i32>} : memref<8x128xf32, #tpu.memory_space<vmem>>, vector<8x128xf32>,
    %c16_68 = arith.constant 16 : index
    %c0_69 = arith.constant 0 : index
    %117 = vector.load %arg5[%c16_68, %c0_69] : memref<64x128xf32, #tpu.memory_space<vmem>>, vector<8x128xf32>
    tpu.vector_store %arg5[%c16_68, %c0_69], %114 {strides = array<i32>} : memref<64x128xf32, #tpu.memory_space<vmem>>, vector<8x128xf32>,
    %c24 = arith.constant 24 : index
    %c0_70 = arith.constant 0 : index
    %118 = vector.load %arg6[%c24, %c0_70] : memref<64x512xf32, #tpu.memory_space<vmem>>, vector<8x512xf32>
    %c0_71 = arith.constant 0 : index
    %c0_72 = arith.constant 0 : index
    %119 = vector.load %arg7[%c0_71, %c0_72] : memref<8x128xf32, #tpu.memory_space<vmem>>, vector<8x128xf32>
    %c0_73 = arith.constant 0 : index
    %c0_74 = arith.constant 0 : index
    %c0_75 = arith.constant 0 : index
    %120 = vector.load %arg2[%c0_73, %c0_74, %c0_75] : memref<3x128x512xf32, #tpu.memory_space<vmem>>, vector<1x128x512xf32>
    %121 = vector.shape_cast %120 : vector<1x128x512xf32> to vector<128x512xf32>
    %cst_76 = arith.constant dense<0.000000e+00> : vector<8x512xf32>
    %122 = tpu.matmul %119, %121, %cst_76 {dimension_numbers = #tpu.dot_dimension_numbers<[1], [0], [0], [1], [0, 0, 1, 1], [], []>} : vector<8x128xf32>, vector<128x512xf32>, vector<8x512xf32> -> vector<8x512xf32>
    %123 = arith.addf %118, %122 : vector<8x512xf32>
    %124 = vector.extract_strided_slice %123 {offsets = [0, 0], sizes = [8, 128], strides = [1, 1]} : vector<8x512xf32> to vector<8x128xf32>
    %125 = arith.negf %124 : vector<8x128xf32>
    %126 = math.exp %125 : vector<8x128xf32>
    %cst_77 = arith.constant 1.000000e+00 : f32
    %127 = vector.broadcast %cst_77 : f32 to vector<8x128xf32>
    %128 = arith.addf %127, %126 : vector<8x128xf32>
    %129 = arith.divf %127, %128 : vector<8x128xf32>
    %130 = vector.extract_strided_slice %123 {offsets = [0, 128], sizes = [8, 128], strides = [1, 1]} : vector<8x512xf32> to vector<8x128xf32>
    %131 = arith.negf %130 : vector<8x128xf32>
    %132 = math.exp %131 : vector<8x128xf32>
    %cst_78 = arith.constant 1.000000e+00 : f32
    %133 = vector.broadcast %cst_78 : f32 to vector<8x128xf32>
    %134 = arith.addf %133, %132 : vector<8x128xf32>
    %135 = arith.divf %133, %134 : vector<8x128xf32>
    %136 = vector.extract_strided_slice %123 {offsets = [0, 256], sizes = [8, 128], strides = [1, 1]} : vector<8x512xf32> to vector<8x128xf32>
    %137 = math.tanh %136 : vector<8x128xf32>
    %138 = vector.extract_strided_slice %123 {offsets = [0, 384], sizes = [8, 128], strides = [1, 1]} : vector<8x512xf32> to vector<8x128xf32>
    %139 = arith.negf %138 : vector<8x128xf32>
    %140 = math.exp %139 : vector<8x128xf32>
    %cst_79 = arith.constant 1.000000e+00 : f32
    %141 = vector.broadcast %cst_79 : f32 to vector<8x128xf32>
    %142 = arith.addf %141, %140 : vector<8x128xf32>
    %143 = arith.divf %141, %142 : vector<8x128xf32>
    %c0_80 = arith.constant 0 : index
    %c0_81 = arith.constant 0 : index
    %144 = vector.load %arg8[%c0_80, %c0_81] : memref<8x128xf32, #tpu.memory_space<vmem>>, vector<8x128xf32>
    %145 = arith.mulf %135, %144 : vector<8x128xf32>
    %146 = arith.mulf %129, %137 : vector<8x128xf32>
    %147 = arith.addf %145, %146 : vector<8x128xf32>
    %148 = math.tanh %147 : vector<8x128xf32>
    %149 = arith.mulf %143, %148 : vector<8x128xf32>
    %c0_82 = arith.constant 0 : index
    %c0_83 = arith.constant 0 : index
    %150 = vector.load %arg8[%c0_82, %c0_83] : memref<8x128xf32, #tpu.memory_space<vmem>>, vector<8x128xf32>
    tpu.vector_store %arg8[%c0_82, %c0_83], %147 {strides = array<i32>} : memref<8x128xf32, #tpu.memory_space<vmem>>, vector<8x128xf32>,
    %c0_84 = arith.constant 0 : index
    %c0_85 = arith.constant 0 : index
    %151 = vector.load %arg7[%c0_84, %c0_85] : memref<8x128xf32, #tpu.memory_space<vmem>>, vector<8x128xf32>
    tpu.vector_store %arg7[%c0_84, %c0_85], %149 {strides = array<i32>} : memref<8x128xf32, #tpu.memory_space<vmem>>, vector<8x128xf32>,
    %c24_86 = arith.constant 24 : index
    %c0_87 = arith.constant 0 : index
    %152 = vector.load %arg5[%c24_86, %c0_87] : memref<64x128xf32, #tpu.memory_space<vmem>>, vector<8x128xf32>
    tpu.vector_store %arg5[%c24_86, %c0_87], %149 {strides = array<i32>} : memref<64x128xf32, #tpu.memory_space<vmem>>, vector<8x128xf32>,
    %c32 = arith.constant 32 : index
    %c0_88 = arith.constant 0 : index
    %153 = vector.load %arg6[%c32, %c0_88] : memref<64x512xf32, #tpu.memory_space<vmem>>, vector<8x512xf32>
    %c0_89 = arith.constant 0 : index
    %c0_90 = arith.constant 0 : index
    %154 = vector.load %arg7[%c0_89, %c0_90] : memref<8x128xf32, #tpu.memory_space<vmem>>, vector<8x128xf32>
    %c0_91 = arith.constant 0 : index
    %c0_92 = arith.constant 0 : index
    %c0_93 = arith.constant 0 : index
    %155 = vector.load %arg2[%c0_91, %c0_92, %c0_93] : memref<3x128x512xf32, #tpu.memory_space<vmem>>, vector<1x128x512xf32>
    %156 = vector.shape_cast %155 : vector<1x128x512xf32> to vector<128x512xf32>
    %cst_94 = arith.constant dense<0.000000e+00> : vector<8x512xf32>
    %157 = tpu.matmul %154, %156, %cst_94 {dimension_numbers = #tpu.dot_dimension_numbers<[1], [0], [0], [1], [0, 0, 1, 1], [], []>} : vector<8x128xf32>, vector<128x512xf32>, vector<8x512xf32> -> vector<8x512xf32>
    %158 = arith.addf %153, %157 : vector<8x512xf32>
    %159 = vector.extract_strided_slice %158 {offsets = [0, 0], sizes = [8, 128], strides = [1, 1]} : vector<8x512xf32> to vector<8x128xf32>
    %160 = arith.negf %159 : vector<8x128xf32>
    %161 = math.exp %160 : vector<8x128xf32>
    %cst_95 = arith.constant 1.000000e+00 : f32
    %162 = vector.broadcast %cst_95 : f32 to vector<8x128xf32>
    %163 = arith.addf %162, %161 : vector<8x128xf32>
    %164 = arith.divf %162, %163 : vector<8x128xf32>
    %165 = vector.extract_strided_slice %158 {offsets = [0, 128], sizes = [8, 128], strides = [1, 1]} : vector<8x512xf32> to vector<8x128xf32>
    %166 = arith.negf %165 : vector<8x128xf32>
    %167 = math.exp %166 : vector<8x128xf32>
    %cst_96 = arith.constant 1.000000e+00 : f32
    %168 = vector.broadcast %cst_96 : f32 to vector<8x128xf32>
    %169 = arith.addf %168, %167 : vector<8x128xf32>
    %170 = arith.divf %168, %169 : vector<8x128xf32>
    %171 = vector.extract_strided_slice %158 {offsets = [0, 256], sizes = [8, 128], strides = [1, 1]} : vector<8x512xf32> to vector<8x128xf32>
    %172 = math.tanh %171 : vector<8x128xf32>
    %173 = vector.extract_strided_slice %158 {offsets = [0, 384], sizes = [8, 128], strides = [1, 1]} : vector<8x512xf32> to vector<8x128xf32>
    %174 = arith.negf %173 : vector<8x128xf32>
    %175 = math.exp %174 : vector<8x128xf32>
    %cst_97 = arith.constant 1.000000e+00 : f32
    %176 = vector.broadcast %cst_97 : f32 to vector<8x128xf32>
    %177 = arith.addf %176, %175 : vector<8x128xf32>
    %178 = arith.divf %176, %177 : vector<8x128xf32>
    %c0_98 = arith.constant 0 : index
    %c0_99 = arith.constant 0 : index
    %179 = vector.load %arg8[%c0_98, %c0_99] : memref<8x128xf32, #tpu.memory_space<vmem>>, vector<8x128xf32>
    %180 = arith.mulf %170, %179 : vector<8x128xf32>
    %181 = arith.mulf %164, %172 : vector<8x128xf32>
    %182 = arith.addf %180, %181 : vector<8x128xf32>
    %183 = math.tanh %182 : vector<8x128xf32>
    %184 = arith.mulf %178, %183 : vector<8x128xf32>
    %c0_100 = arith.constant 0 : index
    %c0_101 = arith.constant 0 : index
    %185 = vector.load %arg8[%c0_100, %c0_101] : memref<8x128xf32, #tpu.memory_space<vmem>>, vector<8x128xf32>
    tpu.vector_store %arg8[%c0_100, %c0_101], %182 {strides = array<i32>} : memref<8x128xf32, #tpu.memory_space<vmem>>, vector<8x128xf32>,
    %c0_102 = arith.constant 0 : index
    %c0_103 = arith.constant 0 : index
    %186 = vector.load %arg7[%c0_102, %c0_103] : memref<8x128xf32, #tpu.memory_space<vmem>>, vector<8x128xf32>
    tpu.vector_store %arg7[%c0_102, %c0_103], %184 {strides = array<i32>} : memref<8x128xf32, #tpu.memory_space<vmem>>, vector<8x128xf32>,
    %c32_104 = arith.constant 32 : index
    %c0_105 = arith.constant 0 : index
    %187 = vector.load %arg5[%c32_104, %c0_105] : memref<64x128xf32, #tpu.memory_space<vmem>>, vector<8x128xf32>
    tpu.vector_store %arg5[%c32_104, %c0_105], %184 {strides = array<i32>} : memref<64x128xf32, #tpu.memory_space<vmem>>, vector<8x128xf32>,
    %c40 = arith.constant 40 : index
    %c0_106 = arith.constant 0 : index
    %188 = vector.load %arg6[%c40, %c0_106] : memref<64x512xf32, #tpu.memory_space<vmem>>, vector<8x512xf32>
    %c0_107 = arith.constant 0 : index
    %c0_108 = arith.constant 0 : index
    %189 = vector.load %arg7[%c0_107, %c0_108] : memref<8x128xf32, #tpu.memory_space<vmem>>, vector<8x128xf32>
    %c0_109 = arith.constant 0 : index
    %c0_110 = arith.constant 0 : index
    %c0_111 = arith.constant 0 : index
    %190 = vector.load %arg2[%c0_109, %c0_110, %c0_111] : memref<3x128x512xf32, #tpu.memory_space<vmem>>, vector<1x128x512xf32>
    %191 = vector.shape_cast %190 : vector<1x128x512xf32> to vector<128x512xf32>
    %cst_112 = arith.constant dense<0.000000e+00> : vector<8x512xf32>
    %192 = tpu.matmul %189, %191, %cst_112 {dimension_numbers = #tpu.dot_dimension_numbers<[1], [0], [0], [1], [0, 0, 1, 1], [], []>} : vector<8x128xf32>, vector<128x512xf32>, vector<8x512xf32> -> vector<8x512xf32>
    %193 = arith.addf %188, %192 : vector<8x512xf32>
    %194 = vector.extract_strided_slice %193 {offsets = [0, 0], sizes = [8, 128], strides = [1, 1]} : vector<8x512xf32> to vector<8x128xf32>
    %195 = arith.negf %194 : vector<8x128xf32>
    %196 = math.exp %195 : vector<8x128xf32>
    %cst_113 = arith.constant 1.000000e+00 : f32
    %197 = vector.broadcast %cst_113 : f32 to vector<8x128xf32>
    %198 = arith.addf %197, %196 : vector<8x128xf32>
    %199 = arith.divf %197, %198 : vector<8x128xf32>
    %200 = vector.extract_strided_slice %193 {offsets = [0, 128], sizes = [8, 128], strides = [1, 1]} : vector<8x512xf32> to vector<8x128xf32>
    %201 = arith.negf %200 : vector<8x128xf32>
    %202 = math.exp %201 : vector<8x128xf32>
    %cst_114 = arith.constant 1.000000e+00 : f32
    %203 = vector.broadcast %cst_114 : f32 to vector<8x128xf32>
    %204 = arith.addf %203, %202 : vector<8x128xf32>
    %205 = arith.divf %203, %204 : vector<8x128xf32>
    %206 = vector.extract_strided_slice %193 {offsets = [0, 256], sizes = [8, 128], strides = [1, 1]} : vector<8x512xf32> to vector<8x128xf32>
    %207 = math.tanh %206 : vector<8x128xf32>
    %208 = vector.extract_strided_slice %193 {offsets = [0, 384], sizes = [8, 128], strides = [1, 1]} : vector<8x512xf32> to vector<8x128xf32>
    %209 = arith.negf %208 : vector<8x128xf32>
    %210 = math.exp %209 : vector<8x128xf32>
    %cst_115 = arith.constant 1.000000e+00 : f32
    %211 = vector.broadcast %cst_115 : f32 to vector<8x128xf32>
    %212 = arith.addf %211, %210 : vector<8x128xf32>
    %213 = arith.divf %211, %212 : vector<8x128xf32>
    %c0_116 = arith.constant 0 : index
    %c0_117 = arith.constant 0 : index
    %214 = vector.load %arg8[%c0_116, %c0_117] : memref<8x128xf32, #tpu.memory_space<vmem>>, vector<8x128xf32>
    %215 = arith.mulf %205, %214 : vector<8x128xf32>
    %216 = arith.mulf %199, %207 : vector<8x128xf32>
    %217 = arith.addf %215, %216 : vector<8x128xf32>
    %218 = math.tanh %217 : vector<8x128xf32>
    %219 = arith.mulf %213, %218 : vector<8x128xf32>
    %c0_118 = arith.constant 0 : index
    %c0_119 = arith.constant 0 : index
    %220 = vector.load %arg8[%c0_118, %c0_119] : memref<8x128xf32, #tpu.memory_space<vmem>>, vector<8x128xf32>
    tpu.vector_store %arg8[%c0_118, %c0_119], %217 {strides = array<i32>} : memref<8x128xf32, #tpu.memory_space<vmem>>, vector<8x128xf32>,
    %c0_120 = arith.constant 0 : index
    %c0_121 = arith.constant 0 : index
    %221 = vector.load %arg7[%c0_120, %c0_121] : memref<8x128xf32, #tpu.memory_space<vmem>>, vector<8x128xf32>
    tpu.vector_store %arg7[%c0_120, %c0_121], %219 {strides = array<i32>} : memref<8x128xf32, #tpu.memory_space<vmem>>, vector<8x128xf32>,
    %c40_122 = arith.constant 40 : index
    %c0_123 = arith.constant 0 : index
    %222 = vector.load %arg5[%c40_122, %c0_123] : memref<64x128xf32, #tpu.memory_space<vmem>>, vector<8x128xf32>
    tpu.vector_store %arg5[%c40_122, %c0_123], %219 {strides = array<i32>} : memref<64x128xf32, #tpu.memory_space<vmem>>, vector<8x128xf32>,
    %c48 = arith.constant 48 : index
    %c0_124 = arith.constant 0 : index
    %223 = vector.load %arg6[%c48, %c0_124] : memref<64x512xf32, #tpu.memory_space<vmem>>, vector<8x512xf32>
    %c0_125 = arith.constant 0 : index
    %c0_126 = arith.constant 0 : index
    %224 = vector.load %arg7[%c0_125, %c0_126] : memref<8x128xf32, #tpu.memory_space<vmem>>, vector<8x128xf32>
    %c0_127 = arith.constant 0 : index
    %c0_128 = arith.constant 0 : index
    %c0_129 = arith.constant 0 : index
    %225 = vector.load %arg2[%c0_127, %c0_128, %c0_129] : memref<3x128x512xf32, #tpu.memory_space<vmem>>, vector<1x128x512xf32>
    %226 = vector.shape_cast %225 : vector<1x128x512xf32> to vector<128x512xf32>
    %cst_130 = arith.constant dense<0.000000e+00> : vector<8x512xf32>
    %227 = tpu.matmul %224, %226, %cst_130 {dimension_numbers = #tpu.dot_dimension_numbers<[1], [0], [0], [1], [0, 0, 1, 1], [], []>} : vector<8x128xf32>, vector<128x512xf32>, vector<8x512xf32> -> vector<8x512xf32>
    %228 = arith.addf %223, %227 : vector<8x512xf32>
    %229 = vector.extract_strided_slice %228 {offsets = [0, 0], sizes = [8, 128], strides = [1, 1]} : vector<8x512xf32> to vector<8x128xf32>
    %230 = arith.negf %229 : vector<8x128xf32>
    %231 = math.exp %230 : vector<8x128xf32>
    %cst_131 = arith.constant 1.000000e+00 : f32
    %232 = vector.broadcast %cst_131 : f32 to vector<8x128xf32>
    %233 = arith.addf %232, %231 : vector<8x128xf32>
    %234 = arith.divf %232, %233 : vector<8x128xf32>
    %235 = vector.extract_strided_slice %228 {offsets = [0, 128], sizes = [8, 128], strides = [1, 1]} : vector<8x512xf32> to vector<8x128xf32>
    %236 = arith.negf %235 : vector<8x128xf32>
    %237 = math.exp %236 : vector<8x128xf32>
    %cst_132 = arith.constant 1.000000e+00 : f32
    %238 = vector.broadcast %cst_132 : f32 to vector<8x128xf32>
    %239 = arith.addf %238, %237 : vector<8x128xf32>
    %240 = arith.divf %238, %239 : vector<8x128xf32>
    %241 = vector.extract_strided_slice %228 {offsets = [0, 256], sizes = [8, 128], strides = [1, 1]} : vector<8x512xf32> to vector<8x128xf32>
    %242 = math.tanh %241 : vector<8x128xf32>
    %243 = vector.extract_strided_slice %228 {offsets = [0, 384], sizes = [8, 128], strides = [1, 1]} : vector<8x512xf32> to vector<8x128xf32>
    %244 = arith.negf %243 : vector<8x128xf32>
    %245 = math.exp %244 : vector<8x128xf32>
    %cst_133 = arith.constant 1.000000e+00 : f32
    %246 = vector.broadcast %cst_133 : f32 to vector<8x128xf32>
    %247 = arith.addf %246, %245 : vector<8x128xf32>
    %248 = arith.divf %246, %247 : vector<8x128xf32>
    %c0_134 = arith.constant 0 : index
    %c0_135 = arith.constant 0 : index
    %249 = vector.load %arg8[%c0_134, %c0_135] : memref<8x128xf32, #tpu.memory_space<vmem>>, vector<8x128xf32>
    %250 = arith.mulf %240, %249 : vector<8x128xf32>
    %251 = arith.mulf %234, %242 : vector<8x128xf32>
    %252 = arith.addf %250, %251 : vector<8x128xf32>
    %253 = math.tanh %252 : vector<8x128xf32>
    %254 = arith.mulf %248, %253 : vector<8x128xf32>
    %c0_136 = arith.constant 0 : index
    %c0_137 = arith.constant 0 : index
    %255 = vector.load %arg8[%c0_136, %c0_137] : memref<8x128xf32, #tpu.memory_space<vmem>>, vector<8x128xf32>
    tpu.vector_store %arg8[%c0_136, %c0_137], %252 {strides = array<i32>} : memref<8x128xf32, #tpu.memory_space<vmem>>, vector<8x128xf32>,
    %c0_138 = arith.constant 0 : index
    %c0_139 = arith.constant 0 : index
    %256 = vector.load %arg7[%c0_138, %c0_139] : memref<8x128xf32, #tpu.memory_space<vmem>>, vector<8x128xf32>
    tpu.vector_store %arg7[%c0_138, %c0_139], %254 {strides = array<i32>} : memref<8x128xf32, #tpu.memory_space<vmem>>, vector<8x128xf32>,
    %c48_140 = arith.constant 48 : index
    %c0_141 = arith.constant 0 : index
    %257 = vector.load %arg5[%c48_140, %c0_141] : memref<64x128xf32, #tpu.memory_space<vmem>>, vector<8x128xf32>
    tpu.vector_store %arg5[%c48_140, %c0_141], %254 {strides = array<i32>} : memref<64x128xf32, #tpu.memory_space<vmem>>, vector<8x128xf32>,
    %c56 = arith.constant 56 : index
    %c0_142 = arith.constant 0 : index
    %258 = vector.load %arg6[%c56, %c0_142] : memref<64x512xf32, #tpu.memory_space<vmem>>, vector<8x512xf32>
    %c0_143 = arith.constant 0 : index
    %c0_144 = arith.constant 0 : index
    %259 = vector.load %arg7[%c0_143, %c0_144] : memref<8x128xf32, #tpu.memory_space<vmem>>, vector<8x128xf32>
    %c0_145 = arith.constant 0 : index
    %c0_146 = arith.constant 0 : index
    %c0_147 = arith.constant 0 : index
    %260 = vector.load %arg2[%c0_145, %c0_146, %c0_147] : memref<3x128x512xf32, #tpu.memory_space<vmem>>, vector<1x128x512xf32>
    %261 = vector.shape_cast %260 : vector<1x128x512xf32> to vector<128x512xf32>
    %cst_148 = arith.constant dense<0.000000e+00> : vector<8x512xf32>
    %262 = tpu.matmul %259, %261, %cst_148 {dimension_numbers = #tpu.dot_dimension_numbers<[1], [0], [0], [1], [0, 0, 1, 1], [], []>} : vector<8x128xf32>, vector<128x512xf32>, vector<8x512xf32> -> vector<8x512xf32>
    %263 = arith.addf %258, %262 : vector<8x512xf32>
    %264 = vector.extract_strided_slice %263 {offsets = [0, 0], sizes = [8, 128], strides = [1, 1]} : vector<8x512xf32> to vector<8x128xf32>
    %265 = arith.negf %264 : vector<8x128xf32>
    %266 = math.exp %265 : vector<8x128xf32>
    %cst_149 = arith.constant 1.000000e+00 : f32
    %267 = vector.broadcast %cst_149 : f32 to vector<8x128xf32>
    %268 = arith.addf %267, %266 : vector<8x128xf32>
    %269 = arith.divf %267, %268 : vector<8x128xf32>
    %270 = vector.extract_strided_slice %263 {offsets = [0, 128], sizes = [8, 128], strides = [1, 1]} : vector<8x512xf32> to vector<8x128xf32>
    %271 = arith.negf %270 : vector<8x128xf32>
    %272 = math.exp %271 : vector<8x128xf32>
    %cst_150 = arith.constant 1.000000e+00 : f32
    %273 = vector.broadcast %cst_150 : f32 to vector<8x128xf32>
    %274 = arith.addf %273, %272 : vector<8x128xf32>
    %275 = arith.divf %273, %274 : vector<8x128xf32>
    %276 = vector.extract_strided_slice %263 {offsets = [0, 256], sizes = [8, 128], strides = [1, 1]} : vector<8x512xf32> to vector<8x128xf32>
    %277 = math.tanh %276 : vector<8x128xf32>
    %278 = vector.extract_strided_slice %263 {offsets = [0, 384], sizes = [8, 128], strides = [1, 1]} : vector<8x512xf32> to vector<8x128xf32>
    %279 = arith.negf %278 : vector<8x128xf32>
    %280 = math.exp %279 : vector<8x128xf32>
    %cst_151 = arith.constant 1.000000e+00 : f32
    %281 = vector.broadcast %cst_151 : f32 to vector<8x128xf32>
    %282 = arith.addf %281, %280 : vector<8x128xf32>
    %283 = arith.divf %281, %282 : vector<8x128xf32>
    %c0_152 = arith.constant 0 : index
    %c0_153 = arith.constant 0 : index
    %284 = vector.load %arg8[%c0_152, %c0_153] : memref<8x128xf32, #tpu.memory_space<vmem>>, vector<8x128xf32>
    %285 = arith.mulf %275, %284 : vector<8x128xf32>
    %286 = arith.mulf %269, %277 : vector<8x128xf32>
    %287 = arith.addf %285, %286 : vector<8x128xf32>
    %288 = math.tanh %287 : vector<8x128xf32>
    %289 = arith.mulf %283, %288 : vector<8x128xf32>
    %c0_154 = arith.constant 0 : index
    %c0_155 = arith.constant 0 : index
    %290 = vector.load %arg8[%c0_154, %c0_155] : memref<8x128xf32, #tpu.memory_space<vmem>>, vector<8x128xf32>
    tpu.vector_store %arg8[%c0_154, %c0_155], %287 {strides = array<i32>} : memref<8x128xf32, #tpu.memory_space<vmem>>, vector<8x128xf32>,
    %c0_156 = arith.constant 0 : index
    %c0_157 = arith.constant 0 : index
    %291 = vector.load %arg7[%c0_156, %c0_157] : memref<8x128xf32, #tpu.memory_space<vmem>>, vector<8x128xf32>
    tpu.vector_store %arg7[%c0_156, %c0_157], %289 {strides = array<i32>} : memref<8x128xf32, #tpu.memory_space<vmem>>, vector<8x128xf32>,
    %c56_158 = arith.constant 56 : index
    %c0_159 = arith.constant 0 : index
    %292 = vector.load %arg5[%c56_158, %c0_159] : memref<64x128xf32, #tpu.memory_space<vmem>>, vector<8x128xf32>
    tpu.vector_store %arg5[%c56_158, %c0_159], %289 {strides = array<i32>} : memref<64x128xf32, #tpu.memory_space<vmem>>, vector<8x128xf32>,
    %c0_160 = arith.constant 0 : index
    %c0_161 = arith.constant 0 : index
    %293 = vector.load %arg5[%c0_160, %c0_161] : memref<64x128xf32, #tpu.memory_space<vmem>>, vector<64x128xf32>
    %c1 = arith.constant 1 : index
    %c0_162 = arith.constant 0 : index
    %c0_163 = arith.constant 0 : index
    %294 = vector.load %arg1[%c1, %c0_162, %c0_163] : memref<3x128x512xf32, #tpu.memory_space<vmem>>, vector<1x128x512xf32>
    %295 = vector.shape_cast %294 : vector<1x128x512xf32> to vector<128x512xf32>
    %cst_164 = arith.constant dense<0.000000e+00> : vector<64x512xf32>
    %296 = tpu.matmul %293, %295, %cst_164 {dimension_numbers = #tpu.dot_dimension_numbers<[1], [0], [0], [1], [0, 0, 1, 1], [], []>} : vector<64x128xf32>, vector<128x512xf32>, vector<64x512xf32> -> vector<64x512xf32>
    %c1_165 = arith.constant 1 : index
    %c0_166 = arith.constant 0 : index
    %c0_167 = arith.constant 0 : index
    %297 = vector.load %arg3[%c1_165, %c0_166, %c0_167] : memref<3x1x512xf32, #tpu.memory_space<vmem>>, vector<1x1x512xf32>
    %298 = vector.shape_cast %297 : vector<1x1x512xf32> to vector<1x512xf32>
    %299 = vector.broadcast %298 : vector<1x512xf32> to vector<64x512xf32>
    %300 = arith.addf %296, %299 : vector<64x512xf32>
    %c0_168 = arith.constant 0 : index
    %c0_169 = arith.constant 0 : index
    %301 = vector.load %arg6[%c0_168, %c0_169] : memref<64x512xf32, #tpu.memory_space<vmem>>, vector<64x512xf32>
    tpu.vector_store %arg6[%c0_168, %c0_169], %300 {strides = array<i32>} : memref<64x512xf32, #tpu.memory_space<vmem>>, vector<64x512xf32>,
    %cst_170 = arith.constant 0.000000e+00 : f32
    %302 = vector.broadcast %cst_170 : f32 to vector<8x128xf32>
    %c0_171 = arith.constant 0 : index
    %c0_172 = arith.constant 0 : index
    %303 = vector.load %arg7[%c0_171, %c0_172] : memref<8x128xf32, #tpu.memory_space<vmem>>, vector<8x128xf32>
    tpu.vector_store %arg7[%c0_171, %c0_172], %302 {strides = array<i32>} : memref<8x128xf32, #tpu.memory_space<vmem>>, vector<8x128xf32>,
    %cst_173 = arith.constant 0.000000e+00 : f32
    %304 = vector.broadcast %cst_173 : f32 to vector<8x128xf32>
    %c0_174 = arith.constant 0 : index
    %c0_175 = arith.constant 0 : index
    %305 = vector.load %arg8[%c0_174, %c0_175] : memref<8x128xf32, #tpu.memory_space<vmem>>, vector<8x128xf32>
    tpu.vector_store %arg8[%c0_174, %c0_175], %304 {strides = array<i32>} : memref<8x128xf32, #tpu.memory_space<vmem>>, vector<8x128xf32>,
    %c0_176 = arith.constant 0 : index
    %c0_177 = arith.constant 0 : index
    %306 = vector.load %arg6[%c0_176, %c0_177] : memref<64x512xf32, #tpu.memory_space<vmem>>, vector<8x512xf32>
    %c0_178 = arith.constant 0 : index
    %c0_179 = arith.constant 0 : index
    %307 = vector.load %arg7[%c0_178, %c0_179] : memref<8x128xf32, #tpu.memory_space<vmem>>, vector<8x128xf32>
    %c1_180 = arith.constant 1 : index
    %c0_181 = arith.constant 0 : index
    %c0_182 = arith.constant 0 : index
    %308 = vector.load %arg2[%c1_180, %c0_181, %c0_182] : memref<3x128x512xf32, #tpu.memory_space<vmem>>, vector<1x128x512xf32>
    %309 = vector.shape_cast %308 : vector<1x128x512xf32> to vector<128x512xf32>
    %cst_183 = arith.constant dense<0.000000e+00> : vector<8x512xf32>
    %310 = tpu.matmul %307, %309, %cst_183 {dimension_numbers = #tpu.dot_dimension_numbers<[1], [0], [0], [1], [0, 0, 1, 1], [], []>} : vector<8x128xf32>, vector<128x512xf32>, vector<8x512xf32> -> vector<8x512xf32>
    %311 = arith.addf %306, %310 : vector<8x512xf32>
    %312 = vector.extract_strided_slice %311 {offsets = [0, 0], sizes = [8, 128], strides = [1, 1]} : vector<8x512xf32> to vector<8x128xf32>
    %313 = arith.negf %312 : vector<8x128xf32>
    %314 = math.exp %313 : vector<8x128xf32>
    %cst_184 = arith.constant 1.000000e+00 : f32
    %315 = vector.broadcast %cst_184 : f32 to vector<8x128xf32>
    %316 = arith.addf %315, %314 : vector<8x128xf32>
    %317 = arith.divf %315, %316 : vector<8x128xf32>
    %318 = vector.extract_strided_slice %311 {offsets = [0, 128], sizes = [8, 128], strides = [1, 1]} : vector<8x512xf32> to vector<8x128xf32>
    %319 = arith.negf %318 : vector<8x128xf32>
    %320 = math.exp %319 : vector<8x128xf32>
    %cst_185 = arith.constant 1.000000e+00 : f32
    %321 = vector.broadcast %cst_185 : f32 to vector<8x128xf32>
    %322 = arith.addf %321, %320 : vector<8x128xf32>
    %323 = arith.divf %321, %322 : vector<8x128xf32>
    %324 = vector.extract_strided_slice %311 {offsets = [0, 256], sizes = [8, 128], strides = [1, 1]} : vector<8x512xf32> to vector<8x128xf32>
    %325 = math.tanh %324 : vector<8x128xf32>
    %326 = vector.extract_strided_slice %311 {offsets = [0, 384], sizes = [8, 128], strides = [1, 1]} : vector<8x512xf32> to vector<8x128xf32>
    %327 = arith.negf %326 : vector<8x128xf32>
    %328 = math.exp %327 : vector<8x128xf32>
    %cst_186 = arith.constant 1.000000e+00 : f32
    %329 = vector.broadcast %cst_186 : f32 to vector<8x128xf32>
    %330 = arith.addf %329, %328 : vector<8x128xf32>
    %331 = arith.divf %329, %330 : vector<8x128xf32>
    %c0_187 = arith.constant 0 : index
    %c0_188 = arith.constant 0 : index
    %332 = vector.load %arg8[%c0_187, %c0_188] : memref<8x128xf32, #tpu.memory_space<vmem>>, vector<8x128xf32>
    %333 = arith.mulf %323, %332 : vector<8x128xf32>
    %334 = arith.mulf %317, %325 : vector<8x128xf32>
    %335 = arith.addf %333, %334 : vector<8x128xf32>
    %336 = math.tanh %335 : vector<8x128xf32>
    %337 = arith.mulf %331, %336 : vector<8x128xf32>
    %c0_189 = arith.constant 0 : index
    %c0_190 = arith.constant 0 : index
    %338 = vector.load %arg8[%c0_189, %c0_190] : memref<8x128xf32, #tpu.memory_space<vmem>>, vector<8x128xf32>
    tpu.vector_store %arg8[%c0_189, %c0_190], %335 {strides = array<i32>} : memref<8x128xf32, #tpu.memory_space<vmem>>, vector<8x128xf32>,
    %c0_191 = arith.constant 0 : index
    %c0_192 = arith.constant 0 : index
    %339 = vector.load %arg7[%c0_191, %c0_192] : memref<8x128xf32, #tpu.memory_space<vmem>>, vector<8x128xf32>
    tpu.vector_store %arg7[%c0_191, %c0_192], %337 {strides = array<i32>} : memref<8x128xf32, #tpu.memory_space<vmem>>, vector<8x128xf32>,
    %c0_193 = arith.constant 0 : index
    %c0_194 = arith.constant 0 : index
    %340 = vector.load %arg5[%c0_193, %c0_194] : memref<64x128xf32, #tpu.memory_space<vmem>>, vector<8x128xf32>
    tpu.vector_store %arg5[%c0_193, %c0_194], %337 {strides = array<i32>} : memref<64x128xf32, #tpu.memory_space<vmem>>, vector<8x128xf32>,
    %c8_195 = arith.constant 8 : index
    %c0_196 = arith.constant 0 : index
    %341 = vector.load %arg6[%c8_195, %c0_196] : memref<64x512xf32, #tpu.memory_space<vmem>>, vector<8x512xf32>
    %c0_197 = arith.constant 0 : index
    %c0_198 = arith.constant 0 : index
    %342 = vector.load %arg7[%c0_197, %c0_198] : memref<8x128xf32, #tpu.memory_space<vmem>>, vector<8x128xf32>
    %c1_199 = arith.constant 1 : index
    %c0_200 = arith.constant 0 : index
    %c0_201 = arith.constant 0 : index
    %343 = vector.load %arg2[%c1_199, %c0_200, %c0_201] : memref<3x128x512xf32, #tpu.memory_space<vmem>>, vector<1x128x512xf32>
    %344 = vector.shape_cast %343 : vector<1x128x512xf32> to vector<128x512xf32>
    %cst_202 = arith.constant dense<0.000000e+00> : vector<8x512xf32>
    %345 = tpu.matmul %342, %344, %cst_202 {dimension_numbers = #tpu.dot_dimension_numbers<[1], [0], [0], [1], [0, 0, 1, 1], [], []>} : vector<8x128xf32>, vector<128x512xf32>, vector<8x512xf32> -> vector<8x512xf32>
    %346 = arith.addf %341, %345 : vector<8x512xf32>
    %347 = vector.extract_strided_slice %346 {offsets = [0, 0], sizes = [8, 128], strides = [1, 1]} : vector<8x512xf32> to vector<8x128xf32>
    %348 = arith.negf %347 : vector<8x128xf32>
    %349 = math.exp %348 : vector<8x128xf32>
    %cst_203 = arith.constant 1.000000e+00 : f32
    %350 = vector.broadcast %cst_203 : f32 to vector<8x128xf32>
    %351 = arith.addf %350, %349 : vector<8x128xf32>
    %352 = arith.divf %350, %351 : vector<8x128xf32>
    %353 = vector.extract_strided_slice %346 {offsets = [0, 128], sizes = [8, 128], strides = [1, 1]} : vector<8x512xf32> to vector<8x128xf32>
    %354 = arith.negf %353 : vector<8x128xf32>
    %355 = math.exp %354 : vector<8x128xf32>
    %cst_204 = arith.constant 1.000000e+00 : f32
    %356 = vector.broadcast %cst_204 : f32 to vector<8x128xf32>
    %357 = arith.addf %356, %355 : vector<8x128xf32>
    %358 = arith.divf %356, %357 : vector<8x128xf32>
    %359 = vector.extract_strided_slice %346 {offsets = [0, 256], sizes = [8, 128], strides = [1, 1]} : vector<8x512xf32> to vector<8x128xf32>
    %360 = math.tanh %359 : vector<8x128xf32>
    %361 = vector.extract_strided_slice %346 {offsets = [0, 384], sizes = [8, 128], strides = [1, 1]} : vector<8x512xf32> to vector<8x128xf32>
    %362 = arith.negf %361 : vector<8x128xf32>
    %363 = math.exp %362 : vector<8x128xf32>
    %cst_205 = arith.constant 1.000000e+00 : f32
    %364 = vector.broadcast %cst_205 : f32 to vector<8x128xf32>
    %365 = arith.addf %364, %363 : vector<8x128xf32>
    %366 = arith.divf %364, %365 : vector<8x128xf32>
    %c0_206 = arith.constant 0 : index
    %c0_207 = arith.constant 0 : index
    %367 = vector.load %arg8[%c0_206, %c0_207] : memref<8x128xf32, #tpu.memory_space<vmem>>, vector<8x128xf32>
    %368 = arith.mulf %358, %367 : vector<8x128xf32>
    %369 = arith.mulf %352, %360 : vector<8x128xf32>
    %370 = arith.addf %368, %369 : vector<8x128xf32>
    %371 = math.tanh %370 : vector<8x128xf32>
    %372 = arith.mulf %366, %371 : vector<8x128xf32>
    %c0_208 = arith.constant 0 : index
    %c0_209 = arith.constant 0 : index
    %373 = vector.load %arg8[%c0_208, %c0_209] : memref<8x128xf32, #tpu.memory_space<vmem>>, vector<8x128xf32>
    tpu.vector_store %arg8[%c0_208, %c0_209], %370 {strides = array<i32>} : memref<8x128xf32, #tpu.memory_space<vmem>>, vector<8x128xf32>,
    %c0_210 = arith.constant 0 : index
    %c0_211 = arith.constant 0 : index
    %374 = vector.load %arg7[%c0_210, %c0_211] : memref<8x128xf32, #tpu.memory_space<vmem>>, vector<8x128xf32>
    tpu.vector_store %arg7[%c0_210, %c0_211], %372 {strides = array<i32>} : memref<8x128xf32, #tpu.memory_space<vmem>>, vector<8x128xf32>,
    %c8_212 = arith.constant 8 : index
    %c0_213 = arith.constant 0 : index
    %375 = vector.load %arg5[%c8_212, %c0_213] : memref<64x128xf32, #tpu.memory_space<vmem>>, vector<8x128xf32>
    tpu.vector_store %arg5[%c8_212, %c0_213], %372 {strides = array<i32>} : memref<64x128xf32, #tpu.memory_space<vmem>>, vector<8x128xf32>,
    %c16_214 = arith.constant 16 : index
    %c0_215 = arith.constant 0 : index
    %376 = vector.load %arg6[%c16_214, %c0_215] : memref<64x512xf32, #tpu.memory_space<vmem>>, vector<8x512xf32>
    %c0_216 = arith.constant 0 : index
    %c0_217 = arith.constant 0 : index
    %377 = vector.load %arg7[%c0_216, %c0_217] : memref<8x128xf32, #tpu.memory_space<vmem>>, vector<8x128xf32>
    %c1_218 = arith.constant 1 : index
    %c0_219 = arith.constant 0 : index
    %c0_220 = arith.constant 0 : index
    %378 = vector.load %arg2[%c1_218, %c0_219, %c0_220] : memref<3x128x512xf32, #tpu.memory_space<vmem>>, vector<1x128x512xf32>
    %379 = vector.shape_cast %378 : vector<1x128x512xf32> to vector<128x512xf32>
    %cst_221 = arith.constant dense<0.000000e+00> : vector<8x512xf32>
    %380 = tpu.matmul %377, %379, %cst_221 {dimension_numbers = #tpu.dot_dimension_numbers<[1], [0], [0], [1], [0, 0, 1, 1], [], []>} : vector<8x128xf32>, vector<128x512xf32>, vector<8x512xf32> -> vector<8x512xf32>
    %381 = arith.addf %376, %380 : vector<8x512xf32>
    %382 = vector.extract_strided_slice %381 {offsets = [0, 0], sizes = [8, 128], strides = [1, 1]} : vector<8x512xf32> to vector<8x128xf32>
    %383 = arith.negf %382 : vector<8x128xf32>
    %384 = math.exp %383 : vector<8x128xf32>
    %cst_222 = arith.constant 1.000000e+00 : f32
    %385 = vector.broadcast %cst_222 : f32 to vector<8x128xf32>
    %386 = arith.addf %385, %384 : vector<8x128xf32>
    %387 = arith.divf %385, %386 : vector<8x128xf32>
    %388 = vector.extract_strided_slice %381 {offsets = [0, 128], sizes = [8, 128], strides = [1, 1]} : vector<8x512xf32> to vector<8x128xf32>
    %389 = arith.negf %388 : vector<8x128xf32>
    %390 = math.exp %389 : vector<8x128xf32>
    %cst_223 = arith.constant 1.000000e+00 : f32
    %391 = vector.broadcast %cst_223 : f32 to vector<8x128xf32>
    %392 = arith.addf %391, %390 : vector<8x128xf32>
    %393 = arith.divf %391, %392 : vector<8x128xf32>
    %394 = vector.extract_strided_slice %381 {offsets = [0, 256], sizes = [8, 128], strides = [1, 1]} : vector<8x512xf32> to vector<8x128xf32>
    %395 = math.tanh %394 : vector<8x128xf32>
    %396 = vector.extract_strided_slice %381 {offsets = [0, 384], sizes = [8, 128], strides = [1, 1]} : vector<8x512xf32> to vector<8x128xf32>
    %397 = arith.negf %396 : vector<8x128xf32>
    %398 = math.exp %397 : vector<8x128xf32>
    %cst_224 = arith.constant 1.000000e+00 : f32
    %399 = vector.broadcast %cst_224 : f32 to vector<8x128xf32>
    %400 = arith.addf %399, %398 : vector<8x128xf32>
    %401 = arith.divf %399, %400 : vector<8x128xf32>
    %c0_225 = arith.constant 0 : index
    %c0_226 = arith.constant 0 : index
    %402 = vector.load %arg8[%c0_225, %c0_226] : memref<8x128xf32, #tpu.memory_space<vmem>>, vector<8x128xf32>
    %403 = arith.mulf %393, %402 : vector<8x128xf32>
    %404 = arith.mulf %387, %395 : vector<8x128xf32>
    %405 = arith.addf %403, %404 : vector<8x128xf32>
    %406 = math.tanh %405 : vector<8x128xf32>
    %407 = arith.mulf %401, %406 : vector<8x128xf32>
    %c0_227 = arith.constant 0 : index
    %c0_228 = arith.constant 0 : index
    %408 = vector.load %arg8[%c0_227, %c0_228] : memref<8x128xf32, #tpu.memory_space<vmem>>, vector<8x128xf32>
    tpu.vector_store %arg8[%c0_227, %c0_228], %405 {strides = array<i32>} : memref<8x128xf32, #tpu.memory_space<vmem>>, vector<8x128xf32>,
    %c0_229 = arith.constant 0 : index
    %c0_230 = arith.constant 0 : index
    %409 = vector.load %arg7[%c0_229, %c0_230] : memref<8x128xf32, #tpu.memory_space<vmem>>, vector<8x128xf32>
    tpu.vector_store %arg7[%c0_229, %c0_230], %407 {strides = array<i32>} : memref<8x128xf32, #tpu.memory_space<vmem>>, vector<8x128xf32>,
    %c16_231 = arith.constant 16 : index
    %c0_232 = arith.constant 0 : index
    %410 = vector.load %arg5[%c16_231, %c0_232] : memref<64x128xf32, #tpu.memory_space<vmem>>, vector<8x128xf32>
    tpu.vector_store %arg5[%c16_231, %c0_232], %407 {strides = array<i32>} : memref<64x128xf32, #tpu.memory_space<vmem>>, vector<8x128xf32>,
    %c24_233 = arith.constant 24 : index
    %c0_234 = arith.constant 0 : index
    %411 = vector.load %arg6[%c24_233, %c0_234] : memref<64x512xf32, #tpu.memory_space<vmem>>, vector<8x512xf32>
    %c0_235 = arith.constant 0 : index
    %c0_236 = arith.constant 0 : index
    %412 = vector.load %arg7[%c0_235, %c0_236] : memref<8x128xf32, #tpu.memory_space<vmem>>, vector<8x128xf32>
    %c1_237 = arith.constant 1 : index
    %c0_238 = arith.constant 0 : index
    %c0_239 = arith.constant 0 : index
    %413 = vector.load %arg2[%c1_237, %c0_238, %c0_239] : memref<3x128x512xf32, #tpu.memory_space<vmem>>, vector<1x128x512xf32>
    %414 = vector.shape_cast %413 : vector<1x128x512xf32> to vector<128x512xf32>
    %cst_240 = arith.constant dense<0.000000e+00> : vector<8x512xf32>
    %415 = tpu.matmul %412, %414, %cst_240 {dimension_numbers = #tpu.dot_dimension_numbers<[1], [0], [0], [1], [0, 0, 1, 1], [], []>} : vector<8x128xf32>, vector<128x512xf32>, vector<8x512xf32> -> vector<8x512xf32>
    %416 = arith.addf %411, %415 : vector<8x512xf32>
    %417 = vector.extract_strided_slice %416 {offsets = [0, 0], sizes = [8, 128], strides = [1, 1]} : vector<8x512xf32> to vector<8x128xf32>
    %418 = arith.negf %417 : vector<8x128xf32>
    %419 = math.exp %418 : vector<8x128xf32>
    %cst_241 = arith.constant 1.000000e+00 : f32
    %420 = vector.broadcast %cst_241 : f32 to vector<8x128xf32>
    %421 = arith.addf %420, %419 : vector<8x128xf32>
    %422 = arith.divf %420, %421 : vector<8x128xf32>
    %423 = vector.extract_strided_slice %416 {offsets = [0, 128], sizes = [8, 128], strides = [1, 1]} : vector<8x512xf32> to vector<8x128xf32>
    %424 = arith.negf %423 : vector<8x128xf32>
    %425 = math.exp %424 : vector<8x128xf32>
    %cst_242 = arith.constant 1.000000e+00 : f32
    %426 = vector.broadcast %cst_242 : f32 to vector<8x128xf32>
    %427 = arith.addf %426, %425 : vector<8x128xf32>
    %428 = arith.divf %426, %427 : vector<8x128xf32>
    %429 = vector.extract_strided_slice %416 {offsets = [0, 256], sizes = [8, 128], strides = [1, 1]} : vector<8x512xf32> to vector<8x128xf32>
    %430 = math.tanh %429 : vector<8x128xf32>
    %431 = vector.extract_strided_slice %416 {offsets = [0, 384], sizes = [8, 128], strides = [1, 1]} : vector<8x512xf32> to vector<8x128xf32>
    %432 = arith.negf %431 : vector<8x128xf32>
    %433 = math.exp %432 : vector<8x128xf32>
    %cst_243 = arith.constant 1.000000e+00 : f32
    %434 = vector.broadcast %cst_243 : f32 to vector<8x128xf32>
    %435 = arith.addf %434, %433 : vector<8x128xf32>
    %436 = arith.divf %434, %435 : vector<8x128xf32>
    %c0_244 = arith.constant 0 : index
    %c0_245 = arith.constant 0 : index
    %437 = vector.load %arg8[%c0_244, %c0_245] : memref<8x128xf32, #tpu.memory_space<vmem>>, vector<8x128xf32>
    %438 = arith.mulf %428, %437 : vector<8x128xf32>
    %439 = arith.mulf %422, %430 : vector<8x128xf32>
    %440 = arith.addf %438, %439 : vector<8x128xf32>
    %441 = math.tanh %440 : vector<8x128xf32>
    %442 = arith.mulf %436, %441 : vector<8x128xf32>
    %c0_246 = arith.constant 0 : index
    %c0_247 = arith.constant 0 : index
    %443 = vector.load %arg8[%c0_246, %c0_247] : memref<8x128xf32, #tpu.memory_space<vmem>>, vector<8x128xf32>
    tpu.vector_store %arg8[%c0_246, %c0_247], %440 {strides = array<i32>} : memref<8x128xf32, #tpu.memory_space<vmem>>, vector<8x128xf32>,
    %c0_248 = arith.constant 0 : index
    %c0_249 = arith.constant 0 : index
    %444 = vector.load %arg7[%c0_248, %c0_249] : memref<8x128xf32, #tpu.memory_space<vmem>>, vector<8x128xf32>
    tpu.vector_store %arg7[%c0_248, %c0_249], %442 {strides = array<i32>} : memref<8x128xf32, #tpu.memory_space<vmem>>, vector<8x128xf32>,
    %c24_250 = arith.constant 24 : index
    %c0_251 = arith.constant 0 : index
    %445 = vector.load %arg5[%c24_250, %c0_251] : memref<64x128xf32, #tpu.memory_space<vmem>>, vector<8x128xf32>
    tpu.vector_store %arg5[%c24_250, %c0_251], %442 {strides = array<i32>} : memref<64x128xf32, #tpu.memory_space<vmem>>, vector<8x128xf32>,
    %c32_252 = arith.constant 32 : index
    %c0_253 = arith.constant 0 : index
    %446 = vector.load %arg6[%c32_252, %c0_253] : memref<64x512xf32, #tpu.memory_space<vmem>>, vector<8x512xf32>
    %c0_254 = arith.constant 0 : index
    %c0_255 = arith.constant 0 : index
    %447 = vector.load %arg7[%c0_254, %c0_255] : memref<8x128xf32, #tpu.memory_space<vmem>>, vector<8x128xf32>
    %c1_256 = arith.constant 1 : index
    %c0_257 = arith.constant 0 : index
    %c0_258 = arith.constant 0 : index
    %448 = vector.load %arg2[%c1_256, %c0_257, %c0_258] : memref<3x128x512xf32, #tpu.memory_space<vmem>>, vector<1x128x512xf32>
    %449 = vector.shape_cast %448 : vector<1x128x512xf32> to vector<128x512xf32>
    %cst_259 = arith.constant dense<0.000000e+00> : vector<8x512xf32>
    %450 = tpu.matmul %447, %449, %cst_259 {dimension_numbers = #tpu.dot_dimension_numbers<[1], [0], [0], [1], [0, 0, 1, 1], [], []>} : vector<8x128xf32>, vector<128x512xf32>, vector<8x512xf32> -> vector<8x512xf32>
    %451 = arith.addf %446, %450 : vector<8x512xf32>
    %452 = vector.extract_strided_slice %451 {offsets = [0, 0], sizes = [8, 128], strides = [1, 1]} : vector<8x512xf32> to vector<8x128xf32>
    %453 = arith.negf %452 : vector<8x128xf32>
    %454 = math.exp %453 : vector<8x128xf32>
    %cst_260 = arith.constant 1.000000e+00 : f32
    %455 = vector.broadcast %cst_260 : f32 to vector<8x128xf32>
    %456 = arith.addf %455, %454 : vector<8x128xf32>
    %457 = arith.divf %455, %456 : vector<8x128xf32>
    %458 = vector.extract_strided_slice %451 {offsets = [0, 128], sizes = [8, 128], strides = [1, 1]} : vector<8x512xf32> to vector<8x128xf32>
    %459 = arith.negf %458 : vector<8x128xf32>
    %460 = math.exp %459 : vector<8x128xf32>
    %cst_261 = arith.constant 1.000000e+00 : f32
    %461 = vector.broadcast %cst_261 : f32 to vector<8x128xf32>
    %462 = arith.addf %461, %460 : vector<8x128xf32>
    %463 = arith.divf %461, %462 : vector<8x128xf32>
    %464 = vector.extract_strided_slice %451 {offsets = [0, 256], sizes = [8, 128], strides = [1, 1]} : vector<8x512xf32> to vector<8x128xf32>
    %465 = math.tanh %464 : vector<8x128xf32>
    %466 = vector.extract_strided_slice %451 {offsets = [0, 384], sizes = [8, 128], strides = [1, 1]} : vector<8x512xf32> to vector<8x128xf32>
    %467 = arith.negf %466 : vector<8x128xf32>
    %468 = math.exp %467 : vector<8x128xf32>
    %cst_262 = arith.constant 1.000000e+00 : f32
    %469 = vector.broadcast %cst_262 : f32 to vector<8x128xf32>
    %470 = arith.addf %469, %468 : vector<8x128xf32>
    %471 = arith.divf %469, %470 : vector<8x128xf32>
    %c0_263 = arith.constant 0 : index
    %c0_264 = arith.constant 0 : index
    %472 = vector.load %arg8[%c0_263, %c0_264] : memref<8x128xf32, #tpu.memory_space<vmem>>, vector<8x128xf32>
    %473 = arith.mulf %463, %472 : vector<8x128xf32>
    %474 = arith.mulf %457, %465 : vector<8x128xf32>
    %475 = arith.addf %473, %474 : vector<8x128xf32>
    %476 = math.tanh %475 : vector<8x128xf32>
    %477 = arith.mulf %471, %476 : vector<8x128xf32>
    %c0_265 = arith.constant 0 : index
    %c0_266 = arith.constant 0 : index
    %478 = vector.load %arg8[%c0_265, %c0_266] : memref<8x128xf32, #tpu.memory_space<vmem>>, vector<8x128xf32>
    tpu.vector_store %arg8[%c0_265, %c0_266], %475 {strides = array<i32>} : memref<8x128xf32, #tpu.memory_space<vmem>>, vector<8x128xf32>,
    %c0_267 = arith.constant 0 : index
    %c0_268 = arith.constant 0 : index
    %479 = vector.load %arg7[%c0_267, %c0_268] : memref<8x128xf32, #tpu.memory_space<vmem>>, vector<8x128xf32>
    tpu.vector_store %arg7[%c0_267, %c0_268], %477 {strides = array<i32>} : memref<8x128xf32, #tpu.memory_space<vmem>>, vector<8x128xf32>,
    %c32_269 = arith.constant 32 : index
    %c0_270 = arith.constant 0 : index
    %480 = vector.load %arg5[%c32_269, %c0_270] : memref<64x128xf32, #tpu.memory_space<vmem>>, vector<8x128xf32>
    tpu.vector_store %arg5[%c32_269, %c0_270], %477 {strides = array<i32>} : memref<64x128xf32, #tpu.memory_space<vmem>>, vector<8x128xf32>,
    %c40_271 = arith.constant 40 : index
    %c0_272 = arith.constant 0 : index
    %481 = vector.load %arg6[%c40_271, %c0_272] : memref<64x512xf32, #tpu.memory_space<vmem>>, vector<8x512xf32>
    %c0_273 = arith.constant 0 : index
    %c0_274 = arith.constant 0 : index
    %482 = vector.load %arg7[%c0_273, %c0_274] : memref<8x128xf32, #tpu.memory_space<vmem>>, vector<8x128xf32>
    %c1_275 = arith.constant 1 : index
    %c0_276 = arith.constant 0 : index
    %c0_277 = arith.constant 0 : index
    %483 = vector.load %arg2[%c1_275, %c0_276, %c0_277] : memref<3x128x512xf32, #tpu.memory_space<vmem>>, vector<1x128x512xf32>
    %484 = vector.shape_cast %483 : vector<1x128x512xf32> to vector<128x512xf32>
    %cst_278 = arith.constant dense<0.000000e+00> : vector<8x512xf32>
    %485 = tpu.matmul %482, %484, %cst_278 {dimension_numbers = #tpu.dot_dimension_numbers<[1], [0], [0], [1], [0, 0, 1, 1], [], []>} : vector<8x128xf32>, vector<128x512xf32>, vector<8x512xf32> -> vector<8x512xf32>
    %486 = arith.addf %481, %485 : vector<8x512xf32>
    %487 = vector.extract_strided_slice %486 {offsets = [0, 0], sizes = [8, 128], strides = [1, 1]} : vector<8x512xf32> to vector<8x128xf32>
    %488 = arith.negf %487 : vector<8x128xf32>
    %489 = math.exp %488 : vector<8x128xf32>
    %cst_279 = arith.constant 1.000000e+00 : f32
    %490 = vector.broadcast %cst_279 : f32 to vector<8x128xf32>
    %491 = arith.addf %490, %489 : vector<8x128xf32>
    %492 = arith.divf %490, %491 : vector<8x128xf32>
    %493 = vector.extract_strided_slice %486 {offsets = [0, 128], sizes = [8, 128], strides = [1, 1]} : vector<8x512xf32> to vector<8x128xf32>
    %494 = arith.negf %493 : vector<8x128xf32>
    %495 = math.exp %494 : vector<8x128xf32>
    %cst_280 = arith.constant 1.000000e+00 : f32
    %496 = vector.broadcast %cst_280 : f32 to vector<8x128xf32>
    %497 = arith.addf %496, %495 : vector<8x128xf32>
    %498 = arith.divf %496, %497 : vector<8x128xf32>
    %499 = vector.extract_strided_slice %486 {offsets = [0, 256], sizes = [8, 128], strides = [1, 1]} : vector<8x512xf32> to vector<8x128xf32>
    %500 = math.tanh %499 : vector<8x128xf32>
    %501 = vector.extract_strided_slice %486 {offsets = [0, 384], sizes = [8, 128], strides = [1, 1]} : vector<8x512xf32> to vector<8x128xf32>
    %502 = arith.negf %501 : vector<8x128xf32>
    %503 = math.exp %502 : vector<8x128xf32>
    %cst_281 = arith.constant 1.000000e+00 : f32
    %504 = vector.broadcast %cst_281 : f32 to vector<8x128xf32>
    %505 = arith.addf %504, %503 : vector<8x128xf32>
    %506 = arith.divf %504, %505 : vector<8x128xf32>
    %c0_282 = arith.constant 0 : index
    %c0_283 = arith.constant 0 : index
    %507 = vector.load %arg8[%c0_282, %c0_283] : memref<8x128xf32, #tpu.memory_space<vmem>>, vector<8x128xf32>
    %508 = arith.mulf %498, %507 : vector<8x128xf32>
    %509 = arith.mulf %492, %500 : vector<8x128xf32>
    %510 = arith.addf %508, %509 : vector<8x128xf32>
    %511 = math.tanh %510 : vector<8x128xf32>
    %512 = arith.mulf %506, %511 : vector<8x128xf32>
    %c0_284 = arith.constant 0 : index
    %c0_285 = arith.constant 0 : index
    %513 = vector.load %arg8[%c0_284, %c0_285] : memref<8x128xf32, #tpu.memory_space<vmem>>, vector<8x128xf32>
    tpu.vector_store %arg8[%c0_284, %c0_285], %510 {strides = array<i32>} : memref<8x128xf32, #tpu.memory_space<vmem>>, vector<8x128xf32>,
    %c0_286 = arith.constant 0 : index
    %c0_287 = arith.constant 0 : index
    %514 = vector.load %arg7[%c0_286, %c0_287] : memref<8x128xf32, #tpu.memory_space<vmem>>, vector<8x128xf32>
    tpu.vector_store %arg7[%c0_286, %c0_287], %512 {strides = array<i32>} : memref<8x128xf32, #tpu.memory_space<vmem>>, vector<8x128xf32>,
    %c40_288 = arith.constant 40 : index
    %c0_289 = arith.constant 0 : index
    %515 = vector.load %arg5[%c40_288, %c0_289] : memref<64x128xf32, #tpu.memory_space<vmem>>, vector<8x128xf32>
    tpu.vector_store %arg5[%c40_288, %c0_289], %512 {strides = array<i32>} : memref<64x128xf32, #tpu.memory_space<vmem>>, vector<8x128xf32>,
    %c48_290 = arith.constant 48 : index
    %c0_291 = arith.constant 0 : index
    %516 = vector.load %arg6[%c48_290, %c0_291] : memref<64x512xf32, #tpu.memory_space<vmem>>, vector<8x512xf32>
    %c0_292 = arith.constant 0 : index
    %c0_293 = arith.constant 0 : index
    %517 = vector.load %arg7[%c0_292, %c0_293] : memref<8x128xf32, #tpu.memory_space<vmem>>, vector<8x128xf32>
    %c1_294 = arith.constant 1 : index
    %c0_295 = arith.constant 0 : index
    %c0_296 = arith.constant 0 : index
    %518 = vector.load %arg2[%c1_294, %c0_295, %c0_296] : memref<3x128x512xf32, #tpu.memory_space<vmem>>, vector<1x128x512xf32>
    %519 = vector.shape_cast %518 : vector<1x128x512xf32> to vector<128x512xf32>
    %cst_297 = arith.constant dense<0.000000e+00> : vector<8x512xf32>
    %520 = tpu.matmul %517, %519, %cst_297 {dimension_numbers = #tpu.dot_dimension_numbers<[1], [0], [0], [1], [0, 0, 1, 1], [], []>} : vector<8x128xf32>, vector<128x512xf32>, vector<8x512xf32> -> vector<8x512xf32>
    %521 = arith.addf %516, %520 : vector<8x512xf32>
    %522 = vector.extract_strided_slice %521 {offsets = [0, 0], sizes = [8, 128], strides = [1, 1]} : vector<8x512xf32> to vector<8x128xf32>
    %523 = arith.negf %522 : vector<8x128xf32>
    %524 = math.exp %523 : vector<8x128xf32>
    %cst_298 = arith.constant 1.000000e+00 : f32
    %525 = vector.broadcast %cst_298 : f32 to vector<8x128xf32>
    %526 = arith.addf %525, %524 : vector<8x128xf32>
    %527 = arith.divf %525, %526 : vector<8x128xf32>
    %528 = vector.extract_strided_slice %521 {offsets = [0, 128], sizes = [8, 128], strides = [1, 1]} : vector<8x512xf32> to vector<8x128xf32>
    %529 = arith.negf %528 : vector<8x128xf32>
    %530 = math.exp %529 : vector<8x128xf32>
    %cst_299 = arith.constant 1.000000e+00 : f32
    %531 = vector.broadcast %cst_299 : f32 to vector<8x128xf32>
    %532 = arith.addf %531, %530 : vector<8x128xf32>
    %533 = arith.divf %531, %532 : vector<8x128xf32>
    %534 = vector.extract_strided_slice %521 {offsets = [0, 256], sizes = [8, 128], strides = [1, 1]} : vector<8x512xf32> to vector<8x128xf32>
    %535 = math.tanh %534 : vector<8x128xf32>
    %536 = vector.extract_strided_slice %521 {offsets = [0, 384], sizes = [8, 128], strides = [1, 1]} : vector<8x512xf32> to vector<8x128xf32>
    %537 = arith.negf %536 : vector<8x128xf32>
    %538 = math.exp %537 : vector<8x128xf32>
    %cst_300 = arith.constant 1.000000e+00 : f32
    %539 = vector.broadcast %cst_300 : f32 to vector<8x128xf32>
    %540 = arith.addf %539, %538 : vector<8x128xf32>
    %541 = arith.divf %539, %540 : vector<8x128xf32>
    %c0_301 = arith.constant 0 : index
    %c0_302 = arith.constant 0 : index
    %542 = vector.load %arg8[%c0_301, %c0_302] : memref<8x128xf32, #tpu.memory_space<vmem>>, vector<8x128xf32>
    %543 = arith.mulf %533, %542 : vector<8x128xf32>
    %544 = arith.mulf %527, %535 : vector<8x128xf32>
    %545 = arith.addf %543, %544 : vector<8x128xf32>
    %546 = math.tanh %545 : vector<8x128xf32>
    %547 = arith.mulf %541, %546 : vector<8x128xf32>
    %c0_303 = arith.constant 0 : index
    %c0_304 = arith.constant 0 : index
    %548 = vector.load %arg8[%c0_303, %c0_304] : memref<8x128xf32, #tpu.memory_space<vmem>>, vector<8x128xf32>
    tpu.vector_store %arg8[%c0_303, %c0_304], %545 {strides = array<i32>} : memref<8x128xf32, #tpu.memory_space<vmem>>, vector<8x128xf32>,
    %c0_305 = arith.constant 0 : index
    %c0_306 = arith.constant 0 : index
    %549 = vector.load %arg7[%c0_305, %c0_306] : memref<8x128xf32, #tpu.memory_space<vmem>>, vector<8x128xf32>
    tpu.vector_store %arg7[%c0_305, %c0_306], %547 {strides = array<i32>} : memref<8x128xf32, #tpu.memory_space<vmem>>, vector<8x128xf32>,
    %c48_307 = arith.constant 48 : index
    %c0_308 = arith.constant 0 : index
    %550 = vector.load %arg5[%c48_307, %c0_308] : memref<64x128xf32, #tpu.memory_space<vmem>>, vector<8x128xf32>
    tpu.vector_store %arg5[%c48_307, %c0_308], %547 {strides = array<i32>} : memref<64x128xf32, #tpu.memory_space<vmem>>, vector<8x128xf32>,
    %c56_309 = arith.constant 56 : index
    %c0_310 = arith.constant 0 : index
    %551 = vector.load %arg6[%c56_309, %c0_310] : memref<64x512xf32, #tpu.memory_space<vmem>>, vector<8x512xf32>
    %c0_311 = arith.constant 0 : index
    %c0_312 = arith.constant 0 : index
    %552 = vector.load %arg7[%c0_311, %c0_312] : memref<8x128xf32, #tpu.memory_space<vmem>>, vector<8x128xf32>
    %c1_313 = arith.constant 1 : index
    %c0_314 = arith.constant 0 : index
    %c0_315 = arith.constant 0 : index
    %553 = vector.load %arg2[%c1_313, %c0_314, %c0_315] : memref<3x128x512xf32, #tpu.memory_space<vmem>>, vector<1x128x512xf32>
    %554 = vector.shape_cast %553 : vector<1x128x512xf32> to vector<128x512xf32>
    %cst_316 = arith.constant dense<0.000000e+00> : vector<8x512xf32>
    %555 = tpu.matmul %552, %554, %cst_316 {dimension_numbers = #tpu.dot_dimension_numbers<[1], [0], [0], [1], [0, 0, 1, 1], [], []>} : vector<8x128xf32>, vector<128x512xf32>, vector<8x512xf32> -> vector<8x512xf32>
    %556 = arith.addf %551, %555 : vector<8x512xf32>
    %557 = vector.extract_strided_slice %556 {offsets = [0, 0], sizes = [8, 128], strides = [1, 1]} : vector<8x512xf32> to vector<8x128xf32>
    %558 = arith.negf %557 : vector<8x128xf32>
    %559 = math.exp %558 : vector<8x128xf32>
    %cst_317 = arith.constant 1.000000e+00 : f32
    %560 = vector.broadcast %cst_317 : f32 to vector<8x128xf32>
    %561 = arith.addf %560, %559 : vector<8x128xf32>
    %562 = arith.divf %560, %561 : vector<8x128xf32>
    %563 = vector.extract_strided_slice %556 {offsets = [0, 128], sizes = [8, 128], strides = [1, 1]} : vector<8x512xf32> to vector<8x128xf32>
    %564 = arith.negf %563 : vector<8x128xf32>
    %565 = math.exp %564 : vector<8x128xf32>
    %cst_318 = arith.constant 1.000000e+00 : f32
    %566 = vector.broadcast %cst_318 : f32 to vector<8x128xf32>
    %567 = arith.addf %566, %565 : vector<8x128xf32>
    %568 = arith.divf %566, %567 : vector<8x128xf32>
    %569 = vector.extract_strided_slice %556 {offsets = [0, 256], sizes = [8, 128], strides = [1, 1]} : vector<8x512xf32> to vector<8x128xf32>
    %570 = math.tanh %569 : vector<8x128xf32>
    %571 = vector.extract_strided_slice %556 {offsets = [0, 384], sizes = [8, 128], strides = [1, 1]} : vector<8x512xf32> to vector<8x128xf32>
    %572 = arith.negf %571 : vector<8x128xf32>
    %573 = math.exp %572 : vector<8x128xf32>
    %cst_319 = arith.constant 1.000000e+00 : f32
    %574 = vector.broadcast %cst_319 : f32 to vector<8x128xf32>
    %575 = arith.addf %574, %573 : vector<8x128xf32>
    %576 = arith.divf %574, %575 : vector<8x128xf32>
    %c0_320 = arith.constant 0 : index
    %c0_321 = arith.constant 0 : index
    %577 = vector.load %arg8[%c0_320, %c0_321] : memref<8x128xf32, #tpu.memory_space<vmem>>, vector<8x128xf32>
    %578 = arith.mulf %568, %577 : vector<8x128xf32>
    %579 = arith.mulf %562, %570 : vector<8x128xf32>
    %580 = arith.addf %578, %579 : vector<8x128xf32>
    %581 = math.tanh %580 : vector<8x128xf32>
    %582 = arith.mulf %576, %581 : vector<8x128xf32>
    %c0_322 = arith.constant 0 : index
    %c0_323 = arith.constant 0 : index
    %583 = vector.load %arg8[%c0_322, %c0_323] : memref<8x128xf32, #tpu.memory_space<vmem>>, vector<8x128xf32>
    tpu.vector_store %arg8[%c0_322, %c0_323], %580 {strides = array<i32>} : memref<8x128xf32, #tpu.memory_space<vmem>>, vector<8x128xf32>,
    %c0_324 = arith.constant 0 : index
    %c0_325 = arith.constant 0 : index
    %584 = vector.load %arg7[%c0_324, %c0_325] : memref<8x128xf32, #tpu.memory_space<vmem>>, vector<8x128xf32>
    tpu.vector_store %arg7[%c0_324, %c0_325], %582 {strides = array<i32>} : memref<8x128xf32, #tpu.memory_space<vmem>>, vector<8x128xf32>,
    %c56_326 = arith.constant 56 : index
    %c0_327 = arith.constant 0 : index
    %585 = vector.load %arg5[%c56_326, %c0_327] : memref<64x128xf32, #tpu.memory_space<vmem>>, vector<8x128xf32>
    tpu.vector_store %arg5[%c56_326, %c0_327], %582 {strides = array<i32>} : memref<64x128xf32, #tpu.memory_space<vmem>>, vector<8x128xf32>,
    %c0_328 = arith.constant 0 : index
    %c0_329 = arith.constant 0 : index
    %586 = vector.load %arg5[%c0_328, %c0_329] : memref<64x128xf32, #tpu.memory_space<vmem>>, vector<64x128xf32>
    %c2 = arith.constant 2 : index
    %c0_330 = arith.constant 0 : index
    %c0_331 = arith.constant 0 : index
    %587 = vector.load %arg1[%c2, %c0_330, %c0_331] : memref<3x128x512xf32, #tpu.memory_space<vmem>>, vector<1x128x512xf32>
    %588 = vector.shape_cast %587 : vector<1x128x512xf32> to vector<128x512xf32>
    %cst_332 = arith.constant dense<0.000000e+00> : vector<64x512xf32>
    %589 = tpu.matmul %586, %588, %cst_332 {dimension_numbers = #tpu.dot_dimension_numbers<[1], [0], [0], [1], [0, 0, 1, 1], [], []>} : vector<64x128xf32>, vector<128x512xf32>, vector<64x512xf32> -> vector<64x512xf32>
    %c2_333 = arith.constant 2 : index
    %c0_334 = arith.constant 0 : index
    %c0_335 = arith.constant 0 : index
    %590 = vector.load %arg3[%c2_333, %c0_334, %c0_335] : memref<3x1x512xf32, #tpu.memory_space<vmem>>, vector<1x1x512xf32>
    %591 = vector.shape_cast %590 : vector<1x1x512xf32> to vector<1x512xf32>
    %592 = vector.broadcast %591 : vector<1x512xf32> to vector<64x512xf32>
    %593 = arith.addf %589, %592 : vector<64x512xf32>
    %c0_336 = arith.constant 0 : index
    %c0_337 = arith.constant 0 : index
    %594 = vector.load %arg6[%c0_336, %c0_337] : memref<64x512xf32, #tpu.memory_space<vmem>>, vector<64x512xf32>
    tpu.vector_store %arg6[%c0_336, %c0_337], %593 {strides = array<i32>} : memref<64x512xf32, #tpu.memory_space<vmem>>, vector<64x512xf32>,
    %cst_338 = arith.constant 0.000000e+00 : f32
    %595 = vector.broadcast %cst_338 : f32 to vector<8x128xf32>
    %c0_339 = arith.constant 0 : index
    %c0_340 = arith.constant 0 : index
    %596 = vector.load %arg7[%c0_339, %c0_340] : memref<8x128xf32, #tpu.memory_space<vmem>>, vector<8x128xf32>
    tpu.vector_store %arg7[%c0_339, %c0_340], %595 {strides = array<i32>} : memref<8x128xf32, #tpu.memory_space<vmem>>, vector<8x128xf32>,
    %cst_341 = arith.constant 0.000000e+00 : f32
    %597 = vector.broadcast %cst_341 : f32 to vector<8x128xf32>
    %c0_342 = arith.constant 0 : index
    %c0_343 = arith.constant 0 : index
    %598 = vector.load %arg8[%c0_342, %c0_343] : memref<8x128xf32, #tpu.memory_space<vmem>>, vector<8x128xf32>
    tpu.vector_store %arg8[%c0_342, %c0_343], %597 {strides = array<i32>} : memref<8x128xf32, #tpu.memory_space<vmem>>, vector<8x128xf32>,
    %c0_344 = arith.constant 0 : index
    %c0_345 = arith.constant 0 : index
    %599 = vector.load %arg6[%c0_344, %c0_345] : memref<64x512xf32, #tpu.memory_space<vmem>>, vector<8x512xf32>
    %c0_346 = arith.constant 0 : index
    %c0_347 = arith.constant 0 : index
    %600 = vector.load %arg7[%c0_346, %c0_347] : memref<8x128xf32, #tpu.memory_space<vmem>>, vector<8x128xf32>
    %c2_348 = arith.constant 2 : index
    %c0_349 = arith.constant 0 : index
    %c0_350 = arith.constant 0 : index
    %601 = vector.load %arg2[%c2_348, %c0_349, %c0_350] : memref<3x128x512xf32, #tpu.memory_space<vmem>>, vector<1x128x512xf32>
    %602 = vector.shape_cast %601 : vector<1x128x512xf32> to vector<128x512xf32>
    %cst_351 = arith.constant dense<0.000000e+00> : vector<8x512xf32>
    %603 = tpu.matmul %600, %602, %cst_351 {dimension_numbers = #tpu.dot_dimension_numbers<[1], [0], [0], [1], [0, 0, 1, 1], [], []>} : vector<8x128xf32>, vector<128x512xf32>, vector<8x512xf32> -> vector<8x512xf32>
    %604 = arith.addf %599, %603 : vector<8x512xf32>
    %605 = vector.extract_strided_slice %604 {offsets = [0, 0], sizes = [8, 128], strides = [1, 1]} : vector<8x512xf32> to vector<8x128xf32>
    %606 = arith.negf %605 : vector<8x128xf32>
    %607 = math.exp %606 : vector<8x128xf32>
    %cst_352 = arith.constant 1.000000e+00 : f32
    %608 = vector.broadcast %cst_352 : f32 to vector<8x128xf32>
    %609 = arith.addf %608, %607 : vector<8x128xf32>
    %610 = arith.divf %608, %609 : vector<8x128xf32>
    %611 = vector.extract_strided_slice %604 {offsets = [0, 128], sizes = [8, 128], strides = [1, 1]} : vector<8x512xf32> to vector<8x128xf32>
    %612 = arith.negf %611 : vector<8x128xf32>
    %613 = math.exp %612 : vector<8x128xf32>
    %cst_353 = arith.constant 1.000000e+00 : f32
    %614 = vector.broadcast %cst_353 : f32 to vector<8x128xf32>
    %615 = arith.addf %614, %613 : vector<8x128xf32>
    %616 = arith.divf %614, %615 : vector<8x128xf32>
    %617 = vector.extract_strided_slice %604 {offsets = [0, 256], sizes = [8, 128], strides = [1, 1]} : vector<8x512xf32> to vector<8x128xf32>
    %618 = math.tanh %617 : vector<8x128xf32>
    %619 = vector.extract_strided_slice %604 {offsets = [0, 384], sizes = [8, 128], strides = [1, 1]} : vector<8x512xf32> to vector<8x128xf32>
    %620 = arith.negf %619 : vector<8x128xf32>
    %621 = math.exp %620 : vector<8x128xf32>
    %cst_354 = arith.constant 1.000000e+00 : f32
    %622 = vector.broadcast %cst_354 : f32 to vector<8x128xf32>
    %623 = arith.addf %622, %621 : vector<8x128xf32>
    %624 = arith.divf %622, %623 : vector<8x128xf32>
    %c0_355 = arith.constant 0 : index
    %c0_356 = arith.constant 0 : index
    %625 = vector.load %arg8[%c0_355, %c0_356] : memref<8x128xf32, #tpu.memory_space<vmem>>, vector<8x128xf32>
    %626 = arith.mulf %616, %625 : vector<8x128xf32>
    %627 = arith.mulf %610, %618 : vector<8x128xf32>
    %628 = arith.addf %626, %627 : vector<8x128xf32>
    %629 = math.tanh %628 : vector<8x128xf32>
    %630 = arith.mulf %624, %629 : vector<8x128xf32>
    %c0_357 = arith.constant 0 : index
    %c0_358 = arith.constant 0 : index
    %631 = vector.load %arg8[%c0_357, %c0_358] : memref<8x128xf32, #tpu.memory_space<vmem>>, vector<8x128xf32>
    tpu.vector_store %arg8[%c0_357, %c0_358], %628 {strides = array<i32>} : memref<8x128xf32, #tpu.memory_space<vmem>>, vector<8x128xf32>,
    %c0_359 = arith.constant 0 : index
    %c0_360 = arith.constant 0 : index
    %632 = vector.load %arg7[%c0_359, %c0_360] : memref<8x128xf32, #tpu.memory_space<vmem>>, vector<8x128xf32>
    tpu.vector_store %arg7[%c0_359, %c0_360], %630 {strides = array<i32>} : memref<8x128xf32, #tpu.memory_space<vmem>>, vector<8x128xf32>,
    %c0_361 = arith.constant 0 : index
    %c0_362 = arith.constant 0 : index
    %633 = vector.load %arg4[%c0_361, %c0_362] : memref<64x128xf32, #tpu.memory_space<vmem>>, vector<8x128xf32>
    tpu.vector_store %arg4[%c0_361, %c0_362], %630 {strides = array<i32>} : memref<64x128xf32, #tpu.memory_space<vmem>>, vector<8x128xf32>,
    %c8_363 = arith.constant 8 : index
    %c0_364 = arith.constant 0 : index
    %634 = vector.load %arg6[%c8_363, %c0_364] : memref<64x512xf32, #tpu.memory_space<vmem>>, vector<8x512xf32>
    %c0_365 = arith.constant 0 : index
    %c0_366 = arith.constant 0 : index
    %635 = vector.load %arg7[%c0_365, %c0_366] : memref<8x128xf32, #tpu.memory_space<vmem>>, vector<8x128xf32>
    %c2_367 = arith.constant 2 : index
    %c0_368 = arith.constant 0 : index
    %c0_369 = arith.constant 0 : index
    %636 = vector.load %arg2[%c2_367, %c0_368, %c0_369] : memref<3x128x512xf32, #tpu.memory_space<vmem>>, vector<1x128x512xf32>
    %637 = vector.shape_cast %636 : vector<1x128x512xf32> to vector<128x512xf32>
    %cst_370 = arith.constant dense<0.000000e+00> : vector<8x512xf32>
    %638 = tpu.matmul %635, %637, %cst_370 {dimension_numbers = #tpu.dot_dimension_numbers<[1], [0], [0], [1], [0, 0, 1, 1], [], []>} : vector<8x128xf32>, vector<128x512xf32>, vector<8x512xf32> -> vector<8x512xf32>
    %639 = arith.addf %634, %638 : vector<8x512xf32>
    %640 = vector.extract_strided_slice %639 {offsets = [0, 0], sizes = [8, 128], strides = [1, 1]} : vector<8x512xf32> to vector<8x128xf32>
    %641 = arith.negf %640 : vector<8x128xf32>
    %642 = math.exp %641 : vector<8x128xf32>
    %cst_371 = arith.constant 1.000000e+00 : f32
    %643 = vector.broadcast %cst_371 : f32 to vector<8x128xf32>
    %644 = arith.addf %643, %642 : vector<8x128xf32>
    %645 = arith.divf %643, %644 : vector<8x128xf32>
    %646 = vector.extract_strided_slice %639 {offsets = [0, 128], sizes = [8, 128], strides = [1, 1]} : vector<8x512xf32> to vector<8x128xf32>
    %647 = arith.negf %646 : vector<8x128xf32>
    %648 = math.exp %647 : vector<8x128xf32>
    %cst_372 = arith.constant 1.000000e+00 : f32
    %649 = vector.broadcast %cst_372 : f32 to vector<8x128xf32>
    %650 = arith.addf %649, %648 : vector<8x128xf32>
    %651 = arith.divf %649, %650 : vector<8x128xf32>
    %652 = vector.extract_strided_slice %639 {offsets = [0, 256], sizes = [8, 128], strides = [1, 1]} : vector<8x512xf32> to vector<8x128xf32>
    %653 = math.tanh %652 : vector<8x128xf32>
    %654 = vector.extract_strided_slice %639 {offsets = [0, 384], sizes = [8, 128], strides = [1, 1]} : vector<8x512xf32> to vector<8x128xf32>
    %655 = arith.negf %654 : vector<8x128xf32>
    %656 = math.exp %655 : vector<8x128xf32>
    %cst_373 = arith.constant 1.000000e+00 : f32
    %657 = vector.broadcast %cst_373 : f32 to vector<8x128xf32>
    %658 = arith.addf %657, %656 : vector<8x128xf32>
    %659 = arith.divf %657, %658 : vector<8x128xf32>
    %c0_374 = arith.constant 0 : index
    %c0_375 = arith.constant 0 : index
    %660 = vector.load %arg8[%c0_374, %c0_375] : memref<8x128xf32, #tpu.memory_space<vmem>>, vector<8x128xf32>
    %661 = arith.mulf %651, %660 : vector<8x128xf32>
    %662 = arith.mulf %645, %653 : vector<8x128xf32>
    %663 = arith.addf %661, %662 : vector<8x128xf32>
    %664 = math.tanh %663 : vector<8x128xf32>
    %665 = arith.mulf %659, %664 : vector<8x128xf32>
    %c0_376 = arith.constant 0 : index
    %c0_377 = arith.constant 0 : index
    %666 = vector.load %arg8[%c0_376, %c0_377] : memref<8x128xf32, #tpu.memory_space<vmem>>, vector<8x128xf32>
    tpu.vector_store %arg8[%c0_376, %c0_377], %663 {strides = array<i32>} : memref<8x128xf32, #tpu.memory_space<vmem>>, vector<8x128xf32>,
    %c0_378 = arith.constant 0 : index
    %c0_379 = arith.constant 0 : index
    %667 = vector.load %arg7[%c0_378, %c0_379] : memref<8x128xf32, #tpu.memory_space<vmem>>, vector<8x128xf32>
    tpu.vector_store %arg7[%c0_378, %c0_379], %665 {strides = array<i32>} : memref<8x128xf32, #tpu.memory_space<vmem>>, vector<8x128xf32>,
    %c8_380 = arith.constant 8 : index
    %c0_381 = arith.constant 0 : index
    %668 = vector.load %arg4[%c8_380, %c0_381] : memref<64x128xf32, #tpu.memory_space<vmem>>, vector<8x128xf32>
    tpu.vector_store %arg4[%c8_380, %c0_381], %665 {strides = array<i32>} : memref<64x128xf32, #tpu.memory_space<vmem>>, vector<8x128xf32>,
    %c16_382 = arith.constant 16 : index
    %c0_383 = arith.constant 0 : index
    %669 = vector.load %arg6[%c16_382, %c0_383] : memref<64x512xf32, #tpu.memory_space<vmem>>, vector<8x512xf32>
    %c0_384 = arith.constant 0 : index
    %c0_385 = arith.constant 0 : index
    %670 = vector.load %arg7[%c0_384, %c0_385] : memref<8x128xf32, #tpu.memory_space<vmem>>, vector<8x128xf32>
    %c2_386 = arith.constant 2 : index
    %c0_387 = arith.constant 0 : index
    %c0_388 = arith.constant 0 : index
    %671 = vector.load %arg2[%c2_386, %c0_387, %c0_388] : memref<3x128x512xf32, #tpu.memory_space<vmem>>, vector<1x128x512xf32>
    %672 = vector.shape_cast %671 : vector<1x128x512xf32> to vector<128x512xf32>
    %cst_389 = arith.constant dense<0.000000e+00> : vector<8x512xf32>
    %673 = tpu.matmul %670, %672, %cst_389 {dimension_numbers = #tpu.dot_dimension_numbers<[1], [0], [0], [1], [0, 0, 1, 1], [], []>} : vector<8x128xf32>, vector<128x512xf32>, vector<8x512xf32> -> vector<8x512xf32>
    %674 = arith.addf %669, %673 : vector<8x512xf32>
    %675 = vector.extract_strided_slice %674 {offsets = [0, 0], sizes = [8, 128], strides = [1, 1]} : vector<8x512xf32> to vector<8x128xf32>
    %676 = arith.negf %675 : vector<8x128xf32>
    %677 = math.exp %676 : vector<8x128xf32>
    %cst_390 = arith.constant 1.000000e+00 : f32
    %678 = vector.broadcast %cst_390 : f32 to vector<8x128xf32>
    %679 = arith.addf %678, %677 : vector<8x128xf32>
    %680 = arith.divf %678, %679 : vector<8x128xf32>
    %681 = vector.extract_strided_slice %674 {offsets = [0, 128], sizes = [8, 128], strides = [1, 1]} : vector<8x512xf32> to vector<8x128xf32>
    %682 = arith.negf %681 : vector<8x128xf32>
    %683 = math.exp %682 : vector<8x128xf32>
    %cst_391 = arith.constant 1.000000e+00 : f32
    %684 = vector.broadcast %cst_391 : f32 to vector<8x128xf32>
    %685 = arith.addf %684, %683 : vector<8x128xf32>
    %686 = arith.divf %684, %685 : vector<8x128xf32>
    %687 = vector.extract_strided_slice %674 {offsets = [0, 256], sizes = [8, 128], strides = [1, 1]} : vector<8x512xf32> to vector<8x128xf32>
    %688 = math.tanh %687 : vector<8x128xf32>
    %689 = vector.extract_strided_slice %674 {offsets = [0, 384], sizes = [8, 128], strides = [1, 1]} : vector<8x512xf32> to vector<8x128xf32>
    %690 = arith.negf %689 : vector<8x128xf32>
    %691 = math.exp %690 : vector<8x128xf32>
    %cst_392 = arith.constant 1.000000e+00 : f32
    %692 = vector.broadcast %cst_392 : f32 to vector<8x128xf32>
    %693 = arith.addf %692, %691 : vector<8x128xf32>
    %694 = arith.divf %692, %693 : vector<8x128xf32>
    %c0_393 = arith.constant 0 : index
    %c0_394 = arith.constant 0 : index
    %695 = vector.load %arg8[%c0_393, %c0_394] : memref<8x128xf32, #tpu.memory_space<vmem>>, vector<8x128xf32>
    %696 = arith.mulf %686, %695 : vector<8x128xf32>
    %697 = arith.mulf %680, %688 : vector<8x128xf32>
    %698 = arith.addf %696, %697 : vector<8x128xf32>
    %699 = math.tanh %698 : vector<8x128xf32>
    %700 = arith.mulf %694, %699 : vector<8x128xf32>
    %c0_395 = arith.constant 0 : index
    %c0_396 = arith.constant 0 : index
    %701 = vector.load %arg8[%c0_395, %c0_396] : memref<8x128xf32, #tpu.memory_space<vmem>>, vector<8x128xf32>
    tpu.vector_store %arg8[%c0_395, %c0_396], %698 {strides = array<i32>} : memref<8x128xf32, #tpu.memory_space<vmem>>, vector<8x128xf32>,
    %c0_397 = arith.constant 0 : index
    %c0_398 = arith.constant 0 : index
    %702 = vector.load %arg7[%c0_397, %c0_398] : memref<8x128xf32, #tpu.memory_space<vmem>>, vector<8x128xf32>
    tpu.vector_store %arg7[%c0_397, %c0_398], %700 {strides = array<i32>} : memref<8x128xf32, #tpu.memory_space<vmem>>, vector<8x128xf32>,
    %c16_399 = arith.constant 16 : index
    %c0_400 = arith.constant 0 : index
    %703 = vector.load %arg4[%c16_399, %c0_400] : memref<64x128xf32, #tpu.memory_space<vmem>>, vector<8x128xf32>
    tpu.vector_store %arg4[%c16_399, %c0_400], %700 {strides = array<i32>} : memref<64x128xf32, #tpu.memory_space<vmem>>, vector<8x128xf32>,
    %c24_401 = arith.constant 24 : index
    %c0_402 = arith.constant 0 : index
    %704 = vector.load %arg6[%c24_401, %c0_402] : memref<64x512xf32, #tpu.memory_space<vmem>>, vector<8x512xf32>
    %c0_403 = arith.constant 0 : index
    %c0_404 = arith.constant 0 : index
    %705 = vector.load %arg7[%c0_403, %c0_404] : memref<8x128xf32, #tpu.memory_space<vmem>>, vector<8x128xf32>
    %c2_405 = arith.constant 2 : index
    %c0_406 = arith.constant 0 : index
    %c0_407 = arith.constant 0 : index
    %706 = vector.load %arg2[%c2_405, %c0_406, %c0_407] : memref<3x128x512xf32, #tpu.memory_space<vmem>>, vector<1x128x512xf32>
    %707 = vector.shape_cast %706 : vector<1x128x512xf32> to vector<128x512xf32>
    %cst_408 = arith.constant dense<0.000000e+00> : vector<8x512xf32>
    %708 = tpu.matmul %705, %707, %cst_408 {dimension_numbers = #tpu.dot_dimension_numbers<[1], [0], [0], [1], [0, 0, 1, 1], [], []>} : vector<8x128xf32>, vector<128x512xf32>, vector<8x512xf32> -> vector<8x512xf32>
    %709 = arith.addf %704, %708 : vector<8x512xf32>
    %710 = vector.extract_strided_slice %709 {offsets = [0, 0], sizes = [8, 128], strides = [1, 1]} : vector<8x512xf32> to vector<8x128xf32>
    %711 = arith.negf %710 : vector<8x128xf32>
    %712 = math.exp %711 : vector<8x128xf32>
    %cst_409 = arith.constant 1.000000e+00 : f32
    %713 = vector.broadcast %cst_409 : f32 to vector<8x128xf32>
    %714 = arith.addf %713, %712 : vector<8x128xf32>
    %715 = arith.divf %713, %714 : vector<8x128xf32>
    %716 = vector.extract_strided_slice %709 {offsets = [0, 128], sizes = [8, 128], strides = [1, 1]} : vector<8x512xf32> to vector<8x128xf32>
    %717 = arith.negf %716 : vector<8x128xf32>
    %718 = math.exp %717 : vector<8x128xf32>
    %cst_410 = arith.constant 1.000000e+00 : f32
    %719 = vector.broadcast %cst_410 : f32 to vector<8x128xf32>
    %720 = arith.addf %719, %718 : vector<8x128xf32>
    %721 = arith.divf %719, %720 : vector<8x128xf32>
    %722 = vector.extract_strided_slice %709 {offsets = [0, 256], sizes = [8, 128], strides = [1, 1]} : vector<8x512xf32> to vector<8x128xf32>
    %723 = math.tanh %722 : vector<8x128xf32>
    %724 = vector.extract_strided_slice %709 {offsets = [0, 384], sizes = [8, 128], strides = [1, 1]} : vector<8x512xf32> to vector<8x128xf32>
    %725 = arith.negf %724 : vector<8x128xf32>
    %726 = math.exp %725 : vector<8x128xf32>
    %cst_411 = arith.constant 1.000000e+00 : f32
    %727 = vector.broadcast %cst_411 : f32 to vector<8x128xf32>
    %728 = arith.addf %727, %726 : vector<8x128xf32>
    %729 = arith.divf %727, %728 : vector<8x128xf32>
    %c0_412 = arith.constant 0 : index
    %c0_413 = arith.constant 0 : index
    %730 = vector.load %arg8[%c0_412, %c0_413] : memref<8x128xf32, #tpu.memory_space<vmem>>, vector<8x128xf32>
    %731 = arith.mulf %721, %730 : vector<8x128xf32>
    %732 = arith.mulf %715, %723 : vector<8x128xf32>
    %733 = arith.addf %731, %732 : vector<8x128xf32>
    %734 = math.tanh %733 : vector<8x128xf32>
    %735 = arith.mulf %729, %734 : vector<8x128xf32>
    %c0_414 = arith.constant 0 : index
    %c0_415 = arith.constant 0 : index
    %736 = vector.load %arg8[%c0_414, %c0_415] : memref<8x128xf32, #tpu.memory_space<vmem>>, vector<8x128xf32>
    tpu.vector_store %arg8[%c0_414, %c0_415], %733 {strides = array<i32>} : memref<8x128xf32, #tpu.memory_space<vmem>>, vector<8x128xf32>,
    %c0_416 = arith.constant 0 : index
    %c0_417 = arith.constant 0 : index
    %737 = vector.load %arg7[%c0_416, %c0_417] : memref<8x128xf32, #tpu.memory_space<vmem>>, vector<8x128xf32>
    tpu.vector_store %arg7[%c0_416, %c0_417], %735 {strides = array<i32>} : memref<8x128xf32, #tpu.memory_space<vmem>>, vector<8x128xf32>,
    %c24_418 = arith.constant 24 : index
    %c0_419 = arith.constant 0 : index
    %738 = vector.load %arg4[%c24_418, %c0_419] : memref<64x128xf32, #tpu.memory_space<vmem>>, vector<8x128xf32>
    tpu.vector_store %arg4[%c24_418, %c0_419], %735 {strides = array<i32>} : memref<64x128xf32, #tpu.memory_space<vmem>>, vector<8x128xf32>,
    %c32_420 = arith.constant 32 : index
    %c0_421 = arith.constant 0 : index
    %739 = vector.load %arg6[%c32_420, %c0_421] : memref<64x512xf32, #tpu.memory_space<vmem>>, vector<8x512xf32>
    %c0_422 = arith.constant 0 : index
    %c0_423 = arith.constant 0 : index
    %740 = vector.load %arg7[%c0_422, %c0_423] : memref<8x128xf32, #tpu.memory_space<vmem>>, vector<8x128xf32>
    %c2_424 = arith.constant 2 : index
    %c0_425 = arith.constant 0 : index
    %c0_426 = arith.constant 0 : index
    %741 = vector.load %arg2[%c2_424, %c0_425, %c0_426] : memref<3x128x512xf32, #tpu.memory_space<vmem>>, vector<1x128x512xf32>
    %742 = vector.shape_cast %741 : vector<1x128x512xf32> to vector<128x512xf32>
    %cst_427 = arith.constant dense<0.000000e+00> : vector<8x512xf32>
    %743 = tpu.matmul %740, %742, %cst_427 {dimension_numbers = #tpu.dot_dimension_numbers<[1], [0], [0], [1], [0, 0, 1, 1], [], []>} : vector<8x128xf32>, vector<128x512xf32>, vector<8x512xf32> -> vector<8x512xf32>
    %744 = arith.addf %739, %743 : vector<8x512xf32>
    %745 = vector.extract_strided_slice %744 {offsets = [0, 0], sizes = [8, 128], strides = [1, 1]} : vector<8x512xf32> to vector<8x128xf32>
    %746 = arith.negf %745 : vector<8x128xf32>
    %747 = math.exp %746 : vector<8x128xf32>
    %cst_428 = arith.constant 1.000000e+00 : f32
    %748 = vector.broadcast %cst_428 : f32 to vector<8x128xf32>
    %749 = arith.addf %748, %747 : vector<8x128xf32>
    %750 = arith.divf %748, %749 : vector<8x128xf32>
    %751 = vector.extract_strided_slice %744 {offsets = [0, 128], sizes = [8, 128], strides = [1, 1]} : vector<8x512xf32> to vector<8x128xf32>
    %752 = arith.negf %751 : vector<8x128xf32>
    %753 = math.exp %752 : vector<8x128xf32>
    %cst_429 = arith.constant 1.000000e+00 : f32
    %754 = vector.broadcast %cst_429 : f32 to vector<8x128xf32>
    %755 = arith.addf %754, %753 : vector<8x128xf32>
    %756 = arith.divf %754, %755 : vector<8x128xf32>
    %757 = vector.extract_strided_slice %744 {offsets = [0, 256], sizes = [8, 128], strides = [1, 1]} : vector<8x512xf32> to vector<8x128xf32>
    %758 = math.tanh %757 : vector<8x128xf32>
    %759 = vector.extract_strided_slice %744 {offsets = [0, 384], sizes = [8, 128], strides = [1, 1]} : vector<8x512xf32> to vector<8x128xf32>
    %760 = arith.negf %759 : vector<8x128xf32>
    %761 = math.exp %760 : vector<8x128xf32>
    %cst_430 = arith.constant 1.000000e+00 : f32
    %762 = vector.broadcast %cst_430 : f32 to vector<8x128xf32>
    %763 = arith.addf %762, %761 : vector<8x128xf32>
    %764 = arith.divf %762, %763 : vector<8x128xf32>
    %c0_431 = arith.constant 0 : index
    %c0_432 = arith.constant 0 : index
    %765 = vector.load %arg8[%c0_431, %c0_432] : memref<8x128xf32, #tpu.memory_space<vmem>>, vector<8x128xf32>
    %766 = arith.mulf %756, %765 : vector<8x128xf32>
    %767 = arith.mulf %750, %758 : vector<8x128xf32>
    %768 = arith.addf %766, %767 : vector<8x128xf32>
    %769 = math.tanh %768 : vector<8x128xf32>
    %770 = arith.mulf %764, %769 : vector<8x128xf32>
    %c0_433 = arith.constant 0 : index
    %c0_434 = arith.constant 0 : index
    %771 = vector.load %arg8[%c0_433, %c0_434] : memref<8x128xf32, #tpu.memory_space<vmem>>, vector<8x128xf32>
    tpu.vector_store %arg8[%c0_433, %c0_434], %768 {strides = array<i32>} : memref<8x128xf32, #tpu.memory_space<vmem>>, vector<8x128xf32>,
    %c0_435 = arith.constant 0 : index
    %c0_436 = arith.constant 0 : index
    %772 = vector.load %arg7[%c0_435, %c0_436] : memref<8x128xf32, #tpu.memory_space<vmem>>, vector<8x128xf32>
    tpu.vector_store %arg7[%c0_435, %c0_436], %770 {strides = array<i32>} : memref<8x128xf32, #tpu.memory_space<vmem>>, vector<8x128xf32>,
    %c32_437 = arith.constant 32 : index
    %c0_438 = arith.constant 0 : index
    %773 = vector.load %arg4[%c32_437, %c0_438] : memref<64x128xf32, #tpu.memory_space<vmem>>, vector<8x128xf32>
    tpu.vector_store %arg4[%c32_437, %c0_438], %770 {strides = array<i32>} : memref<64x128xf32, #tpu.memory_space<vmem>>, vector<8x128xf32>,
    %c40_439 = arith.constant 40 : index
    %c0_440 = arith.constant 0 : index
    %774 = vector.load %arg6[%c40_439, %c0_440] : memref<64x512xf32, #tpu.memory_space<vmem>>, vector<8x512xf32>
    %c0_441 = arith.constant 0 : index
    %c0_442 = arith.constant 0 : index
    %775 = vector.load %arg7[%c0_441, %c0_442] : memref<8x128xf32, #tpu.memory_space<vmem>>, vector<8x128xf32>
    %c2_443 = arith.constant 2 : index
    %c0_444 = arith.constant 0 : index
    %c0_445 = arith.constant 0 : index
    %776 = vector.load %arg2[%c2_443, %c0_444, %c0_445] : memref<3x128x512xf32, #tpu.memory_space<vmem>>, vector<1x128x512xf32>
    %777 = vector.shape_cast %776 : vector<1x128x512xf32> to vector<128x512xf32>
    %cst_446 = arith.constant dense<0.000000e+00> : vector<8x512xf32>
    %778 = tpu.matmul %775, %777, %cst_446 {dimension_numbers = #tpu.dot_dimension_numbers<[1], [0], [0], [1], [0, 0, 1, 1], [], []>} : vector<8x128xf32>, vector<128x512xf32>, vector<8x512xf32> -> vector<8x512xf32>
    %779 = arith.addf %774, %778 : vector<8x512xf32>
    %780 = vector.extract_strided_slice %779 {offsets = [0, 0], sizes = [8, 128], strides = [1, 1]} : vector<8x512xf32> to vector<8x128xf32>
    %781 = arith.negf %780 : vector<8x128xf32>
    %782 = math.exp %781 : vector<8x128xf32>
    %cst_447 = arith.constant 1.000000e+00 : f32
    %783 = vector.broadcast %cst_447 : f32 to vector<8x128xf32>
    %784 = arith.addf %783, %782 : vector<8x128xf32>
    %785 = arith.divf %783, %784 : vector<8x128xf32>
    %786 = vector.extract_strided_slice %779 {offsets = [0, 128], sizes = [8, 128], strides = [1, 1]} : vector<8x512xf32> to vector<8x128xf32>
    %787 = arith.negf %786 : vector<8x128xf32>
    %788 = math.exp %787 : vector<8x128xf32>
    %cst_448 = arith.constant 1.000000e+00 : f32
    %789 = vector.broadcast %cst_448 : f32 to vector<8x128xf32>
    %790 = arith.addf %789, %788 : vector<8x128xf32>
    %791 = arith.divf %789, %790 : vector<8x128xf32>
    %792 = vector.extract_strided_slice %779 {offsets = [0, 256], sizes = [8, 128], strides = [1, 1]} : vector<8x512xf32> to vector<8x128xf32>
    %793 = math.tanh %792 : vector<8x128xf32>
    %794 = vector.extract_strided_slice %779 {offsets = [0, 384], sizes = [8, 128], strides = [1, 1]} : vector<8x512xf32> to vector<8x128xf32>
    %795 = arith.negf %794 : vector<8x128xf32>
    %796 = math.exp %795 : vector<8x128xf32>
    %cst_449 = arith.constant 1.000000e+00 : f32
    %797 = vector.broadcast %cst_449 : f32 to vector<8x128xf32>
    %798 = arith.addf %797, %796 : vector<8x128xf32>
    %799 = arith.divf %797, %798 : vector<8x128xf32>
    %c0_450 = arith.constant 0 : index
    %c0_451 = arith.constant 0 : index
    %800 = vector.load %arg8[%c0_450, %c0_451] : memref<8x128xf32, #tpu.memory_space<vmem>>, vector<8x128xf32>
    %801 = arith.mulf %791, %800 : vector<8x128xf32>
    %802 = arith.mulf %785, %793 : vector<8x128xf32>
    %803 = arith.addf %801, %802 : vector<8x128xf32>
    %804 = math.tanh %803 : vector<8x128xf32>
    %805 = arith.mulf %799, %804 : vector<8x128xf32>
    %c0_452 = arith.constant 0 : index
    %c0_453 = arith.constant 0 : index
    %806 = vector.load %arg8[%c0_452, %c0_453] : memref<8x128xf32, #tpu.memory_space<vmem>>, vector<8x128xf32>
    tpu.vector_store %arg8[%c0_452, %c0_453], %803 {strides = array<i32>} : memref<8x128xf32, #tpu.memory_space<vmem>>, vector<8x128xf32>,
    %c0_454 = arith.constant 0 : index
    %c0_455 = arith.constant 0 : index
    %807 = vector.load %arg7[%c0_454, %c0_455] : memref<8x128xf32, #tpu.memory_space<vmem>>, vector<8x128xf32>
    tpu.vector_store %arg7[%c0_454, %c0_455], %805 {strides = array<i32>} : memref<8x128xf32, #tpu.memory_space<vmem>>, vector<8x128xf32>,
    %c40_456 = arith.constant 40 : index
    %c0_457 = arith.constant 0 : index
    %808 = vector.load %arg4[%c40_456, %c0_457] : memref<64x128xf32, #tpu.memory_space<vmem>>, vector<8x128xf32>
    tpu.vector_store %arg4[%c40_456, %c0_457], %805 {strides = array<i32>} : memref<64x128xf32, #tpu.memory_space<vmem>>, vector<8x128xf32>,
    %c48_458 = arith.constant 48 : index
    %c0_459 = arith.constant 0 : index
    %809 = vector.load %arg6[%c48_458, %c0_459] : memref<64x512xf32, #tpu.memory_space<vmem>>, vector<8x512xf32>
    %c0_460 = arith.constant 0 : index
    %c0_461 = arith.constant 0 : index
    %810 = vector.load %arg7[%c0_460, %c0_461] : memref<8x128xf32, #tpu.memory_space<vmem>>, vector<8x128xf32>
    %c2_462 = arith.constant 2 : index
    %c0_463 = arith.constant 0 : index
    %c0_464 = arith.constant 0 : index
    %811 = vector.load %arg2[%c2_462, %c0_463, %c0_464] : memref<3x128x512xf32, #tpu.memory_space<vmem>>, vector<1x128x512xf32>
    %812 = vector.shape_cast %811 : vector<1x128x512xf32> to vector<128x512xf32>
    %cst_465 = arith.constant dense<0.000000e+00> : vector<8x512xf32>
    %813 = tpu.matmul %810, %812, %cst_465 {dimension_numbers = #tpu.dot_dimension_numbers<[1], [0], [0], [1], [0, 0, 1, 1], [], []>} : vector<8x128xf32>, vector<128x512xf32>, vector<8x512xf32> -> vector<8x512xf32>
    %814 = arith.addf %809, %813 : vector<8x512xf32>
    %815 = vector.extract_strided_slice %814 {offsets = [0, 0], sizes = [8, 128], strides = [1, 1]} : vector<8x512xf32> to vector<8x128xf32>
    %816 = arith.negf %815 : vector<8x128xf32>
    %817 = math.exp %816 : vector<8x128xf32>
    %cst_466 = arith.constant 1.000000e+00 : f32
    %818 = vector.broadcast %cst_466 : f32 to vector<8x128xf32>
    %819 = arith.addf %818, %817 : vector<8x128xf32>
    %820 = arith.divf %818, %819 : vector<8x128xf32>
    %821 = vector.extract_strided_slice %814 {offsets = [0, 128], sizes = [8, 128], strides = [1, 1]} : vector<8x512xf32> to vector<8x128xf32>
    %822 = arith.negf %821 : vector<8x128xf32>
    %823 = math.exp %822 : vector<8x128xf32>
    %cst_467 = arith.constant 1.000000e+00 : f32
    %824 = vector.broadcast %cst_467 : f32 to vector<8x128xf32>
    %825 = arith.addf %824, %823 : vector<8x128xf32>
    %826 = arith.divf %824, %825 : vector<8x128xf32>
    %827 = vector.extract_strided_slice %814 {offsets = [0, 256], sizes = [8, 128], strides = [1, 1]} : vector<8x512xf32> to vector<8x128xf32>
    %828 = math.tanh %827 : vector<8x128xf32>
    %829 = vector.extract_strided_slice %814 {offsets = [0, 384], sizes = [8, 128], strides = [1, 1]} : vector<8x512xf32> to vector<8x128xf32>
    %830 = arith.negf %829 : vector<8x128xf32>
    %831 = math.exp %830 : vector<8x128xf32>
    %cst_468 = arith.constant 1.000000e+00 : f32
    %832 = vector.broadcast %cst_468 : f32 to vector<8x128xf32>
    %833 = arith.addf %832, %831 : vector<8x128xf32>
    %834 = arith.divf %832, %833 : vector<8x128xf32>
    %c0_469 = arith.constant 0 : index
    %c0_470 = arith.constant 0 : index
    %835 = vector.load %arg8[%c0_469, %c0_470] : memref<8x128xf32, #tpu.memory_space<vmem>>, vector<8x128xf32>
    %836 = arith.mulf %826, %835 : vector<8x128xf32>
    %837 = arith.mulf %820, %828 : vector<8x128xf32>
    %838 = arith.addf %836, %837 : vector<8x128xf32>
    %839 = math.tanh %838 : vector<8x128xf32>
    %840 = arith.mulf %834, %839 : vector<8x128xf32>
    %c0_471 = arith.constant 0 : index
    %c0_472 = arith.constant 0 : index
    %841 = vector.load %arg8[%c0_471, %c0_472] : memref<8x128xf32, #tpu.memory_space<vmem>>, vector<8x128xf32>
    tpu.vector_store %arg8[%c0_471, %c0_472], %838 {strides = array<i32>} : memref<8x128xf32, #tpu.memory_space<vmem>>, vector<8x128xf32>,
    %c0_473 = arith.constant 0 : index
    %c0_474 = arith.constant 0 : index
    %842 = vector.load %arg7[%c0_473, %c0_474] : memref<8x128xf32, #tpu.memory_space<vmem>>, vector<8x128xf32>
    tpu.vector_store %arg7[%c0_473, %c0_474], %840 {strides = array<i32>} : memref<8x128xf32, #tpu.memory_space<vmem>>, vector<8x128xf32>,
    %c48_475 = arith.constant 48 : index
    %c0_476 = arith.constant 0 : index
    %843 = vector.load %arg4[%c48_475, %c0_476] : memref<64x128xf32, #tpu.memory_space<vmem>>, vector<8x128xf32>
    tpu.vector_store %arg4[%c48_475, %c0_476], %840 {strides = array<i32>} : memref<64x128xf32, #tpu.memory_space<vmem>>, vector<8x128xf32>,
    %c56_477 = arith.constant 56 : index
    %c0_478 = arith.constant 0 : index
    %844 = vector.load %arg6[%c56_477, %c0_478] : memref<64x512xf32, #tpu.memory_space<vmem>>, vector<8x512xf32>
    %c0_479 = arith.constant 0 : index
    %c0_480 = arith.constant 0 : index
    %845 = vector.load %arg7[%c0_479, %c0_480] : memref<8x128xf32, #tpu.memory_space<vmem>>, vector<8x128xf32>
    %c2_481 = arith.constant 2 : index
    %c0_482 = arith.constant 0 : index
    %c0_483 = arith.constant 0 : index
    %846 = vector.load %arg2[%c2_481, %c0_482, %c0_483] : memref<3x128x512xf32, #tpu.memory_space<vmem>>, vector<1x128x512xf32>
    %847 = vector.shape_cast %846 : vector<1x128x512xf32> to vector<128x512xf32>
    %cst_484 = arith.constant dense<0.000000e+00> : vector<8x512xf32>
    %848 = tpu.matmul %845, %847, %cst_484 {dimension_numbers = #tpu.dot_dimension_numbers<[1], [0], [0], [1], [0, 0, 1, 1], [], []>} : vector<8x128xf32>, vector<128x512xf32>, vector<8x512xf32> -> vector<8x512xf32>
    %849 = arith.addf %844, %848 : vector<8x512xf32>
    %850 = vector.extract_strided_slice %849 {offsets = [0, 0], sizes = [8, 128], strides = [1, 1]} : vector<8x512xf32> to vector<8x128xf32>
    %851 = arith.negf %850 : vector<8x128xf32>
    %852 = math.exp %851 : vector<8x128xf32>
    %cst_485 = arith.constant 1.000000e+00 : f32
    %853 = vector.broadcast %cst_485 : f32 to vector<8x128xf32>
    %854 = arith.addf %853, %852 : vector<8x128xf32>
    %855 = arith.divf %853, %854 : vector<8x128xf32>
    %856 = vector.extract_strided_slice %849 {offsets = [0, 128], sizes = [8, 128], strides = [1, 1]} : vector<8x512xf32> to vector<8x128xf32>
    %857 = arith.negf %856 : vector<8x128xf32>
    %858 = math.exp %857 : vector<8x128xf32>
    %cst_486 = arith.constant 1.000000e+00 : f32
    %859 = vector.broadcast %cst_486 : f32 to vector<8x128xf32>
    %860 = arith.addf %859, %858 : vector<8x128xf32>
    %861 = arith.divf %859, %860 : vector<8x128xf32>
    %862 = vector.extract_strided_slice %849 {offsets = [0, 256], sizes = [8, 128], strides = [1, 1]} : vector<8x512xf32> to vector<8x128xf32>
    %863 = math.tanh %862 : vector<8x128xf32>
    %864 = vector.extract_strided_slice %849 {offsets = [0, 384], sizes = [8, 128], strides = [1, 1]} : vector<8x512xf32> to vector<8x128xf32>
    %865 = arith.negf %864 : vector<8x128xf32>
    %866 = math.exp %865 : vector<8x128xf32>
    %cst_487 = arith.constant 1.000000e+00 : f32
    %867 = vector.broadcast %cst_487 : f32 to vector<8x128xf32>
    %868 = arith.addf %867, %866 : vector<8x128xf32>
    %869 = arith.divf %867, %868 : vector<8x128xf32>
    %c0_488 = arith.constant 0 : index
    %c0_489 = arith.constant 0 : index
    %870 = vector.load %arg8[%c0_488, %c0_489] : memref<8x128xf32, #tpu.memory_space<vmem>>, vector<8x128xf32>
    %871 = arith.mulf %861, %870 : vector<8x128xf32>
    %872 = arith.mulf %855, %863 : vector<8x128xf32>
    %873 = arith.addf %871, %872 : vector<8x128xf32>
    %874 = math.tanh %873 : vector<8x128xf32>
    %875 = arith.mulf %869, %874 : vector<8x128xf32>
    %c0_490 = arith.constant 0 : index
    %c0_491 = arith.constant 0 : index
    %876 = vector.load %arg8[%c0_490, %c0_491] : memref<8x128xf32, #tpu.memory_space<vmem>>, vector<8x128xf32>
    tpu.vector_store %arg8[%c0_490, %c0_491], %873 {strides = array<i32>} : memref<8x128xf32, #tpu.memory_space<vmem>>, vector<8x128xf32>,
    %c0_492 = arith.constant 0 : index
    %c0_493 = arith.constant 0 : index
    %877 = vector.load %arg7[%c0_492, %c0_493] : memref<8x128xf32, #tpu.memory_space<vmem>>, vector<8x128xf32>
    tpu.vector_store %arg7[%c0_492, %c0_493], %875 {strides = array<i32>} : memref<8x128xf32, #tpu.memory_space<vmem>>, vector<8x128xf32>,
    %c56_494 = arith.constant 56 : index
    %c0_495 = arith.constant 0 : index
    %878 = vector.load %arg4[%c56_494, %c0_495] : memref<64x128xf32, #tpu.memory_space<vmem>>, vector<8x128xf32>
    tpu.vector_store %arg4[%c56_494, %c0_495], %875 {strides = array<i32>} : memref<64x128xf32, #tpu.memory_space<vmem>>, vector<8x128xf32>,
    return
  }
}

module attributes {stable_mosaic.version = 11 : i64} {
  func.func @linear_kernel(%arg0: i32, %arg1: i32, %arg2: memref<64x128xf32, #tpu.memory_space<vmem>>, %arg3: memref<128x128xf32, #tpu.memory_space<vmem>>, %arg4: memref<1x128xf32, #tpu.memory_space<vmem>>, %arg5: memref<64x128xf32, #tpu.memory_space<vmem>>) attributes {dimension_semantics = [#tpu.dimension_semantics<parallel>, #tpu.dimension_semantics<parallel>], iteration_bounds = array<i64: 1, 1>, scalar_prefetch = 0 : i64, scratch_operands = 0 : i64, tpu.core_type = #tpu.core_type<tc>, window_params = [{transform_indices = @transform_0, window_bounds = array<i64: 64, 128>}, {transform_indices = @transform_1, window_bounds = array<i64: 128, 128>}, {transform_indices = @transform_2, window_bounds = array<i64: 1, 128>}, {transform_indices = @transform_3, window_bounds = array<i64: 64, 128>}]} {
    %c0 = arith.constant 0 : index
    %c0_0 = arith.constant 0 : index
    %0 = vector.load %arg2[%c0, %c0_0] : memref<64x128xf32, #tpu.memory_space<vmem>>, vector<64x128xf32>
    %c0_1 = arith.constant 0 : index
    %c0_2 = arith.constant 0 : index
    %1 = vector.load %arg3[%c0_1, %c0_2] : memref<128x128xf32, #tpu.memory_space<vmem>>, vector<128x128xf32>
    %cst = arith.constant dense<0.000000e+00> : vector<64x128xf32>
    %2 = tpu.matmul %0, %1, %cst {dimension_numbers = #tpu.dot_dimension_numbers<[1], [0], [0], [1], [0, 0, 1, 1], [], []>} : vector<64x128xf32>, vector<128x128xf32>, vector<64x128xf32> -> vector<64x128xf32>
    %c0_3 = arith.constant 0 : index
    %c0_4 = arith.constant 0 : index
    %3 = vector.load %arg4[%c0_3, %c0_4] : memref<1x128xf32, #tpu.memory_space<vmem>>, vector<1x128xf32>
    %4 = vector.broadcast %3 : vector<1x128xf32> to vector<64x128xf32>
    %5 = arith.addf %2, %4 : vector<64x128xf32>
    %c0_5 = arith.constant 0 : index
    %c0_6 = arith.constant 0 : index
    %6 = vector.load %arg5[%c0_5, %c0_6] : memref<64x128xf32, #tpu.memory_space<vmem>>, vector<64x128xf32>
    tpu.vector_store %arg5[%c0_5, %c0_6], %5 {strides = array<i32>} : memref<64x128xf32, #tpu.memory_space<vmem>>, vector<64x128xf32>,
    return
  }
  func.func @transform_0(%arg0: i32, %arg1: i32) -> (i32, i32) {
    %c0_i32 = arith.constant 0 : i32
    %c0_i32_0 = arith.constant 0 : i32
    return %arg0, %c0_i32 : i32, i32
  }
  func.func @transform_1(%arg0: i32, %arg1: i32) -> (i32, i32) {
    %c0_i32 = arith.constant 0 : i32
    %c0_i32_0 = arith.constant 0 : i32
    return %c0_i32, %arg1 : i32, i32
  }
  func.func @transform_2(%arg0: i32, %arg1: i32) -> (i32, i32) {
    %c0_i32 = arith.constant 0 : i32
    %c0_i32_0 = arith.constant 0 : i32
    return %c0_i32, %arg1 : i32, i32
  }
  func.func @transform_3(%arg0: i32, %arg1: i32) -> (i32, i32) {
    %c0_i32 = arith.constant 0 : i32
    return %arg0, %arg1 : i32, i32
  }
}

</mosaic_0001>

<bundles_post_ra>
// kernel: decoder_forward.3
= control target key start
LH: loop header
LB: loop body
LE: loop exit
PB: predicated region body
PF: predicated region fallthrough
CT: control target
= control target key end

     0   :  { %s398_s1 = inlined_call_operand.vmem [shape: f32[128,128], index: 1, kind: input, shape index: {}]   ;;  %s399_s0 = inlined_call_operand.vmem [shape: f32[64,128], index: 0, kind: input, shape index: {}]   ;;  %s400_s2 = inlined_call_operand.vmem [shape: f32[1,128], index: 2, kind: input, shape index: {}]   ;;  %s401_s3 = inlined_call_operand.vmem [shape: f32[64,128], index: 3, kind: output, shape index: {}]  }
   0x1   :  { %v22_v0 = vld [vmem:[%s398_s1] sm:$0xff]  ;;  %v23_v1 = vld [vmem:[%s398_s1 + $0x8] sm:$0xff]  ;;  %v24_v2 = vld [vmem:[%s398_s1 + $0x10] sm:$0xff] }
   0x2   :  { %v231_v3 = vpack.c.bf16 %v23_v1, %v22_v0  ;;  %v25_v4 = vld [vmem:[%s398_s1 + $0x18] sm:$0xff]  ;;  %v26_v6 = vld [vmem:[%s398_s1 + $0x20] sm:$0xff]  ;;  %v27_v7 = vld [vmem:[%s398_s1 + $0x28] sm:$0xff] }
   0x3   :  { %v235_v5 = vpack.c.bf16 %v25_v4, %v24_v2  ;;  %v239_v8 = vpack.c.bf16 %v27_v7, %v26_v6  ;;  %v14_v9 = vld [vmem:[%s399_s0] sm:$0xff]  ;;  %v28_v11 = vld [vmem:[%s398_s1 + $0x30] sm:$0xff]  ;;  %v29_v12 = vld [vmem:[%s398_s1 + $0x38] sm:$0xff] }
   0x4   :  { %232 = vmatprep.subr.bf16.mxu0 %v231_v3  ;;  %263 = vmatprep.subr.bf16.mxu1 %v231_v3  ;;  %v18_v10 = vld [vmem:[%s399_s0 + $0x20] sm:$0xff]  ;;  %v243_v13 = vpack.c.bf16 %v29_v12, %v28_v11  ;;  %v31_v15 = vld [vmem:[%s398_s1 + $0x48] sm:$0xff]  ;;  %v32_v17 = vld [vmem:[%s398_s1 + $0x50] sm:$0xff] }
   0x5   :  { %234 = vmatpush3.bf16.msra.mxu0 %v231_v3  ;;  %271 = vmatpush3.bf16.msra.mxu1 %v231_v3  ;;  %v30_v14 = vld [vmem:[%s398_s1 + $0x40] sm:$0xff]  ;;  %v33_v18 = vld [vmem:[%s398_s1 + $0x58] sm:$0xff]  ;;  %v35_v21 = vld [vmem:[%s398_s1 + $0x68] sm:$0xff] }
   0x6   :  { %236 = vmatprep.subr.bf16.mxu0 %v235_v5  ;;  %264 = vmatprep.subr.bf16.mxu1 %v235_v5  ;;  %v247_v16 = vpack.c.bf16 %v31_v15, %v30_v14  ;;  %v251_v19 = vpack.c.bf16 %v33_v18, %v32_v17  ;;  %v34_v20 = vld [vmem:[%s398_s1 + $0x60] sm:$0xff]  ;;  %v36_v23 = vld [vmem:[%s398_s1 + $0x70] sm:$0xff]  ;;  %v37_v24 = vld [vmem:[%s398_s1 + $0x78] sm:$0xff] }
   0x7   :  { %219 = vmatprep.mubr.f32.mxu0 %v14_v9  ;;  %225 = vmatprep.mubr.f32.mxu1 %v18_v10  ;;  %v255_v22 = vpack.c.bf16 %v35_v21, %v34_v20  ;;  %v259_v25 = vpack.c.bf16 %v37_v24, %v36_v23  ;;  %v15_v26 = vld [vmem:[%s399_s0 + $0x8] sm:$0xff]  ;;  %v16_v28 = vld [vmem:[%s399_s0 + $0x10] sm:$0xff]  ;;  %v17_v30 = vld [vmem:[%s399_s0 + $0x18] sm:$0xff] }
   0x8   :  { %v19_v27 = vld [vmem:[%s399_s0 + $0x28] sm:$0xff]  ;;  %v20_v29 = vld [vmem:[%s399_s0 + $0x30] sm:$0xff]  ;;  %v21_v31 = vld [vmem:[%s399_s0 + $0x38] sm:$0xff] }
   0x9   :  { %238 = vmatpush3.bf16.msra.mxu0 %v235_v5  ;;  %272 = vmatpush3.bf16.msra.mxu1 %v235_v5  ;;  %v162_v32 = vld [vmem:[%s400_s2] ss:$0 sm:$0xff] }
   0xa   :  { %240 = vmatprep.subr.bf16.mxu0 %v239_v8  ;;  %265 = vmatprep.subr.bf16.mxu1 %v239_v8 }
   0xd   :  { %242 = vmatpush3.bf16.msra.mxu0 %v239_v8  ;;  %273 = vmatpush3.bf16.msra.mxu1 %v239_v8 }
   0xe   :  { %244 = vmatprep.subr.bf16.mxu0 %v243_v13  ;;  %266 = vmatprep.subr.bf16.mxu1 %v243_v13 }
  0x11   :  { %246 = vmatpush3.bf16.msra.mxu0 %v243_v13  ;;  %274 = vmatpush3.bf16.msra.mxu1 %v243_v13 }
  0x12   :  { %248 = vmatprep.subr.bf16.mxu0 %v247_v16  ;;  %267 = vmatprep.subr.bf16.mxu1 %v247_v16 }
  0x15   :  { %250 = vmatpush3.bf16.msra.mxu0 %v247_v16  ;;  %275 = vmatpush3.bf16.msra.mxu1 %v247_v16 }
  0x16   :  { %252 = vmatprep.subr.bf16.mxu0 %v251_v19  ;;  %268 = vmatprep.subr.bf16.mxu1 %v251_v19 }
  0x19   :  { %254 = vmatpush3.bf16.msra.mxu0 %v251_v19  ;;  %276 = vmatpush3.bf16.msra.mxu1 %v251_v19 }
  0x1a   :  { %256 = vmatprep.subr.bf16.mxu0 %v255_v22  ;;  %269 = vmatprep.subr.bf16.mxu1 %v255_v22 }
  0x1d   :  { %258 = vmatpush3.bf16.msra.mxu0 %v255_v22  ;;  %277 = vmatpush3.bf16.msra.mxu1 %v255_v22 }
  0x1e   :  { %260 = vmatprep.subr.bf16.mxu0 %v259_v25  ;;  %270 = vmatprep.subr.bf16.mxu1 %v259_v25 }
  0x21   :  { %262 = vmatpush3.bf16.msra.mxu0 %v259_v25  ;;  %278 = vmatpush3.bf16.msra.mxu1 %v259_v25 }
  0x24   :  { %220 = vmatmul.mubr.f32.vlgmr.msra.gmra.mrb[0].mxu0 %v15_v26  ;;  %226 = vmatmul.mubr.f32.vlgmr.msra.gmra.mrb[0].mxu1 %v19_v27 }
  0x25   :  { %222 = vmatprep.mubr.f32.mxu0 %v16_v28  ;;  %228 = vmatprep.mubr.f32.mxu1 %v20_v29 }
  0x28   :  { %223 = vmatmul.mubr.f32.gmra.mrb[2].mxu0 %v17_v30  ;;  %229 = vmatmul.mubr.f32.gmra.mrb[2].mxu1 %v21_v31 }
  0xf7   :  { %v221_v33 = vpop.f32.mrb[0].mxu0  ;;  %v227_v34 = vpop.f32.mrb[0].mxu1 }
  0xf8   :  { %v117_v35 = vadd.f32 %v221_v33, %v162_v32  ;;  %v137_v36 = vadd.f32 %v227_v34, %v162_v32  ;;  %v111_v37 = vpop.f32.mrb[1].mxu0  ;;  %v131_v38 = vpop.f32.mrb[1].mxu1 }
  0xf9   :  { %v112_v39 = vadd.f32 %v162_v32, %v111_v37  ;;  %v132_v40 = vadd.f32 %v162_v32, %v131_v38 }
  0xfa   :  { %151 = vst [vmem:[%s401_s3 + $0x8] sm:$0xff] %v117_v35  ;;  %155 = vst [vmem:[%s401_s3 + $0x28] sm:$0xff] %v137_v36 }
  0xfb   :  { %150 = vst [vmem:[%s401_s3] sm:$0xff] %v112_v39  ;;  %154 = vst [vmem:[%s401_s3 + $0x20] sm:$0xff] %v132_v40  ;;  %v224_v41 = vpop.f32.mrb[2].mxu0  ;;  %v230_v42 = vpop.f32.mrb[2].mxu1 }
  0xfc   :  { %v127_v43 = vadd.f32 %v224_v41, %v162_v32  ;;  %v147_v44 = vadd.f32 %v230_v42, %v162_v32  ;;  %v121_v45 = vpop.f32.mrb[3].mxu0  ;;  %v141_v46 = vpop.f32.mrb[3].mxu1 }
  0xfd   :  { %v122_v47 = vadd.f32 %v162_v32, %v121_v45  ;;  %v142_v48 = vadd.f32 %v162_v32, %v141_v46 }
  0xfe   :  { %153 = vst [vmem:[%s401_s3 + $0x18] sm:$0xff] %v127_v43  ;;  %157 = vst [vmem:[%s401_s3 + $0x38] sm:$0xff] %v147_v44 }
  0xff   :  { %152 = vst [vmem:[%s401_s3 + $0x10] sm:$0xff] %v122_v47  ;;  %156 = vst [vmem:[%s401_s3 + $0x30] sm:$0xff] %v142_v48 }

// kernel: decoder_forward.2
= control target key start
LH: loop header
LB: loop body
LE: loop exit
PB: predicated region body
PF: predicated region fallthrough
CT: control target
= control target key end

     0   :  { %9 = vsyncpa [#allocation7], 0  ;;  %s11043_s0 = inlined_call_operand.vmem [shape: f32[64,128], index: 0, kind: input, shape index: {}]   ;;  %s11044_s1 = inlined_call_operand.hbm [shape: f32[3,128,512], index: 1, kind: input, shape index: {}]   ;;  %s11045_s2 = inlined_call_operand.hbm [shape: f32[3,128,512], index: 2, kind: input, shape index: {}]   ;;  %s11046_s3 = inlined_call_operand.vmem [shape: f32[3,1,512], index: 3, kind: input, shape index: {}]   ;;  %s11047_s4 = inlined_call_operand.vmem [shape: f32[64,128], index: 4, kind: output, shape index: {}]  }
   0x1   :  { %10 = vsyncpa [#allocation9], 0  ;;  %s9382_s15 = smov [#allocation6]   ;;  %s9334_s19 = scalar_lea.hbm %s11044_s1, 24576 }
   0x2   :  { %s18_s16 = sshll.u32 %s9382_s15, 4  ;;  %p9335_p0 = scmp.ne.s32.totalorder %s11044_s1, %s9334_s19  ;;  %s19_s16 = int_to_ptr.vmem [resolvable:$true] %s18_s16 }
   0x3   :  { %p9338_p1 = scmp.lt.u32.totalorder %s9334_s19, %s11044_s1 }
   0x5   :  { %p9340_p2 = pnand %p9338_p1, %p9335_p0 }
   0x7   :  { %9343 = shalt.err (!%p9340_p2)
}
   0x8   :  { %s9344_s24 = scalar_lea.vmem %s19_s16, 24576  ;;  %p9349_p4 = scmp.lt.s32.totalorder %s19_s16, %s19_s16 }
   0x9   :  { %p9345_p3 = scmp.ne.s32.totalorder %s19_s16, %s9344_s24  ;;  %p9350_p5 = scmp.lt.s32.totalorder %s9344_s24, %s9344_s24 }
   0xb   :  { %p9351_p6 = por %p9350_p5, %p9349_p4 }
   0xd   :  { %p9352_p7 = pnand %p9351_p6, %p9345_p3 }
   0xf   :  { %9355 = shalt.err (!%p9352_p7)
}
  0x10   :  { %s9383_s25 = smov 512   ;;  %s9384_s26 = smov 32  }
  0x11   :  { %24 = dma.hbm_to_vmem [thread:$0]  %s11044_s1, 24576, %s19_s16, [#allocation7], %s9383_s25, %s9383_s25, %s9384_s26  }
  0x12   :  { %s9385_s29 = smov [#allocation8]   ;;  %s9356_s7 = scalar_lea.hbm %s11045_s2, 24576 }
  0x13   :  { %s30_s30 = sshll.u32 %s9385_s29, 4  ;;  %p9357_p8 = scmp.ne.s32.totalorder %s11045_s2, %s9356_s7  ;;  %s31_s30 = int_to_ptr.vmem [resolvable:$true] %s30_s30 }
  0x14   :  { %p9360_p9 = scmp.lt.u32.totalorder %s9356_s7, %s11045_s2 }
  0x16   :  { %p9362_p10 = pnand %p9360_p9, %p9357_p8 }
  0x18   :  { %9365 = shalt.err (!%p9362_p10)
}
  0x19   :  { %s9366_s12 = scalar_lea.vmem %s31_s30, 24576  ;;  %p9371_p12 = scmp.lt.s32.totalorder %s31_s30, %s31_s30 }
  0x1a   :  { %p9367_p11 = scmp.ne.s32.totalorder %s31_s30, %s9366_s12  ;;  %p9372_p13 = scmp.lt.s32.totalorder %s9366_s12, %s9366_s12 }
  0x1c   :  { %p9373_p0 = por %p9372_p13, %p9371_p12 }
  0x1e   :  { %p9374_p1 = pnand %p9373_p0, %p9367_p11 }
  0x20   :  { %9377 = shalt.err (!%p9374_p1)
}
  0x21   :  { %36 = dma.hbm_to_vmem [thread:$0]  %s11045_s2, 24576, %s31_s30, [#allocation9], %s9383_s25, %s9383_s25, %s9384_s26  }
  0x22   :  { %9378 = dma.done.wait [#allocation7], 24576  }
  0x23   :  { %9379 = vsyncadd [#allocation7], 4294942720 }
  0x24   :  { %9380 = dma.done.wait [#allocation9], 24576  }
  0x25   :  { %9381 = vsyncadd [#allocation9], 4294942720  ;;  %v9386_v0 = vmov 0.0   ;;  %v54_v1 = vld [vmem:[#allocation6 + $0x8] sm:$0xff]  ;;  %v56_v3 = vld [vmem:[#allocation6 + $0x18] sm:$0xff] }
  0x26   :  { %203 = vmatprep.mubr.f32.mxu0 %v9386_v0  ;;  %316 = vmatprep.mubr.f32.mxu1 %v9386_v0  ;;  %v58_v2 = vld [vmem:[#allocation6 + $0x28] sm:$0xff]  ;;  %v60_v5 = vld [vmem:[#allocation6 + $0x38] sm:$0xff]  ;;  %v53_v6 = vld [vmem:[#allocation6] sm:$0xff] }
  0x27   :  { %v7025_v4 = vpack.c.bf16 %v58_v2, %v54_v1  ;;  %v57_v7 = vld [vmem:[#allocation6 + $0x20] sm:$0xff]  ;;  %v7057_v8 = vpack.c.bf16 %v60_v5, %v56_v3  ;;  %v55_v10 = vld [vmem:[#allocation6 + $0x10] sm:$0xff]  ;;  %v62_v12 = vld [vmem:[#allocation6 + $0x48] sm:$0xff] }
  0x28   :  { %v7027_v9 = vpack.c.bf16 %v57_v7, %v53_v6  ;;  %v59_v11 = vld [vmem:[#allocation6 + $0x30] sm:$0xff]  ;;  %v66_v14 = vld [vmem:[#allocation6 + $0x68] sm:$0xff]  ;;  %v64_v15 = vld [vmem:[#allocation6 + $0x58] sm:$0xff] }
  0x29   :  { %7026 = vmatprep.subr.bf16.mxu0 %v7025_v4  ;;  %v7059_v13 = vpack.c.bf16 %v59_v11, %v55_v10  ;;  %v68_v16 = vld [vmem:[#allocation6 + $0x78] sm:$0xff]  ;;  %7058 = vmatprep.subr.bf16.mxu1 %v7057_v8  ;;  %v7029_v17 = vpack.c.bf16 %v66_v14, %v62_v12  ;;  %v61_v19 = vld [vmem:[#allocation6 + $0x40] sm:$0xff]  ;;  %v63_v21 = vld [vmem:[#allocation6 + $0x50] sm:$0xff] }
  0x2a   :  { %7028 = vmatpush1.bf16.msra.mxu0 %v7027_v9  ;;  %v7061_v18 = vpack.c.bf16 %v68_v16, %v64_v15  ;;  %v65_v20 = vld [vmem:[#allocation6 + $0x60] sm:$0xff]  ;;  %v67_v23 = vld [vmem:[#allocation6 + $0x70] sm:$0xff]  ;;  %v70_v24 = vld [vmem:[#allocation6 + $0x88] sm:$0xff] }
  0x2b   :  { %7060 = vmatpush1.bf16.msra.mxu1 %v7059_v13  ;;  %v7031_v22 = vpack.c.bf16 %v65_v20, %v61_v19  ;;  %v74_v25 = vld [vmem:[#allocation6 + $0xa8] sm:$0xff]  ;;  %7030 = vmatprep.subr.bf16.mxu0 %v7029_v17  ;;  %v7063_v26 = vpack.c.bf16 %v67_v23, %v63_v21  ;;  %v72_v28 = vld [vmem:[#allocation6 + $0x98] sm:$0xff]  ;;  %v69_v30 = vld [vmem:[#allocation6 + $0x80] sm:$0xff] }
  0x2c   :  { %7062 = vmatprep.subr.bf16.mxu1 %v7061_v18  ;;  %v7033_v27 = vpack.c.bf16 %v74_v25, %v70_v24  ;;  %v76_v29 = vld [vmem:[#allocation6 + $0xb8] sm:$0xff]  ;;  %v73_v32 = vld [vmem:[#allocation6 + $0xa0] sm:$0xff]  ;;  %v71_v33 = vld [vmem:[#allocation6 + $0x90] sm:$0xff] }
  0x2d   :  { %v7065_v31 = vpack.c.bf16 %v76_v29, %v72_v28  ;;  %v75_v34 = vld [vmem:[#allocation6 + $0xb0] sm:$0xff]  ;;  %v7035_v35 = vpack.c.bf16 %v73_v32, %v69_v30  ;;  %v78_v36 = vld [vmem:[#allocation6 + $0xc8] sm:$0xff]  ;;  %v80_v38 = vld [vmem:[#allocation6 + $0xd8] sm:$0xff] }
  0x2e   :  { %7032 = vmatpush1.bf16.msra.mxu0 %v7031_v22  ;;  %v82_v37 = vld [vmem:[#allocation6 + $0xe8] sm:$0xff]  ;;  %v7067_v39 = vpack.c.bf16 %v75_v34, %v71_v33  ;;  %v84_v41 = vld [vmem:[#allocation6 + $0xf8] sm:$0xff]  ;;  %v77_v42 = vld [vmem:[#allocation6 + $0xc0] sm:$0xff] }
  0x2f   :  { %7064 = vmatpush1.bf16.msra.mxu1 %v7063_v26  ;;  %7034 = vmatprep.subr.bf16.mxu0 %v7033_v27  ;;  %v7037_v40 = vpack.c.bf16 %v82_v37, %v78_v36  ;;  %v81_v43 = vld [vmem:[#allocation6 + $0xe0] sm:$0xff]  ;;  %v7069_v44 = vpack.c.bf16 %v84_v41, %v80_v38  ;;  %v79_v45 = vld [vmem:[#allocation6 + $0xd0] sm:$0xff]  ;;  %v86_v47 = vld [vmem:[#allocation6 + $0x108] sm:$0xff] }
  0x30   :  { %7066 = vmatprep.subr.bf16.mxu1 %v7065_v31  ;;  %v83_v46 = vld [vmem:[#allocation6 + $0xf0] sm:$0xff]  ;;  %v90_v48 = vld [vmem:[#allocation6 + $0x128] sm:$0xff]  ;;  %v88_v49 = vld [vmem:[#allocation6 + $0x118] sm:$0xff]  ;;  %v7039_v51 = vpack.c.bf16 %v81_v43, %v77_v42 }
  0x31   :  { %v92_v50 = vld [vmem:[#allocation6 + $0x138] sm:$0xff]  ;;  %v7071_v52 = vpack.c.bf16 %v83_v46, %v79_v45  ;;  %v7041_v53 = vpack.c.bf16 %v90_v48, %v86_v47  ;;  %v85_v54 = vld [vmem:[#allocation6 + $0x100] sm:$0xff]  ;;  %v87_v56 = vld [vmem:[#allocation6 + $0x110] sm:$0xff] }
  0x32   :  { %7036 = vmatpush1.bf16.msra.mxu0 %v7035_v35  ;;  %v89_v55 = vld [vmem:[#allocation6 + $0x120] sm:$0xff]  ;;  %v7073_v57 = vpack.c.bf16 %v92_v50, %v88_v49  ;;  %v91_v58 = vld [vmem:[#allocation6 + $0x130] sm:$0xff]  ;;  %v94_v59 = vld [vmem:[#allocation6 + $0x148] sm:$0xff] }
  0x33   :  { %7068 = vmatpush1.bf16.msra.mxu1 %v7067_v39  ;;  %7038 = vmatprep.subr.bf16.mxu0 %v7037_v40  ;;  %v98_v60 = vld [vmem:[#allocation6 + $0x168] sm:$0xff]  ;;  %v96_v61 = vld [vmem:[#allocation6 + $0x158] sm:$0xff]  ;;  %v7043_v63 = vpack.c.bf16 %v89_v55, %v85_v54  ;;  %v7075_v1 = vpack.c.bf16 %v91_v58, %v87_v56  ;;  %v93_v3 = vld [vmem:[#allocation6 + $0x140] sm:$0xff] }
  0x34   :  { %7070 = vmatprep.subr.bf16.mxu1 %v7069_v44  ;;  %v100_v62 = vld [vmem:[#allocation6 + $0x178] sm:$0xff]  ;;  %v7045_v2 = vpack.c.bf16 %v98_v60, %v94_v59  ;;  %v97_v4 = vld [vmem:[#allocation6 + $0x160] sm:$0xff]  ;;  %v95_v5 = vld [vmem:[#allocation6 + $0x150] sm:$0xff] }
  0x35   :  { %v7077_v6 = vpack.c.bf16 %v100_v62, %v96_v61  ;;  %v99_v7 = vld [vmem:[#allocation6 + $0x170] sm:$0xff]  ;;  %v102_v8 = vld [vmem:[#allocation6 + $0x188] sm:$0xff]  ;;  %v104_v10 = vld [vmem:[#allocation6 + $0x198] sm:$0xff]  ;;  %v7047_v12 = vpack.c.bf16 %v97_v4, %v93_v3 }
  0x36   :  { %7040 = vmatpush1.bf16.msra.mxu0 %v7039_v51  ;;  %v106_v9 = vld [vmem:[#allocation6 + $0x1a8] sm:$0xff]  ;;  %v108_v11 = vld [vmem:[#allocation6 + $0x1b8] sm:$0xff]  ;;  %v7079_v13 = vpack.c.bf16 %v99_v7, %v95_v5  ;;  %v101_v15 = vld [vmem:[#allocation6 + $0x180] sm:$0xff] }
  0x37   :  { %7072 = vmatpush1.bf16.msra.mxu1 %v7071_v52  ;;  %7042 = vmatprep.subr.bf16.mxu0 %v7041_v53  ;;  %v7049_v14 = vpack.c.bf16 %v106_v9, %v102_v8  ;;  %v105_v16 = vld [vmem:[#allocation6 + $0x1a0] sm:$0xff]  ;;  %v103_v17 = vld [vmem:[#allocation6 + $0x190] sm:$0xff]  ;;  %v7081_v18 = vpack.c.bf16 %v108_v11, %v104_v10  ;;  %v110_v20 = vld [vmem:[#allocation6 + $0x1c8] sm:$0xff] }
  0x38   :  { %7074 = vmatprep.subr.bf16.mxu1 %v7073_v57  ;;  %v107_v19 = vld [vmem:[#allocation6 + $0x1b0] sm:$0xff]  ;;  %v114_v21 = vld [vmem:[#allocation6 + $0x1e8] sm:$0xff]  ;;  %v112_v22 = vld [vmem:[#allocation6 + $0x1d8] sm:$0xff]  ;;  %v7051_v24 = vpack.c.bf16 %v105_v16, %v101_v15 }
  0x39   :  { %v116_v23 = vld [vmem:[#allocation6 + $0x1f8] sm:$0xff]  ;;  %v7083_v25 = vpack.c.bf16 %v107_v19, %v103_v17  ;;  %v7053_v26 = vpack.c.bf16 %v114_v21, %v110_v20  ;;  %v109_v27 = vld [vmem:[#allocation6 + $0x1c0] sm:$0xff]  ;;  %v111_v29 = vld [vmem:[#allocation6 + $0x1d0] sm:$0xff] }
  0x3a   :  { %7044 = vmatpush1.bf16.msra.mxu0 %v7043_v63  ;;  %v113_v28 = vld [vmem:[#allocation6 + $0x1e0] sm:$0xff]  ;;  %v7085_v30 = vpack.c.bf16 %v116_v23, %v112_v22  ;;  %v115_v31 = vld [vmem:[#allocation6 + $0x1f0] sm:$0xff]  ;;  %v405_v32 = vld [vmem:[#allocation8 + $0x8] sm:$0xff] }
  0x3b   :  { %7076 = vmatpush1.bf16.msra.mxu1 %v7075_v1  ;;  %7046 = vmatprep.subr.bf16.mxu0 %v7045_v2  ;;  %v409_v33 = vld [vmem:[#allocation8 + $0x28] sm:$0xff]  ;;  %v407_v34 = vld [vmem:[#allocation8 + $0x18] sm:$0xff]  ;;  %v7055_v36 = vpack.c.bf16 %v113_v28, %v109_v27  ;;  %v7087_v37 = vpack.c.bf16 %v115_v31, %v111_v29  ;;  %v404_v39 = vld [vmem:[#allocation8] sm:$0xff] }
  0x3c   :  { %7078 = vmatprep.subr.bf16.mxu1 %v7077_v6  ;;  %v411_v35 = vld [vmem:[#allocation8 + $0x38] sm:$0xff]  ;;  %v9438_v38 = vpack.c.bf16 %v409_v33, %v405_v32  ;;  %v408_v40 = vld [vmem:[#allocation8 + $0x20] sm:$0xff]  ;;  %v406_v42 = vld [vmem:[#allocation8 + $0x10] sm:$0xff] }
  0x3d   :  { %v9440_v41 = vpack.c.bf16 %v411_v35, %v407_v34  ;;  %v410_v43 = vld [vmem:[#allocation8 + $0x30] sm:$0xff]  ;;  %v413_v44 = vld [vmem:[#allocation8 + $0x48] sm:$0xff]  ;;  %v45_v46 = vld [vmem:[%s11043_s0] sm:$0xff]  ;;  %v9445_v47 = vpack.c.bf16 %v408_v40, %v404_v39 }
  0x3e   :  { %7048 = vmatpush1.bf16.msra.mxu0 %v7047_v12  ;;  %v417_v45 = vld [vmem:[#allocation8 + $0x68] sm:$0xff]  ;;  %v415_v48 = vld [vmem:[#allocation8 + $0x58] sm:$0xff]  ;;  %v9448_v50 = vpack.c.bf16 %v410_v43, %v406_v42  ;;  %v412_v51 = vld [vmem:[#allocation8 + $0x40] sm:$0xff] }
  0x3f   :  { %7080 = vmatpush1.bf16.msra.mxu1 %v7079_v13  ;;  %7050 = vmatprep.subr.bf16.mxu0 %v7049_v14  ;;  %v419_v49 = vld [vmem:[#allocation8 + $0x78] sm:$0xff]  ;;  %v416_v52 = vld [vmem:[#allocation8 + $0x60] sm:$0xff]  ;;  %v9451_v53 = vpack.c.bf16 %v417_v45, %v413_v44  ;;  %v414_v54 = vld [vmem:[#allocation8 + $0x50] sm:$0xff] }
  0x40   :  { %7082 = vmatprep.subr.bf16.mxu1 %v7081_v18  ;;  %v418_v55 = vld [vmem:[#allocation8 + $0x70] sm:$0xff]  ;;  %v9453_v56 = vpack.c.bf16 %v419_v49, %v415_v48  ;;  %v421_v57 = vld [vmem:[#allocation8 + $0x88] sm:$0xff]  ;;  %v9459_v60 = vpack.c.bf16 %v416_v52, %v412_v51  ;;  %v423_v61 = vld [vmem:[#allocation8 + $0x98] sm:$0xff] }
  0x41   :  { %v425_v58 = vld [vmem:[#allocation8 + $0xa8] sm:$0xff]  ;;  %v427_v62 = vld [vmem:[#allocation8 + $0xb8] sm:$0xff]  ;;  %v9463_v63 = vpack.c.bf16 %v418_v55, %v414_v54  ;;  %v420_v1 = vld [vmem:[#allocation8 + $0x80] sm:$0xff] }
  0x42   :  { %7052 = vmatpush1.bf16.msra.mxu0 %v7051_v24  ;;  %v46_v59 = vld [vmem:[%s11043_s0 + $0x8] sm:$0xff]  ;;  %v424_v2 = vld [vmem:[#allocation8 + $0xa0] sm:$0xff]  ;;  %v9467_v3 = vpack.c.bf16 %v425_v58, %v421_v57  ;;  %v422_v4 = vld [vmem:[#allocation8 + $0x90] sm:$0xff]  ;;  %v9470_v6 = vpack.c.bf16 %v427_v62, %v423_v61 }
  0x43   :  { %7084 = vmatpush1.bf16.msra.mxu1 %v7083_v25  ;;  %7054 = vmatprep.subr.bf16.mxu0 %v7053_v26  ;;  %v426_v5 = vld [vmem:[#allocation8 + $0xb0] sm:$0xff]  ;;  %v429_v7 = vld [vmem:[#allocation8 + $0xc8] sm:$0xff]  ;;  %v9476_v10 = vpack.c.bf16 %v424_v2, %v420_v1  ;;  %v431_v11 = vld [vmem:[#allocation8 + $0xd8] sm:$0xff] }
  0x44   :  { %7086 = vmatprep.subr.bf16.mxu1 %v7085_v30  ;;  %v433_v8 = vld [vmem:[#allocation8 + $0xe8] sm:$0xff]  ;;  %v47_v9 = vld [vmem:[%s11043_s0 + $0x10] sm:$0xff]  ;;  %v435_v12 = vld [vmem:[#allocation8 + $0xf8] sm:$0xff]  ;;  %v9480_v13 = vpack.c.bf16 %v426_v5, %v422_v4 }
  0x45   :  { %v428_v14 = vld [vmem:[#allocation8 + $0xc0] sm:$0xff]  ;;  %v9484_v16 = vpack.c.bf16 %v433_v8, %v429_v7  ;;  %v430_v17 = vld [vmem:[#allocation8 + $0xd0] sm:$0xff]  ;;  %v9487_v19 = vpack.c.bf16 %v435_v12, %v431_v11  ;;  %v437_v20 = vld [vmem:[#allocation8 + $0x108] sm:$0xff] }
  0x46   :  { %7056 = vmatpush1.bf16.msra.mxu0 %v7055_v36  ;;  %v432_v15 = vld [vmem:[#allocation8 + $0xe0] sm:$0xff]  ;;  %v434_v18 = vld [vmem:[#allocation8 + $0xf0] sm:$0xff]  ;;  %v441_v21 = vld [vmem:[#allocation8 + $0x128] sm:$0xff] }
  0x47   :  { %7088 = vmatpush1.bf16.msra.mxu1 %v7087_v37  ;;  %7090 = vmatprep.subr.bf16.mxu0 %v9438_v38  ;;  %v48_v22 = vld [vmem:[%s11043_s0 + $0x18] sm:$0xff]  ;;  %v9493_v23 = vpack.c.bf16 %v432_v15, %v428_v14  ;;  %v9497_v26 = vpack.c.bf16 %v434_v18, %v430_v17  ;;  %v436_v27 = vld [vmem:[#allocation8 + $0x100] sm:$0xff]  ;;  %v9501_v29 = vpack.c.bf16 %v441_v21, %v437_v20  ;;  %v438_v30 = vld [vmem:[#allocation8 + $0x110] sm:$0xff] }
  0x48   :  { %7122 = vmatprep.subr.bf16.mxu1 %v9440_v41  ;;  %v439_v24 = vld [vmem:[#allocation8 + $0x118] sm:$0xff]  ;;  %v440_v28 = vld [vmem:[#allocation8 + $0x120] sm:$0xff]  ;;  %v442_v31 = vld [vmem:[#allocation8 + $0x130] sm:$0xff] }
  0x49   :  { %204 = vmatmul.mubr.f32.vlgmr.msra.gmra.mrb[0].mxu0 %v45_v46  ;;  %v443_v25 = vld [vmem:[#allocation8 + $0x138] sm:$0xff]  ;;  %v445_v33 = vld [vmem:[#allocation8 + $0x148] sm:$0xff]  ;;  %v49_v35 = vld [vmem:[%s11043_s0 + $0x20] sm:$0xff]  ;;  %v9510_v36 = vpack.c.bf16 %v440_v28, %v436_v27  ;;  %v9514_v40 = vpack.c.bf16 %v442_v31, %v438_v30  ;;  %v119_v28 = vlaneseq }
  0x4a   :  { %317 = vmatmul.mubr.f32.vlgmr.msra.gmra.mrb[0].mxu1 %v45_v46  ;;  %7092 = vmatpush1.bf16.msra.mxu0 %v9445_v47  ;;  %v9504_v32 = vpack.c.bf16 %v443_v25, %v439_v24  ;;  %v449_v34 = vld [vmem:[#allocation8 + $0x168] sm:$0xff]  ;;  %v447_v37 = vld [vmem:[#allocation8 + $0x158] sm:$0xff]  ;;  %v444_v42 = vld [vmem:[#allocation8 + $0x140] sm:$0xff] }
  0x4b   :  { %7124 = vmatpush1.bf16.msra.mxu1 %v9448_v50  ;;  %209 = vmatprep.mubr.f32.mxu0 %v9386_v0  ;;  %v451_v39 = vld [vmem:[#allocation8 + $0x178] sm:$0xff]  ;;  %v448_v43 = vld [vmem:[#allocation8 + $0x160] sm:$0xff]  ;;  %v9518_v44 = vpack.c.bf16 %v449_v34, %v445_v33  ;;  %v446_v45 = vld [vmem:[#allocation8 + $0x150] sm:$0xff]  ;;  %v120_v30 = vshrl.u32 %v119_v28, 7 }
  0x4c   :  { %322 = vmatprep.mubr.f32.mxu1 %v9386_v0  ;;  %7094 = vmatprep.subr.bf16.mxu0 %v9451_v53  ;;  %v450_v46 = vld [vmem:[#allocation8 + $0x170] sm:$0xff]  ;;  %v9521_v48 = vpack.c.bf16 %v451_v39, %v447_v37  ;;  %v453_v49 = vld [vmem:[#allocation8 + $0x188] sm:$0xff]  ;;  %v9527_v54 = vpack.c.bf16 %v448_v43, %v444_v42  ;;  %v455_v55 = vld [vmem:[#allocation8 + $0x198] sm:$0xff] }
  0x4d   :  { %210 = vmatmul.mubr.f32.gmra.mrb[2].mxu0 %v46_v59  ;;  %7126 = vmatprep.subr.bf16.mxu1 %v9453_v56  ;;  %v457_v51 = vld [vmem:[#allocation8 + $0x1a8] sm:$0xff]  ;;  %v459_v57 = vld [vmem:[#allocation8 + $0x1b8] sm:$0xff]  ;;  %v9531_v58 = vpack.c.bf16 %v450_v46, %v446_v45  ;;  %v456_v61 = vld [vmem:[#allocation8 + $0x1a0] sm:$0xff]  ;;  %v9612_v31 = vsub.s32 0, %v120_v30  ;;  %v9617_v34 = vsub.s32 1, %v120_v30 }
  0x4e   :  { %323 = vmatmul.mubr.f32.gmra.mrb[2].mxu1 %v46_v59  ;;  %7096 = vmatpush1.bf16.msra.mxu0 %v9459_v60  ;;  %v50_v52 = vld [vmem:[%s11043_s0 + $0x28] sm:$0xff]  ;;  %v452_v59 = vld [vmem:[#allocation8 + $0x180] sm:$0xff]  ;;  %v9535_v62 = vpack.c.bf16 %v457_v51, %v453_v49  ;;  %v454_v1 = vld [vmem:[#allocation8 + $0x190] sm:$0xff]  ;;  %v9538_v4 = vpack.c.bf16 %v459_v57, %v455_v55  ;;  %v9632_v55 = vsub.s32 2, %v120_v30 }
  0x4f   :  { %7128 = vmatpush1.bf16.msra.mxu1 %v9463_v63  ;;  %215 = vmatprep.mubr.f32.mxu0 %v9386_v0  ;;  %v458_v2 = vld [vmem:[#allocation8 + $0x1b0] sm:$0xff]  ;;  %v461_v5 = vld [vmem:[#allocation8 + $0x1c8] sm:$0xff]  ;;  %v463_v11 = vld [vmem:[#allocation8 + $0x1d8] sm:$0xff] }
  0x50   :  { %328 = vmatprep.mubr.f32.mxu1 %v9386_v0  ;;  %7098 = vmatprep.subr.bf16.mxu0 %v9467_v3  ;;  %v465_v7 = vld [vmem:[#allocation8 + $0x1e8] sm:$0xff]  ;;  %v51_v8 = vld [vmem:[%s11043_s0 + $0x30] sm:$0xff]  ;;  %v467_v12 = vld [vmem:[#allocation8 + $0x1f8] sm:$0xff]  ;;  %v9548_v14 = vpack.c.bf16 %v458_v2, %v454_v1 }
  0x51   :  { %216 = vmatmul.mubr.f32.gmra.mrb[4].mxu0 %v47_v9  ;;  %7130 = vmatprep.subr.bf16.mxu1 %v9470_v6  ;;  %v460_v15 = vld [vmem:[#allocation8 + $0x1c0] sm:$0xff]  ;;  %v9552_v18 = vpack.c.bf16 %v465_v7, %v461_v5  ;;  %v462_v20 = vld [vmem:[#allocation8 + $0x1d0] sm:$0xff]  ;;  %v52_v24 = vld [vmem:[%s11043_s0 + $0x38] sm:$0xff] }
  0x52   :  { %329 = vmatmul.mubr.f32.gmra.mrb[4].mxu1 %v47_v9  ;;  %7100 = vmatpush1.bf16.msra.mxu0 %v9476_v10  ;;  %v9544_v9 = vpack.c.bf16 %v456_v61, %v452_v59  ;;  %v464_v17 = vld [vmem:[#allocation8 + $0x1e0] sm:$0xff]  ;;  %v466_v21 = vld [vmem:[#allocation8 + $0x1f0] sm:$0xff] }
  0x53   :  { %7132 = vmatpush1.bf16.msra.mxu1 %v9480_v13  ;;  %221 = vmatprep.mubr.f32.mxu0 %v9386_v0  ;;  %v9561_v25 = vpack.c.bf16 %v464_v17, %v460_v15  ;;  %v9565_v27 = vpack.c.bf16 %v466_v21, %v462_v20  ;;  %v117_v33 = vld [vmem:[%s11046_s3] sm:$0xf] }
  0x54   :  { %334 = vmatprep.mubr.f32.mxu1 %v9386_v0  ;;  %7102 = vmatprep.subr.bf16.mxu0 %v9484_v16  ;;  %v9623_v37 = vrot.slane %v117_v33, %v9617_v34  ;;  %v9636_v59 = vrot.slane %v117_v33, %v9632_v55 }
  0x55   :  { %222 = vmatmul.mubr.f32.gmra.mrb[6].mxu0 %v48_v22  ;;  %7134 = vmatprep.subr.bf16.mxu1 %v9487_v19 }
  0x56   :  { %335 = vmatmul.mubr.f32.gmra.mrb[6].mxu1 %v48_v22  ;;  %7104 = vmatpush1.bf16.msra.mxu0 %v9493_v23  ;;  %v9555_v22 = vpack.c.bf16 %v467_v12, %v463_v11 }
  0x57   :  { %7136 = vmatpush1.bf16.msra.mxu1 %v9497_v26  ;;  %227 = vmatprep.mubr.f32.mxu0 %v9386_v0 }
  0x58   :  { %340 = vmatprep.mubr.f32.mxu1 %v9386_v0  ;;  %7106 = vmatprep.subr.bf16.mxu0 %v9501_v29 }
  0x59   :  { %228 = vmatmul.mubr.f32.gmra.mrb[8].mxu0 %v49_v35  ;;  %7138 = vmatprep.subr.bf16.mxu1 %v9504_v32 }
  0x5a   :  { %341 = vmatmul.mubr.f32.gmra.mrb[8].mxu1 %v49_v35  ;;  %7108 = vmatpush1.bf16.msra.mxu0 %v9510_v36  ;;  %v9620_v35 = vrot.slane %v117_v33, %v9612_v31 }
  0x5b   :  { %7140 = vmatpush1.bf16.msra.mxu1 %v9514_v40  ;;  %233 = vmatprep.mubr.f32.mxu0 %v9386_v0 }
  0x5c   :  { %346 = vmatprep.mubr.f32.mxu1 %v9386_v0  ;;  %7110 = vmatprep.subr.bf16.mxu0 %v9518_v44 }
  0x5d   :  { %234 = vmatmul.mubr.f32.gmra.mrb[10].mxu0 %v50_v52  ;;  %7142 = vmatprep.subr.bf16.mxu1 %v9521_v48 }
  0x5e   :  { %347 = vmatmul.mubr.f32.gmra.mrb[10].mxu1 %v50_v52  ;;  %7112 = vmatpush1.bf16.msra.mxu0 %v9527_v54 }
  0x5f   :  { %7144 = vmatpush1.bf16.msra.mxu1 %v9531_v58  ;;  %239 = vmatprep.mubr.f32.mxu0 %v9386_v0 }
  0x60   :  { %352 = vmatprep.mubr.f32.mxu1 %v9386_v0  ;;  %7114 = vmatprep.subr.bf16.mxu0 %v9535_v62 }
  0x61   :  { %240 = vmatmul.mubr.f32.gmra.mrb[12].mxu0 %v51_v8  ;;  %7146 = vmatprep.subr.bf16.mxu1 %v9538_v4 }
  0x62   :  { %353 = vmatmul.mubr.f32.gmra.mrb[12].mxu1 %v51_v8  ;;  %7116 = vmatpush1.bf16.msra.mxu0 %v9544_v9 }
  0x63   :  { %7148 = vmatpush1.bf16.msra.mxu1 %v9548_v14  ;;  %245 = vmatprep.mubr.f32.mxu0 %v9386_v0 }
  0x64   :  { %358 = vmatprep.mubr.f32.mxu1 %v9386_v0  ;;  %7118 = vmatprep.subr.bf16.mxu0 %v9552_v18 }
  0x65   :  { %246 = vmatmul.mubr.f32.gmra.mrb[14].mxu0 %v52_v24  ;;  %7150 = vmatprep.subr.bf16.mxu1 %v9555_v22 }
  0x66   :  { %359 = vmatmul.mubr.f32.gmra.mrb[14].mxu1 %v52_v24  ;;  %7120 = vmatpush1.bf16.msra.mxu0 %v9561_v25 }
  0x67   :  { %7152 = vmatpush1.bf16.msra.mxu1 %v9565_v27  ;;  %532 = vmatprep.mubr.f32.mxu0 %v9386_v0 }
  0x68   :  { %603 = vmatprep.mubr.f32.mxu1 %v9386_v0  ;;  %7154 = vmatprep.subr.bf16.mxu0 %v9438_v38 }
  0x69   :  { %533 = vmatmul.mubr.f32.vlgmr.msra.gmra.mrb[0].mxu0 %v9386_v0  ;;  %7186 = vmatprep.subr.bf16.mxu1 %v9440_v41 }
  0x6a   :  { %604 = vmatmul.mubr.f32.vlgmr.msra.gmra.mrb[0].mxu1 %v9386_v0  ;;  %7156 = vmatpush1.bf16.msra.mxu0 %v9445_v47 }
  0x6b   :  { %7188 = vmatpush1.bf16.msra.mxu1 %v9448_v50  ;;  %7158 = vmatprep.subr.bf16.mxu0 %v9451_v53 }
  0x6c   :  { %7190 = vmatprep.subr.bf16.mxu1 %v9453_v56  ;;  %775 = vmatprep.mubr.f32.mxu0 %v9386_v0 }
  0x6d   :  { %846 = vmatprep.mubr.f32.mxu1 %v9386_v0 }
  0x6e   :  { %7160 = vmatpush1.bf16.msra.mxu0 %v9459_v60 }
  0x6f   :  { %7192 = vmatpush1.bf16.msra.mxu1 %v9463_v63  ;;  %7162 = vmatprep.subr.bf16.mxu0 %v9467_v3 }
  0x70   :  { %7194 = vmatprep.subr.bf16.mxu1 %v9470_v6 }
  0x72   :  { %7164 = vmatpush1.bf16.msra.mxu0 %v9476_v10 }
  0x73   :  { %7196 = vmatpush1.bf16.msra.mxu1 %v9480_v13  ;;  %7166 = vmatprep.subr.bf16.mxu0 %v9484_v16 }
  0x74   :  { %7198 = vmatprep.subr.bf16.mxu1 %v9487_v19 }
  0x76   :  { %7168 = vmatpush1.bf16.msra.mxu0 %v9493_v23 }
  0x77   :  { %7200 = vmatpush1.bf16.msra.mxu1 %v9497_v26  ;;  %7170 = vmatprep.subr.bf16.mxu0 %v9501_v29 }
  0x78   :  { %7202 = vmatprep.subr.bf16.mxu1 %v9504_v32 }
  0x7a   :  { %7172 = vmatpush1.bf16.msra.mxu0 %v9510_v36 }
  0x7b   :  { %7204 = vmatpush1.bf16.msra.mxu1 %v9514_v40  ;;  %7174 = vmatprep.subr.bf16.mxu0 %v9518_v44 }
  0x7c   :  { %7206 = vmatprep.subr.bf16.mxu1 %v9521_v48 }
  0x7e   :  { %7176 = vmatpush1.bf16.msra.mxu0 %v9527_v54 }
  0x7f   :  { %7208 = vmatpush1.bf16.msra.mxu1 %v9531_v58  ;;  %7178 = vmatprep.subr.bf16.mxu0 %v9535_v62 }
  0x80   :  { %7210 = vmatprep.subr.bf16.mxu1 %v9538_v4 }
  0x82   :  { %7180 = vmatpush1.bf16.msra.mxu0 %v9544_v9 }
  0x83   :  { %7212 = vmatpush1.bf16.msra.mxu1 %v9548_v14  ;;  %7182 = vmatprep.subr.bf16.mxu0 %v9552_v18 }
  0x84   :  { %7214 = vmatprep.subr.bf16.mxu1 %v9555_v22 }
  0x86   :  { %7184 = vmatpush1.bf16.msra.mxu0 %v9561_v25 }
  0x87   :  { %7216 = vmatpush1.bf16.msra.mxu1 %v9565_v27  ;;  %7218 = vmatprep.subr.bf16.mxu0 %v9438_v38  ;;  %v9625_v38 = vsub.s32 3, %v120_v30 }
  0x88   :  { %7250 = vmatprep.subr.bf16.mxu1 %v9440_v41 }
  0x89   :  { %v9630_v52 = vrot.slane %v117_v33, %v9625_v38 }
 0x13c   :  { %v534_v39 = vpop.f32.mrb[0].mxu0 }
 0x13d   :  { %v8753_v41 = vadd.f32 %v534_v39, %v9620_v35  ;;  %v605_v42 = vpop.f32.mrb[0].mxu1  ;;  %v536_v43 = vpop.f32.mrb[1].mxu0 }
 0x13e   :  { %v8754_v45 = vadd.f32 %v536_v43, %v9623_v37  ;;  %v607_v46 = vpop.f32.mrb[1].mxu1  ;;  %v8769_v1 = vadd.f32 %v605_v42, %v9636_v59 }
 0x13f   :  { %v6951_v49 = vmul.f32 -1.442695, %v8753_v41  ;;  %v8770_v57 = vadd.f32 %v607_v46, %v9630_v52 }
 0x140   :  { %v6952_v51 = vmul.f32 -1.442695, %v8754_v45 }
 0x141   :  { %8950 = vpow2.f32 %v6951_v49  ;;  %v6953_v61 = vmul.f32 -1.442695, %v8770_v57 }
 0x142   :  { %8952 = vpow2.f32 %v6952_v51 }
 0x143   :  { %8954 = vpow2.f32 %v6953_v61 }
 0x144   :  { %8956 = vtanh.f32 %v8769_v1 }
 0x14b   :  { %v8951_v2 = vpop.eup %8950 }
 0x14c   :  { %v8953_v5 = vpop.eup %8952  ;;  %v617_v7 = vadd.f32 1.0, %v8951_v2 }
 0x14d   :  { %v623_v8 = vadd.f32 1.0, %v8953_v5  ;;  %v8955_v11 = vpop.eup %8954 }
 0x14e   :  { %8958 = vrcp.f32 %v617_v7  ;;  %v8957_v12 = vpop.eup %8956  ;;  %v630_v21 = vadd.f32 1.0, %v8955_v11 }
 0x14f   :  { %8960 = vrcp.f32 %v623_v8 }
 0x150   :  { %8962 = vrcp.f32 %v630_v21 }
 0x158   :  { %v8959_v15 = vpop.eup %8958 }
 0x159   :  { %v8961_v17 = vpop.eup %8960  ;;  %v635_v20 = vmul.f32 %v8959_v15, %v8957_v12 }
 0x15a   :  { %v634_v24 = vmul.f32 0.0, %v8961_v17  ;;  %v8963_v30 = vpop.eup %8962 }
 0x15c   :  { %v9639_v28 = vadd.f32 %v635_v20, %v634_v24  ;;  %v1134_v24 = vld [vmem:[#allocation8 + $0x8] sm:$0xff] }
 0x15e   :  { %8964 = vtanh.f32 %v9639_v28 }
 0x168   :  { %v8965_v33 = vpop.eup %8964 }
 0x169   :  { %v9642_v39 = vmul.f32 %v8965_v33, %v8963_v30  ;;  %v1138_v30 = vld [vmem:[#allocation8 + $0x28] sm:$0xff] }
 0x16a   :  { %v9692_v33 = vpack.c.bf16 %v1138_v30, %v1134_v24  ;;  %v1399_v30 = vld [vmem:[#allocation8 + $0xb8] sm:$0xff] }
 0x16b   :  { %776 = vmatmul.mubr.f32.vlgmr.msra.gmra.mrb[2].mxu0 %v9642_v39  ;;  %847 = vmatmul.mubr.f32.vlgmr.msra.gmra.mrb[2].mxu1 %v9642_v39 }
 0x16c   :  { %7220 = vmatpush1.bf16.msra.mxu0 %v9445_v47  ;;  %7252 = vmatpush1.bf16.msra.mxu1 %v9448_v50 }
 0x16d   :  { %7222 = vmatprep.subr.bf16.mxu0 %v9451_v53  ;;  %7254 = vmatprep.subr.bf16.mxu1 %v9453_v56 }
 0x16e   :  { %1018 = vmatprep.mubr.f32.mxu0 %v9386_v0  ;;  %1089 = vmatprep.mubr.f32.mxu1 %v9386_v0 }
 0x170   :  { %7224 = vmatpush1.bf16.msra.mxu0 %v9459_v60  ;;  %7256 = vmatpush1.bf16.msra.mxu1 %v9463_v63 }
 0x171   :  { %7226 = vmatprep.subr.bf16.mxu0 %v9467_v3  ;;  %7258 = vmatprep.subr.bf16.mxu1 %v9470_v6 }
 0x174   :  { %7228 = vmatpush1.bf16.msra.mxu0 %v9476_v10  ;;  %7260 = vmatpush1.bf16.msra.mxu1 %v9480_v13 }
 0x175   :  { %7230 = vmatprep.subr.bf16.mxu0 %v9484_v16  ;;  %7262 = vmatprep.subr.bf16.mxu1 %v9487_v19 }
 0x178   :  { %7232 = vmatpush1.bf16.msra.mxu0 %v9493_v23  ;;  %7264 = vmatpush1.bf16.msra.mxu1 %v9497_v26 }
 0x179   :  { %7234 = vmatprep.subr.bf16.mxu0 %v9501_v29  ;;  %7266 = vmatprep.subr.bf16.mxu1 %v9504_v32 }
 0x17c   :  { %7236 = vmatpush1.bf16.msra.mxu0 %v9510_v36  ;;  %7268 = vmatpush1.bf16.msra.mxu1 %v9514_v40 }
 0x17d   :  { %7238 = vmatprep.subr.bf16.mxu0 %v9518_v44  ;;  %7270 = vmatprep.subr.bf16.mxu1 %v9521_v48 }
 0x180   :  { %7240 = vmatpush1.bf16.msra.mxu0 %v9527_v54  ;;  %7272 = vmatpush1.bf16.msra.mxu1 %v9531_v58 }
 0x181   :  { %7242 = vmatprep.subr.bf16.mxu0 %v9535_v62  ;;  %7274 = vmatprep.subr.bf16.mxu1 %v9538_v4 }
 0x184   :  { %7244 = vmatpush1.bf16.msra.mxu0 %v9544_v9  ;;  %7276 = vmatpush1.bf16.msra.mxu1 %v9548_v14 }
 0x185   :  { %7246 = vmatprep.subr.bf16.mxu0 %v9552_v18  ;;  %7278 = vmatprep.subr.bf16.mxu1 %v9555_v22 }
 0x188   :  { %7248 = vmatpush1.bf16.msra.mxu0 %v9561_v25  ;;  %7280 = vmatpush1.bf16.msra.mxu1 %v9565_v27 }
 0x189   :  { %7282 = vmatprep.subr.bf16.mxu0 %v9692_v33 }
 0x23e   :  { %v777_v47 = vpop.f32.mrb[2].mxu0  ;;  %v848_v50 = vpop.f32.mrb[2].mxu1 }
 0x23f   :  { %v8755_v53 = vadd.f32 %v777_v47, %v9620_v35  ;;  %v779_v56 = vpop.f32.mrb[3].mxu0  ;;  %v850_v60 = vpop.f32.mrb[3].mxu1  ;;  %v8771_v46 = vadd.f32 %v848_v50, %v9636_v59  ;;  %v1140_v47 = vld [vmem:[#allocation8 + $0x38] sm:$0xff]  ;;  %v1133_v50 = vld [vmem:[#allocation8] sm:$0xff] }
 0x240   :  { %v8756_v63 = vadd.f32 %v779_v56, %v9623_v37  ;;  %v8772_v43 = vadd.f32 %v850_v60, %v9630_v52 }
 0x241   :  { %v6954_v41 = vmul.f32 -1.442695, %v8755_v53  ;;  %v1137_v53 = vld [vmem:[#allocation8 + $0x20] sm:$0xff] }
 0x242   :  { %v6955_v42 = vmul.f32 -1.442695, %v8756_v63  ;;  %v6956_v45 = vmul.f32 -1.442695, %v8772_v43  ;;  %v9696_v60 = vpack.c.bf16 %v1137_v53, %v1133_v50  ;;  %v1135_v63 = vld [vmem:[#allocation8 + $0x10] sm:$0xff]  ;;  %v1142_v43 = vld [vmem:[#allocation8 + $0x48] sm:$0xff] }
 0x243   :  { %8966 = vpow2.f32 %v6954_v41  ;;  %v1139_v41 = vld [vmem:[#allocation8 + $0x30] sm:$0xff] }
 0x244   :  { %8968 = vpow2.f32 %v6955_v42  ;;  %v9699_v42 = vpack.c.bf16 %v1139_v41, %v1135_v63  ;;  %v1394_v63 = vld [vmem:[#allocation8 + $0x90] sm:$0xff] }
 0x245   :  { %8970 = vpow2.f32 %v6956_v45  ;;  %v1146_v45 = vld [vmem:[#allocation8 + $0x68] sm:$0xff]  ;;  %v1398_v41 = vld [vmem:[#allocation8 + $0xb0] sm:$0xff] }
 0x246   :  { %8972 = vtanh.f32 %v8771_v46  ;;  %v1144_v46 = vld [vmem:[#allocation8 + $0x58] sm:$0xff] }
 0x24d   :  { %v8967_v49 = vpop.eup %8966 }
 0x24e   :  { %v8969_v51 = vpop.eup %8968  ;;  %v860_v57 = vadd.f32 1.0, %v8967_v49  ;;  %v9704_v49 = vpack.c.bf16 %v1146_v45, %v1142_v43  ;;  %v9769_v43 = vpack.c.bf16 %v1398_v41, %v1394_v63  ;;  %v1401_v45 = vld [vmem:[#allocation8 + $0xc8] sm:$0xff]  ;;  %v1427_v41 = vld [vmem:[#allocation8 + $0x198] sm:$0xff] }
 0x24f   :  { %v866_v61 = vadd.f32 1.0, %v8969_v51  ;;  %v8971_v1 = vpop.eup %8970  ;;  %v1148_v51 = vld [vmem:[#allocation8 + $0x78] sm:$0xff]  ;;  %v1429_v63 = vld [vmem:[#allocation8 + $0x1a8] sm:$0xff] }
 0x250   :  { %8974 = vrcp.f32 %v860_v57  ;;  %v8973_v2 = vpop.eup %8972  ;;  %v873_v11 = vadd.f32 1.0, %v8971_v1  ;;  %v1141_v57 = vld [vmem:[#allocation8 + $0x40] sm:$0xff]  ;;  %v9706_v1 = vpack.c.bf16 %v1148_v51, %v1144_v46  ;;  %v1405_v46 = vld [vmem:[#allocation8 + $0xe8] sm:$0xff]  ;;  %v1403_v51 = vld [vmem:[#allocation8 + $0xd8] sm:$0xff] }
 0x251   :  { %8976 = vrcp.f32 %v866_v61  ;;  %v1145_v61 = vld [vmem:[#allocation8 + $0x60] sm:$0xff] }
 0x252   :  { %8978 = vrcp.f32 %v873_v11 }
 0x25a   :  { %v8975_v5 = vpop.eup %8974 }
 0x25b   :  { %v8977_v7 = vpop.eup %8976  ;;  %v878_v8 = vmul.f32 %v8975_v5, %v8973_v2  ;;  %v9708_v2 = vpack.c.bf16 %v1145_v61, %v1141_v57  ;;  %v1143_v5 = vld [vmem:[#allocation8 + $0x50] sm:$0xff]  ;;  %v9774_v57 = vpack.c.bf16 %v1405_v46, %v1401_v45  ;;  %v1407_v61 = vld [vmem:[#allocation8 + $0xf8] sm:$0xff] }
 0x25c   :  { %v877_v12 = vmul.f32 %v8977_v7, %v9639_v28  ;;  %v8979_v17 = vpop.eup %8978  ;;  %v1136_v28 = vld [vmem:[#allocation8 + $0x18] sm:$0xff]  ;;  %v1147_v7 = vld [vmem:[#allocation8 + $0x70] sm:$0xff] }
 0x25d   :  { %v9694_v56 = vpack.c.bf16 %v1140_v47, %v1136_v28  ;;  %v1392_v28 = vld [vmem:[#allocation8 + $0x80] sm:$0xff]  ;;  %v1431_v45 = vld [vmem:[#allocation8 + $0x1b8] sm:$0xff] }
 0x25e   :  { %v9683_v15 = vadd.f32 %v878_v8, %v877_v12  ;;  %v9711_v8 = vpack.c.bf16 %v1147_v7, %v1143_v5  ;;  %v1396_v47 = vld [vmem:[#allocation8 + $0xa0] sm:$0xff] }
 0x25f   :  { %7314 = vmatprep.subr.bf16.mxu1 %v9694_v56  ;;  %v9766_v53 = vpack.c.bf16 %v1396_v47, %v1392_v28  ;;  %v1400_v5 = vld [vmem:[#allocation8 + $0xc0] sm:$0xff]  ;;  %v1425_v28 = vld [vmem:[#allocation8 + $0x188] sm:$0xff] }
 0x260   :  { %8980 = vtanh.f32 %v9683_v15  ;;  %v1404_v7 = vld [vmem:[#allocation8 + $0xe0] sm:$0xff]  ;;  %v9808_v46 = vpack.c.bf16 %v1429_v63, %v1425_v28 }
 0x26a   :  { %v8981_v20 = vpop.eup %8980 }
 0x26b   :  { %v9686_v21 = vmul.f32 %v8981_v20, %v8979_v17  ;;  %v1397_v17 = vld [vmem:[#allocation8 + $0xa8] sm:$0xff]  ;;  %v1395_v20 = vld [vmem:[#allocation8 + $0x98] sm:$0xff] }
 0x26c   :  { %v9764_v50 = vpack.c.bf16 %v1399_v30, %v1395_v20  ;;  %v1418_v20 = vld [vmem:[#allocation8 + $0x150] sm:$0xff] }
 0x26d   :  { %1019 = vmatmul.mubr.f32.vlgmr.msra.gmra.mrb[4].mxu0 %v9686_v21  ;;  %1090 = vmatmul.mubr.f32.vlgmr.msra.gmra.mrb[4].mxu1 %v9686_v21  ;;  %v1422_v30 = vld [vmem:[#allocation8 + $0x170] sm:$0xff] }
 0x26e   :  { %1261 = vmatprep.mubr.f32.mxu0 %v9386_v0  ;;  %1332 = vmatprep.mubr.f32.mxu1 %v9386_v0  ;;  %v9805_v47 = vpack.c.bf16 %v1422_v30, %v1418_v20 }
 0x26f   :  { %7284 = vmatpush1.bf16.msra.mxu0 %v9696_v60  ;;  %7316 = vmatpush1.bf16.msra.mxu1 %v9699_v42 }
 0x270   :  { %7286 = vmatprep.subr.bf16.mxu0 %v9704_v49  ;;  %7318 = vmatprep.subr.bf16.mxu1 %v9706_v1 }
 0x273   :  { %7288 = vmatpush1.bf16.msra.mxu0 %v9708_v2  ;;  %7320 = vmatpush1.bf16.msra.mxu1 %v9711_v8 }
 0x274   :  { %7290 = vmatprep.subr.bf16.mxu0 %v9467_v3  ;;  %7322 = vmatprep.subr.bf16.mxu1 %v9470_v6 }
 0x277   :  { %7292 = vmatpush1.bf16.msra.mxu0 %v9476_v10  ;;  %7324 = vmatpush1.bf16.msra.mxu1 %v9480_v13 }
 0x278   :  { %7294 = vmatprep.subr.bf16.mxu0 %v9484_v16  ;;  %7326 = vmatprep.subr.bf16.mxu1 %v9487_v19 }
 0x27b   :  { %7296 = vmatpush1.bf16.msra.mxu0 %v9493_v23  ;;  %7328 = vmatpush1.bf16.msra.mxu1 %v9497_v26 }
 0x27c   :  { %7298 = vmatprep.subr.bf16.mxu0 %v9501_v29  ;;  %7330 = vmatprep.subr.bf16.mxu1 %v9504_v32 }
 0x27f   :  { %7300 = vmatpush1.bf16.msra.mxu0 %v9510_v36  ;;  %7332 = vmatpush1.bf16.msra.mxu1 %v9514_v40 }
 0x280   :  { %7302 = vmatprep.subr.bf16.mxu0 %v9518_v44  ;;  %7334 = vmatprep.subr.bf16.mxu1 %v9521_v48 }
 0x283   :  { %7304 = vmatpush1.bf16.msra.mxu0 %v9527_v54  ;;  %7336 = vmatpush1.bf16.msra.mxu1 %v9531_v58 }
 0x284   :  { %7306 = vmatprep.subr.bf16.mxu0 %v9535_v62  ;;  %7338 = vmatprep.subr.bf16.mxu1 %v9538_v4 }
 0x287   :  { %7308 = vmatpush1.bf16.msra.mxu0 %v9544_v9  ;;  %7340 = vmatpush1.bf16.msra.mxu1 %v9548_v14 }
 0x288   :  { %7310 = vmatprep.subr.bf16.mxu0 %v9552_v18  ;;  %7342 = vmatprep.subr.bf16.mxu1 %v9555_v22 }
 0x28b   :  { %7312 = vmatpush1.bf16.msra.mxu0 %v9561_v25  ;;  %7344 = vmatpush1.bf16.msra.mxu1 %v9565_v27 }
 0x28c   :  { %7346 = vmatprep.subr.bf16.mxu0 %v9692_v33  ;;  %7378 = vmatprep.subr.bf16.mxu1 %v9694_v56 }
 0x340   :  { %v1020_v3 = vpop.f32.mrb[4].mxu0  ;;  %v1091_v6 = vpop.f32.mrb[4].mxu1 }
 0x341   :  { %v8757_v10 = vadd.f32 %v1020_v3, %v9620_v35  ;;  %v1022_v13 = vpop.f32.mrb[5].mxu0  ;;  %v1093_v16 = vpop.f32.mrb[5].mxu1  ;;  %v8773_v36 = vadd.f32 %v1091_v6, %v9636_v59  ;;  %v9776_v3 = vpack.c.bf16 %v1407_v61, %v1403_v51  ;;  %v9778_v6 = vpack.c.bf16 %v1404_v7, %v1400_v5  ;;  %v1424_v61 = vld [vmem:[#allocation8 + $0x180] sm:$0xff]  ;;  %v1426_v7 = vld [vmem:[#allocation8 + $0x190] sm:$0xff] }
 0x342   :  { %v8758_v19 = vadd.f32 %v1022_v13, %v9623_v37  ;;  %v8774_v29 = vadd.f32 %v1093_v16, %v9630_v52  ;;  %v1406_v13 = vld [vmem:[#allocation8 + $0xf0] sm:$0xff]  ;;  %v9810_v51 = vpack.c.bf16 %v1431_v45, %v1427_v41  ;;  %v1428_v5 = vld [vmem:[#allocation8 + $0x1a0] sm:$0xff] }
 0x343   :  { %v6957_v23 = vmul.f32 -1.442695, %v8757_v10  ;;  %v1402_v10 = vld [vmem:[#allocation8 + $0xd0] sm:$0xff] }
 0x344   :  { %v6958_v26 = vmul.f32 -1.442695, %v8758_v19  ;;  %v6959_v32 = vmul.f32 -1.442695, %v8774_v29  ;;  %v9781_v16 = vpack.c.bf16 %v1406_v13, %v1402_v10  ;;  %v1409_v19 = vld [vmem:[#allocation8 + $0x108] sm:$0xff]  ;;  %v9813_v10 = vpack.c.bf16 %v1428_v5, %v1424_v61  ;;  %v1430_v13 = vld [vmem:[#allocation8 + $0x1b0] sm:$0xff] }
 0x345   :  { %8982 = vpow2.f32 %v6957_v23  ;;  %v1413_v23 = vld [vmem:[#allocation8 + $0x128] sm:$0xff] }
 0x346   :  { %8984 = vpow2.f32 %v6958_v26  ;;  %v1411_v26 = vld [vmem:[#allocation8 + $0x118] sm:$0xff]  ;;  %v9786_v29 = vpack.c.bf16 %v1413_v23, %v1409_v19  ;;  %v1433_v19 = vld [vmem:[#allocation8 + $0x1c8] sm:$0xff] }
 0x347   :  { %8986 = vpow2.f32 %v6959_v32  ;;  %v1415_v32 = vld [vmem:[#allocation8 + $0x138] sm:$0xff]  ;;  %v1437_v23 = vld [vmem:[#allocation8 + $0x1e8] sm:$0xff] }
 0x348   :  { %8988 = vtanh.f32 %v8773_v36  ;;  %v1408_v36 = vld [vmem:[#allocation8 + $0x100] sm:$0xff] }
 0x34f   :  { %v8983_v40 = vpop.eup %8982 }
 0x350   :  { %v8985_v44 = vpop.eup %8984  ;;  %v1103_v48 = vadd.f32 1.0, %v8983_v40  ;;  %v1412_v40 = vld [vmem:[#allocation8 + $0x120] sm:$0xff] }
 0x351   :  { %v1109_v54 = vadd.f32 1.0, %v8985_v44  ;;  %v8987_v58 = vpop.eup %8986  ;;  %v9788_v44 = vpack.c.bf16 %v1415_v32, %v1411_v26  ;;  %v9817_v26 = vpack.c.bf16 %v1430_v13, %v1426_v7  ;;  %v9819_v32 = vpack.c.bf16 %v1437_v23, %v1433_v19 }
 0x352   :  { %8990 = vrcp.f32 %v1103_v48  ;;  %v8989_v62 = vpop.eup %8988  ;;  %v1116_v18 = vadd.f32 1.0, %v8987_v58  ;;  %v9790_v48 = vpack.c.bf16 %v1412_v40, %v1408_v36  ;;  %v1414_v58 = vld [vmem:[#allocation8 + $0x130] sm:$0xff]  ;;  %v1435_v36 = vld [vmem:[#allocation8 + $0x1d8] sm:$0xff] }
 0x353   :  { %8992 = vrcp.f32 %v1109_v54  ;;  %v1410_v54 = vld [vmem:[#allocation8 + $0x110] sm:$0xff]  ;;  %v1439_v40 = vld [vmem:[#allocation8 + $0x1f8] sm:$0xff] }
 0x354   :  { %8994 = vrcp.f32 %v1116_v18 }
 0x35c   :  { %v8991_v4 = vpop.eup %8990 }
 0x35d   :  { %v8993_v9 = vpop.eup %8992  ;;  %v1121_v14 = vmul.f32 %v8991_v4, %v8989_v62  ;;  %v9793_v62 = vpack.c.bf16 %v1414_v58, %v1410_v54  ;;  %v1417_v4 = vld [vmem:[#allocation8 + $0x148] sm:$0xff]  ;;  %v1432_v54 = vld [vmem:[#allocation8 + $0x1c0] sm:$0xff]  ;;  %v9822_v58 = vpack.c.bf16 %v1439_v40, %v1435_v36 }
 0x35e   :  { %v1120_v22 = vmul.f32 %v8993_v9, %v9683_v15  ;;  %v8995_v27 = vpop.eup %8994  ;;  %v1393_v15 = vld [vmem:[#allocation8 + $0x88] sm:$0xff] }
 0x35f   :  { %v9762_v24 = vpack.c.bf16 %v1397_v17, %v1393_v15  ;;  %v1421_v9 = vld [vmem:[#allocation8 + $0x168] sm:$0xff] }
 0x360   :  { %v9747_v25 = vadd.f32 %v1121_v14, %v1120_v22  ;;  %v1419_v14 = vld [vmem:[#allocation8 + $0x158] sm:$0xff]  ;;  %v9797_v18 = vpack.c.bf16 %v1421_v9, %v1417_v4  ;;  %v1436_v4 = vld [vmem:[#allocation8 + $0x1e0] sm:$0xff]  ;;  %v1434_v9 = vld [vmem:[#allocation8 + $0x1d0] sm:$0xff] }
 0x361   :  { %v1423_v22 = vld [vmem:[#allocation8 + $0x178] sm:$0xff] }
 0x362   :  { %8996 = vtanh.f32 %v9747_v25  ;;  %v9800_v15 = vpack.c.bf16 %v1423_v22, %v1419_v14  ;;  %v1438_v14 = vld [vmem:[#allocation8 + $0x1f0] sm:$0xff]  ;;  %v9825_v22 = vpack.c.bf16 %v1436_v4, %v1432_v54 }
 0x36c   :  { %v8997_v11 = vpop.eup %8996 }
 0x36d   :  { %v9750_v12 = vmul.f32 %v8997_v11, %v8995_v27  ;;  %v1416_v27 = vld [vmem:[#allocation8 + $0x140] sm:$0xff] }
 0x36e   :  { %v1420_v11 = vld [vmem:[#allocation8 + $0x160] sm:$0xff] }
 0x36f   :  { %1262 = vmatmul.mubr.f32.vlgmr.msra.gmra.mrb[6].mxu0 %v9750_v12  ;;  %1333 = vmatmul.mubr.f32.vlgmr.msra.gmra.mrb[6].mxu1 %v9750_v12  ;;  %v9802_v17 = vpack.c.bf16 %v1420_v11, %v1416_v27  ;;  %v9829_v27 = vpack.c.bf16 %v1438_v14, %v1434_v9 }
 0x370   :  { %7348 = vmatpush1.bf16.msra.mxu0 %v9696_v60  ;;  %7380 = vmatpush1.bf16.msra.mxu1 %v9699_v42 }
 0x371   :  { %7350 = vmatprep.subr.bf16.mxu0 %v9704_v49  ;;  %7382 = vmatprep.subr.bf16.mxu1 %v9706_v1 }
 0x372   :  { %1504 = vmatprep.mubr.f32.mxu0 %v9386_v0  ;;  %1575 = vmatprep.mubr.f32.mxu1 %v9386_v0 }
 0x374   :  { %7352 = vmatpush1.bf16.msra.mxu0 %v9708_v2  ;;  %7384 = vmatpush1.bf16.msra.mxu1 %v9711_v8 }
 0x375   :  { %7354 = vmatprep.subr.bf16.mxu0 %v9762_v24  ;;  %7386 = vmatprep.subr.bf16.mxu1 %v9764_v50 }
 0x378   :  { %7356 = vmatpush1.bf16.msra.mxu0 %v9766_v53  ;;  %7388 = vmatpush1.bf16.msra.mxu1 %v9769_v43 }
 0x379   :  { %7358 = vmatprep.subr.bf16.mxu0 %v9774_v57  ;;  %7390 = vmatprep.subr.bf16.mxu1 %v9776_v3 }
 0x37c   :  { %7360 = vmatpush1.bf16.msra.mxu0 %v9778_v6  ;;  %7392 = vmatpush1.bf16.msra.mxu1 %v9781_v16 }
 0x37d   :  { %7362 = vmatprep.subr.bf16.mxu0 %v9786_v29  ;;  %7394 = vmatprep.subr.bf16.mxu1 %v9788_v44 }
 0x380   :  { %7364 = vmatpush1.bf16.msra.mxu0 %v9790_v48  ;;  %7396 = vmatpush1.bf16.msra.mxu1 %v9793_v62 }
 0x381   :  { %7366 = vmatprep.subr.bf16.mxu0 %v9797_v18  ;;  %7398 = vmatprep.subr.bf16.mxu1 %v9800_v15 }
 0x384   :  { %7368 = vmatpush1.bf16.msra.mxu0 %v9802_v17  ;;  %7400 = vmatpush1.bf16.msra.mxu1 %v9805_v47 }
 0x385   :  { %7370 = vmatprep.subr.bf16.mxu0 %v9808_v46  ;;  %7402 = vmatprep.subr.bf16.mxu1 %v9810_v51 }
 0x388   :  { %7372 = vmatpush1.bf16.msra.mxu0 %v9813_v10  ;;  %7404 = vmatpush1.bf16.msra.mxu1 %v9817_v26 }
 0x389   :  { %7374 = vmatprep.subr.bf16.mxu0 %v9819_v32  ;;  %7406 = vmatprep.subr.bf16.mxu1 %v9822_v58 }
 0x38c   :  { %7376 = vmatpush1.bf16.msra.mxu0 %v9825_v22  ;;  %7408 = vmatpush1.bf16.msra.mxu1 %v9829_v27 }
 0x38d   :  { %7410 = vmatprep.subr.bf16.mxu0 %v9692_v33  ;;  %7442 = vmatprep.subr.bf16.mxu1 %v9694_v56 }
 0x442   :  { %v1263_v11 = vpop.f32.mrb[6].mxu0  ;;  %v1334_v20 = vpop.f32.mrb[6].mxu1 }
 0x443   :  { %v8759_v30 = vadd.f32 %v1263_v11, %v9620_v35  ;;  %v1265_v28 = vpop.f32.mrb[7].mxu0  ;;  %v1336_v63 = vpop.f32.mrb[7].mxu1  ;;  %v8775_v13 = vadd.f32 %v1334_v20, %v9636_v59 }
 0x444   :  { %v8760_v41 = vadd.f32 %v1265_v28, %v9623_v37  ;;  %v8776_v5 = vadd.f32 %v1336_v63, %v9630_v52 }
 0x445   :  { %v6960_v45 = vmul.f32 -1.442695, %v8759_v30 }
 0x446   :  { %v6961_v61 = vmul.f32 -1.442695, %v8760_v41  ;;  %v6962_v7 = vmul.f32 -1.442695, %v8776_v5 }
 0x447   :  { %8998 = vpow2.f32 %v6960_v45 }
 0x448   :  { %9000 = vpow2.f32 %v6961_v61 }
 0x449   :  { %9002 = vpow2.f32 %v6962_v7 }
 0x44a   :  { %9004 = vtanh.f32 %v8775_v13 }
 0x451   :  { %v8999_v19 = vpop.eup %8998 }
 0x452   :  { %v9001_v23 = vpop.eup %9000  ;;  %v1346_v36 = vadd.f32 1.0, %v8999_v19 }
 0x453   :  { %v1352_v40 = vadd.f32 1.0, %v9001_v23  ;;  %v9003_v54 = vpop.eup %9002 }
 0x454   :  { %9006 = vrcp.f32 %v1346_v36  ;;  %v9005_v4 = vpop.eup %9004  ;;  %v1359_v30 = vadd.f32 1.0, %v9003_v54 }
 0x455   :  { %9008 = vrcp.f32 %v1352_v40 }
 0x456   :  { %9010 = vrcp.f32 %v1359_v30 }
 0x45e   :  { %v9007_v9 = vpop.eup %9006 }
 0x45f   :  { %v9009_v14 = vpop.eup %9008  ;;  %v1364_v11 = vmul.f32 %v9007_v9, %v9005_v4 }
 0x460   :  { %v1363_v28 = vmul.f32 %v9009_v14, %v9747_v25  ;;  %v9011_v20 = vpop.eup %9010 }
 0x462   :  { %v9841_v63 = vadd.f32 %v1364_v11, %v1363_v28 }
 0x464   :  { %9012 = vtanh.f32 %v9841_v63 }
 0x46e   :  { %v9013_v41 = vpop.eup %9012 }
 0x46f   :  { %v9844_v45 = vmul.f32 %v9013_v41, %v9011_v20 }
 0x471   :  { %1505 = vmatmul.mubr.f32.vlgmr.msra.gmra.mrb[8].mxu0 %v9844_v45  ;;  %1576 = vmatmul.mubr.f32.vlgmr.msra.gmra.mrb[8].mxu1 %v9844_v45 }
 0x472   :  { %7412 = vmatpush1.bf16.msra.mxu0 %v9696_v60  ;;  %7444 = vmatpush1.bf16.msra.mxu1 %v9699_v42 }
 0x473   :  { %7414 = vmatprep.subr.bf16.mxu0 %v9704_v49  ;;  %7446 = vmatprep.subr.bf16.mxu1 %v9706_v1 }
 0x474   :  { %1747 = vmatprep.mubr.f32.mxu0 %v9386_v0  ;;  %1818 = vmatprep.mubr.f32.mxu1 %v9386_v0 }
 0x476   :  { %7416 = vmatpush1.bf16.msra.mxu0 %v9708_v2  ;;  %7448 = vmatpush1.bf16.msra.mxu1 %v9711_v8 }
 0x477   :  { %7418 = vmatprep.subr.bf16.mxu0 %v9762_v24  ;;  %7450 = vmatprep.subr.bf16.mxu1 %v9764_v50 }
 0x47a   :  { %7420 = vmatpush1.bf16.msra.mxu0 %v9766_v53  ;;  %7452 = vmatpush1.bf16.msra.mxu1 %v9769_v43 }
 0x47b   :  { %7422 = vmatprep.subr.bf16.mxu0 %v9774_v57  ;;  %7454 = vmatprep.subr.bf16.mxu1 %v9776_v3 }
 0x47e   :  { %7424 = vmatpush1.bf16.msra.mxu0 %v9778_v6  ;;  %7456 = vmatpush1.bf16.msra.mxu1 %v9781_v16 }
 0x47f   :  { %7426 = vmatprep.subr.bf16.mxu0 %v9786_v29  ;;  %7458 = vmatprep.subr.bf16.mxu1 %v9788_v44 }
 0x482   :  { %7428 = vmatpush1.bf16.msra.mxu0 %v9790_v48  ;;  %7460 = vmatpush1.bf16.msra.mxu1 %v9793_v62 }
 0x483   :  { %7430 = vmatprep.subr.bf16.mxu0 %v9797_v18  ;;  %7462 = vmatprep.subr.bf16.mxu1 %v9800_v15 }
 0x486   :  { %7432 = vmatpush1.bf16.msra.mxu0 %v9802_v17  ;;  %7464 = vmatpush1.bf16.msra.mxu1 %v9805_v47 }
 0x487   :  { %7434 = vmatprep.subr.bf16.mxu0 %v9808_v46  ;;  %7466 = vmatprep.subr.bf16.mxu1 %v9810_v51 }
 0x48a   :  { %7436 = vmatpush1.bf16.msra.mxu0 %v9813_v10  ;;  %7468 = vmatpush1.bf16.msra.mxu1 %v9817_v26 }
 0x48b   :  { %7438 = vmatprep.subr.bf16.mxu0 %v9819_v32  ;;  %7470 = vmatprep.subr.bf16.mxu1 %v9822_v58 }
 0x48e   :  { %7440 = vmatpush1.bf16.msra.mxu0 %v9825_v22  ;;  %7472 = vmatpush1.bf16.msra.mxu1 %v9829_v27 }
 0x48f   :  { %7474 = vmatprep.subr.bf16.mxu0 %v9692_v33  ;;  %7506 = vmatprep.subr.bf16.mxu1 %v9694_v56 }
 0x544   :  { %v1506_v25 = vpop.f32.mrb[8].mxu0  ;;  %v1577_v61 = vpop.f32.mrb[8].mxu1 }
 0x545   :  { %v8761_v5 = vadd.f32 %v1506_v25, %v9620_v35  ;;  %v1508_v7 = vpop.f32.mrb[9].mxu0  ;;  %v1579_v13 = vpop.f32.mrb[9].mxu1  ;;  %v8777_v4 = vadd.f32 %v1577_v61, %v9636_v59 }
 0x546   :  { %v8762_v19 = vadd.f32 %v1508_v7, %v9623_v37  ;;  %v8778_v40 = vadd.f32 %v1579_v13, %v9630_v52 }
 0x547   :  { %v6963_v23 = vmul.f32 -1.442695, %v8761_v5 }
 0x548   :  { %v6964_v36 = vmul.f32 -1.442695, %v8762_v19  ;;  %v6965_v54 = vmul.f32 -1.442695, %v8778_v40 }
 0x549   :  { %9014 = vpow2.f32 %v6963_v23 }
 0x54a   :  { %9016 = vpow2.f32 %v6964_v36 }
 0x54b   :  { %9018 = vpow2.f32 %v6965_v54 }
 0x54c   :  { %9020 = vtanh.f32 %v8777_v4 }
 0x553   :  { %v9015_v33 = vpop.eup %9014 }
 0x554   :  { %v9017_v9 = vpop.eup %9016  ;;  %v1589_v56 = vadd.f32 1.0, %v9015_v33 }
 0x555   :  { %v1595_v14 = vadd.f32 1.0, %v9017_v9  ;;  %v9019_v11 = vpop.eup %9018 }
 0x556   :  { %9022 = vrcp.f32 %v1589_v56  ;;  %v9021_v30 = vpop.eup %9020  ;;  %v1602_v25 = vadd.f32 1.0, %v9019_v11 }
 0x557   :  { %9024 = vrcp.f32 %v1595_v14 }
 0x558   :  { %9026 = vrcp.f32 %v1602_v25 }
 0x560   :  { %v9023_v28 = vpop.eup %9022 }
 0x561   :  { %v9025_v20 = vpop.eup %9024  ;;  %v1607_v41 = vmul.f32 %v9023_v28, %v9021_v30 }
 0x562   :  { %v1606_v5 = vmul.f32 %v9025_v20, %v9841_v63  ;;  %v9027_v61 = vpop.eup %9026 }
 0x564   :  { %v9887_v7 = vadd.f32 %v1607_v41, %v1606_v5 }
 0x566   :  { %9028 = vtanh.f32 %v9887_v7 }
 0x570   :  { %v9029_v13 = vpop.eup %9028 }
 0x571   :  { %v9890_v19 = vmul.f32 %v9029_v13, %v9027_v61 }
 0x573   :  { %1748 = vmatmul.mubr.f32.vlgmr.msra.gmra.mrb[10].mxu0 %v9890_v19  ;;  %1819 = vmatmul.mubr.f32.vlgmr.msra.gmra.mrb[10].mxu1 %v9890_v19 }
 0x574   :  { %7476 = vmatpush1.bf16.msra.mxu0 %v9696_v60  ;;  %7508 = vmatpush1.bf16.msra.mxu1 %v9699_v42 }
 0x575   :  { %7478 = vmatprep.subr.bf16.mxu0 %v9704_v49  ;;  %7510 = vmatprep.subr.bf16.mxu1 %v9706_v1 }
 0x576   :  { %1990 = vmatprep.mubr.f32.mxu0 %v9386_v0  ;;  %2061 = vmatprep.mubr.f32.mxu1 %v9386_v0 }
 0x578   :  { %7480 = vmatpush1.bf16.msra.mxu0 %v9708_v2  ;;  %7512 = vmatpush1.bf16.msra.mxu1 %v9711_v8 }
 0x579   :  { %7482 = vmatprep.subr.bf16.mxu0 %v9762_v24  ;;  %7514 = vmatprep.subr.bf16.mxu1 %v9764_v50 }
 0x57c   :  { %7484 = vmatpush1.bf16.msra.mxu0 %v9766_v53  ;;  %7516 = vmatpush1.bf16.msra.mxu1 %v9769_v43 }
 0x57d   :  { %7486 = vmatprep.subr.bf16.mxu0 %v9774_v57  ;;  %7518 = vmatprep.subr.bf16.mxu1 %v9776_v3 }
 0x580   :  { %7488 = vmatpush1.bf16.msra.mxu0 %v9778_v6  ;;  %7520 = vmatpush1.bf16.msra.mxu1 %v9781_v16 }
 0x581   :  { %7490 = vmatprep.subr.bf16.mxu0 %v9786_v29  ;;  %7522 = vmatprep.subr.bf16.mxu1 %v9788_v44 }
 0x584   :  { %7492 = vmatpush1.bf16.msra.mxu0 %v9790_v48  ;;  %7524 = vmatpush1.bf16.msra.mxu1 %v9793_v62 }
 0x585   :  { %7494 = vmatprep.subr.bf16.mxu0 %v9797_v18  ;;  %7526 = vmatprep.subr.bf16.mxu1 %v9800_v15 }
 0x588   :  { %7496 = vmatpush1.bf16.msra.mxu0 %v9802_v17  ;;  %7528 = vmatpush1.bf16.msra.mxu1 %v9805_v47 }
 0x589   :  { %7498 = vmatprep.subr.bf16.mxu0 %v9808_v46  ;;  %7530 = vmatprep.subr.bf16.mxu1 %v9810_v51 }
 0x58c   :  { %7500 = vmatpush1.bf16.msra.mxu0 %v9813_v10  ;;  %7532 = vmatpush1.bf16.msra.mxu1 %v9817_v26 }
 0x58d   :  { %7502 = vmatprep.subr.bf16.mxu0 %v9819_v32  ;;  %7534 = vmatprep.subr.bf16.mxu1 %v9822_v58 }
 0x590   :  { %7504 = vmatpush1.bf16.msra.mxu0 %v9825_v22  ;;  %7536 = vmatpush1.bf16.msra.mxu1 %v9829_v27 }
 0x646   :  { %v1749_v60 = vpop.f32.mrb[10].mxu0  ;;  %v1820_v42 = vpop.f32.mrb[10].mxu1 }
 0x647   :  { %v8763_v49 = vadd.f32 %v1749_v60, %v9620_v35  ;;  %v1751_v1 = vpop.f32.mrb[11].mxu0  ;;  %v1822_v2 = vpop.f32.mrb[11].mxu1  ;;  %v8779_v54 = vadd.f32 %v1820_v42, %v9636_v59  ;;  %v2106_v42 = vld [vmem:[#allocation8 + $0x8] sm:$0xff] }
 0x648   :  { %v8764_v8 = vadd.f32 %v1751_v1, %v9623_v37  ;;  %v8780_v36 = vadd.f32 %v1822_v2, %v9630_v52  ;;  %v2112_v2 = vld [vmem:[#allocation8 + $0x38] sm:$0xff] }
 0x649   :  { %v6966_v63 = vmul.f32 -1.442695, %v8763_v49  ;;  %v2110_v49 = vld [vmem:[#allocation8 + $0x28] sm:$0xff] }
 0x64a   :  { %v6967_v23 = vmul.f32 -1.442695, %v8764_v8  ;;  %v6968_v40 = vmul.f32 -1.442695, %v8780_v36  ;;  %v7537_v1 = vpack.c.bf16 %v2110_v49, %v2106_v42  ;;  %v2105_v8 = vld [vmem:[#allocation8] sm:$0xff] }
 0x64b   :  { %9030 = vpow2.f32 %v6966_v63  ;;  %v2109_v63 = vld [vmem:[#allocation8 + $0x20] sm:$0xff] }
 0x64c   :  { %9032 = vpow2.f32 %v6967_v23  ;;  %v7539_v36 = vpack.c.bf16 %v2109_v63, %v2105_v8  ;;  %7538 = vmatprep.subr.bf16.mxu0 %v7537_v1  ;;  %v2352_v8 = vld [vmem:[#allocation6 + $0x200] sm:$0xff] }
 0x64d   :  { %9034 = vpow2.f32 %v6968_v40  ;;  %v2107_v40 = vld [vmem:[#allocation8 + $0x10] sm:$0xff]  ;;  %v2356_v63 = vld [vmem:[#allocation6 + $0x220] sm:$0xff] }
 0x64e   :  { %9036 = vtanh.f32 %v8779_v54  ;;  %v2111_v54 = vld [vmem:[#allocation8 + $0x30] sm:$0xff] }
 0x655   :  { %v9031_v4 = vpop.eup %9030 }
 0x656   :  { %v9033_v33 = vpop.eup %9032  ;;  %v1832_v9 = vadd.f32 1.0, %v9031_v4  ;;  %v7571_v4 = vpack.c.bf16 %v2111_v54, %v2107_v40  ;;  %v2361_v40 = vld [vmem:[#allocation6 + $0x248] sm:$0xff] }
 0x657   :  { %v1838_v56 = vadd.f32 1.0, %v9033_v33  ;;  %v9035_v14 = vpop.eup %9034  ;;  %v2114_v33 = vld [vmem:[#allocation8 + $0x48] sm:$0xff] }
 0x658   :  { %9038 = vrcp.f32 %v1832_v9  ;;  %v9037_v11 = vpop.eup %9036  ;;  %v1845_v41 = vadd.f32 1.0, %v9035_v14  ;;  %v2118_v9 = vld [vmem:[#allocation8 + $0x68] sm:$0xff] }
 0x659   :  { %9040 = vrcp.f32 %v1838_v56  ;;  %v2116_v56 = vld [vmem:[#allocation8 + $0x58] sm:$0xff]  ;;  %v7541_v14 = vpack.c.bf16 %v2118_v9, %v2114_v33  ;;  %v2365_v54 = vld [vmem:[#allocation6 + $0x268] sm:$0xff] }
 0x65a   :  { %9042 = vrcp.f32 %v1845_v41  ;;  %v2367_v33 = vld [vmem:[#allocation6 + $0x278] sm:$0xff] }
 0x662   :  { %v9039_v30 = vpop.eup %9038 }
 0x663   :  { %v9041_v28 = vpop.eup %9040  ;;  %v1850_v20 = vmul.f32 %v9039_v30, %v9037_v11  ;;  %v2120_v11 = vld [vmem:[#allocation8 + $0x78] sm:$0xff]  ;;  %v2113_v30 = vld [vmem:[#allocation8 + $0x40] sm:$0xff] }
 0x664   :  { %v1849_v25 = vmul.f32 %v9041_v28, %v9887_v7  ;;  %v9043_v61 = vpop.eup %9042  ;;  %v2108_v7 = vld [vmem:[#allocation8 + $0x18] sm:$0xff]  ;;  %v2117_v28 = vld [vmem:[#allocation8 + $0x60] sm:$0xff] }
 0x665   :  { %v7569_v23 = vpack.c.bf16 %v2112_v2, %v2108_v7  ;;  %v7543_v41 = vpack.c.bf16 %v2117_v28, %v2113_v30  ;;  %v2360_v30 = vld [vmem:[#allocation6 + $0x240] sm:$0xff] }
 0x666   :  { %v9931_v5 = vadd.f32 %v1850_v20, %v1849_v25  ;;  %v7573_v20 = vpack.c.bf16 %v2120_v11, %v2116_v56  ;;  %v2115_v25 = vld [vmem:[#allocation8 + $0x50] sm:$0xff]  ;;  %v2364_v28 = vld [vmem:[#allocation6 + $0x260] sm:$0xff] }
 0x667   :  { %7570 = vmatprep.subr.bf16.mxu1 %v7569_v23  ;;  %v2354_v23 = vld [vmem:[#allocation6 + $0x210] sm:$0xff] }
 0x668   :  { %9044 = vtanh.f32 %v9931_v5 }
 0x672   :  { %v9045_v13 = vpop.eup %9044 }
 0x673   :  { %v9934_v60 = vmul.f32 %v9045_v13, %v9043_v61  ;;  %v2119_v61 = vld [vmem:[#allocation8 + $0x70] sm:$0xff] }
 0x674   :  { %v7575_v13 = vpack.c.bf16 %v2119_v61, %v2115_v25  ;;  %v2362_v25 = vld [vmem:[#allocation6 + $0x250] sm:$0xff] }
 0x675   :  { %1991 = vmatmul.mubr.f32.vlgmr.msra.gmra.mrb[12].mxu0 %v9934_v60  ;;  %2062 = vmatmul.mubr.f32.vlgmr.msra.gmra.mrb[12].mxu1 %v9934_v60  ;;  %v2366_v61 = vld [vmem:[#allocation6 + $0x270] sm:$0xff] }
 0x676   :  { %2233 = vmatprep.mubr.f32.mxu0 %v9386_v0  ;;  %2304 = vmatprep.mubr.f32.mxu1 %v9386_v0 }
 0x677   :  { %7540 = vmatpush1.bf16.msra.mxu0 %v7539_v36  ;;  %7572 = vmatpush1.bf16.msra.mxu1 %v7571_v4  ;;  %v2358_v36 = vld [vmem:[#allocation6 + $0x230] sm:$0xff]  ;;  %v2363_v4 = vld [vmem:[#allocation6 + $0x258] sm:$0xff] }
 0x678   :  { %7542 = vmatprep.subr.bf16.mxu0 %v7541_v14  ;;  %7574 = vmatprep.subr.bf16.mxu1 %v7573_v20  ;;  %v7603_v14 = vpack.c.bf16 %v2356_v63, %v2352_v8  ;;  %v7635_v11 = vpack.c.bf16 %v2358_v36, %v2354_v23  ;;  %v7605_v20 = vpack.c.bf16 %v2365_v54, %v2361_v40  ;;  %v2384_v63 = vld [vmem:[#allocation6 + $0x300] sm:$0xff]  ;;  %v2386_v54 = vld [vmem:[#allocation6 + $0x310] sm:$0xff] }
 0x679   :  { %v2388_v23 = vld [vmem:[#allocation6 + $0x320] sm:$0xff] }
 0x67b   :  { %7544 = vmatpush1.bf16.msra.mxu0 %v7543_v41  ;;  %7576 = vmatpush1.bf16.msra.mxu1 %v7575_v13  ;;  %v7637_v41 = vpack.c.bf16 %v2367_v33, %v2363_v4  ;;  %v2369_v13 = vld [vmem:[#allocation6 + $0x288] sm:$0xff]  ;;  %v2390_v4 = vld [vmem:[#allocation6 + $0x330] sm:$0xff] }
 0x67c   :  { %7546 = vmatprep.subr.bf16.mxu0 %v9762_v24  ;;  %7578 = vmatprep.subr.bf16.mxu1 %v9764_v50  ;;  %v2353_v24 = vld [vmem:[#allocation6 + $0x208] sm:$0xff] }
 0x67d   :  { %v2357_v50 = vld [vmem:[#allocation6 + $0x228] sm:$0xff] }
 0x67e   :  { %v2393_v33 = vld [vmem:[#allocation6 + $0x348] sm:$0xff] }
 0x67f   :  { %7548 = vmatpush1.bf16.msra.mxu0 %v9766_v53  ;;  %7580 = vmatpush1.bf16.msra.mxu1 %v9769_v43  ;;  %v2355_v53 = vld [vmem:[#allocation6 + $0x218] sm:$0xff] }
 0x680   :  { %7550 = vmatprep.subr.bf16.mxu0 %v9774_v57  ;;  %7582 = vmatprep.subr.bf16.mxu1 %v9776_v3  ;;  %v2359_v43 = vld [vmem:[#allocation6 + $0x238] sm:$0xff]  ;;  %v7601_v57 = vpack.c.bf16 %v2357_v50, %v2353_v24  ;;  %v2373_v24 = vld [vmem:[#allocation6 + $0x2a8] sm:$0xff] }
 0x681   :  { %v7633_v3 = vpack.c.bf16 %v2359_v43, %v2355_v53  ;;  %v2371_v50 = vld [vmem:[#allocation6 + $0x298] sm:$0xff]  ;;  %v7607_v43 = vpack.c.bf16 %v2364_v28, %v2360_v30  ;;  %v7651_v30 = vpack.c.bf16 %v2390_v4, %v2386_v54  ;;  %v2392_v28 = vld [vmem:[#allocation6 + $0x340] sm:$0xff] }
 0x682   :  { %v2375_v53 = vld [vmem:[#allocation6 + $0x2b8] sm:$0xff] }
 0x683   :  { %7552 = vmatpush1.bf16.msra.mxu0 %v9778_v6  ;;  %7584 = vmatpush1.bf16.msra.mxu1 %v9781_v16  ;;  %v2716_v54 = vld [vmem:[#allocation8 + $0x258] sm:$0xff] }
 0x684   :  { %7554 = vmatprep.subr.bf16.mxu0 %v9786_v29  ;;  %7586 = vmatprep.subr.bf16.mxu1 %v9788_v44 }
 0x687   :  { %7556 = vmatpush1.bf16.msra.mxu0 %v9790_v48  ;;  %7588 = vmatpush1.bf16.msra.mxu1 %v9793_v62 }
 0x688   :  { %7558 = vmatprep.subr.bf16.mxu0 %v9797_v18  ;;  %7590 = vmatprep.subr.bf16.mxu1 %v9800_v15 }
 0x68b   :  { %7560 = vmatpush1.bf16.msra.mxu0 %v9802_v17  ;;  %7592 = vmatpush1.bf16.msra.mxu1 %v9805_v47 }
 0x68c   :  { %7562 = vmatprep.subr.bf16.mxu0 %v9808_v46  ;;  %7594 = vmatprep.subr.bf16.mxu1 %v9810_v51 }
 0x68f   :  { %7564 = vmatpush1.bf16.msra.mxu0 %v9813_v10  ;;  %7596 = vmatpush1.bf16.msra.mxu1 %v9817_v26 }
 0x690   :  { %7566 = vmatprep.subr.bf16.mxu0 %v9819_v32  ;;  %7598 = vmatprep.subr.bf16.mxu1 %v9822_v58 }
 0x693   :  { %7568 = vmatpush1.bf16.msra.mxu0 %v9825_v22  ;;  %7600 = vmatpush1.bf16.msra.mxu1 %v9829_v27 }
 0x694   :  { %7602 = vmatprep.subr.bf16.mxu0 %v7601_v57  ;;  %7634 = vmatprep.subr.bf16.mxu1 %v7633_v3  ;;  %v7639_v57 = vpack.c.bf16 %v2366_v61, %v2362_v25  ;;  %v2368_v3 = vld [vmem:[#allocation6 + $0x280] sm:$0xff]  ;;  %v2394_v61 = vld [vmem:[#allocation6 + $0x350] sm:$0xff] }
 0x748   :  { %v1992_v6 = vpop.f32.mrb[12].mxu0  ;;  %v2063_v16 = vpop.f32.mrb[12].mxu1 }
 0x749   :  { %v8765_v29 = vadd.f32 %v1992_v6, %v9620_v35  ;;  %v1994_v44 = vpop.f32.mrb[13].mxu0  ;;  %v2065_v48 = vpop.f32.mrb[13].mxu1  ;;  %v8781_v46 = vadd.f32 %v2063_v16, %v9636_v59  ;;  %v2372_v6 = vld [vmem:[#allocation6 + $0x2a0] sm:$0xff]  ;;  %v7609_v16 = vpack.c.bf16 %v2373_v24, %v2369_v13  ;;  %v2398_v13 = vld [vmem:[#allocation6 + $0x370] sm:$0xff]  ;;  %v2401_v24 = vld [vmem:[#allocation6 + $0x388] sm:$0xff] }
 0x74a   :  { %v8766_v62 = vadd.f32 %v1994_v44, %v9623_v37  ;;  %v8782_v17 = vadd.f32 %v2065_v48, %v9630_v52  ;;  %v2370_v44 = vld [vmem:[#allocation6 + $0x290] sm:$0xff] }
 0x74b   :  { %v6969_v18 = vmul.f32 -1.442695, %v8765_v29  ;;  %v7641_v29 = vpack.c.bf16 %v2375_v53, %v2371_v50  ;;  %v2374_v48 = vld [vmem:[#allocation6 + $0x2b0] sm:$0xff]  ;;  %v2405_v50 = vld [vmem:[#allocation6 + $0x3a8] sm:$0xff]  ;;  %v2403_v53 = vld [vmem:[#allocation6 + $0x398] sm:$0xff] }
 0x74c   :  { %v6970_v15 = vmul.f32 -1.442695, %v8766_v62  ;;  %v6971_v47 = vmul.f32 -1.442695, %v8782_v17  ;;  %v2377_v62 = vld [vmem:[#allocation6 + $0x2c8] sm:$0xff]  ;;  %v2383_v17 = vld [vmem:[#allocation6 + $0x2f8] sm:$0xff] }
 0x74d   :  { %9046 = vpow2.f32 %v6969_v18  ;;  %v2381_v18 = vld [vmem:[#allocation6 + $0x2e8] sm:$0xff] }
 0x74e   :  { %9048 = vpow2.f32 %v6970_v15  ;;  %v2379_v15 = vld [vmem:[#allocation6 + $0x2d8] sm:$0xff] }
 0x74f   :  { %9050 = vpow2.f32 %v6971_v47  ;;  %v7611_v47 = vpack.c.bf16 %v2372_v6, %v2368_v3  ;;  %v7655_v3 = vpack.c.bf16 %v2398_v13, %v2394_v61  ;;  %v2400_v6 = vld [vmem:[#allocation6 + $0x380] sm:$0xff]  ;;  %v2724_v61 = vld [vmem:[#allocation8 + $0x298] sm:$0xff] }
 0x750   :  { %9052 = vtanh.f32 %v8781_v46  ;;  %v7643_v46 = vpack.c.bf16 %v2374_v48, %v2370_v44  ;;  %v2402_v48 = vld [vmem:[#allocation6 + $0x390] sm:$0xff] }
 0x757   :  { %v9047_v51 = vpop.eup %9046 }
 0x758   :  { %v9049_v10 = vpop.eup %9048  ;;  %v2075_v26 = vadd.f32 1.0, %v9047_v51  ;;  %v2376_v51 = vld [vmem:[#allocation6 + $0x2c0] sm:$0xff] }
 0x759   :  { %v2081_v32 = vadd.f32 1.0, %v9049_v10  ;;  %v9051_v58 = vpop.eup %9050  ;;  %v2380_v10 = vld [vmem:[#allocation6 + $0x2e0] sm:$0xff] }
 0x75a   :  { %9054 = vrcp.f32 %v2075_v26  ;;  %v9053_v22 = vpop.eup %9052  ;;  %v2088_v7 = vadd.f32 1.0, %v9051_v58  ;;  %v7613_v26 = vpack.c.bf16 %v2381_v18, %v2377_v62  ;;  %v2378_v58 = vld [vmem:[#allocation6 + $0x2d0] sm:$0xff]  ;;  %v2409_v18 = vld [vmem:[#allocation6 + $0x3c8] sm:$0xff] }
 0x75b   :  { %9056 = vrcp.f32 %v2081_v32  ;;  %v7645_v32 = vpack.c.bf16 %v2383_v17, %v2379_v15  ;;  %v2406_v62 = vld [vmem:[#allocation6 + $0x3b0] sm:$0xff]  ;;  %v2413_v15 = vld [vmem:[#allocation6 + $0x3e8] sm:$0xff]  ;;  %v2411_v17 = vld [vmem:[#allocation6 + $0x3d8] sm:$0xff] }
 0x75c   :  { %9058 = vrcp.f32 %v2088_v7  ;;  %v2391_v7 = vld [vmem:[#allocation6 + $0x338] sm:$0xff] }
 0x764   :  { %v9055_v27 = vpop.eup %9054 }
 0x765   :  { %v9057_v42 = vpop.eup %9056  ;;  %v2093_v49 = vmul.f32 %v9055_v27, %v9053_v22  ;;  %v2382_v22 = vld [vmem:[#allocation6 + $0x2f0] sm:$0xff]  ;;  %v2385_v27 = vld [vmem:[#allocation6 + $0x308] sm:$0xff] }
 0x766   :  { %v2092_v1 = vmul.f32 %v9057_v42, %v9931_v5  ;;  %v9059_v9 = vpop.eup %9058  ;;  %v2389_v42 = vld [vmem:[#allocation6 + $0x328] sm:$0xff]  ;;  %v7647_v8 = vpack.c.bf16 %v2382_v22, %v2378_v58  ;;  %v2412_v58 = vld [vmem:[#allocation6 + $0x3e0] sm:$0xff]  ;;  %v2410_v22 = vld [vmem:[#allocation6 + $0x3d0] sm:$0xff] }
 0x767   :  { %v7617_v36 = vpack.c.bf16 %v2389_v42, %v2385_v27  ;;  %v2414_v27 = vld [vmem:[#allocation6 + $0x3f0] sm:$0xff] }
 0x768   :  { %v9969_v2 = vadd.f32 %v2093_v49, %v2092_v1  ;;  %v2387_v49 = vld [vmem:[#allocation6 + $0x318] sm:$0xff]  ;;  %v7615_v1 = vpack.c.bf16 %v2380_v10, %v2376_v51  ;;  %v7659_v51 = vpack.c.bf16 %v2406_v62, %v2402_v48  ;;  %v2408_v10 = vld [vmem:[#allocation6 + $0x3c0] sm:$0xff] }
 0x769   :  { %v7649_v40 = vpack.c.bf16 %v2391_v7, %v2387_v49  ;;  %v7631_v42 = vpack.c.bf16 %v2412_v58, %v2408_v10  ;;  %v7663_v49 = vpack.c.bf16 %v2414_v27, %v2410_v22  ;;  %v2705_v7 = vld [vmem:[#allocation8 + $0x200] sm:$0xff]  ;;  %v2732_v48 = vld [vmem:[#allocation8 + $0x2d8] sm:$0xff]  ;;  %v2735_v10 = vld [vmem:[#allocation8 + $0x2f0] sm:$0xff] }
 0x76a   :  { %9060 = vtanh.f32 %v9969_v2  ;;  %v2742_v58 = vld [vmem:[#allocation8 + $0x328] sm:$0xff]  ;;  %v2740_v22 = vld [vmem:[#allocation8 + $0x318] sm:$0xff] }
 0x76b   :  { %v2744_v27 = vld [vmem:[#allocation8 + $0x338] sm:$0xff] }
 0x774   :  { %v9061_v56 = vpop.eup %9060 }
 0x775   :  { %v9972_v5 = vmul.f32 %v9061_v56, %v9059_v9  ;;  %v2397_v9 = vld [vmem:[#allocation6 + $0x368] sm:$0xff]  ;;  %v2395_v56 = vld [vmem:[#allocation6 + $0x358] sm:$0xff] }
 0x777   :  { %2234 = vmatmul.mubr.f32.vlgmr.msra.gmra.mrb[14].mxu0 %v9972_v5  ;;  %2305 = vmatmul.mubr.f32.vlgmr.msra.gmra.mrb[14].mxu1 %v9972_v5 }
 0x778   :  { %7604 = vmatpush1.bf16.msra.mxu0 %v7603_v14  ;;  %7636 = vmatpush1.bf16.msra.mxu1 %v7635_v11  ;;  %v2399_v14 = vld [vmem:[#allocation6 + $0x378] sm:$0xff]  ;;  %v7619_v11 = vpack.c.bf16 %v2388_v23, %v2384_v63  ;;  %v2707_v63 = vld [vmem:[#allocation8 + $0x210] sm:$0xff] }
 0x779   :  { %7606 = vmatprep.subr.bf16.mxu0 %v7605_v20  ;;  %7638 = vmatprep.subr.bf16.mxu1 %v7637_v41  ;;  %v2396_v20 = vld [vmem:[#allocation6 + $0x360] sm:$0xff]  ;;  %v7621_v41 = vpack.c.bf16 %v2397_v9, %v2393_v33  ;;  %v7653_v25 = vpack.c.bf16 %v2399_v14, %v2395_v56  ;;  %v2711_v23 = vld [vmem:[#allocation8 + $0x230] sm:$0xff]  ;;  %v2720_v33 = vld [vmem:[#allocation8 + $0x278] sm:$0xff] }
 0x77a   :  { %2503 = vmatprep.mubr.f32.mxu0 %v9386_v0  ;;  %2616 = vmatprep.mubr.f32.mxu1 %v9386_v0  ;;  %v2713_v9 = vld [vmem:[#allocation8 + $0x240] sm:$0xff]  ;;  %v10020_v14 = vpack.c.bf16 %v2720_v33, %v2716_v54  ;;  %v2752_v54 = vld [vmem:[#allocation8 + $0x378] sm:$0xff] }
 0x77b   :  { %v2717_v56 = vld [vmem:[#allocation8 + $0x260] sm:$0xff] }
 0x77c   :  { %7608 = vmatpush1.bf16.msra.mxu0 %v7607_v43  ;;  %7640 = vmatpush1.bf16.msra.mxu1 %v7639_v57  ;;  %v2407_v43 = vld [vmem:[#allocation6 + $0x3b8] sm:$0xff]  ;;  %v7623_v57 = vpack.c.bf16 %v2396_v20, %v2392_v28  ;;  %v2719_v28 = vld [vmem:[#allocation8 + $0x270] sm:$0xff]  ;;  %v2745_v33 = vld [vmem:[#allocation8 + $0x340] sm:$0xff] }
 0x77d   :  { %7610 = vmatprep.subr.bf16.mxu0 %v7609_v16  ;;  %7642 = vmatprep.subr.bf16.mxu1 %v7641_v29  ;;  %v2404_v16 = vld [vmem:[#allocation6 + $0x3a0] sm:$0xff]  ;;  %v7625_v29 = vpack.c.bf16 %v2405_v50, %v2401_v24  ;;  %v7657_v44 = vpack.c.bf16 %v2407_v43, %v2403_v53  ;;  %v2728_v24 = vld [vmem:[#allocation8 + $0x2b8] sm:$0xff] }
 0x77e   :  { %v2721_v50 = vld [vmem:[#allocation8 + $0x280] sm:$0xff]  ;;  %v10032_v43 = vpack.c.bf16 %v2728_v24, %v2724_v61  ;;  %v2758_v61 = vld [vmem:[#allocation8 + $0x3a8] sm:$0xff]  ;;  %v2756_v24 = vld [vmem:[#allocation8 + $0x398] sm:$0xff] }
 0x77f   :  { %v2725_v53 = vld [vmem:[#allocation8 + $0x2a0] sm:$0xff] }
 0x780   :  { %7612 = vmatpush1.bf16.msra.mxu0 %v7611_v47  ;;  %7644 = vmatpush1.bf16.msra.mxu1 %v7643_v46  ;;  %v2415_v47 = vld [vmem:[#allocation6 + $0x3f8] sm:$0xff]  ;;  %v7627_v46 = vpack.c.bf16 %v2404_v16, %v2400_v6  ;;  %v2727_v6 = vld [vmem:[#allocation8 + $0x2b0] sm:$0xff] }
 0x781   :  { %7614 = vmatprep.subr.bf16.mxu0 %v7613_v26  ;;  %7646 = vmatprep.subr.bf16.mxu1 %v7645_v32  ;;  %v7629_v26 = vpack.c.bf16 %v2413_v15, %v2409_v18  ;;  %v7661_v32 = vpack.c.bf16 %v2415_v47, %v2411_v17  ;;  %v2736_v18 = vld [vmem:[#allocation8 + $0x2f8] sm:$0xff]  ;;  %v2729_v15 = vld [vmem:[#allocation8 + $0x2c0] sm:$0xff] }
 0x782   :  { %v2733_v17 = vld [vmem:[#allocation8 + $0x2e0] sm:$0xff]  ;;  %v10044_v47 = vpack.c.bf16 %v2736_v18, %v2732_v48  ;;  %v2755_v48 = vld [vmem:[#allocation8 + $0x390] sm:$0xff] }
 0x783   :  { %v2759_v18 = vld [vmem:[#allocation8 + $0x3b0] sm:$0xff] }
 0x784   :  { %7616 = vmatpush1.bf16.msra.mxu0 %v7615_v1  ;;  %7648 = vmatpush1.bf16.msra.mxu1 %v7647_v8 }
 0x785   :  { %7618 = vmatprep.subr.bf16.mxu0 %v7617_v36  ;;  %7650 = vmatprep.subr.bf16.mxu1 %v7649_v40  ;;  %v2714_v36 = vld [vmem:[#allocation8 + $0x248] sm:$0xff] }
 0x786   :  { %v2718_v40 = vld [vmem:[#allocation8 + $0x268] sm:$0xff] }
 0x787   :  { %v10018_v4 = vpack.c.bf16 %v2718_v40, %v2714_v36  ;;  %v2748_v40 = vld [vmem:[#allocation8 + $0x358] sm:$0xff] }
 0x788   :  { %7620 = vmatpush1.bf16.msra.mxu0 %v7619_v11  ;;  %7652 = vmatpush1.bf16.msra.mxu1 %v7651_v30  ;;  %v10022_v11 = vpack.c.bf16 %v2717_v56, %v2713_v9  ;;  %v2715_v30 = vld [vmem:[#allocation8 + $0x250] sm:$0xff]  ;;  %v10066_v9 = vpack.c.bf16 %v2752_v54, %v2748_v40  ;;  %v2749_v56 = vld [vmem:[#allocation8 + $0x360] sm:$0xff] }
 0x789   :  { %7622 = vmatprep.subr.bf16.mxu0 %v7621_v41  ;;  %7654 = vmatprep.subr.bf16.mxu1 %v7653_v25  ;;  %v10025_v20 = vpack.c.bf16 %v2719_v28, %v2715_v30  ;;  %v2722_v41 = vld [vmem:[#allocation8 + $0x288] sm:$0xff]  ;;  %v2747_v30 = vld [vmem:[#allocation8 + $0x350] sm:$0xff] }
 0x78a   :  { %v2726_v25 = vld [vmem:[#allocation8 + $0x2a8] sm:$0xff]  ;;  %v2751_v28 = vld [vmem:[#allocation8 + $0x370] sm:$0xff] }
 0x78b   :  { %v10030_v13 = vpack.c.bf16 %v2726_v25, %v2722_v41  ;;  %v10069_v41 = vpack.c.bf16 %v2749_v56, %v2745_v33  ;;  %v2754_v25 = vld [vmem:[#allocation8 + $0x388] sm:$0xff] }
 0x78c   :  { %7624 = vmatpush1.bf16.msra.mxu0 %v7623_v57  ;;  %7656 = vmatpush1.bf16.msra.mxu1 %v7655_v3  ;;  %v10034_v57 = vpack.c.bf16 %v2725_v53, %v2721_v50  ;;  %v2723_v3 = vld [vmem:[#allocation8 + $0x290] sm:$0xff]  ;;  %v10073_v50 = vpack.c.bf16 %v2751_v28, %v2747_v30  ;;  %v10075_v53 = vpack.c.bf16 %v2758_v61, %v2754_v25 }
 0x78d   :  { %7626 = vmatprep.subr.bf16.mxu0 %v7625_v29  ;;  %7658 = vmatprep.subr.bf16.mxu1 %v7657_v44  ;;  %v10037_v16 = vpack.c.bf16 %v2727_v6, %v2723_v3  ;;  %v2730_v29 = vld [vmem:[#allocation8 + $0x2c8] sm:$0xff]  ;;  %v2760_v3 = vld [vmem:[#allocation8 + $0x3b8] sm:$0xff]  ;;  %v2753_v6 = vld [vmem:[#allocation8 + $0x380] sm:$0xff] }
 0x78e   :  { %v2734_v44 = vld [vmem:[#allocation8 + $0x2e8] sm:$0xff] }
 0x78f   :  { %v10042_v62 = vpack.c.bf16 %v2734_v44, %v2730_v29  ;;  %v2757_v29 = vld [vmem:[#allocation8 + $0x3a0] sm:$0xff]  ;;  %v10078_v44 = vpack.c.bf16 %v2760_v3, %v2756_v24 }
 0x790   :  { %7628 = vmatpush1.bf16.msra.mxu0 %v7627_v46  ;;  %7660 = vmatpush1.bf16.msra.mxu1 %v7659_v51  ;;  %v10046_v46 = vpack.c.bf16 %v2733_v17, %v2729_v15  ;;  %v2731_v51 = vld [vmem:[#allocation8 + $0x2d0] sm:$0xff]  ;;  %v10081_v15 = vpack.c.bf16 %v2757_v29, %v2753_v6  ;;  %v10085_v17 = vpack.c.bf16 %v2759_v18, %v2755_v48 }
 0x791   :  { %7630 = vmatprep.subr.bf16.mxu0 %v7629_v26  ;;  %7662 = vmatprep.subr.bf16.mxu1 %v7661_v32  ;;  %v2738_v26 = vld [vmem:[#allocation8 + $0x308] sm:$0xff]  ;;  %v10049_v32 = vpack.c.bf16 %v2735_v10, %v2731_v51 }
 0x792   :  { %v2762_v51 = vld [vmem:[#allocation8 + $0x3c8] sm:$0xff] }
 0x793   :  { %v2766_v10 = vld [vmem:[#allocation8 + $0x3e8] sm:$0xff] }
 0x794   :  { %7632 = vmatpush1.bf16.msra.mxu0 %v7631_v42  ;;  %7664 = vmatpush1.bf16.msra.mxu1 %v7663_v49  ;;  %v10053_v42 = vpack.c.bf16 %v2742_v58, %v2738_v26  ;;  %v10055_v49 = vpack.c.bf16 %v2744_v27, %v2740_v22  ;;  %v2764_v26 = vld [vmem:[#allocation8 + $0x3d8] sm:$0xff]  ;;  %v10090_v58 = vpack.c.bf16 %v2766_v10, %v2762_v51  ;;  %v2761_v27 = vld [vmem:[#allocation8 + $0x3c0] sm:$0xff] }
 0x795   :  { %v2768_v22 = vld [vmem:[#allocation8 + $0x3f8] sm:$0xff] }
 0x797   :  { %2504 = vmatmul.mubr.f32.vlgmr.msra.gmra.mrb[16].mxu0 %v9642_v39  ;;  %2617 = vmatmul.mubr.f32.vlgmr.msra.gmra.mrb[16].mxu1 %v9642_v39  ;;  %v2706_v39 = vld [vmem:[#allocation8 + $0x208] sm:$0xff] }
 0x798   :  { %2509 = vmatprep.mubr.f32.mxu0 %v9386_v0  ;;  %2622 = vmatprep.mubr.f32.mxu1 %v9386_v0 }
 0x79b   :  { %2510 = vmatmul.mubr.f32.gmra.mrb[18].mxu0 %v9686_v21  ;;  %2623 = vmatmul.mubr.f32.gmra.mrb[18].mxu1 %v9686_v21  ;;  %v2710_v21 = vld [vmem:[#allocation8 + $0x228] sm:$0xff] }
 0x79c   :  { %2515 = vmatprep.mubr.f32.mxu0 %v9386_v0  ;;  %2628 = vmatprep.mubr.f32.mxu1 %v9386_v0 }
 0x79f   :  { %2516 = vmatmul.mubr.f32.gmra.mrb[20].mxu0 %v9750_v12  ;;  %2629 = vmatmul.mubr.f32.gmra.mrb[20].mxu1 %v9750_v12  ;;  %v2708_v12 = vld [vmem:[#allocation8 + $0x218] sm:$0xff] }
 0x7a0   :  { %2521 = vmatprep.mubr.f32.mxu0 %v9386_v0  ;;  %2634 = vmatprep.mubr.f32.mxu1 %v9386_v0 }
 0x7a3   :  { %2522 = vmatmul.mubr.f32.gmra.mrb[22].mxu0 %v9844_v45  ;;  %2635 = vmatmul.mubr.f32.gmra.mrb[22].mxu1 %v9844_v45  ;;  %v10006_v45 = vpack.c.bf16 %v2710_v21, %v2706_v39  ;;  %v2737_v39 = vld [vmem:[#allocation8 + $0x300] sm:$0xff] }
 0x7a4   :  { %2527 = vmatprep.mubr.f32.mxu0 %v9386_v0  ;;  %2640 = vmatprep.mubr.f32.mxu1 %v9386_v0  ;;  %v2741_v21 = vld [vmem:[#allocation8 + $0x320] sm:$0xff] }
 0x7a5   :  { %7666 = vmatprep.subr.bf16.mxu0 %v10006_v45 }
 0x7a7   :  { %2528 = vmatmul.mubr.f32.gmra.mrb[24].mxu0 %v9890_v19  ;;  %2641 = vmatmul.mubr.f32.gmra.mrb[24].mxu1 %v9890_v19  ;;  %v2712_v19 = vld [vmem:[#allocation8 + $0x238] sm:$0xff] }
 0x7a8   :  { %2533 = vmatprep.mubr.f32.mxu0 %v9386_v0  ;;  %2646 = vmatprep.mubr.f32.mxu1 %v9386_v0  ;;  %v10008_v1 = vpack.c.bf16 %v2712_v19, %v2708_v12  ;;  %v2739_v12 = vld [vmem:[#allocation8 + $0x310] sm:$0xff]  ;;  %v10058_v19 = vpack.c.bf16 %v2741_v21, %v2737_v39  ;;  %v2765_v39 = vld [vmem:[#allocation8 + $0x3e0] sm:$0xff]  ;;  %v10092_v21 = vpack.c.bf16 %v2768_v22, %v2764_v26 }
 0x7aa   :  { %7698 = vmatprep.subr.bf16.mxu1 %v10008_v1 }
 0x7ab   :  { %2534 = vmatmul.mubr.f32.gmra.mrb[26].mxu0 %v9934_v60  ;;  %2647 = vmatmul.mubr.f32.gmra.mrb[26].mxu1 %v9934_v60  ;;  %v2709_v60 = vld [vmem:[#allocation8 + $0x220] sm:$0xff] }
 0x7ac   :  { %2539 = vmatprep.mubr.f32.mxu0 %v9386_v0  ;;  %2652 = vmatprep.mubr.f32.mxu1 %v9386_v0  ;;  %v10010_v8 = vpack.c.bf16 %v2709_v60, %v2705_v7  ;;  %v2743_v7 = vld [vmem:[#allocation8 + $0x330] sm:$0xff]  ;;  %v2746_v60 = vld [vmem:[#allocation8 + $0x348] sm:$0xff] }
 0x7ae   :  { %7668 = vmatpush1.bf16.msra.mxu0 %v10010_v8 }
 0x7af   :  { %2540 = vmatmul.mubr.f32.gmra.mrb[28].mxu0 %v9972_v5  ;;  %2653 = vmatmul.mubr.f32.gmra.mrb[28].mxu1 %v9972_v5  ;;  %v10013_v5 = vpack.c.bf16 %v2711_v23, %v2707_v63  ;;  %v2750_v63 = vld [vmem:[#allocation8 + $0x368] sm:$0xff]  ;;  %v10062_v23 = vpack.c.bf16 %v2743_v7, %v2739_v12  ;;  %v10094_v12 = vpack.c.bf16 %v2765_v39, %v2761_v27  ;;  %v2763_v7 = vld [vmem:[#allocation8 + $0x3d0] sm:$0xff] }
 0x7b0   :  { %2545 = vmatprep.mubr.f32.mxu0 %v9386_v0  ;;  %2658 = vmatprep.mubr.f32.mxu1 %v9386_v0  ;;  %v10064_v36 = vpack.c.bf16 %v2750_v63, %v2746_v60  ;;  %v2767_v60 = vld [vmem:[#allocation8 + $0x3f0] sm:$0xff] }
 0x7b1   :  { %7700 = vmatpush1.bf16.msra.mxu1 %v10013_v5  ;;  %7670 = vmatprep.subr.bf16.mxu0 %v10018_v4  ;;  %v10097_v63 = vpack.c.bf16 %v2767_v60, %v2763_v7 }
 0x7b2   :  { %7702 = vmatprep.subr.bf16.mxu1 %v10020_v14  ;;  %7672 = vmatpush1.bf16.msra.mxu0 %v10022_v11 }
 0x7b3   :  { %7674 = vmatprep.subr.bf16.mxu0 %v10030_v13 }
 0x7b5   :  { %7704 = vmatpush1.bf16.msra.mxu1 %v10025_v20 }
 0x7b6   :  { %7706 = vmatprep.subr.bf16.mxu1 %v10032_v43  ;;  %7676 = vmatpush1.bf16.msra.mxu0 %v10034_v57 }
 0x7b7   :  { %7678 = vmatprep.subr.bf16.mxu0 %v10042_v62 }
 0x7b9   :  { %7708 = vmatpush1.bf16.msra.mxu1 %v10037_v16 }
 0x7ba   :  { %7710 = vmatprep.subr.bf16.mxu1 %v10044_v47  ;;  %7680 = vmatpush1.bf16.msra.mxu0 %v10046_v46 }
 0x7bb   :  { %7682 = vmatprep.subr.bf16.mxu0 %v10053_v42 }
 0x7bd   :  { %7712 = vmatpush1.bf16.msra.mxu1 %v10049_v32 }
 0x7be   :  { %7714 = vmatprep.subr.bf16.mxu1 %v10055_v49  ;;  %7684 = vmatpush1.bf16.msra.mxu0 %v10058_v19 }
 0x7bf   :  { %7686 = vmatprep.subr.bf16.mxu0 %v10064_v36 }
 0x7c1   :  { %7716 = vmatpush1.bf16.msra.mxu1 %v10062_v23 }
 0x7c2   :  { %7718 = vmatprep.subr.bf16.mxu1 %v10066_v9  ;;  %7688 = vmatpush1.bf16.msra.mxu0 %v10069_v41 }
 0x7c3   :  { %7690 = vmatprep.subr.bf16.mxu0 %v10075_v53 }
 0x7c5   :  { %7720 = vmatpush1.bf16.msra.mxu1 %v10073_v50 }
 0x7c6   :  { %7722 = vmatprep.subr.bf16.mxu1 %v10078_v44  ;;  %7692 = vmatpush1.bf16.msra.mxu0 %v10081_v15 }
 0x7c7   :  { %7694 = vmatprep.subr.bf16.mxu0 %v10090_v58 }
 0x7c9   :  { %7724 = vmatpush1.bf16.msra.mxu1 %v10085_v17 }
 0x7ca   :  { %7726 = vmatprep.subr.bf16.mxu1 %v10092_v21  ;;  %7696 = vmatpush1.bf16.msra.mxu0 %v10094_v12 }
 0x7cb   :  { %7730 = vmatprep.subr.bf16.mxu0 %v10006_v45 }
 0x7cd   :  { %7728 = vmatpush1.bf16.msra.mxu1 %v10097_v63 }
 0x7ce   :  { %7762 = vmatprep.subr.bf16.mxu1 %v10008_v1 }
 0x84a   :  { %v2235_v40 = vpop.f32.mrb[14].mxu0  ;;  %v2306_v54 = vpop.f32.mrb[14].mxu1 }
 0x84b   :  { %v8767_v33 = vadd.f32 %v2235_v40, %v9620_v35  ;;  %v2237_v56 = vpop.f32.mrb[15].mxu0  ;;  %v2308_v30 = vpop.f32.mrb[15].mxu1  ;;  %v8783_v6 = vadd.f32 %v2306_v54, %v9636_v59 }
 0x84c   :  { %v8768_v28 = vadd.f32 %v2237_v56, %v9623_v37  ;;  %v8784_v24 = vadd.f32 %v2308_v30, %v9630_v52 }
 0x84d   :  { %v6972_v25 = vmul.f32 -1.442695, %v8767_v33 }
 0x84e   :  { %v6973_v61 = vmul.f32 -1.442695, %v8768_v28  ;;  %v6974_v3 = vmul.f32 -1.442695, %v8784_v24 }
 0x84f   :  { %9062 = vpow2.f32 %v6972_v25 }
 0x850   :  { %9064 = vpow2.f32 %v6973_v61 }
 0x851   :  { %9066 = vpow2.f32 %v6974_v3 }
 0x852   :  { %9068 = vtanh.f32 %v8783_v6 }
 0x859   :  { %v9063_v29 = vpop.eup %9062 }
 0x85a   :  { %v9065_v48 = vpop.eup %9064  ;;  %v2318_v18 = vadd.f32 1.0, %v9063_v29 }
 0x85b   :  { %v2324_v51 = vadd.f32 1.0, %v9065_v48  ;;  %v9067_v35 = vpop.eup %9066 }
 0x85c   :  { %9070 = vrcp.f32 %v2318_v18  ;;  %v9069_v10 = vpop.eup %9068  ;;  %v2331_v27 = vadd.f32 1.0, %v9067_v35 }
 0x85d   :  { %9072 = vrcp.f32 %v2324_v51 }
 0x85e   :  { %9074 = vrcp.f32 %v2331_v27 }
 0x866   :  { %v9071_v37 = vpop.eup %9070 }
 0x867   :  { %v9073_v26 = vpop.eup %9072  ;;  %v2336_v22 = vmul.f32 %v9071_v37, %v9069_v10 }
 0x868   :  { %v2335_v39 = vmul.f32 %v9073_v26, %v9969_v2  ;;  %v9075_v59 = vpop.eup %9074  ;;  %v6975_v2 = vld [vmem:[%s11046_s3 + $0x4] sm:$0xf] }
 0x869   :  { %v10151_v40 = vrot.slane %v6975_v2, %v9612_v31  ;;  %v10154_v54 = vrot.slane %v6975_v2, %v9617_v34  ;;  %v10159_v6 = vrot.slane %v6975_v2, %v9625_v38  ;;  %v10163_v48 = vrot.slane %v6975_v2, %v9632_v55 }
 0x86a   :  { %v2337_v52 = vadd.f32 %v2336_v22, %v2335_v39 }
 0x86c   :  { %9076 = vtanh.f32 %v2337_v52 }
 0x876   :  { %v9077_v7 = vpop.eup %9076 }
 0x877   :  { %v2339_v60 = vmul.f32 %v9077_v7, %v9075_v59 }
 0x879   :  { %2546 = vmatmul.mubr.f32.gmra.mrb[30].mxu0 %v2339_v60  ;;  %2659 = vmatmul.mubr.f32.gmra.mrb[30].mxu1 %v2339_v60 }
 0x87a   :  { %2833 = vmatprep.mubr.f32.mxu0 %v9386_v0  ;;  %2904 = vmatprep.mubr.f32.mxu1 %v9386_v0 }
 0x87d   :  { %2834 = vmatmul.mubr.f32.vlgmr.msra.gmra.mrb[16].mxu0 %v9386_v0  ;;  %2905 = vmatmul.mubr.f32.vlgmr.msra.gmra.mrb[16].mxu1 %v9386_v0 }
 0x87e   :  { %7732 = vmatpush1.bf16.msra.mxu0 %v10010_v8  ;;  %7764 = vmatpush1.bf16.msra.mxu1 %v10013_v5 }
 0x87f   :  { %7734 = vmatprep.subr.bf16.mxu0 %v10018_v4  ;;  %7766 = vmatprep.subr.bf16.mxu1 %v10020_v14 }
 0x880   :  { %3076 = vmatprep.mubr.f32.mxu0 %v9386_v0  ;;  %3147 = vmatprep.mubr.f32.mxu1 %v9386_v0 }
 0x882   :  { %7736 = vmatpush1.bf16.msra.mxu0 %v10022_v11  ;;  %7768 = vmatpush1.bf16.msra.mxu1 %v10025_v20 }
 0x883   :  { %7738 = vmatprep.subr.bf16.mxu0 %v10030_v13  ;;  %7770 = vmatprep.subr.bf16.mxu1 %v10032_v43 }
 0x886   :  { %7740 = vmatpush1.bf16.msra.mxu0 %v10034_v57  ;;  %7772 = vmatpush1.bf16.msra.mxu1 %v10037_v16 }
 0x887   :  { %7742 = vmatprep.subr.bf16.mxu0 %v10042_v62  ;;  %7774 = vmatprep.subr.bf16.mxu1 %v10044_v47 }
 0x88a   :  { %7744 = vmatpush1.bf16.msra.mxu0 %v10046_v46  ;;  %7776 = vmatpush1.bf16.msra.mxu1 %v10049_v32 }
 0x88b   :  { %7746 = vmatprep.subr.bf16.mxu0 %v10053_v42  ;;  %7778 = vmatprep.subr.bf16.mxu1 %v10055_v49 }
 0x88e   :  { %7748 = vmatpush1.bf16.msra.mxu0 %v10058_v19  ;;  %7780 = vmatpush1.bf16.msra.mxu1 %v10062_v23 }
 0x88f   :  { %7750 = vmatprep.subr.bf16.mxu0 %v10064_v36  ;;  %7782 = vmatprep.subr.bf16.mxu1 %v10066_v9 }
 0x892   :  { %7752 = vmatpush1.bf16.msra.mxu0 %v10069_v41  ;;  %7784 = vmatpush1.bf16.msra.mxu1 %v10073_v50 }
 0x893   :  { %7754 = vmatprep.subr.bf16.mxu0 %v10075_v53  ;;  %7786 = vmatprep.subr.bf16.mxu1 %v10078_v44 }
 0x896   :  { %7756 = vmatpush1.bf16.msra.mxu0 %v10081_v15  ;;  %7788 = vmatpush1.bf16.msra.mxu1 %v10085_v17 }
 0x897   :  { %7758 = vmatprep.subr.bf16.mxu0 %v10090_v58  ;;  %7790 = vmatprep.subr.bf16.mxu1 %v10092_v21 }
 0x89a   :  { %7760 = vmatpush1.bf16.msra.mxu0 %v10094_v12  ;;  %7792 = vmatpush1.bf16.msra.mxu1 %v10097_v63 }
 0x89b   :  { %7794 = vmatprep.subr.bf16.mxu0 %v10006_v45  ;;  %7826 = vmatprep.subr.bf16.mxu1 %v10008_v1 }
 0x950   :  { %v2835_v33 = vpop.f32.mrb[16].mxu0  ;;  %v2906_v56 = vpop.f32.mrb[16].mxu1 }
 0x951   :  { %v8785_v30 = vadd.f32 %v2835_v33, %v10151_v40  ;;  %v2837_v28 = vpop.f32.mrb[17].mxu0  ;;  %v2908_v25 = vpop.f32.mrb[17].mxu1  ;;  %v8801_v51 = vadd.f32 %v2906_v56, %v10163_v48 }
 0x952   :  { %v8786_v61 = vadd.f32 %v2837_v28, %v10154_v54  ;;  %v8802_v29 = vadd.f32 %v2908_v25, %v10159_v6 }
 0x953   :  { %v6976_v24 = vmul.f32 -1.442695, %v8785_v30 }
 0x954   :  { %v6977_v3 = vmul.f32 -1.442695, %v8786_v61  ;;  %v6978_v18 = vmul.f32 -1.442695, %v8802_v29 }
 0x955   :  { %9078 = vpow2.f32 %v6976_v24 }
 0x956   :  { %9080 = vpow2.f32 %v6977_v3 }
 0x957   :  { %9082 = vpow2.f32 %v6978_v18 }
 0x958   :  { %9084 = vtanh.f32 %v8801_v51 }
 0x95f   :  { %v9079_v35 = vpop.eup %9078 }
 0x960   :  { %v9081_v10 = vpop.eup %9080  ;;  %v2918_v37 = vadd.f32 1.0, %v9079_v35 }
 0x961   :  { %v2924_v26 = vadd.f32 1.0, %v9081_v10  ;;  %v9083_v22 = vpop.eup %9082 }
 0x962   :  { %9086 = vrcp.f32 %v2918_v37  ;;  %v9085_v27 = vpop.eup %9084  ;;  %v2931_v7 = vadd.f32 1.0, %v9083_v22 }
 0x963   :  { %9088 = vrcp.f32 %v2924_v26 }
 0x964   :  { %9090 = vrcp.f32 %v2931_v7 }
 0x96c   :  { %v9087_v39 = vpop.eup %9086 }
 0x96d   :  { %v9089_v52 = vpop.eup %9088  ;;  %v2936_v59 = vmul.f32 %v9087_v39, %v9085_v27 }
 0x96e   :  { %v2935_v60 = vmul.f32 0.0, %v9089_v52  ;;  %v9091_v33 = vpop.eup %9090 }
 0x970   :  { %v10166_v2 = vadd.f32 %v2936_v59, %v2935_v60 }
 0x972   :  { %9092 = vtanh.f32 %v10166_v2 }
 0x97c   :  { %v9093_v56 = vpop.eup %9092 }
 0x97d   :  { %v10169_v30 = vmul.f32 %v9093_v56, %v9091_v33 }
 0x97f   :  { %3077 = vmatmul.mubr.f32.vlgmr.msra.gmra.mrb[18].mxu0 %v10169_v30  ;;  %3148 = vmatmul.mubr.f32.vlgmr.msra.gmra.mrb[18].mxu1 %v10169_v30 }
 0x980   :  { %7796 = vmatpush1.bf16.msra.mxu0 %v10010_v8  ;;  %7828 = vmatpush1.bf16.msra.mxu1 %v10013_v5 }
 0x981   :  { %7798 = vmatprep.subr.bf16.mxu0 %v10018_v4  ;;  %7830 = vmatprep.subr.bf16.mxu1 %v10020_v14 }
 0x982   :  { %3319 = vmatprep.mubr.f32.mxu0 %v9386_v0  ;;  %3390 = vmatprep.mubr.f32.mxu1 %v9386_v0 }
 0x984   :  { %7800 = vmatpush1.bf16.msra.mxu0 %v10022_v11  ;;  %7832 = vmatpush1.bf16.msra.mxu1 %v10025_v20 }
 0x985   :  { %7802 = vmatprep.subr.bf16.mxu0 %v10030_v13  ;;  %7834 = vmatprep.subr.bf16.mxu1 %v10032_v43 }
 0x988   :  { %7804 = vmatpush1.bf16.msra.mxu0 %v10034_v57  ;;  %7836 = vmatpush1.bf16.msra.mxu1 %v10037_v16 }
 0x989   :  { %7806 = vmatprep.subr.bf16.mxu0 %v10042_v62  ;;  %7838 = vmatprep.subr.bf16.mxu1 %v10044_v47 }
 0x98c   :  { %7808 = vmatpush1.bf16.msra.mxu0 %v10046_v46  ;;  %7840 = vmatpush1.bf16.msra.mxu1 %v10049_v32 }
 0x98d   :  { %7810 = vmatprep.subr.bf16.mxu0 %v10053_v42  ;;  %7842 = vmatprep.subr.bf16.mxu1 %v10055_v49 }
 0x990   :  { %7812 = vmatpush1.bf16.msra.mxu0 %v10058_v19  ;;  %7844 = vmatpush1.bf16.msra.mxu1 %v10062_v23 }
 0x991   :  { %7814 = vmatprep.subr.bf16.mxu0 %v10064_v36  ;;  %7846 = vmatprep.subr.bf16.mxu1 %v10066_v9 }
 0x994   :  { %7816 = vmatpush1.bf16.msra.mxu0 %v10069_v41  ;;  %7848 = vmatpush1.bf16.msra.mxu1 %v10073_v50 }
 0x995   :  { %7818 = vmatprep.subr.bf16.mxu0 %v10075_v53  ;;  %7850 = vmatprep.subr.bf16.mxu1 %v10078_v44 }
 0x998   :  { %7820 = vmatpush1.bf16.msra.mxu0 %v10081_v15  ;;  %7852 = vmatpush1.bf16.msra.mxu1 %v10085_v17 }
 0x999   :  { %7822 = vmatprep.subr.bf16.mxu0 %v10090_v58  ;;  %7854 = vmatprep.subr.bf16.mxu1 %v10092_v21 }
 0x99c   :  { %7824 = vmatpush1.bf16.msra.mxu0 %v10094_v12  ;;  %7856 = vmatpush1.bf16.msra.mxu1 %v10097_v63 }
 0x99d   :  { %7858 = vmatprep.subr.bf16.mxu0 %v10006_v45  ;;  %7890 = vmatprep.subr.bf16.mxu1 %v10008_v1 }
 0xa52   :  { %v3078_v28 = vpop.f32.mrb[18].mxu0  ;;  %v3149_v25 = vpop.f32.mrb[18].mxu1 }
 0xa53   :  { %v8787_v61 = vadd.f32 %v3078_v28, %v10151_v40  ;;  %v3080_v24 = vpop.f32.mrb[19].mxu0  ;;  %v3151_v3 = vpop.f32.mrb[19].mxu1  ;;  %v8803_v37 = vadd.f32 %v3149_v25, %v10163_v48 }
 0xa54   :  { %v8788_v29 = vadd.f32 %v3080_v24, %v10154_v54  ;;  %v8804_v35 = vadd.f32 %v3151_v3, %v10159_v6  ;;  %v3677_v24 = vld [vmem:[#allocation8 + $0x200] sm:$0xff] }
 0xa55   :  { %v6979_v18 = vmul.f32 -1.442695, %v8787_v61  ;;  %v3681_v3 = vld [vmem:[#allocation8 + $0x220] sm:$0xff] }
 0xa56   :  { %v6980_v51 = vmul.f32 -1.442695, %v8788_v29  ;;  %v6981_v10 = vmul.f32 -1.442695, %v8804_v35  ;;  %v3683_v35 = vld [vmem:[#allocation8 + $0x230] sm:$0xff] }
 0xa57   :  { %9094 = vpow2.f32 %v6979_v18  ;;  %v10269_v18 = vpack.c.bf16 %v3681_v3, %v3677_v24 }
 0xa58   :  { %9096 = vpow2.f32 %v6980_v51  ;;  %v3679_v51 = vld [vmem:[#allocation8 + $0x210] sm:$0xff] }
 0xa59   :  { %9098 = vpow2.f32 %v6981_v10  ;;  %v10272_v10 = vpack.c.bf16 %v3683_v35, %v3679_v51  ;;  %v3711_v51 = vld [vmem:[#allocation8 + $0x310] sm:$0xff] }
 0xa5a   :  { %9100 = vtanh.f32 %v8803_v37  ;;  %v3686_v37 = vld [vmem:[#allocation8 + $0x248] sm:$0xff]  ;;  %v3715_v35 = vld [vmem:[#allocation8 + $0x330] sm:$0xff] }
 0xa61   :  { %v9095_v45 = vpop.eup %9094 }
 0xa62   :  { %v9097_v26 = vpop.eup %9096  ;;  %v3161_v1 = vadd.f32 1.0, %v9095_v45  ;;  %v3690_v45 = vld [vmem:[#allocation8 + $0x268] sm:$0xff] }
 0xa63   :  { %v3167_v22 = vadd.f32 1.0, %v9097_v26  ;;  %v9099_v27 = vpop.eup %9098  ;;  %v3688_v26 = vld [vmem:[#allocation8 + $0x258] sm:$0xff] }
 0xa64   :  { %9102 = vrcp.f32 %v3161_v1  ;;  %v9101_v39 = vpop.eup %9100  ;;  %v3174_v60 = vadd.f32 1.0, %v9099_v27  ;;  %v10277_v1 = vpack.c.bf16 %v3690_v45, %v3686_v37  ;;  %v3685_v27 = vld [vmem:[#allocation8 + $0x240] sm:$0xff]  ;;  %v10320_v37 = vpack.c.bf16 %v3715_v35, %v3711_v51  ;;  %v3718_v45 = vld [vmem:[#allocation8 + $0x348] sm:$0xff] }
 0xa65   :  { %9104 = vrcp.f32 %v3167_v22  ;;  %v3692_v22 = vld [vmem:[#allocation8 + $0x278] sm:$0xff]  ;;  %v3733_v51 = vld [vmem:[#allocation8 + $0x3c0] sm:$0xff] }
 0xa66   :  { %9106 = vrcp.f32 %v3174_v60  ;;  %v3691_v60 = vld [vmem:[#allocation8 + $0x270] sm:$0xff] }
 0xa6e   :  { %v9103_v52 = vpop.eup %9102 }
 0xa6f   :  { %v9105_v59 = vpop.eup %9104  ;;  %v3179_v7 = vmul.f32 %v9103_v52, %v9101_v39  ;;  %v3689_v39 = vld [vmem:[#allocation8 + $0x260] sm:$0xff]  ;;  %v10279_v52 = vpack.c.bf16 %v3692_v22, %v3688_v26  ;;  %v3722_v26 = vld [vmem:[#allocation8 + $0x368] sm:$0xff]  ;;  %v3720_v22 = vld [vmem:[#allocation8 + $0x358] sm:$0xff] }
 0xa70   :  { %v3178_v33 = vmul.f32 %v9105_v59, %v10166_v2  ;;  %v9107_v28 = vpop.eup %9106  ;;  %v3684_v2 = vld [vmem:[#allocation8 + $0x238] sm:$0xff]  ;;  %v10281_v59 = vpack.c.bf16 %v3689_v39, %v3685_v27  ;;  %v10324_v27 = vpack.c.bf16 %v3722_v26, %v3718_v45  ;;  %v3737_v45 = vld [vmem:[#allocation8 + $0x3e0] sm:$0xff]  ;;  %v3735_v26 = vld [vmem:[#allocation8 + $0x3d0] sm:$0xff] }
 0xa71   :  { %v3724_v39 = vld [vmem:[#allocation8 + $0x378] sm:$0xff] }
 0xa72   :  { %v10212_v56 = vadd.f32 %v3179_v7, %v3178_v33  ;;  %v3687_v7 = vld [vmem:[#allocation8 + $0x250] sm:$0xff] }
 0xa73   :  { %v10284_v33 = vpack.c.bf16 %v3691_v60, %v3687_v7  ;;  %v3717_v7 = vld [vmem:[#allocation8 + $0x340] sm:$0xff] }
 0xa74   :  { %9108 = vtanh.f32 %v10212_v56  ;;  %v3721_v60 = vld [vmem:[#allocation8 + $0x360] sm:$0xff] }
 0xa7e   :  { %v9109_v25 = vpop.eup %9108 }
 0xa7f   :  { %v10215_v61 = vmul.f32 %v9109_v25, %v9107_v28  ;;  %v3698_v28 = vld [vmem:[#allocation8 + $0x2a8] sm:$0xff]  ;;  %v3696_v25 = vld [vmem:[#allocation8 + $0x298] sm:$0xff] }
 0xa81   :  { %3320 = vmatmul.mubr.f32.vlgmr.msra.gmra.mrb[20].mxu0 %v10215_v61  ;;  %3391 = vmatmul.mubr.f32.vlgmr.msra.gmra.mrb[20].mxu1 %v10215_v61 }
 0xa82   :  { %7860 = vmatpush1.bf16.msra.mxu0 %v10010_v8  ;;  %7892 = vmatpush1.bf16.msra.mxu1 %v10013_v5 }
 0xa83   :  { %7862 = vmatprep.subr.bf16.mxu0 %v10018_v4  ;;  %7894 = vmatprep.subr.bf16.mxu1 %v10020_v14 }
 0xa84   :  { %3562 = vmatprep.mubr.f32.mxu0 %v9386_v0  ;;  %3633 = vmatprep.mubr.f32.mxu1 %v9386_v0 }
 0xa86   :  { %7864 = vmatpush1.bf16.msra.mxu0 %v10022_v11  ;;  %7896 = vmatpush1.bf16.msra.mxu1 %v10025_v20 }
 0xa87   :  { %7866 = vmatprep.subr.bf16.mxu0 %v10030_v13  ;;  %7898 = vmatprep.subr.bf16.mxu1 %v10032_v43 }
 0xa8a   :  { %7868 = vmatpush1.bf16.msra.mxu0 %v10034_v57  ;;  %7900 = vmatpush1.bf16.msra.mxu1 %v10037_v16 }
 0xa8b   :  { %7870 = vmatprep.subr.bf16.mxu0 %v10042_v62  ;;  %7902 = vmatprep.subr.bf16.mxu1 %v10044_v47 }
 0xa8e   :  { %7872 = vmatpush1.bf16.msra.mxu0 %v10046_v46  ;;  %7904 = vmatpush1.bf16.msra.mxu1 %v10049_v32 }
 0xa8f   :  { %7874 = vmatprep.subr.bf16.mxu0 %v10053_v42  ;;  %7906 = vmatprep.subr.bf16.mxu1 %v10055_v49 }
 0xa92   :  { %7876 = vmatpush1.bf16.msra.mxu0 %v10058_v19  ;;  %7908 = vmatpush1.bf16.msra.mxu1 %v10062_v23 }
 0xa93   :  { %7878 = vmatprep.subr.bf16.mxu0 %v10064_v36  ;;  %7910 = vmatprep.subr.bf16.mxu1 %v10066_v9 }
 0xa96   :  { %7880 = vmatpush1.bf16.msra.mxu0 %v10069_v41  ;;  %7912 = vmatpush1.bf16.msra.mxu1 %v10073_v50 }
 0xa97   :  { %7882 = vmatprep.subr.bf16.mxu0 %v10075_v53  ;;  %7914 = vmatprep.subr.bf16.mxu1 %v10078_v44 }
 0xa9a   :  { %7884 = vmatpush1.bf16.msra.mxu0 %v10081_v15  ;;  %7916 = vmatpush1.bf16.msra.mxu1 %v10085_v17 }
 0xa9b   :  { %7886 = vmatprep.subr.bf16.mxu0 %v10090_v58  ;;  %7918 = vmatprep.subr.bf16.mxu1 %v10092_v21  ;;  %v3678_v58 = vld [vmem:[#allocation8 + $0x208] sm:$0xff] }
 0xa9c   :  { %v3682_v21 = vld [vmem:[#allocation8 + $0x228] sm:$0xff] }
 0xa9e   :  { %7888 = vmatpush1.bf16.msra.mxu0 %v10094_v12  ;;  %7920 = vmatpush1.bf16.msra.mxu1 %v10097_v63  ;;  %v3680_v12 = vld [vmem:[#allocation8 + $0x218] sm:$0xff]  ;;  %v10265_v63 = vpack.c.bf16 %v3682_v21, %v3678_v58 }
 0xa9f   :  { %v10267_v29 = vpack.c.bf16 %v3684_v2, %v3680_v12  ;;  %v3716_v21 = vld [vmem:[#allocation8 + $0x338] sm:$0xff]  ;;  %v3709_v12 = vld [vmem:[#allocation8 + $0x300] sm:$0xff] }
 0xaa0   :  { %7922 = vmatprep.subr.bf16.mxu0 %v10265_v63  ;;  %v3713_v2 = vld [vmem:[#allocation8 + $0x320] sm:$0xff] }
 0xaa1   :  { %7954 = vmatprep.subr.bf16.mxu1 %v10267_v29  ;;  %v10317_v3 = vpack.c.bf16 %v3713_v2, %v3709_v12  ;;  %v3736_v12 = vld [vmem:[#allocation8 + $0x3d8] sm:$0xff] }
 0xaa2   :  { %v3740_v2 = vld [vmem:[#allocation8 + $0x3f8] sm:$0xff] }
 0xaa3   :  { %v10349_v35 = vpack.c.bf16 %v3740_v2, %v3736_v12 }
 0xb54   :  { %v3321_v8 = vpop.f32.mrb[20].mxu0  ;;  %v3392_v5 = vpop.f32.mrb[20].mxu1 }
 0xb55   :  { %v8789_v4 = vadd.f32 %v3321_v8, %v10151_v40  ;;  %v3323_v14 = vpop.f32.mrb[21].mxu0  ;;  %v3394_v11 = vpop.f32.mrb[21].mxu1  ;;  %v8805_v62 = vadd.f32 %v3392_v5, %v10163_v48  ;;  %v3700_v5 = vld [vmem:[#allocation8 + $0x2b8] sm:$0xff] }
 0xb56   :  { %v8790_v20 = vadd.f32 %v3323_v14, %v10154_v54  ;;  %v8806_v57 = vadd.f32 %v3394_v11, %v10159_v6  ;;  %v3697_v14 = vld [vmem:[#allocation8 + $0x2a0] sm:$0xff]  ;;  %v10291_v11 = vpack.c.bf16 %v3700_v5, %v3696_v25  ;;  %v3719_v25 = vld [vmem:[#allocation8 + $0x350] sm:$0xff] }
 0xb57   :  { %v6982_v13 = vmul.f32 -1.442695, %v8789_v4  ;;  %v3693_v4 = vld [vmem:[#allocation8 + $0x280] sm:$0xff]  ;;  %v3723_v5 = vld [vmem:[#allocation8 + $0x370] sm:$0xff] }
 0xb58   :  { %v6983_v43 = vmul.f32 -1.442695, %v8790_v20  ;;  %v6984_v16 = vmul.f32 -1.442695, %v8806_v57  ;;  %v10293_v20 = vpack.c.bf16 %v3697_v14, %v3693_v4  ;;  %v3726_v4 = vld [vmem:[#allocation8 + $0x388] sm:$0xff]  ;;  %v10332_v14 = vpack.c.bf16 %v3723_v5, %v3719_v25 }
 0xb59   :  { %9110 = vpow2.f32 %v6982_v13  ;;  %v3695_v13 = vld [vmem:[#allocation8 + $0x290] sm:$0xff] }
 0xb5a   :  { %9112 = vpow2.f32 %v6983_v43  ;;  %v3699_v43 = vld [vmem:[#allocation8 + $0x2b0] sm:$0xff] }
 0xb5b   :  { %9114 = vpow2.f32 %v6984_v16  ;;  %v10296_v57 = vpack.c.bf16 %v3699_v43, %v3695_v13  ;;  %v3702_v16 = vld [vmem:[#allocation8 + $0x2c8] sm:$0xff]  ;;  %v3728_v43 = vld [vmem:[#allocation8 + $0x398] sm:$0xff] }
 0xb5c   :  { %9116 = vtanh.f32 %v8805_v62  ;;  %v3706_v62 = vld [vmem:[#allocation8 + $0x2e8] sm:$0xff] }
 0xb5d   :  { %v3730_v13 = vld [vmem:[#allocation8 + $0x3a8] sm:$0xff] }
 0xb63   :  { %v9111_v47 = vpop.eup %9110 }
 0xb64   :  { %v9113_v46 = vpop.eup %9112  ;;  %v3404_v32 = vadd.f32 1.0, %v9111_v47  ;;  %v3704_v47 = vld [vmem:[#allocation8 + $0x2d8] sm:$0xff] }
 0xb65   :  { %v3410_v42 = vadd.f32 1.0, %v9113_v46  ;;  %v9115_v49 = vpop.eup %9114  ;;  %v10301_v46 = vpack.c.bf16 %v3706_v62, %v3702_v16  ;;  %v3732_v16 = vld [vmem:[#allocation8 + $0x3b8] sm:$0xff]  ;;  %v10335_v62 = vpack.c.bf16 %v3730_v13, %v3726_v4 }
 0xb66   :  { %9118 = vrcp.f32 %v3404_v32  ;;  %v9117_v19 = vpop.eup %9116  ;;  %v3417_v41 = vadd.f32 1.0, %v9115_v49  ;;  %v3708_v32 = vld [vmem:[#allocation8 + $0x2f8] sm:$0xff]  ;;  %v3705_v49 = vld [vmem:[#allocation8 + $0x2e0] sm:$0xff] }
 0xb67   :  { %9120 = vrcp.f32 %v3410_v42  ;;  %v3701_v42 = vld [vmem:[#allocation8 + $0x2c0] sm:$0xff] }
 0xb68   :  { %9122 = vrcp.f32 %v3417_v41 }
 0xb70   :  { %v9119_v23 = vpop.eup %9118 }
 0xb71   :  { %v9121_v36 = vpop.eup %9120  ;;  %v3422_v9 = vmul.f32 %v9119_v23, %v9117_v19  ;;  %v10303_v19 = vpack.c.bf16 %v3708_v32, %v3704_v47  ;;  %v10305_v23 = vpack.c.bf16 %v3705_v49, %v3701_v42  ;;  %v10337_v47 = vpack.c.bf16 %v3732_v16, %v3728_v43  ;;  %v3725_v32 = vld [vmem:[#allocation8 + $0x380] sm:$0xff]  ;;  %v3727_v49 = vld [vmem:[#allocation8 + $0x390] sm:$0xff] }
 0xb72   :  { %v3421_v50 = vmul.f32 %v9121_v36, %v10212_v56  ;;  %v9123_v44 = vpop.eup %9122  ;;  %v3694_v56 = vld [vmem:[#allocation8 + $0x288] sm:$0xff]  ;;  %v3703_v36 = vld [vmem:[#allocation8 + $0x2d0] sm:$0xff]  ;;  %v3729_v42 = vld [vmem:[#allocation8 + $0x3a0] sm:$0xff] }
 0xb73   :  { %v10289_v8 = vpack.c.bf16 %v3698_v28, %v3694_v56  ;;  %v10327_v56 = vpack.c.bf16 %v3724_v39, %v3720_v22  ;;  %v10329_v28 = vpack.c.bf16 %v3721_v60, %v3717_v7  ;;  %v3739_v22 = vld [vmem:[#allocation8 + $0x3f0] sm:$0xff]  ;;  %v10352_v39 = vpack.c.bf16 %v3737_v45, %v3733_v51 }
 0xb74   :  { %v10256_v53 = vadd.f32 %v3422_v9, %v3421_v50  ;;  %v3707_v9 = vld [vmem:[#allocation8 + $0x2f0] sm:$0xff]  ;;  %v3710_v50 = vld [vmem:[#allocation8 + $0x308] sm:$0xff]  ;;  %v10356_v7 = vpack.c.bf16 %v3739_v22, %v3735_v26 }
 0xb75   :  { %v10308_v41 = vpack.c.bf16 %v3707_v9, %v3703_v36  ;;  %v10340_v36 = vpack.c.bf16 %v3729_v42, %v3725_v32  ;;  %v3731_v9 = vld [vmem:[#allocation8 + $0x3b0] sm:$0xff] }
 0xb76   :  { %9124 = vtanh.f32 %v10256_v53 }
 0xb80   :  { %v9125_v15 = vpop.eup %9124 }
 0xb81   :  { %v10259_v17 = vmul.f32 %v9125_v15, %v9123_v44  ;;  %v3714_v44 = vld [vmem:[#allocation8 + $0x328] sm:$0xff]  ;;  %v3712_v15 = vld [vmem:[#allocation8 + $0x318] sm:$0xff] }
 0xb82   :  { %v10313_v58 = vpack.c.bf16 %v3714_v44, %v3710_v50  ;;  %v10315_v24 = vpack.c.bf16 %v3716_v21, %v3712_v15  ;;  %v3734_v50 = vld [vmem:[#allocation8 + $0x3c8] sm:$0xff]  ;;  %v10344_v15 = vpack.c.bf16 %v3731_v9, %v3727_v49 }
 0xb83   :  { %3563 = vmatmul.mubr.f32.vlgmr.msra.gmra.mrb[22].mxu0 %v10259_v17  ;;  %3634 = vmatmul.mubr.f32.vlgmr.msra.gmra.mrb[22].mxu1 %v10259_v17  ;;  %v3738_v44 = vld [vmem:[#allocation8 + $0x3e8] sm:$0xff] }
 0xb84   :  { %3805 = vmatprep.mubr.f32.mxu0 %v9386_v0  ;;  %3876 = vmatprep.mubr.f32.mxu1 %v9386_v0  ;;  %v10346_v21 = vpack.c.bf16 %v3738_v44, %v3734_v50 }
 0xb85   :  { %7924 = vmatpush1.bf16.msra.mxu0 %v10269_v18  ;;  %7956 = vmatpush1.bf16.msra.mxu1 %v10272_v10 }
 0xb86   :  { %7926 = vmatprep.subr.bf16.mxu0 %v10277_v1  ;;  %7958 = vmatprep.subr.bf16.mxu1 %v10279_v52 }
 0xb89   :  { %7928 = vmatpush1.bf16.msra.mxu0 %v10281_v59  ;;  %7960 = vmatpush1.bf16.msra.mxu1 %v10284_v33 }
 0xb8a   :  { %7930 = vmatprep.subr.bf16.mxu0 %v10289_v8  ;;  %7962 = vmatprep.subr.bf16.mxu1 %v10291_v11 }
 0xb8d   :  { %7932 = vmatpush1.bf16.msra.mxu0 %v10293_v20  ;;  %7964 = vmatpush1.bf16.msra.mxu1 %v10296_v57 }
 0xb8e   :  { %7934 = vmatprep.subr.bf16.mxu0 %v10301_v46  ;;  %7966 = vmatprep.subr.bf16.mxu1 %v10303_v19 }
 0xb91   :  { %7936 = vmatpush1.bf16.msra.mxu0 %v10305_v23  ;;  %7968 = vmatpush1.bf16.msra.mxu1 %v10308_v41 }
 0xb92   :  { %7938 = vmatprep.subr.bf16.mxu0 %v10313_v58  ;;  %7970 = vmatprep.subr.bf16.mxu1 %v10315_v24 }
 0xb95   :  { %7940 = vmatpush1.bf16.msra.mxu0 %v10317_v3  ;;  %7972 = vmatpush1.bf16.msra.mxu1 %v10320_v37 }
 0xb96   :  { %7942 = vmatprep.subr.bf16.mxu0 %v10324_v27  ;;  %7974 = vmatprep.subr.bf16.mxu1 %v10327_v56 }
 0xb99   :  { %7944 = vmatpush1.bf16.msra.mxu0 %v10329_v28  ;;  %7976 = vmatpush1.bf16.msra.mxu1 %v10332_v14 }
 0xb9a   :  { %7946 = vmatprep.subr.bf16.mxu0 %v10335_v62  ;;  %7978 = vmatprep.subr.bf16.mxu1 %v10337_v47 }
 0xb9d   :  { %7948 = vmatpush1.bf16.msra.mxu0 %v10340_v36  ;;  %7980 = vmatpush1.bf16.msra.mxu1 %v10344_v15 }
 0xb9e   :  { %7950 = vmatprep.subr.bf16.mxu0 %v10346_v21  ;;  %7982 = vmatprep.subr.bf16.mxu1 %v10349_v35 }
 0xba1   :  { %7952 = vmatpush1.bf16.msra.mxu0 %v10352_v39  ;;  %7984 = vmatpush1.bf16.msra.mxu1 %v10356_v7 }
 0xba2   :  { %7986 = vmatprep.subr.bf16.mxu0 %v10265_v63  ;;  %8018 = vmatprep.subr.bf16.mxu1 %v10267_v29 }
 0xc56   :  { %v3564_v60 = vpop.f32.mrb[22].mxu0  ;;  %v3635_v25 = vpop.f32.mrb[22].mxu1 }
 0xc57   :  { %v8791_v5 = vadd.f32 %v3564_v60, %v10151_v40  ;;  %v3566_v4 = vpop.f32.mrb[23].mxu0  ;;  %v3637_v13 = vpop.f32.mrb[23].mxu1  ;;  %v8807_v9 = vadd.f32 %v3635_v25, %v10163_v48 }
 0xc58   :  { %v8792_v43 = vadd.f32 %v3566_v4, %v10154_v54  ;;  %v8808_v42 = vadd.f32 %v3637_v13, %v10159_v6 }
 0xc59   :  { %v6985_v16 = vmul.f32 -1.442695, %v8791_v5 }
 0xc5a   :  { %v6986_v32 = vmul.f32 -1.442695, %v8792_v43  ;;  %v6987_v49 = vmul.f32 -1.442695, %v8808_v42 }
 0xc5b   :  { %9126 = vpow2.f32 %v6985_v16 }
 0xc5c   :  { %9128 = vpow2.f32 %v6986_v32 }
 0xc5d   :  { %9130 = vpow2.f32 %v6987_v49 }
 0xc5e   :  { %9132 = vtanh.f32 %v8807_v9 }
 0xc65   :  { %v9127_v50 = vpop.eup %9126 }
 0xc66   :  { %v9129_v44 = vpop.eup %9128  ;;  %v3647_v12 = vadd.f32 1.0, %v9127_v50 }
 0xc67   :  { %v3653_v2 = vadd.f32 1.0, %v9129_v44  ;;  %v9131_v51 = vpop.eup %9130 }
 0xc68   :  { %9134 = vrcp.f32 %v3647_v12  ;;  %v9133_v45 = vpop.eup %9132  ;;  %v3660_v5 = vadd.f32 1.0, %v9131_v51 }
 0xc69   :  { %9136 = vrcp.f32 %v3653_v2 }
 0xc6a   :  { %9138 = vrcp.f32 %v3660_v5 }
 0xc72   :  { %v9135_v26 = vpop.eup %9134 }
 0xc73   :  { %v9137_v22 = vpop.eup %9136  ;;  %v3665_v60 = vmul.f32 %v9135_v26, %v9133_v45 }
 0xc74   :  { %v3664_v4 = vmul.f32 %v9137_v22, %v10256_v53  ;;  %v9139_v25 = vpop.eup %9138 }
 0xc76   :  { %v10368_v13 = vadd.f32 %v3665_v60, %v3664_v4 }
 0xc78   :  { %9140 = vtanh.f32 %v10368_v13 }
 0xc82   :  { %v9141_v43 = vpop.eup %9140 }
 0xc83   :  { %v10371_v16 = vmul.f32 %v9141_v43, %v9139_v25 }
 0xc85   :  { %3806 = vmatmul.mubr.f32.vlgmr.msra.gmra.mrb[24].mxu0 %v10371_v16  ;;  %3877 = vmatmul.mubr.f32.vlgmr.msra.gmra.mrb[24].mxu1 %v10371_v16 }
 0xc86   :  { %7988 = vmatpush1.bf16.msra.mxu0 %v10269_v18  ;;  %8020 = vmatpush1.bf16.msra.mxu1 %v10272_v10 }
 0xc87   :  { %7990 = vmatprep.subr.bf16.mxu0 %v10277_v1  ;;  %8022 = vmatprep.subr.bf16.mxu1 %v10279_v52 }
 0xc88   :  { %4048 = vmatprep.mubr.f32.mxu0 %v9386_v0  ;;  %4119 = vmatprep.mubr.f32.mxu1 %v9386_v0 }
 0xc8a   :  { %7992 = vmatpush1.bf16.msra.mxu0 %v10281_v59  ;;  %8024 = vmatpush1.bf16.msra.mxu1 %v10284_v33 }
 0xc8b   :  { %7994 = vmatprep.subr.bf16.mxu0 %v10289_v8  ;;  %8026 = vmatprep.subr.bf16.mxu1 %v10291_v11 }
 0xc8e   :  { %7996 = vmatpush1.bf16.msra.mxu0 %v10293_v20  ;;  %8028 = vmatpush1.bf16.msra.mxu1 %v10296_v57 }
 0xc8f   :  { %7998 = vmatprep.subr.bf16.mxu0 %v10301_v46  ;;  %8030 = vmatprep.subr.bf16.mxu1 %v10303_v19 }
 0xc92   :  { %8000 = vmatpush1.bf16.msra.mxu0 %v10305_v23  ;;  %8032 = vmatpush1.bf16.msra.mxu1 %v10308_v41 }
 0xc93   :  { %8002 = vmatprep.subr.bf16.mxu0 %v10313_v58  ;;  %8034 = vmatprep.subr.bf16.mxu1 %v10315_v24 }
 0xc96   :  { %8004 = vmatpush1.bf16.msra.mxu0 %v10317_v3  ;;  %8036 = vmatpush1.bf16.msra.mxu1 %v10320_v37 }
 0xc97   :  { %8006 = vmatprep.subr.bf16.mxu0 %v10324_v27  ;;  %8038 = vmatprep.subr.bf16.mxu1 %v10327_v56 }
 0xc9a   :  { %8008 = vmatpush1.bf16.msra.mxu0 %v10329_v28  ;;  %8040 = vmatpush1.bf16.msra.mxu1 %v10332_v14 }
 0xc9b   :  { %8010 = vmatprep.subr.bf16.mxu0 %v10335_v62  ;;  %8042 = vmatprep.subr.bf16.mxu1 %v10337_v47 }
 0xc9e   :  { %8012 = vmatpush1.bf16.msra.mxu0 %v10340_v36  ;;  %8044 = vmatpush1.bf16.msra.mxu1 %v10344_v15 }
 0xc9f   :  { %8014 = vmatprep.subr.bf16.mxu0 %v10346_v21  ;;  %8046 = vmatprep.subr.bf16.mxu1 %v10349_v35 }
 0xca2   :  { %8016 = vmatpush1.bf16.msra.mxu0 %v10352_v39  ;;  %8048 = vmatpush1.bf16.msra.mxu1 %v10356_v7 }
 0xca3   :  { %8050 = vmatprep.subr.bf16.mxu0 %v10265_v63  ;;  %8082 = vmatprep.subr.bf16.mxu1 %v10267_v29 }
 0xd58   :  { %v3807_v53 = vpop.f32.mrb[24].mxu0  ;;  %v3878_v32 = vpop.f32.mrb[24].mxu1 }
 0xd59   :  { %v8793_v42 = vadd.f32 %v3807_v53, %v10151_v40  ;;  %v3809_v49 = vpop.f32.mrb[25].mxu0  ;;  %v3880_v9 = vpop.f32.mrb[25].mxu1  ;;  %v8809_v45 = vadd.f32 %v3878_v32, %v10163_v48 }
 0xd5a   :  { %v8794_v50 = vadd.f32 %v3809_v49, %v10154_v54  ;;  %v8810_v2 = vadd.f32 %v3880_v9, %v10159_v6 }
 0xd5b   :  { %v6988_v44 = vmul.f32 -1.442695, %v8793_v42 }
 0xd5c   :  { %v6989_v12 = vmul.f32 -1.442695, %v8794_v50  ;;  %v6990_v51 = vmul.f32 -1.442695, %v8810_v2 }
 0xd5d   :  { %9142 = vpow2.f32 %v6988_v44 }
 0xd5e   :  { %9144 = vpow2.f32 %v6989_v12 }
 0xd5f   :  { %9146 = vpow2.f32 %v6990_v51 }
 0xd60   :  { %9148 = vtanh.f32 %v8809_v45 }
 0xd67   :  { %v9143_v26 = vpop.eup %9142 }
 0xd68   :  { %v9145_v22 = vpop.eup %9144  ;;  %v3890_v60 = vadd.f32 1.0, %v9143_v26 }
 0xd69   :  { %v3896_v5 = vadd.f32 1.0, %v9145_v22  ;;  %v9147_v4 = vpop.eup %9146 }
 0xd6a   :  { %9150 = vrcp.f32 %v3890_v60  ;;  %v9149_v25 = vpop.eup %9148  ;;  %v3903_v49 = vadd.f32 1.0, %v9147_v4 }
 0xd6b   :  { %9152 = vrcp.f32 %v3896_v5 }
 0xd6c   :  { %9154 = vrcp.f32 %v3903_v49 }
 0xd74   :  { %v9151_v43 = vpop.eup %9150 }
 0xd75   :  { %v9153_v53 = vpop.eup %9152  ;;  %v3908_v42 = vmul.f32 %v9151_v43, %v9149_v25 }
 0xd76   :  { %v3907_v50 = vmul.f32 %v9153_v53, %v10368_v13  ;;  %v9155_v32 = vpop.eup %9154 }
 0xd78   :  { %v10414_v9 = vadd.f32 %v3908_v42, %v3907_v50 }
 0xd7a   :  { %9156 = vtanh.f32 %v10414_v9 }
 0xd84   :  { %v9157_v44 = vpop.eup %9156 }
 0xd85   :  { %v10417_v12 = vmul.f32 %v9157_v44, %v9155_v32 }
 0xd87   :  { %4049 = vmatmul.mubr.f32.vlgmr.msra.gmra.mrb[26].mxu0 %v10417_v12  ;;  %4120 = vmatmul.mubr.f32.vlgmr.msra.gmra.mrb[26].mxu1 %v10417_v12 }
 0xd88   :  { %8052 = vmatpush1.bf16.msra.mxu0 %v10269_v18  ;;  %8084 = vmatpush1.bf16.msra.mxu1 %v10272_v10 }
 0xd89   :  { %8054 = vmatprep.subr.bf16.mxu0 %v10277_v1  ;;  %8086 = vmatprep.subr.bf16.mxu1 %v10279_v52 }
 0xd8a   :  { %4291 = vmatprep.mubr.f32.mxu0 %v9386_v0  ;;  %4362 = vmatprep.mubr.f32.mxu1 %v9386_v0 }
 0xd8c   :  { %8056 = vmatpush1.bf16.msra.mxu0 %v10281_v59  ;;  %8088 = vmatpush1.bf16.msra.mxu1 %v10284_v33 }
 0xd8d   :  { %8058 = vmatprep.subr.bf16.mxu0 %v10289_v8  ;;  %8090 = vmatprep.subr.bf16.mxu1 %v10291_v11 }
 0xd90   :  { %8060 = vmatpush1.bf16.msra.mxu0 %v10293_v20  ;;  %8092 = vmatpush1.bf16.msra.mxu1 %v10296_v57 }
 0xd91   :  { %8062 = vmatprep.subr.bf16.mxu0 %v10301_v46  ;;  %8094 = vmatprep.subr.bf16.mxu1 %v10303_v19 }
 0xd94   :  { %8064 = vmatpush1.bf16.msra.mxu0 %v10305_v23  ;;  %8096 = vmatpush1.bf16.msra.mxu1 %v10308_v41 }
 0xd95   :  { %8066 = vmatprep.subr.bf16.mxu0 %v10313_v58  ;;  %8098 = vmatprep.subr.bf16.mxu1 %v10315_v24 }
 0xd98   :  { %8068 = vmatpush1.bf16.msra.mxu0 %v10317_v3  ;;  %8100 = vmatpush1.bf16.msra.mxu1 %v10320_v37 }
 0xd99   :  { %8070 = vmatprep.subr.bf16.mxu0 %v10324_v27  ;;  %8102 = vmatprep.subr.bf16.mxu1 %v10327_v56 }
 0xd9c   :  { %8072 = vmatpush1.bf16.msra.mxu0 %v10329_v28  ;;  %8104 = vmatpush1.bf16.msra.mxu1 %v10332_v14 }
 0xd9d   :  { %8074 = vmatprep.subr.bf16.mxu0 %v10335_v62  ;;  %8106 = vmatprep.subr.bf16.mxu1 %v10337_v47 }
 0xda0   :  { %8076 = vmatpush1.bf16.msra.mxu0 %v10340_v36  ;;  %8108 = vmatpush1.bf16.msra.mxu1 %v10344_v15 }
 0xda1   :  { %8078 = vmatprep.subr.bf16.mxu0 %v10346_v21  ;;  %8110 = vmatprep.subr.bf16.mxu1 %v10349_v35 }
 0xda4   :  { %8080 = vmatpush1.bf16.msra.mxu0 %v10352_v39  ;;  %8112 = vmatpush1.bf16.msra.mxu1 %v10356_v7 }
 0xda5   :  { %8114 = vmatprep.subr.bf16.mxu0 %v10265_v63  ;;  %8146 = vmatprep.subr.bf16.mxu1 %v10267_v29 }
 0xe5a   :  { %v4050_v13 = vpop.f32.mrb[26].mxu0  ;;  %v4121_v2 = vpop.f32.mrb[26].mxu1 }
 0xe5b   :  { %v8795_v51 = vadd.f32 %v4050_v13, %v10151_v40  ;;  %v4052_v45 = vpop.f32.mrb[27].mxu0  ;;  %v4123_v26 = vpop.f32.mrb[27].mxu1  ;;  %v8811_v43 = vadd.f32 %v4121_v2, %v10163_v48 }
 0xe5c   :  { %v8796_v22 = vadd.f32 %v4052_v45, %v10154_v54  ;;  %v8812_v4 = vadd.f32 %v4123_v26, %v10159_v6 }
 0xe5d   :  { %v6991_v60 = vmul.f32 -1.442695, %v8795_v51 }
 0xe5e   :  { %v6992_v5 = vmul.f32 -1.442695, %v8796_v22  ;;  %v6993_v25 = vmul.f32 -1.442695, %v8812_v4  ;;  %v4659_v4 = vld [vmem:[#allocation6 + $0x430] sm:$0xff] }
 0xe5f   :  { %9158 = vpow2.f32 %v6991_v60 }
 0xe60   :  { %9160 = vpow2.f32 %v6992_v5  ;;  %v4655_v5 = vld [vmem:[#allocation6 + $0x410] sm:$0xff] }
 0xe61   :  { %9162 = vpow2.f32 %v6993_v25  ;;  %v4662_v25 = vld [vmem:[#allocation6 + $0x448] sm:$0xff] }
 0xe62   :  { %9164 = vtanh.f32 %v8811_v43  ;;  %v4666_v43 = vld [vmem:[#allocation6 + $0x468] sm:$0xff] }
 0xe69   :  { %v9159_v63 = vpop.eup %9158 }
 0xe6a   :  { %v9161_v53 = vpop.eup %9160  ;;  %v4133_v29 = vadd.f32 1.0, %v9159_v63  ;;  %v4664_v63 = vld [vmem:[#allocation6 + $0x458] sm:$0xff] }
 0xe6b   :  { %v4139_v42 = vadd.f32 1.0, %v9161_v53  ;;  %v9163_v49 = vpop.eup %9162  ;;  %v4668_v53 = vld [vmem:[#allocation6 + $0x478] sm:$0xff] }
 0xe6c   :  { %9166 = vrcp.f32 %v4133_v29  ;;  %v9165_v50 = vpop.eup %9164  ;;  %v4146_v51 = vadd.f32 1.0, %v9163_v49 }
 0xe6d   :  { %9168 = vrcp.f32 %v4139_v42 }
 0xe6e   :  { %9170 = vrcp.f32 %v4146_v51  ;;  %v8181_v51 = vpack.c.bf16 %v4666_v43, %v4662_v25  ;;  %v4687_v43 = vld [vmem:[#allocation6 + $0x510] sm:$0xff] }
 0xe76   :  { %v9167_v32 = vpop.eup %9166 }
 0xe77   :  { %v9169_v44 = vpop.eup %9168  ;;  %v4151_v13 = vmul.f32 %v9167_v32, %v9165_v50  ;;  %v8211_v50 = vpack.c.bf16 %v4659_v4, %v4655_v5  ;;  %v4661_v32 = vld [vmem:[#allocation6 + $0x440] sm:$0xff] }
 0xe78   :  { %v4150_v45 = vmul.f32 %v9169_v44, %v10414_v9  ;;  %v9171_v2 = vpop.eup %9170  ;;  %v4657_v9 = vld [vmem:[#allocation6 + $0x420] sm:$0xff] }
 0xe79   :  { %v4665_v44 = vld [vmem:[#allocation6 + $0x460] sm:$0xff] }
 0xe7a   :  { %v10460_v26 = vadd.f32 %v4151_v13, %v4150_v45  ;;  %v8213_v45 = vpack.c.bf16 %v4668_v53, %v4664_v63  ;;  %v4689_v5 = vld [vmem:[#allocation6 + $0x520] sm:$0xff]  ;;  %v4691_v63 = vld [vmem:[#allocation6 + $0x530] sm:$0xff]  ;;  %v4694_v53 = vld [vmem:[#allocation6 + $0x548] sm:$0xff] }
 0xe7c   :  { %9172 = vtanh.f32 %v10460_v26 }
 0xe86   :  { %v9173_v22 = vpop.eup %9172 }
 0xe87   :  { %v10463_v60 = vmul.f32 %v9173_v22, %v9171_v2  ;;  %v4667_v2 = vld [vmem:[#allocation6 + $0x470] sm:$0xff]  ;;  %v4670_v22 = vld [vmem:[#allocation6 + $0x488] sm:$0xff] }
 0xe89   :  { %4292 = vmatmul.mubr.f32.vlgmr.msra.gmra.mrb[28].mxu0 %v10463_v60  ;;  %4363 = vmatmul.mubr.f32.vlgmr.msra.gmra.mrb[28].mxu1 %v10463_v60 }
 0xe8a   :  { %8116 = vmatpush1.bf16.msra.mxu0 %v10269_v18  ;;  %8148 = vmatpush1.bf16.msra.mxu1 %v10272_v10  ;;  %v4654_v18 = vld [vmem:[#allocation6 + $0x408] sm:$0xff] }
 0xe8b   :  { %8118 = vmatprep.subr.bf16.mxu0 %v10277_v1  ;;  %8150 = vmatprep.subr.bf16.mxu1 %v10279_v52  ;;  %v4658_v10 = vld [vmem:[#allocation6 + $0x428] sm:$0xff]  ;;  %v4656_v1 = vld [vmem:[#allocation6 + $0x418] sm:$0xff] }
 0xe8c   :  { %4534 = vmatprep.mubr.f32.mxu0 %v9386_v0  ;;  %4605 = vmatprep.mubr.f32.mxu1 %v9386_v0  ;;  %v8177_v52 = vpack.c.bf16 %v4658_v10, %v4654_v18  ;;  %v4674_v18 = vld [vmem:[#allocation6 + $0x4a8] sm:$0xff]  ;;  %v4672_v10 = vld [vmem:[#allocation6 + $0x498] sm:$0xff] }
 0xe8e   :  { %8120 = vmatpush1.bf16.msra.mxu0 %v10281_v59  ;;  %8152 = vmatpush1.bf16.msra.mxu1 %v10284_v33  ;;  %v4660_v59 = vld [vmem:[#allocation6 + $0x438] sm:$0xff] }
 0xe8f   :  { %8122 = vmatprep.subr.bf16.mxu0 %v10289_v8  ;;  %8154 = vmatprep.subr.bf16.mxu1 %v10291_v11  ;;  %v8209_v33 = vpack.c.bf16 %v4660_v59, %v4656_v1  ;;  %v4676_v1 = vld [vmem:[#allocation6 + $0x4b8] sm:$0xff] }
 0xe92   :  { %8124 = vmatpush1.bf16.msra.mxu0 %v10293_v20  ;;  %8156 = vmatpush1.bf16.msra.mxu1 %v10296_v57 }
 0xe93   :  { %8126 = vmatprep.subr.bf16.mxu0 %v10301_v46  ;;  %8158 = vmatprep.subr.bf16.mxu1 %v10303_v19 }
 0xe96   :  { %8128 = vmatpush1.bf16.msra.mxu0 %v10305_v23  ;;  %8160 = vmatpush1.bf16.msra.mxu1 %v10308_v41 }
 0xe97   :  { %8130 = vmatprep.subr.bf16.mxu0 %v10313_v58  ;;  %8162 = vmatprep.subr.bf16.mxu1 %v10315_v24 }
 0xe9a   :  { %8132 = vmatpush1.bf16.msra.mxu0 %v10317_v3  ;;  %8164 = vmatpush1.bf16.msra.mxu1 %v10320_v37 }
 0xe9b   :  { %8134 = vmatprep.subr.bf16.mxu0 %v10324_v27  ;;  %8166 = vmatprep.subr.bf16.mxu1 %v10327_v56 }
 0xe9e   :  { %8136 = vmatpush1.bf16.msra.mxu0 %v10329_v28  ;;  %8168 = vmatpush1.bf16.msra.mxu1 %v10332_v14 }
 0xe9f   :  { %8138 = vmatprep.subr.bf16.mxu0 %v10335_v62  ;;  %8170 = vmatprep.subr.bf16.mxu1 %v10337_v47 }
 0xea2   :  { %8140 = vmatpush1.bf16.msra.mxu0 %v10340_v36  ;;  %8172 = vmatpush1.bf16.msra.mxu1 %v10344_v15 }
 0xea3   :  { %8142 = vmatprep.subr.bf16.mxu0 %v10346_v21  ;;  %8174 = vmatprep.subr.bf16.mxu1 %v10349_v35 }
 0xea6   :  { %8144 = vmatpush1.bf16.msra.mxu0 %v10352_v39  ;;  %8176 = vmatpush1.bf16.msra.mxu1 %v10356_v7  ;;  %v4653_v7 = vld [vmem:[#allocation6 + $0x400] sm:$0xff] }
 0xea7   :  { %8178 = vmatprep.subr.bf16.mxu0 %v8177_v52  ;;  %8210 = vmatprep.subr.bf16.mxu1 %v8209_v33  ;;  %v8179_v49 = vpack.c.bf16 %v4657_v9, %v4653_v7  ;;  %v8183_v52 = vpack.c.bf16 %v4665_v44, %v4661_v32  ;;  %v4669_v33 = vld [vmem:[#allocation6 + $0x480] sm:$0xff]  ;;  %v8227_v32 = vpack.c.bf16 %v4691_v63, %v4687_v43  ;;  %v5017_v43 = vld [vmem:[#allocation8 + $0x458] sm:$0xff] }
 0xea8   :  { %v4685_v9 = vld [vmem:[#allocation6 + $0x500] sm:$0xff] }
 0xea9   :  { %v4693_v44 = vld [vmem:[#allocation6 + $0x540] sm:$0xff] }
 0xf5c   :  { %v4293_v8 = vpop.f32.mrb[28].mxu0  ;;  %v4364_v11 = vpop.f32.mrb[28].mxu1 }
 0xf5d   :  { %v8797_v20 = vadd.f32 %v4293_v8, %v10151_v40  ;;  %v4295_v57 = vpop.f32.mrb[29].mxu0  ;;  %v4366_v46 = vpop.f32.mrb[29].mxu1  ;;  %v8813_v3 = vadd.f32 %v4364_v11, %v10163_v48  ;;  %v4673_v8 = vld [vmem:[#allocation6 + $0x4a0] sm:$0xff]  ;;  %v8185_v11 = vpack.c.bf16 %v4674_v18, %v4670_v22  ;;  %v4699_v22 = vld [vmem:[#allocation6 + $0x570] sm:$0xff]  ;;  %v4702_v18 = vld [vmem:[#allocation6 + $0x588] sm:$0xff] }
 0xf5e   :  { %v8798_v19 = vadd.f32 %v4295_v57, %v10154_v54  ;;  %v8814_v58 = vadd.f32 %v4366_v46, %v10159_v6  ;;  %v4671_v57 = vld [vmem:[#allocation6 + $0x490] sm:$0xff] }
 0xf5f   :  { %v6994_v23 = vmul.f32 -1.442695, %v8797_v20  ;;  %v8217_v20 = vpack.c.bf16 %v4676_v1, %v4672_v10  ;;  %v4675_v46 = vld [vmem:[#allocation6 + $0x4b0] sm:$0xff]  ;;  %v4706_v10 = vld [vmem:[#allocation6 + $0x5a8] sm:$0xff]  ;;  %v4704_v1 = vld [vmem:[#allocation6 + $0x598] sm:$0xff] }
 0xf60   :  { %v6995_v41 = vmul.f32 -1.442695, %v8798_v19  ;;  %v6996_v24 = vmul.f32 -1.442695, %v8814_v58  ;;  %v4678_v19 = vld [vmem:[#allocation6 + $0x4c8] sm:$0xff]  ;;  %v4684_v58 = vld [vmem:[#allocation6 + $0x4f8] sm:$0xff] }
 0xf61   :  { %9174 = vpow2.f32 %v6994_v23  ;;  %v4682_v23 = vld [vmem:[#allocation6 + $0x4e8] sm:$0xff] }
 0xf62   :  { %9176 = vpow2.f32 %v6995_v41  ;;  %v4680_v41 = vld [vmem:[#allocation6 + $0x4d8] sm:$0xff] }
 0xf63   :  { %9178 = vpow2.f32 %v6996_v24  ;;  %v8187_v24 = vpack.c.bf16 %v4673_v8, %v4669_v33  ;;  %v4701_v8 = vld [vmem:[#allocation6 + $0x580] sm:$0xff] }
 0xf64   :  { %9180 = vtanh.f32 %v8813_v3  ;;  %v8219_v3 = vpack.c.bf16 %v4675_v46, %v4671_v57  ;;  %v4703_v46 = vld [vmem:[#allocation6 + $0x590] sm:$0xff] }
 0xf6b   :  { %v9175_v37 = vpop.eup %9174 }
 0xf6c   :  { %v9177_v27 = vpop.eup %9176  ;;  %v4376_v56 = vadd.f32 1.0, %v9175_v37  ;;  %v4677_v37 = vld [vmem:[#allocation6 + $0x4c0] sm:$0xff] }
 0xf6d   :  { %v4382_v28 = vadd.f32 1.0, %v9177_v27  ;;  %v9179_v14 = vpop.eup %9178  ;;  %v4681_v27 = vld [vmem:[#allocation6 + $0x4e0] sm:$0xff] }
 0xf6e   :  { %9182 = vrcp.f32 %v4376_v56  ;;  %v9181_v62 = vpop.eup %9180  ;;  %v4389_v21 = vadd.f32 1.0, %v9179_v14  ;;  %v8189_v56 = vpack.c.bf16 %v4682_v23, %v4678_v19  ;;  %v4679_v14 = vld [vmem:[#allocation6 + $0x4d0] sm:$0xff]  ;;  %v4710_v23 = vld [vmem:[#allocation6 + $0x5c8] sm:$0xff] }
 0xf6f   :  { %9184 = vrcp.f32 %v4382_v28  ;;  %v8221_v28 = vpack.c.bf16 %v4684_v58, %v4680_v41  ;;  %v4707_v19 = vld [vmem:[#allocation6 + $0x5b0] sm:$0xff]  ;;  %v4714_v41 = vld [vmem:[#allocation6 + $0x5e8] sm:$0xff]  ;;  %v4712_v58 = vld [vmem:[#allocation6 + $0x5d8] sm:$0xff] }
 0xf70   :  { %9186 = vrcp.f32 %v4389_v21  ;;  %v4692_v21 = vld [vmem:[#allocation6 + $0x538] sm:$0xff] }
 0xf78   :  { %v9183_v47 = vpop.eup %9182 }
 0xf79   :  { %v9185_v36 = vpop.eup %9184  ;;  %v4394_v15 = vmul.f32 %v9183_v47, %v9181_v62  ;;  %v4683_v62 = vld [vmem:[#allocation6 + $0x4f0] sm:$0xff]  ;;  %v4686_v47 = vld [vmem:[#allocation6 + $0x508] sm:$0xff] }
 0xf7a   :  { %v4393_v35 = vmul.f32 %v9185_v36, %v10460_v26  ;;  %v9187_v29 = vpop.eup %9186  ;;  %v4663_v26 = vld [vmem:[#allocation6 + $0x450] sm:$0xff]  ;;  %v4690_v36 = vld [vmem:[#allocation6 + $0x528] sm:$0xff]  ;;  %v8223_v7 = vpack.c.bf16 %v4683_v62, %v4679_v14  ;;  %v4713_v14 = vld [vmem:[#allocation6 + $0x5e0] sm:$0xff] }
 0xf7b   :  { %v8215_v59 = vpack.c.bf16 %v4667_v2, %v4663_v26  ;;  %v8193_v4 = vpack.c.bf16 %v4690_v36, %v4686_v47  ;;  %v4695_v2 = vld [vmem:[#allocation6 + $0x550] sm:$0xff] }
 0xf7c   :  { %v10504_v39 = vadd.f32 %v4394_v15, %v4393_v35  ;;  %v4688_v15 = vld [vmem:[#allocation6 + $0x518] sm:$0xff]  ;;  %v8191_v35 = vpack.c.bf16 %v4681_v27, %v4677_v37  ;;  %v8231_v33 = vpack.c.bf16 %v4699_v22, %v4695_v2  ;;  %v8235_v37 = vpack.c.bf16 %v4707_v19, %v4703_v46  ;;  %v4709_v27 = vld [vmem:[#allocation6 + $0x5c0] sm:$0xff]  ;;  %v4711_v62 = vld [vmem:[#allocation6 + $0x5d0] sm:$0xff] }
 0xf7d   :  { %v8225_v25 = vpack.c.bf16 %v4692_v21, %v4688_v15  ;;  %v4715_v47 = vld [vmem:[#allocation6 + $0x5f0] sm:$0xff]  ;;  %v8207_v36 = vpack.c.bf16 %v4713_v14, %v4709_v27  ;;  %v5006_v21 = vld [vmem:[#allocation8 + $0x400] sm:$0xff]  ;;  %v5025_v2 = vld [vmem:[#allocation8 + $0x498] sm:$0xff] }
 0xf7e   :  { %9188 = vtanh.f32 %v10504_v39  ;;  %v8239_v15 = vpack.c.bf16 %v4715_v47, %v4711_v62  ;;  %v5033_v46 = vld [vmem:[#allocation8 + $0x4d8] sm:$0xff]  ;;  %v5036_v27 = vld [vmem:[#allocation8 + $0x4f0] sm:$0xff]  ;;  %v5043_v14 = vld [vmem:[#allocation8 + $0x528] sm:$0xff] }
 0xf7f   :  { %v5041_v62 = vld [vmem:[#allocation8 + $0x518] sm:$0xff] }
 0xf80   :  { %v5045_v47 = vld [vmem:[#allocation8 + $0x538] sm:$0xff] }
 0xf88   :  { %v9189_v42 = vpop.eup %9188 }
 0xf89   :  { %v10507_v13 = vmul.f32 %v9189_v42, %v9187_v29  ;;  %v4698_v29 = vld [vmem:[#allocation6 + $0x568] sm:$0xff]  ;;  %v4696_v42 = vld [vmem:[#allocation6 + $0x558] sm:$0xff] }
 0xf8b   :  { %4535 = vmatmul.mubr.f32.vlgmr.msra.gmra.mrb[30].mxu0 %v10507_v13  ;;  %4606 = vmatmul.mubr.f32.vlgmr.msra.gmra.mrb[30].mxu1 %v10507_v13 }
 0xf8c   :  { %8180 = vmatpush1.bf16.msra.mxu0 %v8179_v49  ;;  %8212 = vmatpush1.bf16.msra.mxu1 %v8211_v50  ;;  %v4700_v49 = vld [vmem:[#allocation6 + $0x578] sm:$0xff]  ;;  %v8195_v50 = vpack.c.bf16 %v4689_v5, %v4685_v9  ;;  %v5008_v9 = vld [vmem:[#allocation8 + $0x410] sm:$0xff] }
 0xf8d   :  { %8182 = vmatprep.subr.bf16.mxu0 %v8181_v51  ;;  %8214 = vmatprep.subr.bf16.mxu1 %v8213_v45  ;;  %v4697_v51 = vld [vmem:[#allocation6 + $0x560] sm:$0xff]  ;;  %v8197_v45 = vpack.c.bf16 %v4698_v29, %v4694_v53  ;;  %v8229_v26 = vpack.c.bf16 %v4700_v49, %v4696_v42  ;;  %v5012_v5 = vld [vmem:[#allocation8 + $0x430] sm:$0xff]  ;;  %v5021_v53 = vld [vmem:[#allocation8 + $0x478] sm:$0xff] }
 0xf8e   :  { %4804 = vmatprep.mubr.f32.mxu0 %v9386_v0  ;;  %4917 = vmatprep.mubr.f32.mxu1 %v9386_v0  ;;  %v5014_v29 = vld [vmem:[#allocation8 + $0x440] sm:$0xff]  ;;  %v10555_v49 = vpack.c.bf16 %v5021_v53, %v5017_v43  ;;  %v5053_v43 = vld [vmem:[#allocation8 + $0x578] sm:$0xff] }
 0xf8f   :  { %v5018_v42 = vld [vmem:[#allocation8 + $0x460] sm:$0xff] }
 0xf90   :  { %8184 = vmatpush1.bf16.msra.mxu0 %v8183_v52  ;;  %8216 = vmatpush1.bf16.msra.mxu1 %v8215_v59  ;;  %v4708_v52 = vld [vmem:[#allocation6 + $0x5b8] sm:$0xff]  ;;  %v8199_v59 = vpack.c.bf16 %v4697_v51, %v4693_v44  ;;  %v5020_v44 = vld [vmem:[#allocation8 + $0x470] sm:$0xff]  ;;  %v5046_v53 = vld [vmem:[#allocation8 + $0x540] sm:$0xff] }
 0xf91   :  { %8186 = vmatprep.subr.bf16.mxu0 %v8185_v11  ;;  %8218 = vmatprep.subr.bf16.mxu1 %v8217_v20  ;;  %v4705_v11 = vld [vmem:[#allocation6 + $0x5a0] sm:$0xff]  ;;  %v8201_v20 = vpack.c.bf16 %v4706_v10, %v4702_v18  ;;  %v8233_v57 = vpack.c.bf16 %v4708_v52, %v4704_v1  ;;  %v5029_v18 = vld [vmem:[#allocation8 + $0x4b8] sm:$0xff] }
 0xf92   :  { %v5022_v10 = vld [vmem:[#allocation8 + $0x480] sm:$0xff]  ;;  %v10567_v52 = vpack.c.bf16 %v5029_v18, %v5025_v2  ;;  %v5059_v2 = vld [vmem:[#allocation8 + $0x5a8] sm:$0xff]  ;;  %v5057_v18 = vld [vmem:[#allocation8 + $0x598] sm:$0xff] }
 0xf93   :  { %v5026_v1 = vld [vmem:[#allocation8 + $0x4a0] sm:$0xff] }
 0xf94   :  { %8188 = vmatpush1.bf16.msra.mxu0 %v8187_v24  ;;  %8220 = vmatpush1.bf16.msra.mxu1 %v8219_v3  ;;  %v4716_v24 = vld [vmem:[#allocation6 + $0x5f8] sm:$0xff]  ;;  %v8203_v3 = vpack.c.bf16 %v4705_v11, %v4701_v8  ;;  %v5028_v8 = vld [vmem:[#allocation8 + $0x4b0] sm:$0xff] }
 0xf95   :  { %8190 = vmatprep.subr.bf16.mxu0 %v8189_v56  ;;  %8222 = vmatprep.subr.bf16.mxu1 %v8221_v28  ;;  %v8205_v56 = vpack.c.bf16 %v4714_v41, %v4710_v23  ;;  %v8237_v28 = vpack.c.bf16 %v4716_v24, %v4712_v58  ;;  %v5037_v23 = vld [vmem:[#allocation8 + $0x4f8] sm:$0xff]  ;;  %v5030_v41 = vld [vmem:[#allocation8 + $0x4c0] sm:$0xff] }
 0xf96   :  { %v5034_v58 = vld [vmem:[#allocation8 + $0x4e0] sm:$0xff]  ;;  %v10579_v24 = vpack.c.bf16 %v5037_v23, %v5033_v46  ;;  %v5056_v46 = vld [vmem:[#allocation8 + $0x590] sm:$0xff] }
 0xf97   :  { %v5060_v23 = vld [vmem:[#allocation8 + $0x5b0] sm:$0xff] }
 0xf98   :  { %8192 = vmatpush1.bf16.msra.mxu0 %v8191_v35  ;;  %8224 = vmatpush1.bf16.msra.mxu1 %v8223_v7 }
 0xf99   :  { %8194 = vmatprep.subr.bf16.mxu0 %v8193_v4  ;;  %8226 = vmatprep.subr.bf16.mxu1 %v8225_v25  ;;  %v5015_v4 = vld [vmem:[#allocation8 + $0x448] sm:$0xff] }
 0xf9a   :  { %v5019_v25 = vld [vmem:[#allocation8 + $0x468] sm:$0xff] }
 0xf9b   :  { %v10553_v63 = vpack.c.bf16 %v5019_v25, %v5015_v4  ;;  %v5049_v25 = vld [vmem:[#allocation8 + $0x558] sm:$0xff] }
 0xf9c   :  { %8196 = vmatpush1.bf16.msra.mxu0 %v8195_v50  ;;  %8228 = vmatpush1.bf16.msra.mxu1 %v8227_v32  ;;  %v10557_v50 = vpack.c.bf16 %v5018_v42, %v5014_v29  ;;  %v5016_v32 = vld [vmem:[#allocation8 + $0x450] sm:$0xff]  ;;  %v10601_v29 = vpack.c.bf16 %v5053_v43, %v5049_v25  ;;  %v5050_v42 = vld [vmem:[#allocation8 + $0x560] sm:$0xff] }
 0xf9d   :  { %8198 = vmatprep.subr.bf16.mxu0 %v8197_v45  ;;  %8230 = vmatprep.subr.bf16.mxu1 %v8229_v26  ;;  %v10560_v51 = vpack.c.bf16 %v5020_v44, %v5016_v32  ;;  %v5023_v45 = vld [vmem:[#allocation8 + $0x488] sm:$0xff]  ;;  %v5048_v32 = vld [vmem:[#allocation8 + $0x550] sm:$0xff] }
 0xf9e   :  { %v5027_v26 = vld [vmem:[#allocation8 + $0x4a8] sm:$0xff]  ;;  %v5052_v44 = vld [vmem:[#allocation8 + $0x570] sm:$0xff] }
 0xf9f   :  { %v10565_v22 = vpack.c.bf16 %v5027_v26, %v5023_v45  ;;  %v10604_v45 = vpack.c.bf16 %v5050_v42, %v5046_v53  ;;  %v5055_v26 = vld [vmem:[#allocation8 + $0x588] sm:$0xff] }
 0xfa0   :  { %8200 = vmatpush1.bf16.msra.mxu0 %v8199_v59  ;;  %8232 = vmatpush1.bf16.msra.mxu1 %v8231_v33  ;;  %v10569_v59 = vpack.c.bf16 %v5026_v1, %v5022_v10  ;;  %v5024_v33 = vld [vmem:[#allocation8 + $0x490] sm:$0xff]  ;;  %v10608_v10 = vpack.c.bf16 %v5052_v44, %v5048_v32  ;;  %v10610_v1 = vpack.c.bf16 %v5059_v2, %v5055_v26 }
 0xfa1   :  { %8202 = vmatprep.subr.bf16.mxu0 %v8201_v20  ;;  %8234 = vmatprep.subr.bf16.mxu1 %v8233_v57  ;;  %v10572_v11 = vpack.c.bf16 %v5028_v8, %v5024_v33  ;;  %v5031_v20 = vld [vmem:[#allocation8 + $0x4c8] sm:$0xff]  ;;  %v5061_v33 = vld [vmem:[#allocation8 + $0x5b8] sm:$0xff]  ;;  %v5054_v8 = vld [vmem:[#allocation8 + $0x580] sm:$0xff] }
 0xfa2   :  { %v5035_v57 = vld [vmem:[#allocation8 + $0x4e8] sm:$0xff] }
 0xfa3   :  { %v10577_v19 = vpack.c.bf16 %v5035_v57, %v5031_v20  ;;  %v5058_v20 = vld [vmem:[#allocation8 + $0x5a0] sm:$0xff]  ;;  %v10613_v57 = vpack.c.bf16 %v5061_v33, %v5057_v18 }
 0xfa4   :  { %8204 = vmatpush1.bf16.msra.mxu0 %v8203_v3  ;;  %8236 = vmatpush1.bf16.msra.mxu1 %v8235_v37  ;;  %v10581_v3 = vpack.c.bf16 %v5034_v58, %v5030_v41  ;;  %v5032_v37 = vld [vmem:[#allocation8 + $0x4d0] sm:$0xff]  ;;  %v10616_v41 = vpack.c.bf16 %v5058_v20, %v5054_v8  ;;  %v10620_v58 = vpack.c.bf16 %v5060_v23, %v5056_v46 }
 0xfa5   :  { %8206 = vmatprep.subr.bf16.mxu0 %v8205_v56  ;;  %8238 = vmatprep.subr.bf16.mxu1 %v8237_v28  ;;  %v5039_v56 = vld [vmem:[#allocation8 + $0x508] sm:$0xff]  ;;  %v10584_v28 = vpack.c.bf16 %v5036_v27, %v5032_v37 }
 0xfa6   :  { %v5063_v37 = vld [vmem:[#allocation8 + $0x5c8] sm:$0xff] }
 0xfa7   :  { %v5067_v27 = vld [vmem:[#allocation8 + $0x5e8] sm:$0xff] }
 0xfa8   :  { %8208 = vmatpush1.bf16.msra.mxu0 %v8207_v36  ;;  %8240 = vmatpush1.bf16.msra.mxu1 %v8239_v15  ;;  %v10588_v36 = vpack.c.bf16 %v5043_v14, %v5039_v56  ;;  %v10590_v15 = vpack.c.bf16 %v5045_v47, %v5041_v62  ;;  %v5065_v56 = vld [vmem:[#allocation8 + $0x5d8] sm:$0xff]  ;;  %v10625_v14 = vpack.c.bf16 %v5067_v27, %v5063_v37  ;;  %v5062_v47 = vld [vmem:[#allocation8 + $0x5c0] sm:$0xff] }
 0xfa9   :  { %v5069_v62 = vld [vmem:[#allocation8 + $0x5f8] sm:$0xff] }
 0xfab   :  { %4805 = vmatmul.mubr.f32.vlgmr.msra.gmra.mrb[32].mxu0 %v10169_v30  ;;  %4918 = vmatmul.mubr.f32.vlgmr.msra.gmra.mrb[32].mxu1 %v10169_v30  ;;  %v5007_v30 = vld [vmem:[#allocation8 + $0x408] sm:$0xff] }
 0xfac   :  { %4810 = vmatprep.mubr.f32.mxu0 %v9386_v0  ;;  %4923 = vmatprep.mubr.f32.mxu1 %v9386_v0 }
 0xfaf   :  { %4811 = vmatmul.mubr.f32.gmra.mrb[34].mxu0 %v10215_v61  ;;  %4924 = vmatmul.mubr.f32.gmra.mrb[34].mxu1 %v10215_v61  ;;  %v5011_v61 = vld [vmem:[#allocation8 + $0x428] sm:$0xff] }
 0xfb0   :  { %4816 = vmatprep.mubr.f32.mxu0 %v9386_v0  ;;  %4929 = vmatprep.mubr.f32.mxu1 %v9386_v0 }
 0xfb3   :  { %4817 = vmatmul.mubr.f32.gmra.mrb[36].mxu0 %v10259_v17  ;;  %4930 = vmatmul.mubr.f32.gmra.mrb[36].mxu1 %v10259_v17  ;;  %v5009_v17 = vld [vmem:[#allocation8 + $0x418] sm:$0xff] }
 0xfb4   :  { %4822 = vmatprep.mubr.f32.mxu0 %v9386_v0  ;;  %4935 = vmatprep.mubr.f32.mxu1 %v9386_v0 }
 0xfb7   :  { %4823 = vmatmul.mubr.f32.gmra.mrb[38].mxu0 %v10371_v16  ;;  %4936 = vmatmul.mubr.f32.gmra.mrb[38].mxu1 %v10371_v16  ;;  %v10541_v16 = vpack.c.bf16 %v5011_v61, %v5007_v30  ;;  %v5038_v30 = vld [vmem:[#allocation8 + $0x500] sm:$0xff] }
 0xfb8   :  { %4828 = vmatprep.mubr.f32.mxu0 %v9386_v0  ;;  %4941 = vmatprep.mubr.f32.mxu1 %v9386_v0  ;;  %v5042_v61 = vld [vmem:[#allocation8 + $0x520] sm:$0xff] }
 0xfb9   :  { %8242 = vmatprep.subr.bf16.mxu0 %v10541_v16 }
 0xfbb   :  { %4829 = vmatmul.mubr.f32.gmra.mrb[40].mxu0 %v10417_v12  ;;  %4942 = vmatmul.mubr.f32.gmra.mrb[40].mxu1 %v10417_v12  ;;  %v5013_v12 = vld [vmem:[#allocation8 + $0x438] sm:$0xff] }
 0xfbc   :  { %4834 = vmatprep.mubr.f32.mxu0 %v9386_v0  ;;  %4947 = vmatprep.mubr.f32.mxu1 %v9386_v0  ;;  %v10543_v35 = vpack.c.bf16 %v5013_v12, %v5009_v17  ;;  %v5040_v17 = vld [vmem:[#allocation8 + $0x510] sm:$0xff]  ;;  %v10593_v12 = vpack.c.bf16 %v5042_v61, %v5038_v30  ;;  %v5066_v30 = vld [vmem:[#allocation8 + $0x5e0] sm:$0xff]  ;;  %v10627_v61 = vpack.c.bf16 %v5069_v62, %v5065_v56 }
 0xfbe   :  { %8274 = vmatprep.subr.bf16.mxu1 %v10543_v35 }
 0xfbf   :  { %4835 = vmatmul.mubr.f32.gmra.mrb[42].mxu0 %v10463_v60  ;;  %4948 = vmatmul.mubr.f32.gmra.mrb[42].mxu1 %v10463_v60  ;;  %v5010_v60 = vld [vmem:[#allocation8 + $0x420] sm:$0xff] }
 0xfc0   :  { %4840 = vmatprep.mubr.f32.mxu0 %v9386_v0  ;;  %4953 = vmatprep.mubr.f32.mxu1 %v9386_v0  ;;  %v10545_v7 = vpack.c.bf16 %v5010_v60, %v5006_v21  ;;  %v5044_v21 = vld [vmem:[#allocation8 + $0x530] sm:$0xff]  ;;  %v5047_v60 = vld [vmem:[#allocation8 + $0x548] sm:$0xff] }
 0xfc2   :  { %8244 = vmatpush1.bf16.msra.mxu0 %v10545_v7 }
 0xfc3   :  { %4841 = vmatmul.mubr.f32.gmra.mrb[44].mxu0 %v10507_v13  ;;  %4954 = vmatmul.mubr.f32.gmra.mrb[44].mxu1 %v10507_v13  ;;  %v10548_v13 = vpack.c.bf16 %v5012_v5, %v5008_v9  ;;  %v5051_v9 = vld [vmem:[#allocation8 + $0x568] sm:$0xff]  ;;  %v10597_v5 = vpack.c.bf16 %v5044_v21, %v5040_v17  ;;  %v10629_v17 = vpack.c.bf16 %v5066_v30, %v5062_v47  ;;  %v5064_v21 = vld [vmem:[#allocation8 + $0x5d0] sm:$0xff] }
 0xfc4   :  { %4846 = vmatprep.mubr.f32.mxu0 %v9386_v0  ;;  %4959 = vmatprep.mubr.f32.mxu1 %v9386_v0  ;;  %v10599_v4 = vpack.c.bf16 %v5051_v9, %v5047_v60  ;;  %v5068_v60 = vld [vmem:[#allocation8 + $0x5f0] sm:$0xff] }
 0xfc5   :  { %8276 = vmatpush1.bf16.msra.mxu1 %v10548_v13  ;;  %8246 = vmatprep.subr.bf16.mxu0 %v10553_v63  ;;  %v10632_v9 = vpack.c.bf16 %v5068_v60, %v5064_v21 }
 0xfc6   :  { %8278 = vmatprep.subr.bf16.mxu1 %v10555_v49  ;;  %8248 = vmatpush1.bf16.msra.mxu0 %v10557_v50 }
 0xfc7   :  { %8250 = vmatprep.subr.bf16.mxu0 %v10565_v22 }
 0xfc9   :  { %8280 = vmatpush1.bf16.msra.mxu1 %v10560_v51 }
 0xfca   :  { %8282 = vmatprep.subr.bf16.mxu1 %v10567_v52  ;;  %8252 = vmatpush1.bf16.msra.mxu0 %v10569_v59 }
 0xfcb   :  { %8254 = vmatprep.subr.bf16.mxu0 %v10577_v19 }
 0xfcd   :  { %8284 = vmatpush1.bf16.msra.mxu1 %v10572_v11 }
 0xfce   :  { %8286 = vmatprep.subr.bf16.mxu1 %v10579_v24  ;;  %8256 = vmatpush1.bf16.msra.mxu0 %v10581_v3 }
 0xfcf   :  { %8258 = vmatprep.subr.bf16.mxu0 %v10588_v36 }
 0xfd1   :  { %8288 = vmatpush1.bf16.msra.mxu1 %v10584_v28 }
 0xfd2   :  { %8290 = vmatprep.subr.bf16.mxu1 %v10590_v15  ;;  %8260 = vmatpush1.bf16.msra.mxu0 %v10593_v12 }
 0xfd3   :  { %8262 = vmatprep.subr.bf16.mxu0 %v10599_v4 }
 0xfd5   :  { %8292 = vmatpush1.bf16.msra.mxu1 %v10597_v5 }
 0xfd6   :  { %8294 = vmatprep.subr.bf16.mxu1 %v10601_v29  ;;  %8264 = vmatpush1.bf16.msra.mxu0 %v10604_v45 }
 0xfd7   :  { %8266 = vmatprep.subr.bf16.mxu0 %v10610_v1 }
 0xfd9   :  { %8296 = vmatpush1.bf16.msra.mxu1 %v10608_v10 }
 0xfda   :  { %8298 = vmatprep.subr.bf16.mxu1 %v10613_v57  ;;  %8268 = vmatpush1.bf16.msra.mxu0 %v10616_v41 }
 0xfdb   :  { %8270 = vmatprep.subr.bf16.mxu0 %v10625_v14 }
 0xfdd   :  { %8300 = vmatpush1.bf16.msra.mxu1 %v10620_v58 }
 0xfde   :  { %8302 = vmatprep.subr.bf16.mxu1 %v10627_v61  ;;  %8272 = vmatpush1.bf16.msra.mxu0 %v10629_v17 }
 0xfdf   :  { %8306 = vmatprep.subr.bf16.mxu0 %v10541_v16 }
 0xfe1   :  { %8304 = vmatpush1.bf16.msra.mxu1 %v10632_v9 }
 0xfe2   :  { %8338 = vmatprep.subr.bf16.mxu1 %v10543_v35 }
0x105e   :  { %v4536_v25 = vpop.f32.mrb[30].mxu0  ;;  %v4607_v43 = vpop.f32.mrb[30].mxu1 }
0x105f   :  { %v8799_v53 = vadd.f32 %v4536_v25, %v10151_v40  ;;  %v4538_v42 = vpop.f32.mrb[31].mxu0  ;;  %v4609_v32 = vpop.f32.mrb[31].mxu1  ;;  %v8815_v8 = vadd.f32 %v4607_v43, %v10163_v48 }
0x1060   :  { %v8800_v44 = vadd.f32 %v4538_v42, %v10154_v54  ;;  %v8816_v18 = vadd.f32 %v4609_v32, %v10159_v6 }
0x1061   :  { %v6997_v26 = vmul.f32 -1.442695, %v8799_v53 }
0x1062   :  { %v6998_v2 = vmul.f32 -1.442695, %v8800_v44  ;;  %v6999_v33 = vmul.f32 -1.442695, %v8816_v18 }
0x1063   :  { %9190 = vpow2.f32 %v6997_v26 }
0x1064   :  { %9192 = vpow2.f32 %v6998_v2 }
0x1065   :  { %9194 = vpow2.f32 %v6999_v33 }
0x1066   :  { %9196 = vtanh.f32 %v8815_v8 }
0x106d   :  { %v9191_v20 = vpop.eup %9190 }
0x106e   :  { %v9193_v46 = vpop.eup %9192  ;;  %v4619_v23 = vadd.f32 1.0, %v9191_v20 }
0x106f   :  { %v4625_v37 = vadd.f32 1.0, %v9193_v46  ;;  %v9195_v40 = vpop.eup %9194 }
0x1070   :  { %9198 = vrcp.f32 %v4619_v23  ;;  %v9197_v27 = vpop.eup %9196  ;;  %v4632_v47 = vadd.f32 1.0, %v9195_v40 }
0x1071   :  { %9200 = vrcp.f32 %v4625_v37 }
0x1072   :  { %9202 = vrcp.f32 %v4632_v47 }
0x107a   :  { %v9199_v54 = vpop.eup %9198 }
0x107b   :  { %v9201_v56 = vpop.eup %9200  ;;  %v4637_v62 = vmul.f32 %v9199_v54, %v9197_v27 }
0x107c   :  { %v4636_v30 = vmul.f32 %v9201_v56, %v10504_v39  ;;  %v9203_v48 = vpop.eup %9202  ;;  %v7000_v39 = vld [vmem:[%s11046_s3 + $0x8] sm:$0xf] }
0x107d   :  { %v10686_v25 = vrot.slane %v7000_v39, %v9612_v31  ;;  %v10689_v43 = vrot.slane %v7000_v39, %v9617_v34  ;;  %v10694_v8 = vrot.slane %v7000_v39, %v9625_v38  ;;  %v10698_v34 = vrot.slane %v7000_v39, %v9632_v55 }
0x107e   :  { %v4638_v6 = vadd.f32 %v4637_v62, %v4636_v30 }
0x1080   :  { %9204 = vtanh.f32 %v4638_v6 }
0x108a   :  { %v9205_v21 = vpop.eup %9204 }
0x108b   :  { %v4640_v60 = vmul.f32 %v9205_v21, %v9203_v48 }
0x108d   :  { %4847 = vmatmul.mubr.f32.gmra.mrb[46].mxu0 %v4640_v60  ;;  %4960 = vmatmul.mubr.f32.gmra.mrb[46].mxu1 %v4640_v60 }
0x108e   :  { %5134 = vmatprep.mubr.f32.mxu0 %v9386_v0  ;;  %5205 = vmatprep.mubr.f32.mxu1 %v9386_v0 }
0x1091   :  { %5135 = vmatmul.mubr.f32.vlgmr.msra.gmra.mrb[32].mxu0 %v9386_v0  ;;  %5206 = vmatmul.mubr.f32.vlgmr.msra.gmra.mrb[32].mxu1 %v9386_v0 }
0x1092   :  { %8308 = vmatpush1.bf16.msra.mxu0 %v10545_v7  ;;  %8340 = vmatpush1.bf16.msra.mxu1 %v10548_v13 }
0x1093   :  { %8310 = vmatprep.subr.bf16.mxu0 %v10553_v63  ;;  %8342 = vmatprep.subr.bf16.mxu1 %v10555_v49 }
0x1094   :  { %5377 = vmatprep.mubr.f32.mxu0 %v9386_v0  ;;  %5448 = vmatprep.mubr.f32.mxu1 %v9386_v0 }
0x1096   :  { %8312 = vmatpush1.bf16.msra.mxu0 %v10557_v50  ;;  %8344 = vmatpush1.bf16.msra.mxu1 %v10560_v51 }
0x1097   :  { %8314 = vmatprep.subr.bf16.mxu0 %v10565_v22  ;;  %8346 = vmatprep.subr.bf16.mxu1 %v10567_v52 }
0x109a   :  { %8316 = vmatpush1.bf16.msra.mxu0 %v10569_v59  ;;  %8348 = vmatpush1.bf16.msra.mxu1 %v10572_v11 }
0x109b   :  { %8318 = vmatprep.subr.bf16.mxu0 %v10577_v19  ;;  %8350 = vmatprep.subr.bf16.mxu1 %v10579_v24 }
0x109e   :  { %8320 = vmatpush1.bf16.msra.mxu0 %v10581_v3  ;;  %8352 = vmatpush1.bf16.msra.mxu1 %v10584_v28 }
0x109f   :  { %8322 = vmatprep.subr.bf16.mxu0 %v10588_v36  ;;  %8354 = vmatprep.subr.bf16.mxu1 %v10590_v15 }
0x10a2   :  { %8324 = vmatpush1.bf16.msra.mxu0 %v10593_v12  ;;  %8356 = vmatpush1.bf16.msra.mxu1 %v10597_v5 }
0x10a3   :  { %8326 = vmatprep.subr.bf16.mxu0 %v10599_v4  ;;  %8358 = vmatprep.subr.bf16.mxu1 %v10601_v29 }
0x10a6   :  { %8328 = vmatpush1.bf16.msra.mxu0 %v10604_v45  ;;  %8360 = vmatpush1.bf16.msra.mxu1 %v10608_v10 }
0x10a7   :  { %8330 = vmatprep.subr.bf16.mxu0 %v10610_v1  ;;  %8362 = vmatprep.subr.bf16.mxu1 %v10613_v57 }
0x10aa   :  { %8332 = vmatpush1.bf16.msra.mxu0 %v10616_v41  ;;  %8364 = vmatpush1.bf16.msra.mxu1 %v10620_v58 }
0x10ab   :  { %8334 = vmatprep.subr.bf16.mxu0 %v10625_v14  ;;  %8366 = vmatprep.subr.bf16.mxu1 %v10627_v61 }
0x10ae   :  { %8336 = vmatpush1.bf16.msra.mxu0 %v10629_v17  ;;  %8368 = vmatpush1.bf16.msra.mxu1 %v10632_v9 }
0x10af   :  { %8370 = vmatprep.subr.bf16.mxu0 %v10541_v16  ;;  %8402 = vmatprep.subr.bf16.mxu1 %v10543_v35 }
0x1164   :  { %v5136_v53 = vpop.f32.mrb[32].mxu0  ;;  %v5207_v42 = vpop.f32.mrb[32].mxu1 }
0x1165   :  { %v8817_v32 = vadd.f32 %v5136_v53, %v10686_v25  ;;  %v5138_v44 = vpop.f32.mrb[33].mxu0  ;;  %v5209_v26 = vpop.f32.mrb[33].mxu1  ;;  %v8833_v46 = vadd.f32 %v5207_v42, %v10698_v34 }
0x1166   :  { %v8818_v2 = vadd.f32 %v5138_v44, %v10689_v43  ;;  %v8834_v31 = vadd.f32 %v5209_v26, %v10694_v8 }
0x1167   :  { %v7001_v18 = vmul.f32 -1.442695, %v8817_v32 }
0x1168   :  { %v7002_v33 = vmul.f32 -1.442695, %v8818_v2  ;;  %v7003_v20 = vmul.f32 -1.442695, %v8834_v31 }
0x1169   :  { %9206 = vpow2.f32 %v7001_v18 }
0x116a   :  { %9208 = vpow2.f32 %v7002_v33 }
0x116b   :  { %9210 = vpow2.f32 %v7003_v20 }
0x116c   :  { %9212 = vtanh.f32 %v8833_v46 }
0x1173   :  { %v9207_v23 = vpop.eup %9206 }
0x1174   :  { %v9209_v37 = vpop.eup %9208  ;;  %v5219_v40 = vadd.f32 1.0, %v9207_v23 }
0x1175   :  { %v5225_v27 = vadd.f32 1.0, %v9209_v37  ;;  %v9211_v38 = vpop.eup %9210 }
0x1176   :  { %9214 = vrcp.f32 %v5219_v40  ;;  %v9213_v54 = vpop.eup %9212  ;;  %v5232_v30 = vadd.f32 1.0, %v9211_v38 }
0x1177   :  { %9216 = vrcp.f32 %v5225_v27 }
0x1178   :  { %9218 = vrcp.f32 %v5232_v30 }
0x1180   :  { %v9215_v56 = vpop.eup %9214 }
0x1181   :  { %v9217_v62 = vpop.eup %9216  ;;  %v5237_v47 = vmul.f32 %v9215_v56, %v9213_v54 }
0x1182   :  { %v5236_v6 = vmul.f32 0.0, %v9217_v62  ;;  %v9219_v48 = vpop.eup %9218 }
0x1184   :  { %v10701_v55 = vadd.f32 %v5237_v47, %v5236_v6 }
0x1186   :  { %9220 = vtanh.f32 %v10701_v55 }
0x1190   :  { %v9221_v21 = vpop.eup %9220 }
0x1191   :  { %v5240_v60 = vmul.f32 %v9221_v21, %v9219_v48  ;;  %v5978_v21 = vld [vmem:[#allocation8 + $0x400] sm:$0xff] }
0x1193   :  { %5243 = vst [vmem:[%s11047_s4] sm:$0xff] %v5240_v60  ;;  %5378 = vmatmul.mubr.f32.vlgmr.msra.gmra.mrb[34].mxu0 %v5240_v60  ;;  %5449 = vmatmul.mubr.f32.vlgmr.msra.gmra.mrb[34].mxu1 %v5240_v60  ;;  %v5982_v60 = vld [vmem:[#allocation8 + $0x420] sm:$0xff] }
0x1194   :  { %8372 = vmatpush1.bf16.msra.mxu0 %v10545_v7  ;;  %8404 = vmatpush1.bf16.msra.mxu1 %v10548_v13 }
0x1195   :  { %8374 = vmatprep.subr.bf16.mxu0 %v10553_v63  ;;  %8406 = vmatprep.subr.bf16.mxu1 %v10555_v49 }
0x1196   :  { %5620 = vmatprep.mubr.f32.mxu0 %v9386_v0  ;;  %5691 = vmatprep.mubr.f32.mxu1 %v9386_v0 }
0x1198   :  { %8376 = vmatpush1.bf16.msra.mxu0 %v10557_v50  ;;  %8408 = vmatpush1.bf16.msra.mxu1 %v10560_v51 }
0x1199   :  { %8378 = vmatprep.subr.bf16.mxu0 %v10565_v22  ;;  %8410 = vmatprep.subr.bf16.mxu1 %v10567_v52 }
0x119c   :  { %8380 = vmatpush1.bf16.msra.mxu0 %v10569_v59  ;;  %8412 = vmatpush1.bf16.msra.mxu1 %v10572_v11 }
0x119d   :  { %8382 = vmatprep.subr.bf16.mxu0 %v10577_v19  ;;  %8414 = vmatprep.subr.bf16.mxu1 %v10579_v24 }
0x11a0   :  { %8384 = vmatpush1.bf16.msra.mxu0 %v10581_v3  ;;  %8416 = vmatpush1.bf16.msra.mxu1 %v10584_v28 }
0x11a1   :  { %8386 = vmatprep.subr.bf16.mxu0 %v10588_v36  ;;  %8418 = vmatprep.subr.bf16.mxu1 %v10590_v15 }
0x11a4   :  { %8388 = vmatpush1.bf16.msra.mxu0 %v10593_v12  ;;  %8420 = vmatpush1.bf16.msra.mxu1 %v10597_v5 }
0x11a5   :  { %8390 = vmatprep.subr.bf16.mxu0 %v10599_v4  ;;  %8422 = vmatprep.subr.bf16.mxu1 %v10601_v29 }
0x11a8   :  { %8392 = vmatpush1.bf16.msra.mxu0 %v10604_v45  ;;  %8424 = vmatpush1.bf16.msra.mxu1 %v10608_v10 }
0x11a9   :  { %8394 = vmatprep.subr.bf16.mxu0 %v10610_v1  ;;  %8426 = vmatprep.subr.bf16.mxu1 %v10613_v57 }
0x11ac   :  { %8396 = vmatpush1.bf16.msra.mxu0 %v10616_v41  ;;  %8428 = vmatpush1.bf16.msra.mxu1 %v10620_v58 }
0x11ad   :  { %8398 = vmatprep.subr.bf16.mxu0 %v10625_v14  ;;  %8430 = vmatprep.subr.bf16.mxu1 %v10627_v61 }
0x11b0   :  { %8400 = vmatpush1.bf16.msra.mxu0 %v10629_v17  ;;  %8432 = vmatpush1.bf16.msra.mxu1 %v10632_v9 }
0x11b1   :  { %8434 = vmatprep.subr.bf16.mxu0 %v10541_v16  ;;  %8466 = vmatprep.subr.bf16.mxu1 %v10543_v35 }
0x1266   :  { %v5379_v39 = vpop.f32.mrb[34].mxu0  ;;  %v5450_v53 = vpop.f32.mrb[34].mxu1 }
0x1267   :  { %v8819_v42 = vadd.f32 %v5379_v39, %v10686_v25  ;;  %v5381_v32 = vpop.f32.mrb[35].mxu0  ;;  %v5452_v44 = vpop.f32.mrb[35].mxu1  ;;  %v8835_v20 = vadd.f32 %v5450_v53, %v10698_v34  ;;  %v10801_v53 = vpack.c.bf16 %v5982_v60, %v5978_v21  ;;  %v6021_v21 = vld [vmem:[#allocation8 + $0x558] sm:$0xff] }
0x1268   :  { %v8820_v26 = vadd.f32 %v5381_v32, %v10689_v43  ;;  %v8836_v33 = vadd.f32 %v5452_v44, %v10694_v8  ;;  %v5984_v32 = vld [vmem:[#allocation8 + $0x430] sm:$0xff] }
0x1269   :  { %v7004_v2 = vmul.f32 -1.442695, %v8819_v42  ;;  %v5980_v42 = vld [vmem:[#allocation8 + $0x410] sm:$0xff] }
0x126a   :  { %v7005_v18 = vmul.f32 -1.442695, %v8820_v26  ;;  %v7006_v31 = vmul.f32 -1.442695, %v8836_v33  ;;  %v10804_v44 = vpack.c.bf16 %v5984_v32, %v5980_v42  ;;  %v5987_v26 = vld [vmem:[#allocation8 + $0x448] sm:$0xff]  ;;  %v6025_v42 = vld [vmem:[#allocation8 + $0x578] sm:$0xff] }
0x126b   :  { %9222 = vpow2.f32 %v7004_v2  ;;  %v5991_v2 = vld [vmem:[#allocation8 + $0x468] sm:$0xff]  ;;  %v6018_v32 = vld [vmem:[#allocation8 + $0x540] sm:$0xff] }
0x126c   :  { %9224 = vpow2.f32 %v7005_v18  ;;  %v5989_v18 = vld [vmem:[#allocation8 + $0x458] sm:$0xff]  ;;  %v10809_v33 = vpack.c.bf16 %v5991_v2, %v5987_v26  ;;  %v6022_v26 = vld [vmem:[#allocation8 + $0x560] sm:$0xff]  ;;  %v10859_v2 = vpack.c.bf16 %v6025_v42, %v6021_v21 }
0x126d   :  { %9226 = vpow2.f32 %v7006_v31  ;;  %v5993_v31 = vld [vmem:[#allocation8 + $0x478] sm:$0xff] }
0x126e   :  { %9228 = vtanh.f32 %v8835_v20  ;;  %v5986_v20 = vld [vmem:[#allocation8 + $0x440] sm:$0xff] }
0x1275   :  { %v9223_v16 = vpop.eup %9222 }
0x1276   :  { %v9225_v46 = vpop.eup %9224  ;;  %v5462_v35 = vadd.f32 1.0, %v9223_v16  ;;  %v5990_v16 = vld [vmem:[#allocation8 + $0x460] sm:$0xff] }
0x1277   :  { %v5468_v23 = vadd.f32 1.0, %v9225_v46  ;;  %v9227_v37 = vpop.eup %9226  ;;  %v10811_v46 = vpack.c.bf16 %v5993_v31, %v5989_v18  ;;  %v10861_v18 = vpack.c.bf16 %v6022_v26, %v6018_v32  ;;  %v6020_v31 = vld [vmem:[#allocation8 + $0x550] sm:$0xff] }
0x1278   :  { %9230 = vrcp.f32 %v5462_v35  ;;  %v9229_v40 = vpop.eup %9228  ;;  %v5475_v56 = vadd.f32 1.0, %v9227_v37  ;;  %v10813_v35 = vpack.c.bf16 %v5990_v16, %v5986_v20  ;;  %v5992_v37 = vld [vmem:[#allocation8 + $0x470] sm:$0xff]  ;;  %v6027_v16 = vld [vmem:[#allocation8 + $0x588] sm:$0xff] }
0x1279   :  { %9232 = vrcp.f32 %v5468_v23  ;;  %v5988_v23 = vld [vmem:[#allocation8 + $0x450] sm:$0xff] }
0x127a   :  { %9234 = vrcp.f32 %v5475_v56  ;;  %v6024_v20 = vld [vmem:[#allocation8 + $0x570] sm:$0xff] }
0x1282   :  { %v9231_v27 = vpop.eup %9230 }
0x1283   :  { %v9233_v38 = vpop.eup %9232  ;;  %v5480_v54 = vmul.f32 %v9231_v27, %v9229_v40  ;;  %v10816_v40 = vpack.c.bf16 %v5992_v37, %v5988_v23  ;;  %v5995_v27 = vld [vmem:[#allocation8 + $0x488] sm:$0xff]  ;;  %v10864_v23 = vpack.c.bf16 %v6024_v20, %v6020_v31 }
0x1284   :  { %v5479_v62 = vmul.f32 %v9233_v38, %v10701_v55  ;;  %v9235_v30 = vpop.eup %9234  ;;  %v5985_v55 = vld [vmem:[#allocation8 + $0x438] sm:$0xff]  ;;  %v5999_v38 = vld [vmem:[#allocation8 + $0x4a8] sm:$0xff] }
0x1285   :  { %v10821_v56 = vpack.c.bf16 %v5999_v38, %v5995_v27  ;;  %v6031_v37 = vld [vmem:[#allocation8 + $0x5a8] sm:$0xff]  ;;  %v6029_v27 = vld [vmem:[#allocation8 + $0x598] sm:$0xff] }
0x1286   :  { %v10746_v47 = vadd.f32 %v5480_v54, %v5479_v62  ;;  %v5997_v54 = vld [vmem:[#allocation8 + $0x498] sm:$0xff] }
0x1287   :  { %v6001_v62 = vld [vmem:[#allocation8 + $0x4b8] sm:$0xff] }
0x1288   :  { %9236 = vtanh.f32 %v10746_v47  ;;  %v6033_v38 = vld [vmem:[#allocation8 + $0x5b8] sm:$0xff] }
0x1292   :  { %v9237_v6 = vpop.eup %9236 }
0x1293   :  { %v5483_v48 = vmul.f32 %v9237_v6, %v9235_v30  ;;  %v5998_v30 = vld [vmem:[#allocation8 + $0x4a0] sm:$0xff]  ;;  %v10823_v6 = vpack.c.bf16 %v6001_v62, %v5997_v54  ;;  %v10867_v54 = vpack.c.bf16 %v6031_v37, %v6027_v16  ;;  %v10869_v62 = vpack.c.bf16 %v6033_v38, %v6029_v27 }
0x1295   :  { %5486 = vst [vmem:[%s11047_s4 + $0x8] sm:$0xff] %v5483_v48  ;;  %5621 = vmatmul.mubr.f32.vlgmr.msra.gmra.mrb[36].mxu0 %v5483_v48  ;;  %5692 = vmatmul.mubr.f32.vlgmr.msra.gmra.mrb[36].mxu1 %v5483_v48 }
0x1296   :  { %8436 = vmatpush1.bf16.msra.mxu0 %v10545_v7  ;;  %8468 = vmatpush1.bf16.msra.mxu1 %v10548_v13 }
0x1297   :  { %8438 = vmatprep.subr.bf16.mxu0 %v10553_v63  ;;  %8470 = vmatprep.subr.bf16.mxu1 %v10555_v49 }
0x1298   :  { %5863 = vmatprep.mubr.f32.mxu0 %v9386_v0  ;;  %5934 = vmatprep.mubr.f32.mxu1 %v9386_v0 }
0x129a   :  { %8440 = vmatpush1.bf16.msra.mxu0 %v10557_v50  ;;  %8472 = vmatpush1.bf16.msra.mxu1 %v10560_v51 }
0x129b   :  { %8442 = vmatprep.subr.bf16.mxu0 %v10565_v22  ;;  %8474 = vmatprep.subr.bf16.mxu1 %v10567_v52 }
0x129e   :  { %8444 = vmatpush1.bf16.msra.mxu0 %v10569_v59  ;;  %8476 = vmatpush1.bf16.msra.mxu1 %v10572_v11 }
0x129f   :  { %8446 = vmatprep.subr.bf16.mxu0 %v10577_v19  ;;  %8478 = vmatprep.subr.bf16.mxu1 %v10579_v24 }
0x12a2   :  { %8448 = vmatpush1.bf16.msra.mxu0 %v10581_v3  ;;  %8480 = vmatpush1.bf16.msra.mxu1 %v10584_v28 }
0x12a3   :  { %8450 = vmatprep.subr.bf16.mxu0 %v10588_v36  ;;  %8482 = vmatprep.subr.bf16.mxu1 %v10590_v15 }
0x12a6   :  { %8452 = vmatpush1.bf16.msra.mxu0 %v10593_v12  ;;  %8484 = vmatpush1.bf16.msra.mxu1 %v10597_v5 }
0x12a7   :  { %8454 = vmatprep.subr.bf16.mxu0 %v10599_v4  ;;  %8486 = vmatprep.subr.bf16.mxu1 %v10601_v29 }
0x12aa   :  { %8456 = vmatpush1.bf16.msra.mxu0 %v10604_v45  ;;  %8488 = vmatpush1.bf16.msra.mxu1 %v10608_v10 }
0x12ab   :  { %8458 = vmatprep.subr.bf16.mxu0 %v10610_v1  ;;  %8490 = vmatprep.subr.bf16.mxu1 %v10613_v57 }
0x12ae   :  { %8460 = vmatpush1.bf16.msra.mxu0 %v10616_v41  ;;  %8492 = vmatpush1.bf16.msra.mxu1 %v10620_v58 }
0x12af   :  { %8462 = vmatprep.subr.bf16.mxu0 %v10625_v14  ;;  %8494 = vmatprep.subr.bf16.mxu1 %v10627_v61  ;;  %v5979_v14 = vld [vmem:[#allocation8 + $0x408] sm:$0xff] }
0x12b0   :  { %v5983_v61 = vld [vmem:[#allocation8 + $0x428] sm:$0xff] }
0x12b2   :  { %8464 = vmatpush1.bf16.msra.mxu0 %v10629_v17  ;;  %8496 = vmatpush1.bf16.msra.mxu1 %v10632_v9  ;;  %v5981_v17 = vld [vmem:[#allocation8 + $0x418] sm:$0xff]  ;;  %v10797_v9 = vpack.c.bf16 %v5983_v61, %v5979_v14  ;;  %v6016_v14 = vld [vmem:[#allocation8 + $0x530] sm:$0xff] }
0x12b3   :  { %v10799_v39 = vpack.c.bf16 %v5985_v55, %v5981_v17  ;;  %v6019_v17 = vld [vmem:[#allocation8 + $0x548] sm:$0xff] }
0x12b4   :  { %8498 = vmatprep.subr.bf16.mxu0 %v10797_v9  ;;  %v6023_v55 = vld [vmem:[#allocation8 + $0x568] sm:$0xff] }
0x12b5   :  { %8530 = vmatprep.subr.bf16.mxu1 %v10799_v39  ;;  %v10856_v60 = vpack.c.bf16 %v6023_v55, %v6019_v17 }
0x1368   :  { %v5622_v7 = vpop.f32.mrb[36].mxu0  ;;  %v5693_v13 = vpop.f32.mrb[36].mxu1 }
0x1369   :  { %v8821_v63 = vadd.f32 %v5622_v7, %v10686_v25  ;;  %v5624_v49 = vpop.f32.mrb[37].mxu0  ;;  %v5695_v50 = vpop.f32.mrb[37].mxu1  ;;  %v8837_v19 = vadd.f32 %v5693_v13, %v10698_v34  ;;  %v5996_v7 = vld [vmem:[#allocation8 + $0x490] sm:$0xff] }
0x136a   :  { %v8822_v51 = vadd.f32 %v5624_v49, %v10689_v43  ;;  %v8838_v59 = vadd.f32 %v5695_v50, %v10694_v8  ;;  %v6000_v13 = vld [vmem:[#allocation8 + $0x4b0] sm:$0xff]  ;;  %v6003_v49 = vld [vmem:[#allocation8 + $0x4c8] sm:$0xff] }
0x136b   :  { %v7007_v22 = vmul.f32 -1.442695, %v8821_v63  ;;  %v10828_v63 = vpack.c.bf16 %v6000_v13, %v5996_v7  ;;  %v6007_v50 = vld [vmem:[#allocation8 + $0x4e8] sm:$0xff]  ;;  %v6028_v7 = vld [vmem:[#allocation8 + $0x590] sm:$0xff] }
0x136c   :  { %v7008_v52 = vmul.f32 -1.442695, %v8822_v51  ;;  %v7009_v11 = vmul.f32 -1.442695, %v8838_v59  ;;  %v6005_v51 = vld [vmem:[#allocation8 + $0x4d8] sm:$0xff]  ;;  %v6002_v59 = vld [vmem:[#allocation8 + $0x4c0] sm:$0xff] }
0x136d   :  { %9238 = vpow2.f32 %v7007_v22  ;;  %v10833_v22 = vpack.c.bf16 %v6007_v50, %v6003_v49  ;;  %v6032_v49 = vld [vmem:[#allocation8 + $0x5b0] sm:$0xff]  ;;  %v6035_v50 = vld [vmem:[#allocation8 + $0x5c8] sm:$0xff] }
0x136e   :  { %9240 = vpow2.f32 %v7008_v52  ;;  %v6009_v52 = vld [vmem:[#allocation8 + $0x4f8] sm:$0xff] }
0x136f   :  { %9242 = vpow2.f32 %v7009_v11  ;;  %v6006_v11 = vld [vmem:[#allocation8 + $0x4e0] sm:$0xff] }
0x1370   :  { %9244 = vtanh.f32 %v8837_v19  ;;  %v10835_v19 = vpack.c.bf16 %v6009_v52, %v6005_v51  ;;  %v6039_v51 = vld [vmem:[#allocation8 + $0x5e8] sm:$0xff]  ;;  %v10876_v52 = vpack.c.bf16 %v6032_v49, %v6028_v7 }
0x1377   :  { %v9239_v24 = vpop.eup %9238 }
0x1378   :  { %v9241_v3 = vpop.eup %9240  ;;  %v5705_v28 = vadd.f32 1.0, %v9239_v24  ;;  %v10837_v24 = vpack.c.bf16 %v6006_v11, %v6002_v59  ;;  %v10878_v59 = vpack.c.bf16 %v6039_v51, %v6035_v50  ;;  %v6037_v11 = vld [vmem:[#allocation8 + $0x5d8] sm:$0xff] }
0x1379   :  { %v5711_v36 = vadd.f32 1.0, %v9241_v3  ;;  %v9243_v15 = vpop.eup %9242  ;;  %v6004_v3 = vld [vmem:[#allocation8 + $0x4d0] sm:$0xff] }
0x137a   :  { %9246 = vrcp.f32 %v5705_v28  ;;  %v9245_v12 = vpop.eup %9244  ;;  %v5718_v45 = vadd.f32 1.0, %v9243_v15  ;;  %v6008_v28 = vld [vmem:[#allocation8 + $0x4f0] sm:$0xff]  ;;  %v6011_v15 = vld [vmem:[#allocation8 + $0x508] sm:$0xff] }
0x137b   :  { %9248 = vrcp.f32 %v5711_v36  ;;  %v10840_v36 = vpack.c.bf16 %v6008_v28, %v6004_v3  ;;  %v6041_v3 = vld [vmem:[#allocation8 + $0x5f8] sm:$0xff]  ;;  %v6034_v28 = vld [vmem:[#allocation8 + $0x5c0] sm:$0xff] }
0x137c   :  { %9250 = vrcp.f32 %v5718_v45  ;;  %v6010_v45 = vld [vmem:[#allocation8 + $0x500] sm:$0xff] }
0x1384   :  { %v9247_v5 = vpop.eup %9246 }
0x1385   :  { %v9249_v4 = vpop.eup %9248  ;;  %v5723_v29 = vmul.f32 %v9247_v5, %v9245_v12  ;;  %v6015_v12 = vld [vmem:[#allocation8 + $0x528] sm:$0xff]  ;;  %v6013_v5 = vld [vmem:[#allocation8 + $0x518] sm:$0xff] }
0x1386   :  { %v5722_v10 = vmul.f32 %v9249_v4, %v10746_v47  ;;  %v9251_v57 = vpop.eup %9250  ;;  %v5994_v47 = vld [vmem:[#allocation8 + $0x480] sm:$0xff]  ;;  %v10845_v4 = vpack.c.bf16 %v6015_v12, %v6011_v15  ;;  %v10881_v15 = vpack.c.bf16 %v6041_v3, %v6037_v11 }
0x1387   :  { %v10825_v48 = vpack.c.bf16 %v5998_v30, %v5994_v47  ;;  %v6026_v47 = vld [vmem:[#allocation8 + $0x580] sm:$0xff] }
0x1388   :  { %v10789_v1 = vadd.f32 %v5723_v29, %v5722_v10  ;;  %v6017_v29 = vld [vmem:[#allocation8 + $0x538] sm:$0xff]  ;;  %v6014_v10 = vld [vmem:[#allocation8 + $0x520] sm:$0xff] }
0x1389   :  { %v6030_v30 = vld [vmem:[#allocation8 + $0x5a0] sm:$0xff] }
0x138a   :  { %9252 = vtanh.f32 %v10789_v1  ;;  %v10872_v13 = vpack.c.bf16 %v6030_v30, %v6026_v47  ;;  %v6038_v12 = vld [vmem:[#allocation8 + $0x5e0] sm:$0xff] }
0x1394   :  { %v9253_v41 = vpop.eup %9252 }
0x1395   :  { %v5726_v58 = vmul.f32 %v9253_v41, %v9251_v57  ;;  %v10847_v57 = vpack.c.bf16 %v6017_v29, %v6013_v5  ;;  %v10849_v41 = vpack.c.bf16 %v6014_v10, %v6010_v45  ;;  %v6036_v5 = vld [vmem:[#allocation8 + $0x5d0] sm:$0xff]  ;;  %v10884_v45 = vpack.c.bf16 %v6038_v12, %v6034_v28 }
0x1396   :  { %v6040_v29 = vld [vmem:[#allocation8 + $0x5f0] sm:$0xff] }
0x1397   :  { %5729 = vst [vmem:[%s11047_s4 + $0x10] sm:$0xff] %v5726_v58  ;;  %5864 = vmatmul.mubr.f32.vlgmr.msra.gmra.mrb[38].mxu0 %v5726_v58  ;;  %5935 = vmatmul.mubr.f32.vlgmr.msra.gmra.mrb[38].mxu1 %v5726_v58  ;;  %v6012_v58 = vld [vmem:[#allocation8 + $0x510] sm:$0xff]  ;;  %v10888_v10 = vpack.c.bf16 %v6040_v29, %v6036_v5 }
0x1398   :  { %6106 = vmatprep.mubr.f32.mxu0 %v9386_v0  ;;  %6177 = vmatprep.mubr.f32.mxu1 %v9386_v0  ;;  %v10852_v61 = vpack.c.bf16 %v6016_v14, %v6012_v58 }
0x1399   :  { %8500 = vmatpush1.bf16.msra.mxu0 %v10801_v53  ;;  %8532 = vmatpush1.bf16.msra.mxu1 %v10804_v44 }
0x139a   :  { %8502 = vmatprep.subr.bf16.mxu0 %v10809_v33  ;;  %8534 = vmatprep.subr.bf16.mxu1 %v10811_v46 }
0x139d   :  { %8504 = vmatpush1.bf16.msra.mxu0 %v10813_v35  ;;  %8536 = vmatpush1.bf16.msra.mxu1 %v10816_v40 }
0x139e   :  { %8506 = vmatprep.subr.bf16.mxu0 %v10821_v56  ;;  %8538 = vmatprep.subr.bf16.mxu1 %v10823_v6 }
0x13a1   :  { %8508 = vmatpush1.bf16.msra.mxu0 %v10825_v48  ;;  %8540 = vmatpush1.bf16.msra.mxu1 %v10828_v63 }
0x13a2   :  { %8510 = vmatprep.subr.bf16.mxu0 %v10833_v22  ;;  %8542 = vmatprep.subr.bf16.mxu1 %v10835_v19 }
0x13a5   :  { %8512 = vmatpush1.bf16.msra.mxu0 %v10837_v24  ;;  %8544 = vmatpush1.bf16.msra.mxu1 %v10840_v36 }
0x13a6   :  { %8514 = vmatprep.subr.bf16.mxu0 %v10845_v4  ;;  %8546 = vmatprep.subr.bf16.mxu1 %v10847_v57 }
0x13a9   :  { %8516 = vmatpush1.bf16.msra.mxu0 %v10849_v41  ;;  %8548 = vmatpush1.bf16.msra.mxu1 %v10852_v61 }
0x13aa   :  { %8518 = vmatprep.subr.bf16.mxu0 %v10856_v60  ;;  %8550 = vmatprep.subr.bf16.mxu1 %v10859_v2 }
0x13ad   :  { %8520 = vmatpush1.bf16.msra.mxu0 %v10861_v18  ;;  %8552 = vmatpush1.bf16.msra.mxu1 %v10864_v23 }
0x13ae   :  { %8522 = vmatprep.subr.bf16.mxu0 %v10867_v54  ;;  %8554 = vmatprep.subr.bf16.mxu1 %v10869_v62 }
0x13b1   :  { %8524 = vmatpush1.bf16.msra.mxu0 %v10872_v13  ;;  %8556 = vmatpush1.bf16.msra.mxu1 %v10876_v52 }
0x13b2   :  { %8526 = vmatprep.subr.bf16.mxu0 %v10878_v59  ;;  %8558 = vmatprep.subr.bf16.mxu1 %v10881_v15 }
0x13b5   :  { %8528 = vmatpush1.bf16.msra.mxu0 %v10884_v45  ;;  %8560 = vmatpush1.bf16.msra.mxu1 %v10888_v10 }
0x13b6   :  { %8562 = vmatprep.subr.bf16.mxu0 %v10797_v9  ;;  %8594 = vmatprep.subr.bf16.mxu1 %v10799_v39 }
0x146a   :  { %v5865_v58 = vpop.f32.mrb[38].mxu0  ;;  %v5936_v14 = vpop.f32.mrb[38].mxu1 }
0x146b   :  { %v8823_v17 = vadd.f32 %v5865_v58, %v10686_v25  ;;  %v5867_v55 = vpop.f32.mrb[39].mxu0  ;;  %v5938_v21 = vpop.f32.mrb[39].mxu1  ;;  %v8839_v16 = vadd.f32 %v5936_v14, %v10698_v34 }
0x146c   :  { %v8824_v42 = vadd.f32 %v5867_v55, %v10689_v43  ;;  %v8840_v31 = vadd.f32 %v5938_v21, %v10694_v8 }
0x146d   :  { %v7010_v32 = vmul.f32 -1.442695, %v8823_v17 }
0x146e   :  { %v7011_v26 = vmul.f32 -1.442695, %v8824_v42  ;;  %v7012_v20 = vmul.f32 -1.442695, %v8840_v31 }
0x146f   :  { %9254 = vpow2.f32 %v7010_v32 }
0x1470   :  { %9256 = vpow2.f32 %v7011_v26 }
0x1471   :  { %9258 = vpow2.f32 %v7012_v20 }
0x1472   :  { %9260 = vtanh.f32 %v8839_v16 }
0x1479   :  { %v9255_v37 = vpop.eup %9254 }
0x147a   :  { %v9257_v27 = vpop.eup %9256  ;;  %v5948_v38 = vadd.f32 1.0, %v9255_v37 }
0x147b   :  { %v5954_v47 = vadd.f32 1.0, %v9257_v27  ;;  %v9259_v30 = vpop.eup %9258 }
0x147c   :  { %9262 = vrcp.f32 %v5948_v38  ;;  %v9261_v7 = vpop.eup %9260  ;;  %v5961_v11 = vadd.f32 1.0, %v9259_v30 }
0x147d   :  { %9264 = vrcp.f32 %v5954_v47 }
0x147e   :  { %9266 = vrcp.f32 %v5961_v11 }
0x1486   :  { %v9263_v49 = vpop.eup %9262 }
0x1487   :  { %v9265_v50 = vpop.eup %9264  ;;  %v5966_v51 = vmul.f32 %v9263_v49, %v9261_v7 }
0x1488   :  { %v5965_v3 = vmul.f32 %v9265_v50, %v10789_v1  ;;  %v9267_v12 = vpop.eup %9266 }
0x148a   :  { %v10900_v28 = vadd.f32 %v5966_v51, %v5965_v3 }
0x148c   :  { %9268 = vtanh.f32 %v10900_v28 }
0x1496   :  { %v9269_v5 = vpop.eup %9268 }
0x1497   :  { %v5969_v29 = vmul.f32 %v9269_v5, %v9267_v12 }
0x1499   :  { %5972 = vst [vmem:[%s11047_s4 + $0x18] sm:$0xff] %v5969_v29  ;;  %6107 = vmatmul.mubr.f32.vlgmr.msra.gmra.mrb[40].mxu0 %v5969_v29  ;;  %6178 = vmatmul.mubr.f32.vlgmr.msra.gmra.mrb[40].mxu1 %v5969_v29 }
0x149a   :  { %8564 = vmatpush1.bf16.msra.mxu0 %v10801_v53  ;;  %8596 = vmatpush1.bf16.msra.mxu1 %v10804_v44 }
0x149b   :  { %8566 = vmatprep.subr.bf16.mxu0 %v10809_v33  ;;  %8598 = vmatprep.subr.bf16.mxu1 %v10811_v46 }
0x149c   :  { %6349 = vmatprep.mubr.f32.mxu0 %v9386_v0  ;;  %6420 = vmatprep.mubr.f32.mxu1 %v9386_v0 }
0x149e   :  { %8568 = vmatpush1.bf16.msra.mxu0 %v10813_v35  ;;  %8600 = vmatpush1.bf16.msra.mxu1 %v10816_v40 }
0x149f   :  { %8570 = vmatprep.subr.bf16.mxu0 %v10821_v56  ;;  %8602 = vmatprep.subr.bf16.mxu1 %v10823_v6 }
0x14a2   :  { %8572 = vmatpush1.bf16.msra.mxu0 %v10825_v48  ;;  %8604 = vmatpush1.bf16.msra.mxu1 %v10828_v63 }
0x14a3   :  { %8574 = vmatprep.subr.bf16.mxu0 %v10833_v22  ;;  %8606 = vmatprep.subr.bf16.mxu1 %v10835_v19 }
0x14a6   :  { %8576 = vmatpush1.bf16.msra.mxu0 %v10837_v24  ;;  %8608 = vmatpush1.bf16.msra.mxu1 %v10840_v36 }
0x14a7   :  { %8578 = vmatprep.subr.bf16.mxu0 %v10845_v4  ;;  %8610 = vmatprep.subr.bf16.mxu1 %v10847_v57 }
0x14aa   :  { %8580 = vmatpush1.bf16.msra.mxu0 %v10849_v41  ;;  %8612 = vmatpush1.bf16.msra.mxu1 %v10852_v61 }
0x14ab   :  { %8582 = vmatprep.subr.bf16.mxu0 %v10856_v60  ;;  %8614 = vmatprep.subr.bf16.mxu1 %v10859_v2 }
0x14ae   :  { %8584 = vmatpush1.bf16.msra.mxu0 %v10861_v18  ;;  %8616 = vmatpush1.bf16.msra.mxu1 %v10864_v23 }
0x14af   :  { %8586 = vmatprep.subr.bf16.mxu0 %v10867_v54  ;;  %8618 = vmatprep.subr.bf16.mxu1 %v10869_v62 }
0x14b2   :  { %8588 = vmatpush1.bf16.msra.mxu0 %v10872_v13  ;;  %8620 = vmatpush1.bf16.msra.mxu1 %v10876_v52 }
0x14b3   :  { %8590 = vmatprep.subr.bf16.mxu0 %v10878_v59  ;;  %8622 = vmatprep.subr.bf16.mxu1 %v10881_v15 }
0x14b6   :  { %8592 = vmatpush1.bf16.msra.mxu0 %v10884_v45  ;;  %8624 = vmatpush1.bf16.msra.mxu1 %v10888_v10 }
0x14b7   :  { %8626 = vmatprep.subr.bf16.mxu0 %v10797_v9  ;;  %8658 = vmatprep.subr.bf16.mxu1 %v10799_v39 }
0x156c   :  { %v6108_v1 = vpop.f32.mrb[40].mxu0  ;;  %v6179_v58 = vpop.f32.mrb[40].mxu1 }
0x156d   :  { %v8825_v14 = vadd.f32 %v6108_v1, %v10686_v25  ;;  %v6110_v17 = vpop.f32.mrb[41].mxu0  ;;  %v6181_v55 = vpop.f32.mrb[41].mxu1  ;;  %v8841_v20 = vadd.f32 %v6179_v58, %v10698_v34 }
0x156e   :  { %v8826_v21 = vadd.f32 %v6110_v17, %v10689_v43  ;;  %v8842_v26 = vadd.f32 %v6181_v55, %v10694_v8 }
0x156f   :  { %v7013_v42 = vmul.f32 -1.442695, %v8825_v14 }
0x1570   :  { %v7014_v32 = vmul.f32 -1.442695, %v8826_v21  ;;  %v7015_v31 = vmul.f32 -1.442695, %v8842_v26 }
0x1571   :  { %9270 = vpow2.f32 %v7013_v42 }
0x1572   :  { %9272 = vpow2.f32 %v7014_v32 }
0x1573   :  { %9274 = vpow2.f32 %v7015_v31 }
0x1574   :  { %9276 = vtanh.f32 %v8841_v20 }
0x157b   :  { %v9271_v16 = vpop.eup %9270 }
0x157c   :  { %v9273_v37 = vpop.eup %9272  ;;  %v6191_v27 = vadd.f32 1.0, %v9271_v16 }
0x157d   :  { %v6197_v38 = vadd.f32 1.0, %v9273_v37  ;;  %v9275_v47 = vpop.eup %9274 }
0x157e   :  { %9278 = vrcp.f32 %v6191_v27  ;;  %v9277_v30 = vpop.eup %9276  ;;  %v6204_v51 = vadd.f32 1.0, %v9275_v47 }
0x157f   :  { %9280 = vrcp.f32 %v6197_v38 }
0x1580   :  { %9282 = vrcp.f32 %v6204_v51 }
0x1588   :  { %v9279_v7 = vpop.eup %9278 }
0x1589   :  { %v9281_v49 = vpop.eup %9280  ;;  %v6209_v50 = vmul.f32 %v9279_v7, %v9277_v30 }
0x158a   :  { %v6208_v11 = vmul.f32 %v9281_v49, %v10900_v28  ;;  %v9283_v12 = vpop.eup %9282 }
0x158c   :  { %v10945_v3 = vadd.f32 %v6209_v50, %v6208_v11 }
0x158e   :  { %9284 = vtanh.f32 %v10945_v3 }
0x1598   :  { %v9285_v5 = vpop.eup %9284 }
0x1599   :  { %v6212_v29 = vmul.f32 %v9285_v5, %v9283_v12 }
0x159b   :  { %6215 = vst [vmem:[%s11047_s4 + $0x20] sm:$0xff] %v6212_v29  ;;  %6350 = vmatmul.mubr.f32.vlgmr.msra.gmra.mrb[42].mxu0 %v6212_v29  ;;  %6421 = vmatmul.mubr.f32.vlgmr.msra.gmra.mrb[42].mxu1 %v6212_v29 }
0x159c   :  { %8628 = vmatpush1.bf16.msra.mxu0 %v10801_v53  ;;  %8660 = vmatpush1.bf16.msra.mxu1 %v10804_v44 }
0x159d   :  { %8630 = vmatprep.subr.bf16.mxu0 %v10809_v33  ;;  %8662 = vmatprep.subr.bf16.mxu1 %v10811_v46 }
0x159e   :  { %6592 = vmatprep.mubr.f32.mxu0 %v9386_v0  ;;  %6663 = vmatprep.mubr.f32.mxu1 %v9386_v0 }
0x15a0   :  { %8632 = vmatpush1.bf16.msra.mxu0 %v10813_v35  ;;  %8664 = vmatpush1.bf16.msra.mxu1 %v10816_v40 }
0x15a1   :  { %8634 = vmatprep.subr.bf16.mxu0 %v10821_v56  ;;  %8666 = vmatprep.subr.bf16.mxu1 %v10823_v6 }
0x15a4   :  { %8636 = vmatpush1.bf16.msra.mxu0 %v10825_v48  ;;  %8668 = vmatpush1.bf16.msra.mxu1 %v10828_v63 }
0x15a5   :  { %8638 = vmatprep.subr.bf16.mxu0 %v10833_v22  ;;  %8670 = vmatprep.subr.bf16.mxu1 %v10835_v19 }
0x15a8   :  { %8640 = vmatpush1.bf16.msra.mxu0 %v10837_v24  ;;  %8672 = vmatpush1.bf16.msra.mxu1 %v10840_v36 }
0x15a9   :  { %8642 = vmatprep.subr.bf16.mxu0 %v10845_v4  ;;  %8674 = vmatprep.subr.bf16.mxu1 %v10847_v57 }
0x15ac   :  { %8644 = vmatpush1.bf16.msra.mxu0 %v10849_v41  ;;  %8676 = vmatpush1.bf16.msra.mxu1 %v10852_v61 }
0x15ad   :  { %8646 = vmatprep.subr.bf16.mxu0 %v10856_v60  ;;  %8678 = vmatprep.subr.bf16.mxu1 %v10859_v2 }
0x15b0   :  { %8648 = vmatpush1.bf16.msra.mxu0 %v10861_v18  ;;  %8680 = vmatpush1.bf16.msra.mxu1 %v10864_v23 }
0x15b1   :  { %8650 = vmatprep.subr.bf16.mxu0 %v10867_v54  ;;  %8682 = vmatprep.subr.bf16.mxu1 %v10869_v62 }
0x15b4   :  { %8652 = vmatpush1.bf16.msra.mxu0 %v10872_v13  ;;  %8684 = vmatpush1.bf16.msra.mxu1 %v10876_v52 }
0x15b5   :  { %8654 = vmatprep.subr.bf16.mxu0 %v10878_v59  ;;  %8686 = vmatprep.subr.bf16.mxu1 %v10881_v15 }
0x15b8   :  { %8656 = vmatpush1.bf16.msra.mxu0 %v10884_v45  ;;  %8688 = vmatpush1.bf16.msra.mxu1 %v10888_v10 }
0x15b9   :  { %8690 = vmatprep.subr.bf16.mxu0 %v10797_v9  ;;  %8722 = vmatprep.subr.bf16.mxu1 %v10799_v39 }
0x166e   :  { %v6351_v28 = vpop.f32.mrb[42].mxu0  ;;  %v6422_v1 = vpop.f32.mrb[42].mxu1 }
0x166f   :  { %v8827_v58 = vadd.f32 %v6351_v28, %v10686_v25  ;;  %v6353_v14 = vpop.f32.mrb[43].mxu0  ;;  %v6424_v17 = vpop.f32.mrb[43].mxu1  ;;  %v8843_v31 = vadd.f32 %v6422_v1, %v10698_v34 }
0x1670   :  { %v8828_v55 = vadd.f32 %v6353_v14, %v10689_v43  ;;  %v8844_v32 = vadd.f32 %v6424_v17, %v10694_v8 }
0x1671   :  { %v7016_v21 = vmul.f32 -1.442695, %v8827_v58 }
0x1672   :  { %v7017_v42 = vmul.f32 -1.442695, %v8828_v55  ;;  %v7018_v26 = vmul.f32 -1.442695, %v8844_v32 }
0x1673   :  { %9286 = vpow2.f32 %v7016_v21 }
0x1674   :  { %9288 = vpow2.f32 %v7017_v42 }
0x1675   :  { %9290 = vpow2.f32 %v7018_v26 }
0x1676   :  { %9292 = vtanh.f32 %v8843_v31 }
0x167d   :  { %v9287_v9 = vpop.eup %9286 }
0x167e   :  { %v9289_v20 = vpop.eup %9288  ;;  %v6434_v39 = vadd.f32 1.0, %v9287_v9 }
0x167f   :  { %v6440_v16 = vadd.f32 1.0, %v9289_v20  ;;  %v9291_v37 = vpop.eup %9290 }
0x1680   :  { %9294 = vrcp.f32 %v6434_v39  ;;  %v9293_v27 = vpop.eup %9292  ;;  %v6447_v7 = vadd.f32 1.0, %v9291_v37 }
0x1681   :  { %9296 = vrcp.f32 %v6440_v16 }
0x1682   :  { %9298 = vrcp.f32 %v6447_v7 }
0x168a   :  { %v9295_v38 = vpop.eup %9294 }
0x168b   :  { %v9297_v47 = vpop.eup %9296  ;;  %v6452_v30 = vmul.f32 %v9295_v38, %v9293_v27 }
0x168c   :  { %v6451_v49 = vmul.f32 %v9297_v47, %v10945_v3  ;;  %v9299_v51 = vpop.eup %9298 }
0x168e   :  { %v10990_v50 = vadd.f32 %v6452_v30, %v6451_v49 }
0x1690   :  { %9300 = vtanh.f32 %v10990_v50 }
0x169a   :  { %v9301_v11 = vpop.eup %9300 }
0x169b   :  { %v6455_v12 = vmul.f32 %v9301_v11, %v9299_v51 }
0x169d   :  { %6458 = vst [vmem:[%s11047_s4 + $0x28] sm:$0xff] %v6455_v12  ;;  %6593 = vmatmul.mubr.f32.vlgmr.msra.gmra.mrb[44].mxu0 %v6455_v12  ;;  %6664 = vmatmul.mubr.f32.vlgmr.msra.gmra.mrb[44].mxu1 %v6455_v12 }
0x169e   :  { %8692 = vmatpush1.bf16.msra.mxu0 %v10801_v53  ;;  %8724 = vmatpush1.bf16.msra.mxu1 %v10804_v44 }
0x169f   :  { %8694 = vmatprep.subr.bf16.mxu0 %v10809_v33  ;;  %8726 = vmatprep.subr.bf16.mxu1 %v10811_v46 }
0x16a0   :  { %6835 = vmatprep.mubr.f32.mxu0 %v9386_v0  ;;  %6906 = vmatprep.mubr.f32.mxu1 %v9386_v0 }
0x16a2   :  { %8696 = vmatpush1.bf16.msra.mxu0 %v10813_v35  ;;  %8728 = vmatpush1.bf16.msra.mxu1 %v10816_v40 }
0x16a3   :  { %8698 = vmatprep.subr.bf16.mxu0 %v10821_v56  ;;  %8730 = vmatprep.subr.bf16.mxu1 %v10823_v6 }
0x16a6   :  { %8700 = vmatpush1.bf16.msra.mxu0 %v10825_v48  ;;  %8732 = vmatpush1.bf16.msra.mxu1 %v10828_v63 }
0x16a7   :  { %8702 = vmatprep.subr.bf16.mxu0 %v10833_v22  ;;  %8734 = vmatprep.subr.bf16.mxu1 %v10835_v19 }
0x16aa   :  { %8704 = vmatpush1.bf16.msra.mxu0 %v10837_v24  ;;  %8736 = vmatpush1.bf16.msra.mxu1 %v10840_v36 }
0x16ab   :  { %8706 = vmatprep.subr.bf16.mxu0 %v10845_v4  ;;  %8738 = vmatprep.subr.bf16.mxu1 %v10847_v57 }
0x16ae   :  { %8708 = vmatpush1.bf16.msra.mxu0 %v10849_v41  ;;  %8740 = vmatpush1.bf16.msra.mxu1 %v10852_v61 }
0x16af   :  { %8710 = vmatprep.subr.bf16.mxu0 %v10856_v60  ;;  %8742 = vmatprep.subr.bf16.mxu1 %v10859_v2 }
0x16b2   :  { %8712 = vmatpush1.bf16.msra.mxu0 %v10861_v18  ;;  %8744 = vmatpush1.bf16.msra.mxu1 %v10864_v23 }
0x16b3   :  { %8714 = vmatprep.subr.bf16.mxu0 %v10867_v54  ;;  %8746 = vmatprep.subr.bf16.mxu1 %v10869_v62 }
0x16b6   :  { %8716 = vmatpush1.bf16.msra.mxu0 %v10872_v13  ;;  %8748 = vmatpush1.bf16.msra.mxu1 %v10876_v52 }
0x16b7   :  { %8718 = vmatprep.subr.bf16.mxu0 %v10878_v59  ;;  %8750 = vmatprep.subr.bf16.mxu1 %v10881_v15 }
0x16ba   :  { %8720 = vmatpush1.bf16.msra.mxu0 %v10884_v45  ;;  %8752 = vmatpush1.bf16.msra.mxu1 %v10888_v10 }
0x1770   :  { %v6594_v0 = vpop.f32.mrb[44].mxu0  ;;  %v6665_v53 = vpop.f32.mrb[44].mxu1 }
0x1771   :  { %v8829_v44 = vadd.f32 %v6594_v0, %v10686_v25  ;;  %v6596_v33 = vpop.f32.mrb[45].mxu0  ;;  %v6667_v46 = vpop.f32.mrb[45].mxu1  ;;  %v8845_v63 = vadd.f32 %v6665_v53, %v10698_v34 }
0x1772   :  { %v8830_v35 = vadd.f32 %v6596_v33, %v10689_v43  ;;  %v8846_v6 = vadd.f32 %v6667_v46, %v10694_v8 }
0x1773   :  { %v7019_v40 = vmul.f32 -1.442695, %v8829_v44 }
0x1774   :  { %v7020_v56 = vmul.f32 -1.442695, %v8830_v35  ;;  %v7021_v48 = vmul.f32 -1.442695, %v8846_v6 }
0x1775   :  { %9302 = vpow2.f32 %v7019_v40 }
0x1776   :  { %9304 = vpow2.f32 %v7020_v56 }
0x1777   :  { %9306 = vpow2.f32 %v7021_v48 }
0x1778   :  { %9308 = vtanh.f32 %v8845_v63 }
0x177f   :  { %v9303_v22 = vpop.eup %9302 }
0x1780   :  { %v9305_v19 = vpop.eup %9304  ;;  %v6677_v24 = vadd.f32 1.0, %v9303_v22 }
0x1781   :  { %v6683_v36 = vadd.f32 1.0, %v9305_v19  ;;  %v9307_v4 = vpop.eup %9306 }
0x1782   :  { %9310 = vrcp.f32 %v6677_v24  ;;  %v9309_v57 = vpop.eup %9308  ;;  %v6690_v2 = vadd.f32 1.0, %v9307_v4 }
0x1783   :  { %9312 = vrcp.f32 %v6683_v36 }
0x1784   :  { %9314 = vrcp.f32 %v6690_v2 }
0x178c   :  { %v9311_v41 = vpop.eup %9310 }
0x178d   :  { %v9313_v61 = vpop.eup %9312  ;;  %v6695_v60 = vmul.f32 %v9311_v41, %v9309_v57 }
0x178e   :  { %v6694_v18 = vmul.f32 %v9313_v61, %v10990_v50  ;;  %v9315_v54 = vpop.eup %9314 }
0x1790   :  { %v6696_v23 = vadd.f32 %v6695_v60, %v6694_v18 }
0x1792   :  { %9316 = vtanh.f32 %v6696_v23 }
0x179c   :  { %v9317_v62 = vpop.eup %9316 }
0x179d   :  { %v6698_v13 = vmul.f32 %v9317_v62, %v9315_v54 }
0x179f   :  { %6701 = vst [vmem:[%s11047_s4 + $0x30] sm:$0xff] %v6698_v13  ;;  %6836 = vmatmul.mubr.f32.vlgmr.msra.gmra.mrb[46].mxu0 %v6698_v13  ;;  %6907 = vmatmul.mubr.f32.vlgmr.msra.gmra.mrb[46].mxu1 %v6698_v13 }
0x1872   :  { %v6837_v52 = vpop.f32.mrb[46].mxu0  ;;  %v6908_v59 = vpop.f32.mrb[46].mxu1 }
0x1873   :  { %v8831_v15 = vadd.f32 %v6837_v52, %v10686_v25  ;;  %v6839_v45 = vpop.f32.mrb[47].mxu0  ;;  %v6910_v10 = vpop.f32.mrb[47].mxu1  ;;  %v8847_v58 = vadd.f32 %v6908_v59, %v10698_v34 }
0x1874   :  { %v8832_v3 = vadd.f32 %v6839_v45, %v10689_v43  ;;  %v8848_v28 = vadd.f32 %v6910_v10, %v10694_v8 }
0x1875   :  { %v7022_v5 = vmul.f32 -1.442695, %v8831_v15 }
0x1876   :  { %v7023_v29 = vmul.f32 -1.442695, %v8832_v3  ;;  %v7024_v1 = vmul.f32 -1.442695, %v8848_v28 }
0x1877   :  { %9318 = vpow2.f32 %v7022_v5 }
0x1878   :  { %9320 = vpow2.f32 %v7023_v29 }
0x1879   :  { %9322 = vpow2.f32 %v7024_v1 }
0x187a   :  { %9324 = vtanh.f32 %v8847_v58 }
0x1881   :  { %v9319_v14 = vpop.eup %9318 }
0x1882   :  { %v9321_v17 = vpop.eup %9320  ;;  %v6920_v55 = vadd.f32 1.0, %v9319_v14 }
0x1883   :  { %v6926_v21 = vadd.f32 1.0, %v9321_v17  ;;  %v9323_v25 = vpop.eup %9322 }
0x1884   :  { %9326 = vrcp.f32 %v6920_v55  ;;  %v9325_v42 = vpop.eup %9324  ;;  %v6933_v31 = vadd.f32 1.0, %v9323_v25 }
0x1885   :  { %9328 = vrcp.f32 %v6926_v21 }
0x1886   :  { %9330 = vrcp.f32 %v6933_v31 }
0x188e   :  { %v9327_v43 = vpop.eup %9326 }
0x188f   :  { %v9329_v32 = vpop.eup %9328  ;;  %v6938_v26 = vmul.f32 %v9327_v43, %v9325_v42 }
0x1890   :  { %v6937_v9 = vmul.f32 %v9329_v32, %v6696_v23  ;;  %v9331_v8 = vpop.eup %9330 }
0x1892   :  { %v6939_v20 = vadd.f32 %v6938_v26, %v6937_v9 }
0x1894   :  { %9332 = vtanh.f32 %v6939_v20 }
0x189e   :  { %v9333_v34 = vpop.eup %9332 }
0x189f   :  { %v6941_v39 = vmul.f32 %v9333_v34, %v9331_v8 }
0x18a1   :  { %6944 = vst [vmem:[%s11047_s4 + $0x38] sm:$0xff] %v6941_v39 }
0x18a2   :  { %6949 = vsyncpa [#allocation7], 1 }
0x18a3   :  { %6950 = vsyncpa [#allocation9], 1 }

</bundles_post_ra>
